<compile_context>
chip_gen: v7x
topology: tpu7x:2x2x1
jax: 0.10.0
libtpu: 0.0.40
codegen_flags: <defaults>
</compile_context>

<pallas_src>
import functools

import jax
import jax.numpy as jnp
from jax.experimental import pallas as pl
from jax.experimental.pallas import tpu as pltpu

BN_EPS = 1e-5
KSIZE = 3          # conv3x3
PAD = 1            # conv3x3 padding in BasicBlock
_SCR_COL0 = 8      # sublane-aligned column where conv1's output starts in scratch


# --------------------------------------------------------------------------
# In-kernel helpers (tap loops over VMEM-resident blocks; no im2col)
# --------------------------------------------------------------------------

def _conv3x3_from_phases(x_ref, w_ref, *, stride, oh, ow):
    """3x3 conv over the space-to-depth phase block of ONE image.

    x_ref: (stride*stride, PH, PW, Cin) f32 (single phase if stride == 1).
    w_ref: (9, Cin, Cout) bf16, (kh, kw)-major tap order.
    Returns the f32 (oh*ow, Cout) MXU accumulation.
    """
    cin, cout = w_ref.shape[1], w_ref.shape[2]
    acc = jnp.zeros((oh * ow, cout), jnp.float32)
    for kh in range(KSIZE):
        for kw in range(KSIZE):
            p = (kh % stride) * stride + (kw % stride)   # which phase
            h0, w0 = kh // stride, kw // stride           # window offset in phase
            win = x_ref[p, h0:h0 + oh, w0:w0 + ow, :]     # (oh, ow, cin) f32
            a = win.reshape(oh * ow, cin).astype(jnp.bfloat16)
            acc = acc + jnp.dot(a, w_ref[kh * KSIZE + kw],
                                preferred_element_type=jnp.float32)
    return acc


def _conv3x3_from_scratch(y_scr, w_ref, *, oh, ow):
    """3x3 stride-1 conv reading conv1's output from the zero-padded scratch."""
    cin, cout = w_ref.shape[1], w_ref.shape[2]
    acc = jnp.zeros((oh * ow, cout), jnp.float32)
    for kh in range(KSIZE):
        for kw in range(KSIZE):
            c0 = _SCR_COL0 - PAD + kw
            win = y_scr[kh:kh + oh, c0:c0 + ow, :]        # (oh, ow, cin) f32
            a = win.reshape(oh * ow, cin).astype(jnp.bfloat16)
            acc = acc + jnp.dot(a, w_ref[kh * KSIZE + kw],
                                preferred_element_type=jnp.float32)
    return acc


def _conv1_bn_relu_into_scratch(x_ref, w1_ref, s1_ref, b1_ref, y_scr, *,
                                stride, oh, ow):
    planes = w1_ref.shape[2]
    y = _conv3x3_from_phases(x_ref, w1_ref, stride=stride, oh=oh, ow=ow)
    y = jnp.maximum(y * s1_ref[...] + b1_ref[...], 0.0)
    y_scr[...] = jnp.zeros_like(y_scr)                    # zero halo ring
    # Row halo lives on the untiled first axis; column offset _SCR_COL0 is a
    # sublane-tile multiple -> this partial store is fully aligned/unmasked.
    y_scr[PAD:PAD + oh, _SCR_COL0:_SCR_COL0 + ow, :] = y.reshape(oh, ow, planes)


# --------------------------------------------------------------------------
# Fused BasicBlock kernels (identity residual / 1x1-conv downsample residual)
# --------------------------------------------------------------------------

def _basic_block_identity_kernel(x_ref, w1_ref, s1_ref, b1_ref,
                                 w2_ref, s2_ref, b2_ref, o_ref, y_scr,
                                 *, oh, ow):
    planes = w2_ref.shape[2]
    _conv1_bn_relu_into_scratch(x_ref, w1_ref, s1_ref, b1_ref, y_scr,
                                stride=1, oh=oh, ow=ow)
    out = _conv3x3_from_scratch(y_scr, w2_ref, oh=oh, ow=ow)
    out = out * s2_ref[...] + b2_ref[...]
    res = x_ref[0, PAD:PAD + oh, PAD:PAD + ow, :]          # identity residual (f32)
    out = out + res.reshape(oh * ow, planes)
    out = jnp.maximum(out, 0.0)
    o_ref[...] = out.reshape(o_ref.shape).astype(o_ref.dtype)


def _basic_block_downsample_kernel(x_ref, w1_ref, s1_ref, b1_ref,
                                   w2_ref, s2_ref, b2_ref,
                                   wd_ref, sd_ref, bd_ref, o_ref, y_scr,
                                   *, stride, oh, ow):
    cin = w1_ref.shape[1]
    _conv1_bn_relu_into_scratch(x_ref, w1_ref, s1_ref, b1_ref, y_scr,
                                stride=stride, oh=oh, ow=ow)
    out = _conv3x3_from_scratch(y_scr, w2_ref, oh=oh, ow=ow)
    out = out * s2_ref[...] + b2_ref[...]
    # 1x1 stride-s downsample conv: x[::s, ::s] lives in phase (r, r) of the
    # padded phase block at offset (q, q), with r = PAD % s, q = PAD // s.
    r, q = PAD % stride, PAD // stride
    p = r * stride + r
    rsrc = x_ref[p, q:q + oh, q:q + ow, :].reshape(oh * ow, cin)
    res = jnp.dot(rsrc.astype(jnp.bfloat16), wd_ref[...],
                  preferred_element_type=jnp.float32)
    out = out + (res * sd_ref[...] + bd_ref[...])
    out = jnp.maximum(out, 0.0)
    o_ref[...] = out.reshape(o_ref.shape).astype(o_ref.dtype)


# --------------------------------------------------------------------------
# Wrapper: whole BasicBlock in ONE pallas_call (grid over batch)
# --------------------------------------------------------------------------

def basic_block(x_nhwc, blk):
    """Pallas forward of one BasicBlock on an NHWC activation (f32 in/out)."""
    stride = int(blk["stride"])
    w1 = blk["conv1"]                                   # (planes, inplanes, 3, 3)
    w2 = blk["conv2"]                                   # (planes, planes, 3, 3)
    planes, inplanes = int(w1.shape[0]), int(w1.shape[1])
    N, H, W, Cin = x_nhwc.shape
    assert Cin == inplanes
    OH = (H + 2 * PAD - KSIZE) // stride + 1
    OW = (W + 2 * PAD - KSIZE) // stride + 1

    # Zero-pad + (for stride > 1) space-to-depth phase relayout: a 1x-sized
    # copy instead of a 9x im2col expansion; XLA fuses it into one HBM pass.
    xf = jnp.pad(x_nhwc.astype(jnp.float32),
                 ((0, 0), (PAD, PAD), (PAD, PAD), (0, 0)))
    if stride == 1:
        nph = 1
        xph = xf                                        # (N, Hp, Wp, Cin)
    else:
        Hp, Wp = xf.shape[1], xf.shape[2]
        assert Hp % stride == 0 and Wp % stride == 0
        nph = stride * stride
        phases = [xf[:, ph::stride, pw::stride, :]
                  for ph in range(stride) for pw in range(stride)]
        xph = jnp.stack(phases, axis=1).reshape(N * nph, Hp // stride,
                                                Wp // stride, Cin)
    PH, PW = xph.shape[1], xph.shape[2]

    # Weights as (taps, Cin, Cout) bf16; BN folded to f32 scale/shift rows.
    w1t = jnp.transpose(w1, (2, 3, 1, 0)).reshape(KSIZE * KSIZE, Cin, planes)
    w1t = w1t.astype(jnp.bfloat16)
    w2t = jnp.transpose(w2, (2, 3, 1, 0)).reshape(KSIZE * KSIZE, planes, planes)
    w2t = w2t.astype(jnp.bfloat16)
    s1, b1 = _bn_scale_shift(blk["bn1"])
    s2, b2 = _bn_scale_shift(blk["bn2"])
    s1 = s1.reshape(1, planes).astype(jnp.float32)
    b1 = b1.reshape(1, planes).astype(jnp.float32)
    s2 = s2.reshape(1, planes).astype(jnp.float32)
    b2 = b2.reshape(1, planes).astype(jnp.float32)

    gi3 = lambda n: (0, 0, 0)     # grid-invariant: fetched once, kept resident
    gi2 = lambda n: (0, 0)
    in_specs = [
        pl.BlockSpec((nph, PH, PW, Cin), lambda n: (n, 0, 0, 0)),
        pl.BlockSpec((KSIZE * KSIZE, Cin, planes), gi3),
        pl.BlockSpec((1, planes), gi2),
        pl.BlockSpec((1, planes), gi2),
        pl.BlockSpec((KSIZE * KSIZE, planes, planes), gi3),
        pl.BlockSpec((1, planes), gi2),
        pl.BlockSpec((1, planes), gi2),
    ]
    args = [xph, w1t, s1, b1, w2t, s2, b2]
    flops = 2 * N * OH * OW * KSIZE * KSIZE * (Cin * planes + planes * planes)

    if blk["downsample"] is not None:
        wd = blk["downsample"]["conv"]                  # (planes, Cin, 1, 1)
        wdt = jnp.transpose(wd, (2, 3, 1, 0)).reshape(Cin, planes)
        wdt = wdt.astype(jnp.bfloat16)
        sd, bd = _bn_scale_shift(blk["downsample"]["bn"])
        sd = sd.reshape(1, planes).astype(jnp.float32)
        bd = bd.reshape(1, planes).astype(jnp.float32)
        in_specs += [pl.BlockSpec((Cin, planes), gi2),
                     pl.BlockSpec((1, planes), gi2),
                     pl.BlockSpec((1, planes), gi2)]
        args += [wdt, sd, bd]
        kernel = functools.partial(_basic_block_downsample_kernel,
                                   stride=stride, oh=OH, ow=OW)
        flops += 2 * N * OH * OW * Cin * planes
    else:
        assert stride == 1 and Cin == planes
        kernel = functools.partial(_basic_block_identity_kernel, oh=OH, ow=OW)

    scr_shape = (OH + 2 * PAD, OW + 2 * _SCR_COL0, planes)
    scr_bytes = scr_shape[0] * scr_shape[1] * scr_shape[2] * 4
    out_blk_bytes = OH * OW * planes * 4
    per_step = (nph * PH * PW * Cin * 4 + int(w1t.size) * 2 + int(w2t.size) * 2
                + 8 * planes * 4 + out_blk_bytes + scr_bytes)
    if blk["downsample"] is not None:
        per_step += Cin * planes * 2
    vmem_limit = int(min(48 << 20, max(16 << 20, 3 * per_step)))

    bytes_accessed = int(sum(int(a.size) * a.dtype.itemsize for a in args)
                         + N * out_blk_bytes)
    cost = pl.CostEstimate(flops=int(flops), transcendentals=0,
                           bytes_accessed=bytes_accessed)

    out = pl.pallas_call(
        kernel,
        out_shape=jax.ShapeDtypeStruct((N, OH, OW, planes), jnp.float32),
        grid=(N,),
        in_specs=in_specs,
        out_specs=pl.BlockSpec((1, OH, OW, planes), lambda n: (n, 0, 0, 0)),
        scratch_shapes=[pltpu.VMEM(scr_shape, jnp.float32)],
        compiler_params=pltpu.CompilerParams(
            dimension_semantics=("parallel",),    # v7x: both TCs split the batch
            vmem_limit_bytes=vmem_limit),
        cost_estimate=cost,
    )(*args)
    return out


# --------------------------------------------------------------------------
# BasicBlock parameters (deterministic, mirrors nn.Module __init__) + forward
# --------------------------------------------------------------------------

def _bn_params(c):
    return dict(gamma=jnp.ones((c,), jnp.float32),
                beta=jnp.zeros((c,), jnp.float32),
                mean=jnp.zeros((c,), jnp.float32),
                var=jnp.ones((c,), jnp.float32))


def _bn_scale_shift(bn):
    scale = bn["gamma"] / jnp.sqrt(bn["var"] + BN_EPS)
    shift = bn["beta"] - bn["mean"] * scale
    return scale, shift


def _conv_w(key, cout, cin, k):
    n = k * k * cout        # Kaiming fan-out init as in the reference ResNet
    return jax.random.normal(key, (cout, cin, k, k), jnp.float32) * (2.0 / n) ** 0.5


def make_basic_block_params(key, inplanes, planes, stride=1):
    k1, k2, k3 = jax.random.split(key, 3)
    blk = {
        "stride": stride,
        "conv1": _conv_w(k1, planes, inplanes, 3),
        "bn1": _bn_params(planes),
        "conv2": _conv_w(k2, planes, planes, 3),
        "bn2": _bn_params(planes),
        "downsample": None,
    }
    if stride != 1 or inplanes != planes:
        blk["downsample"] = {"conv": _conv_w(k3, planes, inplanes, 1),
                             "bn": _bn_params(planes)}
    return blk


def basic_block_forward(blk, x_nchw):
    x = jnp.transpose(x_nchw, (0, 2, 3, 1)).astype(jnp.float32)   # NCHW -> NHWC
    y = basic_block(x, blk)
    return jnp.transpose(y, (0, 3, 1, 2))                          # back to NCHW


# --------------------------------------------------------------------------
# Pure-JAX reference (same bf16 matmul-operand rounding) for correctness check
# --------------------------------------------------------------------------

def _conv_ref(x_nhwc, w_oihw, stride, padding):
    return jax.lax.conv_general_dilated(
        x_nhwc.astype(jnp.bfloat16), w_oihw.astype(jnp.bfloat16),
        window_strides=(stride, stride),
        padding=((padding, padding), (padding, padding)),
        dimension_numbers=("NHWC", "OIHW", "NHWC"),
        preferred_element_type=jnp.float32)


def basic_block_ref(x_nhwc, blk):
    stride = blk["stride"]
    s1, b1 = _bn_scale_shift(blk["bn1"])
    y = jnp.maximum(_conv_ref(x_nhwc, blk["conv1"], stride, 1) * s1 + b1, 0.0)
    s2, b2 = _bn_scale_shift(blk["bn2"])
    out = _conv_ref(y, blk["conv2"], 1, 1) * s2 + b2
    if blk["downsample"] is not None:
        sd, bd = _bn_scale_shift(blk["downsample"]["bn"])
        res = _conv_ref(x_nhwc, blk["downsample"]["conv"], stride, 0) * sd + bd
    else:
        res = x_nhwc.astype(jnp.float32)
    return jnp.maximum(out + res, 0.0)


# --------------------------------------------------------------------------
# Main
# --------------------------------------------------------------------------

if __name__ == "__main__":
    key = jax.random.PRNGKey(0)
    kb1, kb2, kx = jax.random.split(key, 3)

    # Two BasicBlock configurations: identity residual, and strided downsample.
    blk1 = make_basic_block_params(kb1, inplanes=128, planes=128, stride=1)
    blk2 = make_basic_block_params(kb2, inplanes=128, planes=256, stride=2)

    # PyTorch-style NCHW input (channels chosen >=128 for lane-dense stores).
    x = jax.random.normal(kx, (2, 128, 16, 16), jnp.float32)

    @jax.jit
    def fwd(inp):
        h = basic_block_forward(blk1, inp)      # (2, 128, 16, 16)
        return basic_block_forward(blk2, h)     # (2, 256, 8, 8)

    out = fwd(x)
    jax.block_until_ready(out)

    assert out.shape == (2, 256, 8, 8), out.shape
    assert bool(jnp.all(jnp.isfinite(out)))

    # Reference check (same bf16 operand rounding -> only accumulation-order noise).
    x_nhwc = jnp.transpose(x, (0, 2, 3, 1))
    ref = basic_block_ref(basic_block_ref(x_nhwc, blk1), blk2)
    ref = jnp.transpose(ref, (0, 3, 1, 2))
    err = float(jnp.max(jnp.abs(out - ref)))
    scale = float(jnp.max(jnp.abs(ref))) + 1e-6
    assert err <= 2e-2 * scale + 2e-2, f"max |pallas - ref| = {err} (scale {scale})"

    print("KERNEL_OK")
</pallas_src>

<mosaic_0001>
module attributes {stable_mosaic.version = 11 : i64} {
  func.func @_basic_block_identity_kernel(%arg0: i32, %arg1: memref<1x18x18x128xf32, #tpu.memory_space<vmem>>, %arg2: memref<9x128x128xbf16, #tpu.memory_space<vmem>>, %arg3: memref<1x128xf32, #tpu.memory_space<vmem>>, %arg4: memref<1x128xf32, #tpu.memory_space<vmem>>, %arg5: memref<9x128x128xbf16, #tpu.memory_space<vmem>>, %arg6: memref<1x128xf32, #tpu.memory_space<vmem>>, %arg7: memref<1x128xf32, #tpu.memory_space<vmem>>, %arg8: memref<1x16x16x128xf32, #tpu.memory_space<vmem>>, %arg9: memref<18x32x128xf32, #tpu.memory_space<vmem>>) attributes {dimension_semantics = [#tpu.dimension_semantics<parallel>], iteration_bounds = array<i64: 2>, scalar_prefetch = 0 : i64, scratch_operands = 1 : i64, tpu.core_type = #tpu.core_type<tc>, window_params = [{transform_indices = @transform_0, window_bounds = array<i64: 1, 18, 18, 128>}, {pipeline_mode = #tpu.pipeline_mode<synchronous>, transform_indices = @transform_1, window_bounds = array<i64: 9, 128, 128>}, {pipeline_mode = #tpu.pipeline_mode<synchronous>, transform_indices = @transform_2, window_bounds = array<i64: 1, 128>}, {pipeline_mode = #tpu.pipeline_mode<synchronous>, transform_indices = @transform_3, window_bounds = array<i64: 1, 128>}, {pipeline_mode = #tpu.pipeline_mode<synchronous>, transform_indices = @transform_4, window_bounds = array<i64: 9, 128, 128>}, {pipeline_mode = #tpu.pipeline_mode<synchronous>, transform_indices = @transform_5, window_bounds = array<i64: 1, 128>}, {pipeline_mode = #tpu.pipeline_mode<synchronous>, transform_indices = @transform_6, window_bounds = array<i64: 1, 128>}, {transform_indices = @transform_7, window_bounds = array<i64: 1, 16, 16, 128>}]} {
    %cst = arith.constant 0.000000e+00 : f32
    %0 = vector.broadcast %cst : f32 to vector<256x128xf32>
    %c0 = arith.constant 0 : index
    %c0_0 = arith.constant 0 : index
    %c0_1 = arith.constant 0 : index
    %c0_2 = arith.constant 0 : index
    %1 = vector.load %arg1[%c0, %c0_0, %c0_1, %c0_2] : memref<1x18x18x128xf32, #tpu.memory_space<vmem>>, vector<1x16x16x128xf32>
    %2 = vector.shape_cast %1 : vector<1x16x16x128xf32> to vector<16x16x128xf32>
    %3 = vector.shape_cast %2 : vector<16x16x128xf32> to vector<256x128xf32>
    %4 = arith.truncf %3 : vector<256x128xf32> to vector<256x128xbf16>
    %c0_3 = arith.constant 0 : index
    %c0_4 = arith.constant 0 : index
    %c0_5 = arith.constant 0 : index
    %5 = vector.load %arg2[%c0_3, %c0_4, %c0_5] : memref<9x128x128xbf16, #tpu.memory_space<vmem>>, vector<1x128x128xbf16>
    %6 = vector.shape_cast %5 : vector<1x128x128xbf16> to vector<128x128xbf16>
    %cst_6 = arith.constant dense<0.000000e+00> : vector<256x128xf32>
    %7 = tpu.matmul %4, %6, %cst_6 {dimension_numbers = #tpu.dot_dimension_numbers<[1], [0], [0], [1], [0, 0, 1, 1], [], []>} : vector<256x128xbf16>, vector<128x128xbf16>, vector<256x128xf32> -> vector<256x128xf32>
    %8 = arith.addf %0, %7 : vector<256x128xf32>
    %c0_7 = arith.constant 0 : index
    %c0_8 = arith.constant 0 : index
    %c1 = arith.constant 1 : index
    %c0_9 = arith.constant 0 : index
    %9 = vector.load %arg1[%c0_7, %c0_8, %c1, %c0_9] : memref<1x18x18x128xf32, #tpu.memory_space<vmem>>, vector<1x16x16x128xf32>
    %10 = vector.shape_cast %9 : vector<1x16x16x128xf32> to vector<16x16x128xf32>
    %11 = vector.shape_cast %10 : vector<16x16x128xf32> to vector<256x128xf32>
    %12 = arith.truncf %11 : vector<256x128xf32> to vector<256x128xbf16>
    %c1_10 = arith.constant 1 : index
    %c0_11 = arith.constant 0 : index
    %c0_12 = arith.constant 0 : index
    %13 = vector.load %arg2[%c1_10, %c0_11, %c0_12] : memref<9x128x128xbf16, #tpu.memory_space<vmem>>, vector<1x128x128xbf16>
    %14 = vector.shape_cast %13 : vector<1x128x128xbf16> to vector<128x128xbf16>
    %cst_13 = arith.constant dense<0.000000e+00> : vector<256x128xf32>
    %15 = tpu.matmul %12, %14, %cst_13 {dimension_numbers = #tpu.dot_dimension_numbers<[1], [0], [0], [1], [0, 0, 1, 1], [], []>} : vector<256x128xbf16>, vector<128x128xbf16>, vector<256x128xf32> -> vector<256x128xf32>
    %16 = arith.addf %8, %15 : vector<256x128xf32>
    %c0_14 = arith.constant 0 : index
    %c0_15 = arith.constant 0 : index
    %c2 = arith.constant 2 : index
    %c0_16 = arith.constant 0 : index
    %17 = vector.load %arg1[%c0_14, %c0_15, %c2, %c0_16] : memref<1x18x18x128xf32, #tpu.memory_space<vmem>>, vector<1x16x16x128xf32>
    %18 = vector.shape_cast %17 : vector<1x16x16x128xf32> to vector<16x16x128xf32>
    %19 = vector.shape_cast %18 : vector<16x16x128xf32> to vector<256x128xf32>
    %20 = arith.truncf %19 : vector<256x128xf32> to vector<256x128xbf16>
    %c2_17 = arith.constant 2 : index
    %c0_18 = arith.constant 0 : index
    %c0_19 = arith.constant 0 : index
    %21 = vector.load %arg2[%c2_17, %c0_18, %c0_19] : memref<9x128x128xbf16, #tpu.memory_space<vmem>>, vector<1x128x128xbf16>
    %22 = vector.shape_cast %21 : vector<1x128x128xbf16> to vector<128x128xbf16>
    %cst_20 = arith.constant dense<0.000000e+00> : vector<256x128xf32>
    %23 = tpu.matmul %20, %22, %cst_20 {dimension_numbers = #tpu.dot_dimension_numbers<[1], [0], [0], [1], [0, 0, 1, 1], [], []>} : vector<256x128xbf16>, vector<128x128xbf16>, vector<256x128xf32> -> vector<256x128xf32>
    %24 = arith.addf %16, %23 : vector<256x128xf32>
    %c0_21 = arith.constant 0 : index
    %c1_22 = arith.constant 1 : index
    %c0_23 = arith.constant 0 : index
    %c0_24 = arith.constant 0 : index
    %25 = vector.load %arg1[%c0_21, %c1_22, %c0_23, %c0_24] : memref<1x18x18x128xf32, #tpu.memory_space<vmem>>, vector<1x16x16x128xf32>
    %26 = vector.shape_cast %25 : vector<1x16x16x128xf32> to vector<16x16x128xf32>
    %27 = vector.shape_cast %26 : vector<16x16x128xf32> to vector<256x128xf32>
    %28 = arith.truncf %27 : vector<256x128xf32> to vector<256x128xbf16>
    %c3 = arith.constant 3 : index
    %c0_25 = arith.constant 0 : index
    %c0_26 = arith.constant 0 : index
    %29 = vector.load %arg2[%c3, %c0_25, %c0_26] : memref<9x128x128xbf16, #tpu.memory_space<vmem>>, vector<1x128x128xbf16>
    %30 = vector.shape_cast %29 : vector<1x128x128xbf16> to vector<128x128xbf16>
    %cst_27 = arith.constant dense<0.000000e+00> : vector<256x128xf32>
    %31 = tpu.matmul %28, %30, %cst_27 {dimension_numbers = #tpu.dot_dimension_numbers<[1], [0], [0], [1], [0, 0, 1, 1], [], []>} : vector<256x128xbf16>, vector<128x128xbf16>, vector<256x128xf32> -> vector<256x128xf32>
    %32 = arith.addf %24, %31 : vector<256x128xf32>
    %c0_28 = arith.constant 0 : index
    %c1_29 = arith.constant 1 : index
    %c1_30 = arith.constant 1 : index
    %c0_31 = arith.constant 0 : index
    %33 = vector.load %arg1[%c0_28, %c1_29, %c1_30, %c0_31] : memref<1x18x18x128xf32, #tpu.memory_space<vmem>>, vector<1x16x16x128xf32>
    %34 = vector.shape_cast %33 : vector<1x16x16x128xf32> to vector<16x16x128xf32>
    %35 = vector.shape_cast %34 : vector<16x16x128xf32> to vector<256x128xf32>
    %36 = arith.truncf %35 : vector<256x128xf32> to vector<256x128xbf16>
    %c4 = arith.constant 4 : index
    %c0_32 = arith.constant 0 : index
    %c0_33 = arith.constant 0 : index
    %37 = vector.load %arg2[%c4, %c0_32, %c0_33] : memref<9x128x128xbf16, #tpu.memory_space<vmem>>, vector<1x128x128xbf16>
    %38 = vector.shape_cast %37 : vector<1x128x128xbf16> to vector<128x128xbf16>
    %cst_34 = arith.constant dense<0.000000e+00> : vector<256x128xf32>
    %39 = tpu.matmul %36, %38, %cst_34 {dimension_numbers = #tpu.dot_dimension_numbers<[1], [0], [0], [1], [0, 0, 1, 1], [], []>} : vector<256x128xbf16>, vector<128x128xbf16>, vector<256x128xf32> -> vector<256x128xf32>
    %40 = arith.addf %32, %39 : vector<256x128xf32>
    %c0_35 = arith.constant 0 : index
    %c1_36 = arith.constant 1 : index
    %c2_37 = arith.constant 2 : index
    %c0_38 = arith.constant 0 : index
    %41 = vector.load %arg1[%c0_35, %c1_36, %c2_37, %c0_38] : memref<1x18x18x128xf32, #tpu.memory_space<vmem>>, vector<1x16x16x128xf32>
    %42 = vector.shape_cast %41 : vector<1x16x16x128xf32> to vector<16x16x128xf32>
    %43 = vector.shape_cast %42 : vector<16x16x128xf32> to vector<256x128xf32>
    %44 = arith.truncf %43 : vector<256x128xf32> to vector<256x128xbf16>
    %c5 = arith.constant 5 : index
    %c0_39 = arith.constant 0 : index
    %c0_40 = arith.constant 0 : index
    %45 = vector.load %arg2[%c5, %c0_39, %c0_40] : memref<9x128x128xbf16, #tpu.memory_space<vmem>>, vector<1x128x128xbf16>
    %46 = vector.shape_cast %45 : vector<1x128x128xbf16> to vector<128x128xbf16>
    %cst_41 = arith.constant dense<0.000000e+00> : vector<256x128xf32>
    %47 = tpu.matmul %44, %46, %cst_41 {dimension_numbers = #tpu.dot_dimension_numbers<[1], [0], [0], [1], [0, 0, 1, 1], [], []>} : vector<256x128xbf16>, vector<128x128xbf16>, vector<256x128xf32> -> vector<256x128xf32>
    %48 = arith.addf %40, %47 : vector<256x128xf32>
    %c0_42 = arith.constant 0 : index
    %c2_43 = arith.constant 2 : index
    %c0_44 = arith.constant 0 : index
    %c0_45 = arith.constant 0 : index
    %49 = vector.load %arg1[%c0_42, %c2_43, %c0_44, %c0_45] : memref<1x18x18x128xf32, #tpu.memory_space<vmem>>, vector<1x16x16x128xf32>
    %50 = vector.shape_cast %49 : vector<1x16x16x128xf32> to vector<16x16x128xf32>
    %51 = vector.shape_cast %50 : vector<16x16x128xf32> to vector<256x128xf32>
    %52 = arith.truncf %51 : vector<256x128xf32> to vector<256x128xbf16>
    %c6 = arith.constant 6 : index
    %c0_46 = arith.constant 0 : index
    %c0_47 = arith.constant 0 : index
    %53 = vector.load %arg2[%c6, %c0_46, %c0_47] : memref<9x128x128xbf16, #tpu.memory_space<vmem>>, vector<1x128x128xbf16>
    %54 = vector.shape_cast %53 : vector<1x128x128xbf16> to vector<128x128xbf16>
    %cst_48 = arith.constant dense<0.000000e+00> : vector<256x128xf32>
    %55 = tpu.matmul %52, %54, %cst_48 {dimension_numbers = #tpu.dot_dimension_numbers<[1], [0], [0], [1], [0, 0, 1, 1], [], []>} : vector<256x128xbf16>, vector<128x128xbf16>, vector<256x128xf32> -> vector<256x128xf32>
    %56 = arith.addf %48, %55 : vector<256x128xf32>
    %c0_49 = arith.constant 0 : index
    %c2_50 = arith.constant 2 : index
    %c1_51 = arith.constant 1 : index
    %c0_52 = arith.constant 0 : index
    %57 = vector.load %arg1[%c0_49, %c2_50, %c1_51, %c0_52] : memref<1x18x18x128xf32, #tpu.memory_space<vmem>>, vector<1x16x16x128xf32>
    %58 = vector.shape_cast %57 : vector<1x16x16x128xf32> to vector<16x16x128xf32>
    %59 = vector.shape_cast %58 : vector<16x16x128xf32> to vector<256x128xf32>
    %60 = arith.truncf %59 : vector<256x128xf32> to vector<256x128xbf16>
    %c7 = arith.constant 7 : index
    %c0_53 = arith.constant 0 : index
    %c0_54 = arith.constant 0 : index
    %61 = vector.load %arg2[%c7, %c0_53, %c0_54] : memref<9x128x128xbf16, #tpu.memory_space<vmem>>, vector<1x128x128xbf16>
    %62 = vector.shape_cast %61 : vector<1x128x128xbf16> to vector<128x128xbf16>
    %cst_55 = arith.constant dense<0.000000e+00> : vector<256x128xf32>
    %63 = tpu.matmul %60, %62, %cst_55 {dimension_numbers = #tpu.dot_dimension_numbers<[1], [0], [0], [1], [0, 0, 1, 1], [], []>} : vector<256x128xbf16>, vector<128x128xbf16>, vector<256x128xf32> -> vector<256x128xf32>
    %64 = arith.addf %56, %63 : vector<256x128xf32>
    %c0_56 = arith.constant 0 : index
    %c2_57 = arith.constant 2 : index
    %c2_58 = arith.constant 2 : index
    %c0_59 = arith.constant 0 : index
    %65 = vector.load %arg1[%c0_56, %c2_57, %c2_58, %c0_59] : memref<1x18x18x128xf32, #tpu.memory_space<vmem>>, vector<1x16x16x128xf32>
    %66 = vector.shape_cast %65 : vector<1x16x16x128xf32> to vector<16x16x128xf32>
    %67 = vector.shape_cast %66 : vector<16x16x128xf32> to vector<256x128xf32>
    %68 = arith.truncf %67 : vector<256x128xf32> to vector<256x128xbf16>
    %c8 = arith.constant 8 : index
    %c0_60 = arith.constant 0 : index
    %c0_61 = arith.constant 0 : index
    %69 = vector.load %arg2[%c8, %c0_60, %c0_61] : memref<9x128x128xbf16, #tpu.memory_space<vmem>>, vector<1x128x128xbf16>
    %70 = vector.shape_cast %69 : vector<1x128x128xbf16> to vector<128x128xbf16>
    %cst_62 = arith.constant dense<0.000000e+00> : vector<256x128xf32>
    %71 = tpu.matmul %68, %70, %cst_62 {dimension_numbers = #tpu.dot_dimension_numbers<[1], [0], [0], [1], [0, 0, 1, 1], [], []>} : vector<256x128xbf16>, vector<128x128xbf16>, vector<256x128xf32> -> vector<256x128xf32>
    %72 = arith.addf %64, %71 : vector<256x128xf32>
    %c0_63 = arith.constant 0 : index
    %c0_64 = arith.constant 0 : index
    %73 = vector.load %arg3[%c0_63, %c0_64] : memref<1x128xf32, #tpu.memory_space<vmem>>, vector<1x128xf32>
    %74 = vector.broadcast %73 : vector<1x128xf32> to vector<256x128xf32>
    %75 = arith.mulf %72, %74 : vector<256x128xf32>
    %c0_65 = arith.constant 0 : index
    %c0_66 = arith.constant 0 : index
    %76 = vector.load %arg4[%c0_65, %c0_66] : memref<1x128xf32, #tpu.memory_space<vmem>>, vector<1x128xf32>
    %77 = vector.broadcast %76 : vector<1x128xf32> to vector<256x128xf32>
    %78 = arith.addf %75, %77 : vector<256x128xf32>
    %cst_67 = arith.constant 0.000000e+00 : f32
    %79 = vector.broadcast %cst_67 : f32 to vector<256x128xf32>
    %80 = arith.maximumf %78, %79 : vector<256x128xf32>
    %cst_68 = arith.constant 0.000000e+00 : f32
    %81 = vector.broadcast %cst_68 : f32 to vector<18x32x128xf32>
    %c0_69 = arith.constant 0 : index
    %c0_70 = arith.constant 0 : index
    %c0_71 = arith.constant 0 : index
    %82 = vector.load %arg9[%c0_69, %c0_70, %c0_71] : memref<18x32x128xf32, #tpu.memory_space<vmem>>, vector<18x32x128xf32>
    tpu.vector_store %arg9[%c0_69, %c0_70, %c0_71], %81 {strides = array<i32>} : memref<18x32x128xf32, #tpu.memory_space<vmem>>, vector<18x32x128xf32>,
    %83 = vector.shape_cast %80 : vector<256x128xf32> to vector<16x16x128xf32>
    %c1_72 = arith.constant 1 : index
    %c8_73 = arith.constant 8 : index
    %c0_74 = arith.constant 0 : index
    %84 = vector.load %arg9[%c1_72, %c8_73, %c0_74] : memref<18x32x128xf32, #tpu.memory_space<vmem>>, vector<16x16x128xf32>
    tpu.vector_store %arg9[%c1_72, %c8_73, %c0_74], %83 {strides = array<i32>} : memref<18x32x128xf32, #tpu.memory_space<vmem>>, vector<16x16x128xf32>,
    %cst_75 = arith.constant 0.000000e+00 : f32
    %85 = vector.broadcast %cst_75 : f32 to vector<256x128xf32>
    %c0_76 = arith.constant 0 : index
    %c7_77 = arith.constant 7 : index
    %c0_78 = arith.constant 0 : index
    %86 = vector.load %arg9[%c0_76, %c7_77, %c0_78] : memref<18x32x128xf32, #tpu.memory_space<vmem>>, vector<16x16x128xf32>
    %87 = vector.shape_cast %86 : vector<16x16x128xf32> to vector<256x128xf32>
    %88 = arith.truncf %87 : vector<256x128xf32> to vector<256x128xbf16>
    %c0_79 = arith.constant 0 : index
    %c0_80 = arith.constant 0 : index
    %c0_81 = arith.constant 0 : index
    %89 = vector.load %arg5[%c0_79, %c0_80, %c0_81] : memref<9x128x128xbf16, #tpu.memory_space<vmem>>, vector<1x128x128xbf16>
    %90 = vector.shape_cast %89 : vector<1x128x128xbf16> to vector<128x128xbf16>
    %cst_82 = arith.constant dense<0.000000e+00> : vector<256x128xf32>
    %91 = tpu.matmul %88, %90, %cst_82 {dimension_numbers = #tpu.dot_dimension_numbers<[1], [0], [0], [1], [0, 0, 1, 1], [], []>} : vector<256x128xbf16>, vector<128x128xbf16>, vector<256x128xf32> -> vector<256x128xf32>
    %92 = arith.addf %85, %91 : vector<256x128xf32>
    %c0_83 = arith.constant 0 : index
    %c8_84 = arith.constant 8 : index
    %c0_85 = arith.constant 0 : index
    %93 = vector.load %arg9[%c0_83, %c8_84, %c0_85] : memref<18x32x128xf32, #tpu.memory_space<vmem>>, vector<16x16x128xf32>
    %94 = vector.shape_cast %93 : vector<16x16x128xf32> to vector<256x128xf32>
    %95 = arith.truncf %94 : vector<256x128xf32> to vector<256x128xbf16>
    %c1_86 = arith.constant 1 : index
    %c0_87 = arith.constant 0 : index
    %c0_88 = arith.constant 0 : index
    %96 = vector.load %arg5[%c1_86, %c0_87, %c0_88] : memref<9x128x128xbf16, #tpu.memory_space<vmem>>, vector<1x128x128xbf16>
    %97 = vector.shape_cast %96 : vector<1x128x128xbf16> to vector<128x128xbf16>
    %cst_89 = arith.constant dense<0.000000e+00> : vector<256x128xf32>
    %98 = tpu.matmul %95, %97, %cst_89 {dimension_numbers = #tpu.dot_dimension_numbers<[1], [0], [0], [1], [0, 0, 1, 1], [], []>} : vector<256x128xbf16>, vector<128x128xbf16>, vector<256x128xf32> -> vector<256x128xf32>
    %99 = arith.addf %92, %98 : vector<256x128xf32>
    %c0_90 = arith.constant 0 : index
    %c9 = arith.constant 9 : index
    %c0_91 = arith.constant 0 : index
    %100 = vector.load %arg9[%c0_90, %c9, %c0_91] : memref<18x32x128xf32, #tpu.memory_space<vmem>>, vector<16x16x128xf32>
    %101 = vector.shape_cast %100 : vector<16x16x128xf32> to vector<256x128xf32>
    %102 = arith.truncf %101 : vector<256x128xf32> to vector<256x128xbf16>
    %c2_92 = arith.constant 2 : index
    %c0_93 = arith.constant 0 : index
    %c0_94 = arith.constant 0 : index
    %103 = vector.load %arg5[%c2_92, %c0_93, %c0_94] : memref<9x128x128xbf16, #tpu.memory_space<vmem>>, vector<1x128x128xbf16>
    %104 = vector.shape_cast %103 : vector<1x128x128xbf16> to vector<128x128xbf16>
    %cst_95 = arith.constant dense<0.000000e+00> : vector<256x128xf32>
    %105 = tpu.matmul %102, %104, %cst_95 {dimension_numbers = #tpu.dot_dimension_numbers<[1], [0], [0], [1], [0, 0, 1, 1], [], []>} : vector<256x128xbf16>, vector<128x128xbf16>, vector<256x128xf32> -> vector<256x128xf32>
    %106 = arith.addf %99, %105 : vector<256x128xf32>
    %c1_96 = arith.constant 1 : index
    %c7_97 = arith.constant 7 : index
    %c0_98 = arith.constant 0 : index
    %107 = vector.load %arg9[%c1_96, %c7_97, %c0_98] : memref<18x32x128xf32, #tpu.memory_space<vmem>>, vector<16x16x128xf32>
    %108 = vector.shape_cast %107 : vector<16x16x128xf32> to vector<256x128xf32>
    %109 = arith.truncf %108 : vector<256x128xf32> to vector<256x128xbf16>
    %c3_99 = arith.constant 3 : index
    %c0_100 = arith.constant 0 : index
    %c0_101 = arith.constant 0 : index
    %110 = vector.load %arg5[%c3_99, %c0_100, %c0_101] : memref<9x128x128xbf16, #tpu.memory_space<vmem>>, vector<1x128x128xbf16>
    %111 = vector.shape_cast %110 : vector<1x128x128xbf16> to vector<128x128xbf16>
    %cst_102 = arith.constant dense<0.000000e+00> : vector<256x128xf32>
    %112 = tpu.matmul %109, %111, %cst_102 {dimension_numbers = #tpu.dot_dimension_numbers<[1], [0], [0], [1], [0, 0, 1, 1], [], []>} : vector<256x128xbf16>, vector<128x128xbf16>, vector<256x128xf32> -> vector<256x128xf32>
    %113 = arith.addf %106, %112 : vector<256x128xf32>
    %c1_103 = arith.constant 1 : index
    %c8_104 = arith.constant 8 : index
    %c0_105 = arith.constant 0 : index
    %114 = vector.load %arg9[%c1_103, %c8_104, %c0_105] : memref<18x32x128xf32, #tpu.memory_space<vmem>>, vector<16x16x128xf32>
    %115 = vector.shape_cast %114 : vector<16x16x128xf32> to vector<256x128xf32>
    %116 = arith.truncf %115 : vector<256x128xf32> to vector<256x128xbf16>
    %c4_106 = arith.constant 4 : index
    %c0_107 = arith.constant 0 : index
    %c0_108 = arith.constant 0 : index
    %117 = vector.load %arg5[%c4_106, %c0_107, %c0_108] : memref<9x128x128xbf16, #tpu.memory_space<vmem>>, vector<1x128x128xbf16>
    %118 = vector.shape_cast %117 : vector<1x128x128xbf16> to vector<128x128xbf16>
    %cst_109 = arith.constant dense<0.000000e+00> : vector<256x128xf32>
    %119 = tpu.matmul %116, %118, %cst_109 {dimension_numbers = #tpu.dot_dimension_numbers<[1], [0], [0], [1], [0, 0, 1, 1], [], []>} : vector<256x128xbf16>, vector<128x128xbf16>, vector<256x128xf32> -> vector<256x128xf32>
    %120 = arith.addf %113, %119 : vector<256x128xf32>
    %c1_110 = arith.constant 1 : index
    %c9_111 = arith.constant 9 : index
    %c0_112 = arith.constant 0 : index
    %121 = vector.load %arg9[%c1_110, %c9_111, %c0_112] : memref<18x32x128xf32, #tpu.memory_space<vmem>>, vector<16x16x128xf32>
    %122 = vector.shape_cast %121 : vector<16x16x128xf32> to vector<256x128xf32>
    %123 = arith.truncf %122 : vector<256x128xf32> to vector<256x128xbf16>
    %c5_113 = arith.constant 5 : index
    %c0_114 = arith.constant 0 : index
    %c0_115 = arith.constant 0 : index
    %124 = vector.load %arg5[%c5_113, %c0_114, %c0_115] : memref<9x128x128xbf16, #tpu.memory_space<vmem>>, vector<1x128x128xbf16>
    %125 = vector.shape_cast %124 : vector<1x128x128xbf16> to vector<128x128xbf16>
    %cst_116 = arith.constant dense<0.000000e+00> : vector<256x128xf32>
    %126 = tpu.matmul %123, %125, %cst_116 {dimension_numbers = #tpu.dot_dimension_numbers<[1], [0], [0], [1], [0, 0, 1, 1], [], []>} : vector<256x128xbf16>, vector<128x128xbf16>, vector<256x128xf32> -> vector<256x128xf32>
    %127 = arith.addf %120, %126 : vector<256x128xf32>
    %c2_117 = arith.constant 2 : index
    %c7_118 = arith.constant 7 : index
    %c0_119 = arith.constant 0 : index
    %128 = vector.load %arg9[%c2_117, %c7_118, %c0_119] : memref<18x32x128xf32, #tpu.memory_space<vmem>>, vector<16x16x128xf32>
    %129 = vector.shape_cast %128 : vector<16x16x128xf32> to vector<256x128xf32>
    %130 = arith.truncf %129 : vector<256x128xf32> to vector<256x128xbf16>
    %c6_120 = arith.constant 6 : index
    %c0_121 = arith.constant 0 : index
    %c0_122 = arith.constant 0 : index
    %131 = vector.load %arg5[%c6_120, %c0_121, %c0_122] : memref<9x128x128xbf16, #tpu.memory_space<vmem>>, vector<1x128x128xbf16>
    %132 = vector.shape_cast %131 : vector<1x128x128xbf16> to vector<128x128xbf16>
    %cst_123 = arith.constant dense<0.000000e+00> : vector<256x128xf32>
    %133 = tpu.matmul %130, %132, %cst_123 {dimension_numbers = #tpu.dot_dimension_numbers<[1], [0], [0], [1], [0, 0, 1, 1], [], []>} : vector<256x128xbf16>, vector<128x128xbf16>, vector<256x128xf32> -> vector<256x128xf32>
    %134 = arith.addf %127, %133 : vector<256x128xf32>
    %c2_124 = arith.constant 2 : index
    %c8_125 = arith.constant 8 : index
    %c0_126 = arith.constant 0 : index
    %135 = vector.load %arg9[%c2_124, %c8_125, %c0_126] : memref<18x32x128xf32, #tpu.memory_space<vmem>>, vector<16x16x128xf32>
    %136 = vector.shape_cast %135 : vector<16x16x128xf32> to vector<256x128xf32>
    %137 = arith.truncf %136 : vector<256x128xf32> to vector<256x128xbf16>
    %c7_127 = arith.constant 7 : index
    %c0_128 = arith.constant 0 : index
    %c0_129 = arith.constant 0 : index
    %138 = vector.load %arg5[%c7_127, %c0_128, %c0_129] : memref<9x128x128xbf16, #tpu.memory_space<vmem>>, vector<1x128x128xbf16>
    %139 = vector.shape_cast %138 : vector<1x128x128xbf16> to vector<128x128xbf16>
    %cst_130 = arith.constant dense<0.000000e+00> : vector<256x128xf32>
    %140 = tpu.matmul %137, %139, %cst_130 {dimension_numbers = #tpu.dot_dimension_numbers<[1], [0], [0], [1], [0, 0, 1, 1], [], []>} : vector<256x128xbf16>, vector<128x128xbf16>, vector<256x128xf32> -> vector<256x128xf32>
    %141 = arith.addf %134, %140 : vector<256x128xf32>
    %c2_131 = arith.constant 2 : index
    %c9_132 = arith.constant 9 : index
    %c0_133 = arith.constant 0 : index
    %142 = vector.load %arg9[%c2_131, %c9_132, %c0_133] : memref<18x32x128xf32, #tpu.memory_space<vmem>>, vector<16x16x128xf32>
    %143 = vector.shape_cast %142 : vector<16x16x128xf32> to vector<256x128xf32>
    %144 = arith.truncf %143 : vector<256x128xf32> to vector<256x128xbf16>
    %c8_134 = arith.constant 8 : index
    %c0_135 = arith.constant 0 : index
    %c0_136 = arith.constant 0 : index
    %145 = vector.load %arg5[%c8_134, %c0_135, %c0_136] : memref<9x128x128xbf16, #tpu.memory_space<vmem>>, vector<1x128x128xbf16>
    %146 = vector.shape_cast %145 : vector<1x128x128xbf16> to vector<128x128xbf16>
    %cst_137 = arith.constant dense<0.000000e+00> : vector<256x128xf32>
    %147 = tpu.matmul %144, %146, %cst_137 {dimension_numbers = #tpu.dot_dimension_numbers<[1], [0], [0], [1], [0, 0, 1, 1], [], []>} : vector<256x128xbf16>, vector<128x128xbf16>, vector<256x128xf32> -> vector<256x128xf32>
    %148 = arith.addf %141, %147 : vector<256x128xf32>
    %c0_138 = arith.constant 0 : index
    %c0_139 = arith.constant 0 : index
    %149 = vector.load %arg6[%c0_138, %c0_139] : memref<1x128xf32, #tpu.memory_space<vmem>>, vector<1x128xf32>
    %150 = vector.broadcast %149 : vector<1x128xf32> to vector<256x128xf32>
    %151 = arith.mulf %148, %150 : vector<256x128xf32>
    %c0_140 = arith.constant 0 : index
    %c0_141 = arith.constant 0 : index
    %152 = vector.load %arg7[%c0_140, %c0_141] : memref<1x128xf32, #tpu.memory_space<vmem>>, vector<1x128xf32>
    %153 = vector.broadcast %152 : vector<1x128xf32> to vector<256x128xf32>
    %154 = arith.addf %151, %153 : vector<256x128xf32>
    %c0_142 = arith.constant 0 : index
    %c1_143 = arith.constant 1 : index
    %c1_144 = arith.constant 1 : index
    %c0_145 = arith.constant 0 : index
    %155 = vector.load %arg1[%c0_142, %c1_143, %c1_144, %c0_145] : memref<1x18x18x128xf32, #tpu.memory_space<vmem>>, vector<1x16x16x128xf32>
    %156 = vector.shape_cast %155 : vector<1x16x16x128xf32> to vector<16x16x128xf32>
    %157 = vector.shape_cast %156 : vector<16x16x128xf32> to vector<256x128xf32>
    %158 = arith.addf %154, %157 : vector<256x128xf32>
    %cst_146 = arith.constant 0.000000e+00 : f32
    %159 = vector.broadcast %cst_146 : f32 to vector<256x128xf32>
    %160 = arith.maximumf %158, %159 : vector<256x128xf32>
    %161 = vector.shape_cast %160 : vector<256x128xf32> to vector<1x16x16x128xf32>
    %c0_147 = arith.constant 0 : index
    %c0_148 = arith.constant 0 : index
    %c0_149 = arith.constant 0 : index
    %c0_150 = arith.constant 0 : index
    %162 = vector.load %arg8[%c0_147, %c0_148, %c0_149, %c0_150] : memref<1x16x16x128xf32, #tpu.memory_space<vmem>>, vector<1x16x16x128xf32>
    tpu.vector_store %arg8[%c0_147, %c0_148, %c0_149, %c0_150], %161 {strides = array<i32>} : memref<1x16x16x128xf32, #tpu.memory_space<vmem>>, vector<1x16x16x128xf32>,
    return
  }
  func.func @transform_0(%arg0: i32) -> (i32, i32, i32, i32) {
    %c0_i32 = arith.constant 0 : i32
    %c0_i32_0 = arith.constant 0 : i32
    %c0_i32_1 = arith.constant 0 : i32
    %c0_i32_2 = arith.constant 0 : i32
    return %arg0, %c0_i32, %c0_i32_0, %c0_i32_1 : i32, i32, i32, i32
  }
  func.func @transform_1(%arg0: i32) -> (i32, i32, i32) {
    %c0_i32 = arith.constant 0 : i32
    %c0_i32_0 = arith.constant 0 : i32
    %c0_i32_1 = arith.constant 0 : i32
    %c0_i32_2 = arith.constant 0 : i32
    return %c0_i32, %c0_i32_0, %c0_i32_1 : i32, i32, i32
  }
  func.func @transform_2(%arg0: i32) -> (i32, i32) {
    %c0_i32 = arith.constant 0 : i32
    %c0_i32_0 = arith.constant 0 : i32
    %c0_i32_1 = arith.constant 0 : i32
    return %c0_i32, %c0_i32_0 : i32, i32
  }
  func.func @transform_3(%arg0: i32) -> (i32, i32) {
    %c0_i32 = arith.constant 0 : i32
    %c0_i32_0 = arith.constant 0 : i32
    %c0_i32_1 = arith.constant 0 : i32
    return %c0_i32, %c0_i32_0 : i32, i32
  }
  func.func @transform_4(%arg0: i32) -> (i32, i32, i32) {
    %c0_i32 = arith.constant 0 : i32
    %c0_i32_0 = arith.constant 0 : i32
    %c0_i32_1 = arith.constant 0 : i32
    %c0_i32_2 = arith.constant 0 : i32
    return %c0_i32, %c0_i32_0, %c0_i32_1 : i32, i32, i32
  }
  func.func @transform_5(%arg0: i32) -> (i32, i32) {
    %c0_i32 = arith.constant 0 : i32
    %c0_i32_0 = arith.constant 0 : i32
    %c0_i32_1 = arith.constant 0 : i32
    return %c0_i32, %c0_i32_0 : i32, i32
  }
  func.func @transform_6(%arg0: i32) -> (i32, i32) {
    %c0_i32 = arith.constant 0 : i32
    %c0_i32_0 = arith.constant 0 : i32
    %c0_i32_1 = arith.constant 0 : i32
    return %c0_i32, %c0_i32_0 : i32, i32
  }
  func.func @transform_7(%arg0: i32) -> (i32, i32, i32, i32) {
    %c0_i32 = arith.constant 0 : i32
    %c0_i32_0 = arith.constant 0 : i32
    %c0_i32_1 = arith.constant 0 : i32
    %c0_i32_2 = arith.constant 0 : i32
    return %arg0, %c0_i32, %c0_i32_0, %c0_i32_1 : i32, i32, i32, i32
  }
}

module attributes {stable_mosaic.version = 11 : i64} {
  func.func @_basic_block_downsample_kernel(%arg0: i32, %arg1: memref<4x9x9x128xf32, #tpu.memory_space<vmem>>, %arg2: memref<9x128x256xbf16, #tpu.memory_space<vmem>>, %arg3: memref<1x256xf32, #tpu.memory_space<vmem>>, %arg4: memref<1x256xf32, #tpu.memory_space<vmem>>, %arg5: memref<9x256x256xbf16, #tpu.memory_space<vmem>>, %arg6: memref<1x256xf32, #tpu.memory_space<vmem>>, %arg7: memref<1x256xf32, #tpu.memory_space<vmem>>, %arg8: memref<128x256xbf16, #tpu.memory_space<vmem>>, %arg9: memref<1x256xf32, #tpu.memory_space<vmem>>, %arg10: memref<1x256xf32, #tpu.memory_space<vmem>>, %arg11: memref<1x8x8x256xf32, #tpu.memory_space<vmem>>, %arg12: memref<10x24x256xf32, #tpu.memory_space<vmem>>) attributes {dimension_semantics = [#tpu.dimension_semantics<parallel>], iteration_bounds = array<i64: 2>, scalar_prefetch = 0 : i64, scratch_operands = 1 : i64, tpu.core_type = #tpu.core_type<tc>, window_params = [{transform_indices = @transform_0, window_bounds = array<i64: 4, 9, 9, 128>}, {pipeline_mode = #tpu.pipeline_mode<synchronous>, transform_indices = @transform_1, window_bounds = array<i64: 9, 128, 256>}, {pipeline_mode = #tpu.pipeline_mode<synchronous>, transform_indices = @transform_2, window_bounds = array<i64: 1, 256>}, {pipeline_mode = #tpu.pipeline_mode<synchronous>, transform_indices = @transform_3, window_bounds = array<i64: 1, 256>}, {pipeline_mode = #tpu.pipeline_mode<synchronous>, transform_indices = @transform_4, window_bounds = array<i64: 9, 256, 256>}, {pipeline_mode = #tpu.pipeline_mode<synchronous>, transform_indices = @transform_5, window_bounds = array<i64: 1, 256>}, {pipeline_mode = #tpu.pipeline_mode<synchronous>, transform_indices = @transform_6, window_bounds = array<i64: 1, 256>}, {pipeline_mode = #tpu.pipeline_mode<synchronous>, transform_indices = @transform_7, window_bounds = array<i64: 128, 256>}, {pipeline_mode = #tpu.pipeline_mode<synchronous>, transform_indices = @transform_8, window_bounds = array<i64: 1, 256>}, {pipeline_mode = #tpu.pipeline_mode<synchronous>, transform_indices = @transform_9, window_bounds = array<i64: 1, 256>}, {transform_indices = @transform_10, window_bounds = array<i64: 1, 8, 8, 256>}]} {
    %cst = arith.constant 0.000000e+00 : f32
    %0 = vector.broadcast %cst : f32 to vector<64x256xf32>
    %c0 = arith.constant 0 : index
    %c0_0 = arith.constant 0 : index
    %c0_1 = arith.constant 0 : index
    %c0_2 = arith.constant 0 : index
    %1 = vector.load %arg1[%c0, %c0_0, %c0_1, %c0_2] : memref<4x9x9x128xf32, #tpu.memory_space<vmem>>, vector<1x8x8x128xf32>
    %2 = vector.shape_cast %1 : vector<1x8x8x128xf32> to vector<8x8x128xf32>
    %3 = vector.shape_cast %2 : vector<8x8x128xf32> to vector<64x128xf32>
    %4 = arith.truncf %3 : vector<64x128xf32> to vector<64x128xbf16>
    %c0_3 = arith.constant 0 : index
    %c0_4 = arith.constant 0 : index
    %c0_5 = arith.constant 0 : index
    %5 = vector.load %arg2[%c0_3, %c0_4, %c0_5] : memref<9x128x256xbf16, #tpu.memory_space<vmem>>, vector<1x128x256xbf16>
    %6 = vector.shape_cast %5 : vector<1x128x256xbf16> to vector<128x256xbf16>
    %cst_6 = arith.constant dense<0.000000e+00> : vector<64x256xf32>
    %7 = tpu.matmul %4, %6, %cst_6 {dimension_numbers = #tpu.dot_dimension_numbers<[1], [0], [0], [1], [0, 0, 1, 1], [], []>} : vector<64x128xbf16>, vector<128x256xbf16>, vector<64x256xf32> -> vector<64x256xf32>
    %8 = arith.addf %0, %7 : vector<64x256xf32>
    %c1 = arith.constant 1 : index
    %c0_7 = arith.constant 0 : index
    %c0_8 = arith.constant 0 : index
    %c0_9 = arith.constant 0 : index
    %9 = vector.load %arg1[%c1, %c0_7, %c0_8, %c0_9] : memref<4x9x9x128xf32, #tpu.memory_space<vmem>>, vector<1x8x8x128xf32>
    %10 = vector.shape_cast %9 : vector<1x8x8x128xf32> to vector<8x8x128xf32>
    %11 = vector.shape_cast %10 : vector<8x8x128xf32> to vector<64x128xf32>
    %12 = arith.truncf %11 : vector<64x128xf32> to vector<64x128xbf16>
    %c1_10 = arith.constant 1 : index
    %c0_11 = arith.constant 0 : index
    %c0_12 = arith.constant 0 : index
    %13 = vector.load %arg2[%c1_10, %c0_11, %c0_12] : memref<9x128x256xbf16, #tpu.memory_space<vmem>>, vector<1x128x256xbf16>
    %14 = vector.shape_cast %13 : vector<1x128x256xbf16> to vector<128x256xbf16>
    %cst_13 = arith.constant dense<0.000000e+00> : vector<64x256xf32>
    %15 = tpu.matmul %12, %14, %cst_13 {dimension_numbers = #tpu.dot_dimension_numbers<[1], [0], [0], [1], [0, 0, 1, 1], [], []>} : vector<64x128xbf16>, vector<128x256xbf16>, vector<64x256xf32> -> vector<64x256xf32>
    %16 = arith.addf %8, %15 : vector<64x256xf32>
    %c0_14 = arith.constant 0 : index
    %c0_15 = arith.constant 0 : index
    %c1_16 = arith.constant 1 : index
    %c0_17 = arith.constant 0 : index
    %17 = vector.load %arg1[%c0_14, %c0_15, %c1_16, %c0_17] : memref<4x9x9x128xf32, #tpu.memory_space<vmem>>, vector<1x8x8x128xf32>
    %18 = vector.shape_cast %17 : vector<1x8x8x128xf32> to vector<8x8x128xf32>
    %19 = vector.shape_cast %18 : vector<8x8x128xf32> to vector<64x128xf32>
    %20 = arith.truncf %19 : vector<64x128xf32> to vector<64x128xbf16>
    %c2 = arith.constant 2 : index
    %c0_18 = arith.constant 0 : index
    %c0_19 = arith.constant 0 : index
    %21 = vector.load %arg2[%c2, %c0_18, %c0_19] : memref<9x128x256xbf16, #tpu.memory_space<vmem>>, vector<1x128x256xbf16>
    %22 = vector.shape_cast %21 : vector<1x128x256xbf16> to vector<128x256xbf16>
    %cst_20 = arith.constant dense<0.000000e+00> : vector<64x256xf32>
    %23 = tpu.matmul %20, %22, %cst_20 {dimension_numbers = #tpu.dot_dimension_numbers<[1], [0], [0], [1], [0, 0, 1, 1], [], []>} : vector<64x128xbf16>, vector<128x256xbf16>, vector<64x256xf32> -> vector<64x256xf32>
    %24 = arith.addf %16, %23 : vector<64x256xf32>
    %c2_21 = arith.constant 2 : index
    %c0_22 = arith.constant 0 : index
    %c0_23 = arith.constant 0 : index
    %c0_24 = arith.constant 0 : index
    %25 = vector.load %arg1[%c2_21, %c0_22, %c0_23, %c0_24] : memref<4x9x9x128xf32, #tpu.memory_space<vmem>>, vector<1x8x8x128xf32>
    %26 = vector.shape_cast %25 : vector<1x8x8x128xf32> to vector<8x8x128xf32>
    %27 = vector.shape_cast %26 : vector<8x8x128xf32> to vector<64x128xf32>
    %28 = arith.truncf %27 : vector<64x128xf32> to vector<64x128xbf16>
    %c3 = arith.constant 3 : index
    %c0_25 = arith.constant 0 : index
    %c0_26 = arith.constant 0 : index
    %29 = vector.load %arg2[%c3, %c0_25, %c0_26] : memref<9x128x256xbf16, #tpu.memory_space<vmem>>, vector<1x128x256xbf16>
    %30 = vector.shape_cast %29 : vector<1x128x256xbf16> to vector<128x256xbf16>
    %cst_27 = arith.constant dense<0.000000e+00> : vector<64x256xf32>
    %31 = tpu.matmul %28, %30, %cst_27 {dimension_numbers = #tpu.dot_dimension_numbers<[1], [0], [0], [1], [0, 0, 1, 1], [], []>} : vector<64x128xbf16>, vector<128x256xbf16>, vector<64x256xf32> -> vector<64x256xf32>
    %32 = arith.addf %24, %31 : vector<64x256xf32>
    %c3_28 = arith.constant 3 : index
    %c0_29 = arith.constant 0 : index
    %c0_30 = arith.constant 0 : index
    %c0_31 = arith.constant 0 : index
    %33 = vector.load %arg1[%c3_28, %c0_29, %c0_30, %c0_31] : memref<4x9x9x128xf32, #tpu.memory_space<vmem>>, vector<1x8x8x128xf32>
    %34 = vector.shape_cast %33 : vector<1x8x8x128xf32> to vector<8x8x128xf32>
    %35 = vector.shape_cast %34 : vector<8x8x128xf32> to vector<64x128xf32>
    %36 = arith.truncf %35 : vector<64x128xf32> to vector<64x128xbf16>
    %c4 = arith.constant 4 : index
    %c0_32 = arith.constant 0 : index
    %c0_33 = arith.constant 0 : index
    %37 = vector.load %arg2[%c4, %c0_32, %c0_33] : memref<9x128x256xbf16, #tpu.memory_space<vmem>>, vector<1x128x256xbf16>
    %38 = vector.shape_cast %37 : vector<1x128x256xbf16> to vector<128x256xbf16>
    %cst_34 = arith.constant dense<0.000000e+00> : vector<64x256xf32>
    %39 = tpu.matmul %36, %38, %cst_34 {dimension_numbers = #tpu.dot_dimension_numbers<[1], [0], [0], [1], [0, 0, 1, 1], [], []>} : vector<64x128xbf16>, vector<128x256xbf16>, vector<64x256xf32> -> vector<64x256xf32>
    %40 = arith.addf %32, %39 : vector<64x256xf32>
    %c2_35 = arith.constant 2 : index
    %c0_36 = arith.constant 0 : index
    %c1_37 = arith.constant 1 : index
    %c0_38 = arith.constant 0 : index
    %41 = vector.load %arg1[%c2_35, %c0_36, %c1_37, %c0_38] : memref<4x9x9x128xf32, #tpu.memory_space<vmem>>, vector<1x8x8x128xf32>
    %42 = vector.shape_cast %41 : vector<1x8x8x128xf32> to vector<8x8x128xf32>
    %43 = vector.shape_cast %42 : vector<8x8x128xf32> to vector<64x128xf32>
    %44 = arith.truncf %43 : vector<64x128xf32> to vector<64x128xbf16>
    %c5 = arith.constant 5 : index
    %c0_39 = arith.constant 0 : index
    %c0_40 = arith.constant 0 : index
    %45 = vector.load %arg2[%c5, %c0_39, %c0_40] : memref<9x128x256xbf16, #tpu.memory_space<vmem>>, vector<1x128x256xbf16>
    %46 = vector.shape_cast %45 : vector<1x128x256xbf16> to vector<128x256xbf16>
    %cst_41 = arith.constant dense<0.000000e+00> : vector<64x256xf32>
    %47 = tpu.matmul %44, %46, %cst_41 {dimension_numbers = #tpu.dot_dimension_numbers<[1], [0], [0], [1], [0, 0, 1, 1], [], []>} : vector<64x128xbf16>, vector<128x256xbf16>, vector<64x256xf32> -> vector<64x256xf32>
    %48 = arith.addf %40, %47 : vector<64x256xf32>
    %c0_42 = arith.constant 0 : index
    %c1_43 = arith.constant 1 : index
    %c0_44 = arith.constant 0 : index
    %c0_45 = arith.constant 0 : index
    %49 = vector.load %arg1[%c0_42, %c1_43, %c0_44, %c0_45] : memref<4x9x9x128xf32, #tpu.memory_space<vmem>>, vector<1x8x8x128xf32>
    %50 = vector.shape_cast %49 : vector<1x8x8x128xf32> to vector<8x8x128xf32>
    %51 = vector.shape_cast %50 : vector<8x8x128xf32> to vector<64x128xf32>
    %52 = arith.truncf %51 : vector<64x128xf32> to vector<64x128xbf16>
    %c6 = arith.constant 6 : index
    %c0_46 = arith.constant 0 : index
    %c0_47 = arith.constant 0 : index
    %53 = vector.load %arg2[%c6, %c0_46, %c0_47] : memref<9x128x256xbf16, #tpu.memory_space<vmem>>, vector<1x128x256xbf16>
    %54 = vector.shape_cast %53 : vector<1x128x256xbf16> to vector<128x256xbf16>
    %cst_48 = arith.constant dense<0.000000e+00> : vector<64x256xf32>
    %55 = tpu.matmul %52, %54, %cst_48 {dimension_numbers = #tpu.dot_dimension_numbers<[1], [0], [0], [1], [0, 0, 1, 1], [], []>} : vector<64x128xbf16>, vector<128x256xbf16>, vector<64x256xf32> -> vector<64x256xf32>
    %56 = arith.addf %48, %55 : vector<64x256xf32>
    %c1_49 = arith.constant 1 : index
    %c1_50 = arith.constant 1 : index
    %c0_51 = arith.constant 0 : index
    %c0_52 = arith.constant 0 : index
    %57 = vector.load %arg1[%c1_49, %c1_50, %c0_51, %c0_52] : memref<4x9x9x128xf32, #tpu.memory_space<vmem>>, vector<1x8x8x128xf32>
    %58 = vector.shape_cast %57 : vector<1x8x8x128xf32> to vector<8x8x128xf32>
    %59 = vector.shape_cast %58 : vector<8x8x128xf32> to vector<64x128xf32>
    %60 = arith.truncf %59 : vector<64x128xf32> to vector<64x128xbf16>
    %c7 = arith.constant 7 : index
    %c0_53 = arith.constant 0 : index
    %c0_54 = arith.constant 0 : index
    %61 = vector.load %arg2[%c7, %c0_53, %c0_54] : memref<9x128x256xbf16, #tpu.memory_space<vmem>>, vector<1x128x256xbf16>
    %62 = vector.shape_cast %61 : vector<1x128x256xbf16> to vector<128x256xbf16>
    %cst_55 = arith.constant dense<0.000000e+00> : vector<64x256xf32>
    %63 = tpu.matmul %60, %62, %cst_55 {dimension_numbers = #tpu.dot_dimension_numbers<[1], [0], [0], [1], [0, 0, 1, 1], [], []>} : vector<64x128xbf16>, vector<128x256xbf16>, vector<64x256xf32> -> vector<64x256xf32>
    %64 = arith.addf %56, %63 : vector<64x256xf32>
    %c0_56 = arith.constant 0 : index
    %c1_57 = arith.constant 1 : index
    %c1_58 = arith.constant 1 : index
    %c0_59 = arith.constant 0 : index
    %65 = vector.load %arg1[%c0_56, %c1_57, %c1_58, %c0_59] : memref<4x9x9x128xf32, #tpu.memory_space<vmem>>, vector<1x8x8x128xf32>
    %66 = vector.shape_cast %65 : vector<1x8x8x128xf32> to vector<8x8x128xf32>
    %67 = vector.shape_cast %66 : vector<8x8x128xf32> to vector<64x128xf32>
    %68 = arith.truncf %67 : vector<64x128xf32> to vector<64x128xbf16>
    %c8 = arith.constant 8 : index
    %c0_60 = arith.constant 0 : index
    %c0_61 = arith.constant 0 : index
    %69 = vector.load %arg2[%c8, %c0_60, %c0_61] : memref<9x128x256xbf16, #tpu.memory_space<vmem>>, vector<1x128x256xbf16>
    %70 = vector.shape_cast %69 : vector<1x128x256xbf16> to vector<128x256xbf16>
    %cst_62 = arith.constant dense<0.000000e+00> : vector<64x256xf32>
    %71 = tpu.matmul %68, %70, %cst_62 {dimension_numbers = #tpu.dot_dimension_numbers<[1], [0], [0], [1], [0, 0, 1, 1], [], []>} : vector<64x128xbf16>, vector<128x256xbf16>, vector<64x256xf32> -> vector<64x256xf32>
    %72 = arith.addf %64, %71 : vector<64x256xf32>
    %c0_63 = arith.constant 0 : index
    %c0_64 = arith.constant 0 : index
    %73 = vector.load %arg3[%c0_63, %c0_64] : memref<1x256xf32, #tpu.memory_space<vmem>>, vector<1x256xf32>
    %74 = vector.broadcast %73 : vector<1x256xf32> to vector<64x256xf32>
    %75 = arith.mulf %72, %74 : vector<64x256xf32>
    %c0_65 = arith.constant 0 : index
    %c0_66 = arith.constant 0 : index
    %76 = vector.load %arg4[%c0_65, %c0_66] : memref<1x256xf32, #tpu.memory_space<vmem>>, vector<1x256xf32>
    %77 = vector.broadcast %76 : vector<1x256xf32> to vector<64x256xf32>
    %78 = arith.addf %75, %77 : vector<64x256xf32>
    %cst_67 = arith.constant 0.000000e+00 : f32
    %79 = vector.broadcast %cst_67 : f32 to vector<64x256xf32>
    %80 = arith.maximumf %78, %79 : vector<64x256xf32>
    %cst_68 = arith.constant 0.000000e+00 : f32
    %81 = vector.broadcast %cst_68 : f32 to vector<10x24x256xf32>
    %c0_69 = arith.constant 0 : index
    %c0_70 = arith.constant 0 : index
    %c0_71 = arith.constant 0 : index
    %82 = vector.load %arg12[%c0_69, %c0_70, %c0_71] : memref<10x24x256xf32, #tpu.memory_space<vmem>>, vector<10x24x256xf32>
    tpu.vector_store %arg12[%c0_69, %c0_70, %c0_71], %81 {strides = array<i32>} : memref<10x24x256xf32, #tpu.memory_space<vmem>>, vector<10x24x256xf32>,
    %83 = vector.shape_cast %80 : vector<64x256xf32> to vector<8x8x256xf32>
    %c1_72 = arith.constant 1 : index
    %c8_73 = arith.constant 8 : index
    %c0_74 = arith.constant 0 : index
    %84 = vector.load %arg12[%c1_72, %c8_73, %c0_74] : memref<10x24x256xf32, #tpu.memory_space<vmem>>, vector<8x8x256xf32>
    tpu.vector_store %arg12[%c1_72, %c8_73, %c0_74], %83 {strides = array<i32>} : memref<10x24x256xf32, #tpu.memory_space<vmem>>, vector<8x8x256xf32>,
    %cst_75 = arith.constant 0.000000e+00 : f32
    %85 = vector.broadcast %cst_75 : f32 to vector<64x256xf32>
    %c0_76 = arith.constant 0 : index
    %c7_77 = arith.constant 7 : index
    %c0_78 = arith.constant 0 : index
    %86 = vector.load %arg12[%c0_76, %c7_77, %c0_78] : memref<10x24x256xf32, #tpu.memory_space<vmem>>, vector<8x8x256xf32>
    %87 = vector.shape_cast %86 : vector<8x8x256xf32> to vector<64x256xf32>
    %88 = arith.truncf %87 : vector<64x256xf32> to vector<64x256xbf16>
    %c0_79 = arith.constant 0 : index
    %c0_80 = arith.constant 0 : index
    %c0_81 = arith.constant 0 : index
    %89 = vector.load %arg5[%c0_79, %c0_80, %c0_81] : memref<9x256x256xbf16, #tpu.memory_space<vmem>>, vector<1x256x256xbf16>
    %90 = vector.shape_cast %89 : vector<1x256x256xbf16> to vector<256x256xbf16>
    %cst_82 = arith.constant dense<0.000000e+00> : vector<64x256xf32>
    %91 = tpu.matmul %88, %90, %cst_82 {dimension_numbers = #tpu.dot_dimension_numbers<[1], [0], [0], [1], [0, 0, 1, 1], [], []>} : vector<64x256xbf16>, vector<256x256xbf16>, vector<64x256xf32> -> vector<64x256xf32>
    %92 = arith.addf %85, %91 : vector<64x256xf32>
    %c0_83 = arith.constant 0 : index
    %c8_84 = arith.constant 8 : index
    %c0_85 = arith.constant 0 : index
    %93 = vector.load %arg12[%c0_83, %c8_84, %c0_85] : memref<10x24x256xf32, #tpu.memory_space<vmem>>, vector<8x8x256xf32>
    %94 = vector.shape_cast %93 : vector<8x8x256xf32> to vector<64x256xf32>
    %95 = arith.truncf %94 : vector<64x256xf32> to vector<64x256xbf16>
    %c1_86 = arith.constant 1 : index
    %c0_87 = arith.constant 0 : index
    %c0_88 = arith.constant 0 : index
    %96 = vector.load %arg5[%c1_86, %c0_87, %c0_88] : memref<9x256x256xbf16, #tpu.memory_space<vmem>>, vector<1x256x256xbf16>
    %97 = vector.shape_cast %96 : vector<1x256x256xbf16> to vector<256x256xbf16>
    %cst_89 = arith.constant dense<0.000000e+00> : vector<64x256xf32>
    %98 = tpu.matmul %95, %97, %cst_89 {dimension_numbers = #tpu.dot_dimension_numbers<[1], [0], [0], [1], [0, 0, 1, 1], [], []>} : vector<64x256xbf16>, vector<256x256xbf16>, vector<64x256xf32> -> vector<64x256xf32>
    %99 = arith.addf %92, %98 : vector<64x256xf32>
    %c0_90 = arith.constant 0 : index
    %c9 = arith.constant 9 : index
    %c0_91 = arith.constant 0 : index
    %100 = vector.load %arg12[%c0_90, %c9, %c0_91] : memref<10x24x256xf32, #tpu.memory_space<vmem>>, vector<8x8x256xf32>
    %101 = vector.shape_cast %100 : vector<8x8x256xf32> to vector<64x256xf32>
    %102 = arith.truncf %101 : vector<64x256xf32> to vector<64x256xbf16>
    %c2_92 = arith.constant 2 : index
    %c0_93 = arith.constant 0 : index
    %c0_94 = arith.constant 0 : index
    %103 = vector.load %arg5[%c2_92, %c0_93, %c0_94] : memref<9x256x256xbf16, #tpu.memory_space<vmem>>, vector<1x256x256xbf16>
    %104 = vector.shape_cast %103 : vector<1x256x256xbf16> to vector<256x256xbf16>
    %cst_95 = arith.constant dense<0.000000e+00> : vector<64x256xf32>
    %105 = tpu.matmul %102, %104, %cst_95 {dimension_numbers = #tpu.dot_dimension_numbers<[1], [0], [0], [1], [0, 0, 1, 1], [], []>} : vector<64x256xbf16>, vector<256x256xbf16>, vector<64x256xf32> -> vector<64x256xf32>
    %106 = arith.addf %99, %105 : vector<64x256xf32>
    %c1_96 = arith.constant 1 : index
    %c7_97 = arith.constant 7 : index
    %c0_98 = arith.constant 0 : index
    %107 = vector.load %arg12[%c1_96, %c7_97, %c0_98] : memref<10x24x256xf32, #tpu.memory_space<vmem>>, vector<8x8x256xf32>
    %108 = vector.shape_cast %107 : vector<8x8x256xf32> to vector<64x256xf32>
    %109 = arith.truncf %108 : vector<64x256xf32> to vector<64x256xbf16>
    %c3_99 = arith.constant 3 : index
    %c0_100 = arith.constant 0 : index
    %c0_101 = arith.constant 0 : index
    %110 = vector.load %arg5[%c3_99, %c0_100, %c0_101] : memref<9x256x256xbf16, #tpu.memory_space<vmem>>, vector<1x256x256xbf16>
    %111 = vector.shape_cast %110 : vector<1x256x256xbf16> to vector<256x256xbf16>
    %cst_102 = arith.constant dense<0.000000e+00> : vector<64x256xf32>
    %112 = tpu.matmul %109, %111, %cst_102 {dimension_numbers = #tpu.dot_dimension_numbers<[1], [0], [0], [1], [0, 0, 1, 1], [], []>} : vector<64x256xbf16>, vector<256x256xbf16>, vector<64x256xf32> -> vector<64x256xf32>
    %113 = arith.addf %106, %112 : vector<64x256xf32>
    %c1_103 = arith.constant 1 : index
    %c8_104 = arith.constant 8 : index
    %c0_105 = arith.constant 0 : index
    %114 = vector.load %arg12[%c1_103, %c8_104, %c0_105] : memref<10x24x256xf32, #tpu.memory_space<vmem>>, vector<8x8x256xf32>
    %115 = vector.shape_cast %114 : vector<8x8x256xf32> to vector<64x256xf32>
    %116 = arith.truncf %115 : vector<64x256xf32> to vector<64x256xbf16>
    %c4_106 = arith.constant 4 : index
    %c0_107 = arith.constant 0 : index
    %c0_108 = arith.constant 0 : index
    %117 = vector.load %arg5[%c4_106, %c0_107, %c0_108] : memref<9x256x256xbf16, #tpu.memory_space<vmem>>, vector<1x256x256xbf16>
    %118 = vector.shape_cast %117 : vector<1x256x256xbf16> to vector<256x256xbf16>
    %cst_109 = arith.constant dense<0.000000e+00> : vector<64x256xf32>
    %119 = tpu.matmul %116, %118, %cst_109 {dimension_numbers = #tpu.dot_dimension_numbers<[1], [0], [0], [1], [0, 0, 1, 1], [], []>} : vector<64x256xbf16>, vector<256x256xbf16>, vector<64x256xf32> -> vector<64x256xf32>
    %120 = arith.addf %113, %119 : vector<64x256xf32>
    %c1_110 = arith.constant 1 : index
    %c9_111 = arith.constant 9 : index
    %c0_112 = arith.constant 0 : index
    %121 = vector.load %arg12[%c1_110, %c9_111, %c0_112] : memref<10x24x256xf32, #tpu.memory_space<vmem>>, vector<8x8x256xf32>
    %122 = vector.shape_cast %121 : vector<8x8x256xf32> to vector<64x256xf32>
    %123 = arith.truncf %122 : vector<64x256xf32> to vector<64x256xbf16>
    %c5_113 = arith.constant 5 : index
    %c0_114 = arith.constant 0 : index
    %c0_115 = arith.constant 0 : index
    %124 = vector.load %arg5[%c5_113, %c0_114, %c0_115] : memref<9x256x256xbf16, #tpu.memory_space<vmem>>, vector<1x256x256xbf16>
    %125 = vector.shape_cast %124 : vector<1x256x256xbf16> to vector<256x256xbf16>
    %cst_116 = arith.constant dense<0.000000e+00> : vector<64x256xf32>
    %126 = tpu.matmul %123, %125, %cst_116 {dimension_numbers = #tpu.dot_dimension_numbers<[1], [0], [0], [1], [0, 0, 1, 1], [], []>} : vector<64x256xbf16>, vector<256x256xbf16>, vector<64x256xf32> -> vector<64x256xf32>
    %127 = arith.addf %120, %126 : vector<64x256xf32>
    %c2_117 = arith.constant 2 : index
    %c7_118 = arith.constant 7 : index
    %c0_119 = arith.constant 0 : index
    %128 = vector.load %arg12[%c2_117, %c7_118, %c0_119] : memref<10x24x256xf32, #tpu.memory_space<vmem>>, vector<8x8x256xf32>
    %129 = vector.shape_cast %128 : vector<8x8x256xf32> to vector<64x256xf32>
    %130 = arith.truncf %129 : vector<64x256xf32> to vector<64x256xbf16>
    %c6_120 = arith.constant 6 : index
    %c0_121 = arith.constant 0 : index
    %c0_122 = arith.constant 0 : index
    %131 = vector.load %arg5[%c6_120, %c0_121, %c0_122] : memref<9x256x256xbf16, #tpu.memory_space<vmem>>, vector<1x256x256xbf16>
    %132 = vector.shape_cast %131 : vector<1x256x256xbf16> to vector<256x256xbf16>
    %cst_123 = arith.constant dense<0.000000e+00> : vector<64x256xf32>
    %133 = tpu.matmul %130, %132, %cst_123 {dimension_numbers = #tpu.dot_dimension_numbers<[1], [0], [0], [1], [0, 0, 1, 1], [], []>} : vector<64x256xbf16>, vector<256x256xbf16>, vector<64x256xf32> -> vector<64x256xf32>
    %134 = arith.addf %127, %133 : vector<64x256xf32>
    %c2_124 = arith.constant 2 : index
    %c8_125 = arith.constant 8 : index
    %c0_126 = arith.constant 0 : index
    %135 = vector.load %arg12[%c2_124, %c8_125, %c0_126] : memref<10x24x256xf32, #tpu.memory_space<vmem>>, vector<8x8x256xf32>
    %136 = vector.shape_cast %135 : vector<8x8x256xf32> to vector<64x256xf32>
    %137 = arith.truncf %136 : vector<64x256xf32> to vector<64x256xbf16>
    %c7_127 = arith.constant 7 : index
    %c0_128 = arith.constant 0 : index
    %c0_129 = arith.constant 0 : index
    %138 = vector.load %arg5[%c7_127, %c0_128, %c0_129] : memref<9x256x256xbf16, #tpu.memory_space<vmem>>, vector<1x256x256xbf16>
    %139 = vector.shape_cast %138 : vector<1x256x256xbf16> to vector<256x256xbf16>
    %cst_130 = arith.constant dense<0.000000e+00> : vector<64x256xf32>
    %140 = tpu.matmul %137, %139, %cst_130 {dimension_numbers = #tpu.dot_dimension_numbers<[1], [0], [0], [1], [0, 0, 1, 1], [], []>} : vector<64x256xbf16>, vector<256x256xbf16>, vector<64x256xf32> -> vector<64x256xf32>
    %141 = arith.addf %134, %140 : vector<64x256xf32>
    %c2_131 = arith.constant 2 : index
    %c9_132 = arith.constant 9 : index
    %c0_133 = arith.constant 0 : index
    %142 = vector.load %arg12[%c2_131, %c9_132, %c0_133] : memref<10x24x256xf32, #tpu.memory_space<vmem>>, vector<8x8x256xf32>
    %143 = vector.shape_cast %142 : vector<8x8x256xf32> to vector<64x256xf32>
    %144 = arith.truncf %143 : vector<64x256xf32> to vector<64x256xbf16>
    %c8_134 = arith.constant 8 : index
    %c0_135 = arith.constant 0 : index
    %c0_136 = arith.constant 0 : index
    %145 = vector.load %arg5[%c8_134, %c0_135, %c0_136] : memref<9x256x256xbf16, #tpu.memory_space<vmem>>, vector<1x256x256xbf16>
    %146 = vector.shape_cast %145 : vector<1x256x256xbf16> to vector<256x256xbf16>
    %cst_137 = arith.constant dense<0.000000e+00> : vector<64x256xf32>
    %147 = tpu.matmul %144, %146, %cst_137 {dimension_numbers = #tpu.dot_dimension_numbers<[1], [0], [0], [1], [0, 0, 1, 1], [], []>} : vector<64x256xbf16>, vector<256x256xbf16>, vector<64x256xf32> -> vector<64x256xf32>
    %148 = arith.addf %141, %147 : vector<64x256xf32>
    %c0_138 = arith.constant 0 : index
    %c0_139 = arith.constant 0 : index
    %149 = vector.load %arg6[%c0_138, %c0_139] : memref<1x256xf32, #tpu.memory_space<vmem>>, vector<1x256xf32>
    %150 = vector.broadcast %149 : vector<1x256xf32> to vector<64x256xf32>
    %151 = arith.mulf %148, %150 : vector<64x256xf32>
    %c0_140 = arith.constant 0 : index
    %c0_141 = arith.constant 0 : index
    %152 = vector.load %arg7[%c0_140, %c0_141] : memref<1x256xf32, #tpu.memory_space<vmem>>, vector<1x256xf32>
    %153 = vector.broadcast %152 : vector<1x256xf32> to vector<64x256xf32>
    %154 = arith.addf %151, %153 : vector<64x256xf32>
    %c3_142 = arith.constant 3 : index
    %c0_143 = arith.constant 0 : index
    %c0_144 = arith.constant 0 : index
    %c0_145 = arith.constant 0 : index
    %155 = vector.load %arg1[%c3_142, %c0_143, %c0_144, %c0_145] : memref<4x9x9x128xf32, #tpu.memory_space<vmem>>, vector<1x8x8x128xf32>
    %156 = vector.shape_cast %155 : vector<1x8x8x128xf32> to vector<8x8x128xf32>
    %157 = vector.shape_cast %156 : vector<8x8x128xf32> to vector<64x128xf32>
    %158 = arith.truncf %157 : vector<64x128xf32> to vector<64x128xbf16>
    %c0_146 = arith.constant 0 : index
    %c0_147 = arith.constant 0 : index
    %159 = vector.load %arg8[%c0_146, %c0_147] : memref<128x256xbf16, #tpu.memory_space<vmem>>, vector<128x256xbf16>
    %cst_148 = arith.constant dense<0.000000e+00> : vector<64x256xf32>
    %160 = tpu.matmul %158, %159, %cst_148 {dimension_numbers = #tpu.dot_dimension_numbers<[1], [0], [0], [1], [0, 0, 1, 1], [], []>} : vector<64x128xbf16>, vector<128x256xbf16>, vector<64x256xf32> -> vector<64x256xf32>
    %c0_149 = arith.constant 0 : index
    %c0_150 = arith.constant 0 : index
    %161 = vector.load %arg9[%c0_149, %c0_150] : memref<1x256xf32, #tpu.memory_space<vmem>>, vector<1x256xf32>
    %162 = vector.broadcast %161 : vector<1x256xf32> to vector<64x256xf32>
    %163 = arith.mulf %160, %162 : vector<64x256xf32>
    %c0_151 = arith.constant 0 : index
    %c0_152 = arith.constant 0 : index
    %164 = vector.load %arg10[%c0_151, %c0_152] : memref<1x256xf32, #tpu.memory_space<vmem>>, vector<1x256xf32>
    %165 = vector.broadcast %164 : vector<1x256xf32> to vector<64x256xf32>
    %166 = arith.addf %163, %165 : vector<64x256xf32>
    %167 = arith.addf %154, %166 : vector<64x256xf32>
    %cst_153 = arith.constant 0.000000e+00 : f32
    %168 = vector.broadcast %cst_153 : f32 to vector<64x256xf32>
    %169 = arith.maximumf %167, %168 : vector<64x256xf32>
    %170 = vector.shape_cast %169 : vector<64x256xf32> to vector<1x8x8x256xf32>
    %c0_154 = arith.constant 0 : index
    %c0_155 = arith.constant 0 : index
    %c0_156 = arith.constant 0 : index
    %c0_157 = arith.constant 0 : index
    %171 = vector.load %arg11[%c0_154, %c0_155, %c0_156, %c0_157] : memref<1x8x8x256xf32, #tpu.memory_space<vmem>>, vector<1x8x8x256xf32>
    tpu.vector_store %arg11[%c0_154, %c0_155, %c0_156, %c0_157], %170 {strides = array<i32>} : memref<1x8x8x256xf32, #tpu.memory_space<vmem>>, vector<1x8x8x256xf32>,
    return
  }
  func.func @transform_0(%arg0: i32) -> (i32, i32, i32, i32) {
    %c0_i32 = arith.constant 0 : i32
    %c0_i32_0 = arith.constant 0 : i32
    %c0_i32_1 = arith.constant 0 : i32
    %c0_i32_2 = arith.constant 0 : i32
    return %arg0, %c0_i32, %c0_i32_0, %c0_i32_1 : i32, i32, i32, i32
  }
  func.func @transform_1(%arg0: i32) -> (i32, i32, i32) {
    %c0_i32 = arith.constant 0 : i32
    %c0_i32_0 = arith.constant 0 : i32
    %c0_i32_1 = arith.constant 0 : i32
    %c0_i32_2 = arith.constant 0 : i32
    return %c0_i32, %c0_i32_0, %c0_i32_1 : i32, i32, i32
  }
  func.func @transform_2(%arg0: i32) -> (i32, i32) {
    %c0_i32 = arith.constant 0 : i32
    %c0_i32_0 = arith.constant 0 : i32
    %c0_i32_1 = arith.constant 0 : i32
    return %c0_i32, %c0_i32_0 : i32, i32
  }
  func.func @transform_3(%arg0: i32) -> (i32, i32) {
    %c0_i32 = arith.constant 0 : i32
    %c0_i32_0 = arith.constant 0 : i32
    %c0_i32_1 = arith.constant 0 : i32
    return %c0_i32, %c0_i32_0 : i32, i32
  }
  func.func @transform_4(%arg0: i32) -> (i32, i32, i32) {
    %c0_i32 = arith.constant 0 : i32
    %c0_i32_0 = arith.constant 0 : i32
    %c0_i32_1 = arith.constant 0 : i32
    %c0_i32_2 = arith.constant 0 : i32
    return %c0_i32, %c0_i32_0, %c0_i32_1 : i32, i32, i32
  }
  func.func @transform_5(%arg0: i32) -> (i32, i32) {
    %c0_i32 = arith.constant 0 : i32
    %c0_i32_0 = arith.constant 0 : i32
    %c0_i32_1 = arith.constant 0 : i32
    return %c0_i32, %c0_i32_0 : i32, i32
  }
  func.func @transform_6(%arg0: i32) -> (i32, i32) {
    %c0_i32 = arith.constant 0 : i32
    %c0_i32_0 = arith.constant 0 : i32
    %c0_i32_1 = arith.constant 0 : i32
    return %c0_i32, %c0_i32_0 : i32, i32
  }
  func.func @transform_7(%arg0: i32) -> (i32, i32) {
    %c0_i32 = arith.constant 0 : i32
    %c0_i32_0 = arith.constant 0 : i32
    %c0_i32_1 = arith.constant 0 : i32
    return %c0_i32, %c0_i32_0 : i32, i32
  }
  func.func @transform_8(%arg0: i32) -> (i32, i32) {
    %c0_i32 = arith.constant 0 : i32
    %c0_i32_0 = arith.constant 0 : i32
    %c0_i32_1 = arith.constant 0 : i32
    return %c0_i32, %c0_i32_0 : i32, i32
  }
  func.func @transform_9(%arg0: i32) -> (i32, i32) {
    %c0_i32 = arith.constant 0 : i32
    %c0_i32_0 = arith.constant 0 : i32
    %c0_i32_1 = arith.constant 0 : i32
    return %c0_i32, %c0_i32_0 : i32, i32
  }
  func.func @transform_10(%arg0: i32) -> (i32, i32, i32, i32) {
    %c0_i32 = arith.constant 0 : i32
    %c0_i32_0 = arith.constant 0 : i32
    %c0_i32_1 = arith.constant 0 : i32
    %c0_i32_2 = arith.constant 0 : i32
    return %arg0, %c0_i32, %c0_i32_0, %c0_i32_1 : i32, i32, i32, i32
  }
}

</mosaic_0001>

<bundles_post_ra>
// kernel: fwd.2
= control target key start
LH: loop header
LB: loop body
LE: loop exit
PB: predicated region body
PF: predicated region fallthrough
CT: control target
= control target key end

     0   :  { %12 = vsyncpa [#allocation4], 0  ;;  %s9573_s0 = inlined_call_operand.vmem [shape: f32[2,18,18,128], index: 0, kind: input, shape index: {}]   ;;  %s9574_s1 = inlined_call_operand.hbm [shape: bf16[9,128,128], index: 1, kind: input, shape index: {}]   ;;  %s9575_s2 = inlined_call_operand.vmem [shape: f32[1,128], index: 2, kind: input, shape index: {}, may-alias: {2,5}]   ;;  %s9576_s3 = inlined_call_operand.vmem [shape: f32[1,128], index: 3, kind: input, shape index: {}, may-alias: {3,6}]   ;;  %s9577_s4 = inlined_call_operand.hbm [shape: bf16[9,128,128], index: 4, kind: input, shape index: {}]   ;;  %s9578_s5 = inlined_call_operand.vmem [shape: f32[1,128], index: 5, kind: input, shape index: {}, may-alias: {2,5}]   ;;  %s9579_s6 = inlined_call_operand.vmem [shape: f32[1,128], index: 6, kind: input, shape index: {}, may-alias: {3,6}]   ;;  %s9580_s7 = inlined_call_operand.vmem [shape: f32[2,16,16,128], index: 7, kind: output, shape index: {}]  }
   0x1   :  { %13 = vsyncpa [#allocation6], 0  ;;  %s8680_s24 = smov 0  }
   0x2 LB: > { %s8686_s25 = sadd.s32 4294967295, %s8632_s24   ;;  %p6191_p0 = scmp.ge.s32.totalorder %s8632_s24, 1  ;;  %s8632_s24 = sphi %s8680_s24, %s19_s24  }
   0x3   : > { %p202_p1 = scmp.lt.s32.totalorder %s8632_s24, 3  ;;  %s8634_s26 = smov [#allocation3]  }
   0x4   : > { %s214_s27 = sshll.u32 %s8634_s26, 4  ;;  %p9581_p3 = scmp.eq.s32.totalorder %s8686_s25, 0  ;;  %s215_s27 = int_to_ptr.vmem [resolvable:$true] %s214_s27 }
   0x5   : > { %p8690_p2 = pnand %p6191_p0, %p202_p1  ;;  %s8635_s29 = smov [#allocation5]  }
   0x6   : > { %s233_s30 = sshll.u32 %s8635_s29, 4  ;;  %s8562_s11 = scalar_lea.hbm %s9574_s1, 9216  ;;  %s8703_s30 = int_to_ptr.vmem [resolvable:$true] %s233_s30 }
   0x7   : > { %s9583_s28 = scalar_select %p8690_p2, 1, 0 }
   0x8   : > { %p8393_p4 = pneg %p8690_p2  ;;  %p8563_p6 = scmp.ne.s32.totalorder %s9574_s1, %s8562_s11 }
   0x9   : > { %p8569_p10 = scmp.lt.u32.totalorder %s8562_s11, %s9574_s1 }
   0xa   : > { %p8699_p5 = pnand %p9581_p3, %p8393_p4 }
   0xc   : > { %p8564_p7 = pneg %p8699_p5 }
   0xe   : > { %p8565_p8 = pnand %p8564_p7, %p8563_p6 }
  0x10   : > { %p8566_p9 = pneg %p8565_p8 }
  0x12   : > { %p8571_p11 = pnand %p8569_p10, %p8566_p9 }
  0x14   : > { %8574 = shalt.err (!%p8571_p11)
}
  0x15   : > { %s8575_s16 = scalar_lea.vmem %s215_s27, 9216  ;;  %p8583_p1 = scmp.lt.s32.totalorder %s215_s27, %s215_s27 }
  0x16   : > { %p8576_p12 = scmp.ne.s32.totalorder %s215_s27, %s8575_s16  ;;  %p8584_p4 = scmp.lt.s32.totalorder %s8575_s16, %s8575_s16 }
  0x18   : > { %p8578_p13 = pnand %p8576_p12, %p8564_p7  ;;  %p8585_p3 = por %p8584_p4, %p8583_p1 }
  0x1a   : > { %p8579_p0 = pneg %p8578_p13 }
  0x1c   : > { %p8586_p2 = pnand %p8585_p3, %p8579_p0 }
  0x1e   : > { %8589 = shalt.err (!%p8586_p2)
}
  0x1f   : > { %s8636_s17 = smov 64   ;;  %s8637_s18 = smov 4  }
  0x20   : > { %8396 = dma.hbm_to_vmem [thread:$0]  (!%p8699_p5), %s9574_s1, 9216, %s215_s27, [#allocation4], %s8636_s17, %s8636_s17, %s8637_s18  }
  0x21   : > { %s8590_s23 = scalar_lea.hbm %s9577_s4, 9216 }
  0x22   : > { %p8591_p6 = scmp.ne.s32.totalorder %s9577_s4, %s8590_s23  ;;  %p8597_p8 = scmp.lt.u32.totalorder %s8590_s23, %s9577_s4 }
  0x24   : > { %p8593_p2 = pnand %p8591_p6, %p8564_p7 }
  0x26   : > { %p8594_p3 = pneg %p8593_p2 }
  0x28   : > { %p8599_p9 = pnand %p8597_p8, %p8594_p3 }
  0x2a   : > { %8602 = shalt.err (!%p8599_p9)
}
  0x2b   : > { %s8603_s27 = scalar_lea.vmem %s8703_s30, 9216  ;;  %p8611_p13 = scmp.lt.s32.totalorder %s8703_s30, %s8703_s30 }
  0x2c   : > { %p8604_p10 = scmp.ne.s32.totalorder %s8703_s30, %s8603_s27  ;;  %p8612_p0 = scmp.lt.s32.totalorder %s8603_s27, %s8603_s27 }
  0x2e   : > { %p8606_p11 = pnand %p8604_p10, %p8564_p7  ;;  %p8613_p1 = por %p8612_p0, %p8611_p13 }
  0x30   : > { %p8607_p12 = pneg %p8606_p11 }
  0x32   : > { %p8614_p4 = pnand %p8613_p1, %p8607_p12 }
  0x34   : > { %8617 = shalt.err (!%p8614_p4)
}
  0x35   : > { %8399 = dma.hbm_to_vmem [thread:$0]  (!%p8699_p5), %s9577_s4, 9216, %s8703_s30, [#allocation6], %s8636_s17, %s8636_s17, %s8637_s18  }
  0x36   : > { %p9585_p6 = scmp.ne.s32.totalorder %s9583_s28, 0 }
  0x37   : > { %p9586_p2 = scmp.eq.s32.totalorder (!%p9585_p6), %s8686_s25, 0 }
  0x38   : > { %263 = sbr.rel (%p9585_p6) target bundleno = 1627 (0x65b), region = 48 }
  0x3f   : > { %8623 = dma.done.wait (%p9586_p2), [#allocation4], 9216   ;;  %p9587_p7 = pmov %p9586_p2 }
  0x40   : > { %p9588_p3 = pmov %p9586_p2 }
  0x41   : > { %8625 = vsyncadd (%p9587_p7), [#allocation4], 4294958080 }
  0x42   : > { %8627 = dma.done.wait (%p9588_p3), [#allocation6], 9216   ;;  %p9589_p8 = pmov %p9586_p2 }
  0x43   : > { %p299_p9 = scmp.lt.s32.totalorder %s8686_s25, 1  ;;  %v8417_v0 = vld [vmem:[#allocation3 + $0x40] sm:$0xff]   ;;  %v8418_v1 = vld [vmem:[#allocation3 + $0x48] sm:$0xff]   ;;  %v8419_v2 = vld [vmem:[#allocation3 + $0x50] sm:$0xff]  }
  0x44   : > { %8629 = vsyncadd (%p9589_p8), [#allocation6], 4294958080  ;;  %7008 = vmatprep.subr.bf16.mxu0 %v8417_v0  ;;  %v8420_v3 = vld [vmem:[#allocation3 + $0x58] sm:$0xff]   ;;  %v8421_v7 = vld [vmem:[#allocation3 + $0x60] sm:$0xff]  }
  0x45   : > { %s9591_s25 = smov (!%p299_p9, %s8686_s25), 1  ;;  %7009 = vmatpush3.bf16.msra.mxu0 %v8417_v0  ;;  %v8422_v8 = vld [vmem:[#allocation3 + $0x68] sm:$0xff]   ;;  %v8423_v9 = vld [vmem:[#allocation3 + $0x70] sm:$0xff]   ;;  %v8424_v10 = vld [vmem:[#allocation3 + $0x78] sm:$0xff]  }
  0x46   : > { %s8384_s28 = smul.u32 432, %s9591_s25  ;;  %7010 = vmatprep.subr.bf16.mxu0 %v8418_v1  ;;  %v8425_v13 = vld [vmem:[#allocation3] sm:$0xff]   ;;  %v8426_v18 = vld [vmem:[#allocation3 + $0x8] sm:$0xff]   ;;  %v8427_v23 = vld [vmem:[#allocation3 + $0x10] sm:$0xff]   ;;  %s6575_s22 = sshll.u32 %s9591_s25, 8 }
  0x47   : > { %v8428_v26 = vld [vmem:[#allocation3 + $0x18] sm:$0xff]   ;;  %v8429_v31 = vld [vmem:[#allocation3 + $0x20] sm:$0xff]   ;;  %v8430_v34 = vld [vmem:[#allocation3 + $0x28] sm:$0xff]   ;;  %s9451_s25 = scalar_lea.vmem %s9580_s7, %s6575_s22 }
  0x48   : > { %s8770_s13 = scalar_lea.vmem %s9573_s0, %s8384_s28  ;;  %v8431_v39 = vld [vmem:[#allocation3 + $0x30] sm:$0xff]   ;;  %v8432_v41 = vld [vmem:[#allocation3 + $0x38] sm:$0xff]   ;;  %v8433_v47 = vld [vmem:[#allocation3 + $0x80] sm:$0xff]  }
  0x49   : > { %7011 = vmatpush3.bf16.msra.mxu0 %v8418_v1  ;;  %v374_v4 = vld [vmem:[%s8770_s13 + $0x1] sm:$0xff]  ;;  %v375_v5 = vld [vmem:[%s8770_s13 + $0x9] sm:$0xff]  ;;  %v376_v11 = vld [vmem:[%s8770_s13 + $0x19] sm:$0xff] }
  0x4a   : > { %7012 = vmatprep.subr.bf16.mxu0 %v8419_v2  ;;  %v406_v6 = vpack.c.bf16 %v375_v5, %v374_v4  ;;  %v377_v12 = vld [vmem:[%s8770_s13 + $0x21] sm:$0xff]  ;;  %v378_v14 = vld [vmem:[%s8770_s13 + $0x31] sm:$0xff]  ;;  %v379_v15 = vld [vmem:[%s8770_s13 + $0x39] sm:$0xff] }
  0x4b   : > { %v8778_v16 = vpack.c.bf16 %v377_v12, %v376_v11  ;;  %v8780_v17 = vpack.c.bf16 %v379_v15, %v378_v14  ;;  %v380_v19 = vld [vmem:[%s8770_s13 + $0x49] sm:$0xff]  ;;  %v381_v20 = vld [vmem:[%s8770_s13 + $0x51] sm:$0xff]  ;;  %v382_v21 = vld [vmem:[%s8770_s13 + $0x61] sm:$0xff] }
  0x4c   : > { %7024 = vmatprep.mubr.bf16.mxu0 %v406_v6  ;;  %v383_v22 = vld [vmem:[%s8770_s13 + $0x69] sm:$0xff]  ;;  %v8788_v24 = vpack.c.bf16 %v381_v20, %v380_v19  ;;  %v384_v27 = vld [vmem:[%s8770_s13 + $0x79] sm:$0xff]  ;;  %v385_v28 = vld [vmem:[%s8770_s13 + $0x81] sm:$0xff] }
  0x4d   : > { %7013 = vmatpush3.bf16.msra.mxu0 %v8419_v2  ;;  %v8790_v25 = vpack.c.bf16 %v383_v22, %v382_v21  ;;  %v386_v29 = vld [vmem:[%s8770_s13 + $0x91] sm:$0xff]  ;;  %v387_v30 = vld [vmem:[%s8770_s13 + $0x99] sm:$0xff]  ;;  %v8798_v32 = vpack.c.bf16 %v385_v28, %v384_v27  ;;  %v388_v35 = vld [vmem:[%s8770_s13 + $0xa9] sm:$0xff] }
  0x4e   : > { %7014 = vmatprep.subr.bf16.mxu0 %v8420_v3  ;;  %v8800_v33 = vpack.c.bf16 %v387_v30, %v386_v29  ;;  %v389_v36 = vld [vmem:[%s8770_s13 + $0xb1] sm:$0xff]  ;;  %v390_v37 = vld [vmem:[%s8770_s13 + $0xc1] sm:$0xff]  ;;  %v391_v38 = vld [vmem:[%s8770_s13 + $0xc9] sm:$0xff] }
  0x4f   : > { %v8808_v40 = vpack.c.bf16 %v389_v36, %v388_v35  ;;  %v8810_v42 = vpack.c.bf16 %v391_v38, %v390_v37  ;;  %v392_v43 = vld [vmem:[%s8770_s13 + $0xd9] sm:$0xff]  ;;  %v393_v44 = vld [vmem:[%s8770_s13 + $0xe1] sm:$0xff]  ;;  %v394_v45 = vld [vmem:[%s8770_s13 + $0xf1] sm:$0xff] }
  0x50   : > { %v395_v46 = vld [vmem:[%s8770_s13 + $0xf9] sm:$0xff]  ;;  %v8818_v48 = vpack.c.bf16 %v393_v44, %v392_v43  ;;  %v396_v50 = vld [vmem:[%s8770_s13 + $0x109] sm:$0xff]  ;;  %v397_v51 = vld [vmem:[%s8770_s13 + $0x111] sm:$0xff] }
  0x51   : > { %7015 = vmatpush3.bf16.msra.mxu0 %v8420_v3  ;;  %v8820_v49 = vpack.c.bf16 %v395_v46, %v394_v45  ;;  %v398_v52 = vld [vmem:[%s8770_s13 + $0x121] sm:$0xff]  ;;  %v399_v53 = vld [vmem:[%s8770_s13 + $0x129] sm:$0xff]  ;;  %v8828_v54 = vpack.c.bf16 %v397_v51, %v396_v50  ;;  %v400_v56 = vld [vmem:[%s8770_s13 + $0x139] sm:$0xff] }
  0x52   : > { %7016 = vmatprep.subr.bf16.mxu0 %v8421_v7  ;;  %v8830_v55 = vpack.c.bf16 %v399_v53, %v398_v52  ;;  %v401_v57 = vld [vmem:[%s8770_s13 + $0x141] sm:$0xff]  ;;  %v402_v58 = vld [vmem:[%s8770_s13 + $0x151] sm:$0xff]  ;;  %v403_v59 = vld [vmem:[%s8770_s13 + $0x159] sm:$0xff] }
  0x53   : > { %v8838_v60 = vpack.c.bf16 %v401_v57, %v400_v56  ;;  %v8840_v61 = vpack.c.bf16 %v403_v59, %v402_v58  ;;  %v404_v62 = vld [vmem:[%s8770_s13 + $0x169] sm:$0xff]  ;;  %v405_v63 = vld [vmem:[%s8770_s13 + $0x171] sm:$0xff]  ;;  %v310_v0 = vld [vmem:[%s8770_s13] sm:$0xff] }
  0x54   : > { %v311_v1 = vld [vmem:[%s8770_s13 + $0x8] sm:$0xff]  ;;  %v8848_v2 = vpack.c.bf16 %v405_v63, %v404_v62  ;;  %v312_v4 = vld [vmem:[%s8770_s13 + $0x18] sm:$0xff]  ;;  %v313_v5 = vld [vmem:[%s8770_s13 + $0x20] sm:$0xff] }
  0x55   : > { %7017 = vmatpush3.bf16.msra.mxu0 %v8421_v7  ;;  %v342_v3 = vpack.c.bf16 %v311_v1, %v310_v0  ;;  %v314_v6 = vld [vmem:[%s8770_s13 + $0x30] sm:$0xff]  ;;  %v315_v7 = vld [vmem:[%s8770_s13 + $0x38] sm:$0xff]  ;;  %v316_v11 = vld [vmem:[%s8770_s13 + $0x48] sm:$0xff] }
  0x56   : > { %7018 = vmatprep.subr.bf16.mxu0 %v8422_v8  ;;  %v317_v12 = vld [vmem:[%s8770_s13 + $0x50] sm:$0xff]  ;;  %v319_v14 = vld [vmem:[%s8770_s13 + $0x68] sm:$0xff]  ;;  %v8436_v19 = vld [vmem:[#allocation3 + $0x98] sm:$0xff]  }
  0x57   : > { %v8435_v15 = vld [vmem:[#allocation3 + $0x90] sm:$0xff]   ;;  %v320_v21 = vld [vmem:[%s8770_s13 + $0x78] sm:$0xff]  ;;  %v321_v22 = vld [vmem:[%s8770_s13 + $0x80] sm:$0xff] }
  0x58   : > { %v8437_v27 = vld [vmem:[#allocation3 + $0xa0] sm:$0xff]   ;;  %v8875_v28 = vpack.c.bf16 %v321_v22, %v320_v21  ;;  %v8438_v29 = vld [vmem:[#allocation3 + $0xa8] sm:$0xff]   ;;  %v8439_v37 = vld [vmem:[#allocation3 + $0xb0] sm:$0xff]  }
  0x59   : > { %7019 = vmatpush3.bf16.msra.mxu0 %v8422_v8  ;;  %v8855_v8 = vpack.c.bf16 %v313_v5, %v312_v4  ;;  %v326_v35 = vld [vmem:[%s8770_s13 + $0xc0] sm:$0xff]  ;;  %v327_v36 = vld [vmem:[%s8770_s13 + $0xc8] sm:$0xff]  ;;  %v328_v43 = vld [vmem:[%s8770_s13 + $0xd8] sm:$0xff] }
  0x5a   : > { %7020 = vmatprep.subr.bf16.mxu0 %v8423_v9  ;;  %v329_v44 = vld [vmem:[%s8770_s13 + $0xe0] sm:$0xff]  ;;  %v330_v45 = vld [vmem:[%s8770_s13 + $0xf0] sm:$0xff]  ;;  %v331_v46 = vld [vmem:[%s8770_s13 + $0xf8] sm:$0xff] }
  0x5b   : > { %v8895_v50 = vpack.c.bf16 %v329_v44, %v328_v43  ;;  %v8897_v51 = vpack.c.bf16 %v331_v46, %v330_v45  ;;  %v332_v52 = vld [vmem:[%s8770_s13 + $0x108] sm:$0xff]  ;;  %v333_v53 = vld [vmem:[%s8770_s13 + $0x110] sm:$0xff]  ;;  %v334_v56 = vld [vmem:[%s8770_s13 + $0x120] sm:$0xff] }
  0x5c   : > { %v335_v57 = vld [vmem:[%s8770_s13 + $0x128] sm:$0xff]  ;;  %v8905_v58 = vpack.c.bf16 %v333_v53, %v332_v52  ;;  %v336_v62 = vld [vmem:[%s8770_s13 + $0x138] sm:$0xff]  ;;  %v337_v63 = vld [vmem:[%s8770_s13 + $0x140] sm:$0xff] }
  0x5d   : > { %7021 = vmatpush3.bf16.msra.mxu0 %v8423_v9  ;;  %v8434_v9 = vld [vmem:[#allocation3 + $0x88] sm:$0xff]   ;;  %v8907_v59 = vpack.c.bf16 %v335_v57, %v334_v56  ;;  %v338_v0 = vld [vmem:[%s8770_s13 + $0x150] sm:$0xff]  ;;  %v339_v1 = vld [vmem:[%s8770_s13 + $0x158] sm:$0xff] }
  0x5e   : > { %7022 = vmatprep.subr.bf16.mxu0 %v8424_v10  ;;  %v8917_v4 = vpack.c.bf16 %v339_v1, %v338_v0  ;;  %v340_v5 = vld [vmem:[%s8770_s13 + $0x168] sm:$0xff]  ;;  %v869_v44 = vld [vmem:[%s8770_s13 + $0x92] sm:$0xff]  ;;  %v870_v45 = vld [vmem:[%s8770_s13 + $0x9a] sm:$0xff] }
  0x5f   : > { %v868_v43 = vld [vmem:[%s8770_s13 + $0x82] sm:$0xff]  ;;  %v8954_v52 = vpack.c.bf16 %v870_v45, %v869_v44  ;;  %v871_v56 = vld [vmem:[%s8770_s13 + $0xaa] sm:$0xff]  ;;  %v872_v57 = vld [vmem:[%s8770_s13 + $0xb2] sm:$0xff] }
  0x60   : > { %v8445_v46 = vld [vmem:[#allocation3 + $0xe0] sm:$0xff]   ;;  %v8446_v53 = vld [vmem:[#allocation3 + $0xe8] sm:$0xff]   ;;  %v8447_v0 = vld [vmem:[#allocation3 + $0xf0] sm:$0xff]   ;;  %v8962_v1 = vpack.c.bf16 %v872_v57, %v871_v56 }
  0x61   : > { %7023 = vmatpush3.bf16.msra.mxu0 %v8424_v10  ;;  %v8857_v10 = vpack.c.bf16 %v315_v7, %v314_v6  ;;  %v341_v6 = vld [vmem:[%s8770_s13 + $0x170] sm:$0xff]  ;;  %v857_v7 = vld [vmem:[%s8770_s13 + $0x2] sm:$0xff]  ;;  %v886_v44 = vld [vmem:[%s8770_s13 + $0x15a] sm:$0xff] }
  0x62   : > { %7056 = vmatprep.subr.bf16.mxu0 %v8425_v13  ;;  %v888_v56 = vld [vmem:[%s8770_s13 + $0x172] sm:$0xff] }
  0x64   : > { %7025 = vmatmul.mubr.bf16.vlgmr.msra.gmra.mrb[0].mxu0 %v8778_v16 }
  0x65   : > { %7057 = vmatpush3.bf16.msra.mxu0 %v8425_v13  ;;  %7028 = vmatprep.mubr.bf16.mxu0 %v8780_v17  ;;  %v318_v13 = vld [vmem:[%s8770_s13 + $0x60] sm:$0xff] }
  0x66   : > { %7058 = vmatprep.subr.bf16.mxu0 %v8426_v18  ;;  %v8867_v20 = vpack.c.bf16 %v319_v14, %v318_v13  ;;  %v859_v13 = vld [vmem:[%s8770_s13 + $0x1a] sm:$0xff]  ;;  %v860_v14 = vld [vmem:[%s8770_s13 + $0x22] sm:$0xff] }
  0x67   : > { %v8932_v21 = vpack.c.bf16 %v860_v14, %v859_v13  ;;  %v878_v13 = vld [vmem:[%s8770_s13 + $0xfa] sm:$0xff] }
  0x68   : > { %v8449_v14 = vld [vmem:[#allocation3 + $0x100] sm:$0xff]  }
  0x69   : > { %7059 = vmatpush3.bf16.msra.mxu0 %v8426_v18  ;;  %v8865_v18 = vpack.c.bf16 %v317_v12, %v316_v11  ;;  %v8925_v11 = vpack.c.bf16 %v341_v6, %v340_v5  ;;  %v8448_v6 = vld [vmem:[#allocation3 + $0xf8] sm:$0xff]  }
  0x6a   : > { %7060 = vmatprep.subr.bf16.mxu0 %v8427_v23 }
  0x6c   : > { %7029 = vmatmul.mubr.bf16.gmra.mrb[4].mxu0 %v8788_v24 }
  0x6d   : > { %7032 = vmatprep.mubr.bf16.mxu0 %v8790_v25  ;;  %7061 = vmatpush3.bf16.msra.mxu0 %v8427_v23  ;;  %v322_v23 = vld [vmem:[%s8770_s13 + $0x90] sm:$0xff] }
  0x6e   : > { %7062 = vmatprep.subr.bf16.mxu0 %v8428_v26 }
  0x71   : > { %7063 = vmatpush3.bf16.msra.mxu0 %v8428_v26  ;;  %v323_v26 = vld [vmem:[%s8770_s13 + $0x98] sm:$0xff] }
  0x72   : > { %7064 = vmatprep.subr.bf16.mxu0 %v8429_v31  ;;  %v8877_v30 = vpack.c.bf16 %v323_v26, %v322_v23  ;;  %v8442_v23 = vld [vmem:[#allocation3 + $0xc8] sm:$0xff]  }
  0x73   : > { %v863_v26 = vld [vmem:[%s8770_s13 + $0x4a] sm:$0xff] }
  0x74   : > { %7033 = vmatmul.mubr.bf16.gmra.mrb[8].mxu0 %v8798_v32 }
  0x75   : > { %7036 = vmatprep.mubr.bf16.mxu0 %v8800_v33  ;;  %7065 = vmatpush3.bf16.msra.mxu0 %v8429_v31  ;;  %v324_v31 = vld [vmem:[%s8770_s13 + $0xa8] sm:$0xff] }
  0x76   : > { %7066 = vmatprep.subr.bf16.mxu0 %v8430_v34 }
  0x79   : > { %7067 = vmatpush3.bf16.msra.mxu0 %v8430_v34  ;;  %v325_v34 = vld [vmem:[%s8770_s13 + $0xb0] sm:$0xff] }
  0x7a   : > { %7068 = vmatprep.subr.bf16.mxu0 %v8431_v39  ;;  %v8885_v38 = vpack.c.bf16 %v325_v34, %v324_v31  ;;  %v866_v31 = vld [vmem:[%s8770_s13 + $0x6a] sm:$0xff] }
  0x7b   : > { %v8443_v34 = vld [vmem:[#allocation3 + $0xd0] sm:$0xff]  }
  0x7c   : > { %7037 = vmatmul.mubr.bf16.gmra.mrb[12].mxu0 %v8808_v40 }
  0x7d   : > { %7040 = vmatprep.mubr.bf16.mxu0 %v8810_v42  ;;  %7069 = vmatpush3.bf16.msra.mxu0 %v8431_v39  ;;  %v8440_v39 = vld [vmem:[#allocation3 + $0xb8] sm:$0xff]  }
  0x7e   : > { %7070 = vmatprep.subr.bf16.mxu0 %v8432_v41 }
  0x81   : > { %7071 = vmatpush3.bf16.msra.mxu0 %v8432_v41  ;;  %v8887_v41 = vpack.c.bf16 %v327_v36, %v326_v35 }
  0x82   : > { %7104 = vmatprep.subr.bf16.mxu0 %v8433_v47 }
  0x84   : > { %7041 = vmatmul.mubr.bf16.gmra.mrb[16].mxu0 %v8818_v48 }
  0x85   : > { %7044 = vmatprep.mubr.bf16.mxu0 %v8820_v49 }
  0x8c   : > { %7045 = vmatmul.mubr.bf16.gmra.mrb[20].mxu0 %v8828_v54 }
  0x8d   : > { %7048 = vmatprep.mubr.bf16.mxu0 %v8830_v55 }
  0x94   : > { %7049 = vmatmul.mubr.bf16.gmra.mrb[24].mxu0 %v8838_v60 }
  0x95   : > { %7052 = vmatprep.mubr.bf16.mxu0 %v8840_v61 }
  0x9c   : > { %7053 = vmatmul.mubr.bf16.gmra.mrb[28].mxu0 %v8848_v2 }
  0x9d   : > { %7072 = vmatprep.mubr.bf16.mxu0 %v342_v3  ;;  %v8915_v3 = vpack.c.bf16 %v337_v63, %v336_v62  ;;  %v873_v62 = vld [vmem:[%s8770_s13 + $0xc2] sm:$0xff]  ;;  %v874_v63 = vld [vmem:[%s8770_s13 + $0xca] sm:$0xff] }
  0x9e   : > { %v8964_v5 = vpack.c.bf16 %v874_v63, %v873_v62  ;;  %v8450_v62 = vld [vmem:[#allocation3 + $0x108] sm:$0xff]   ;;  %v8451_v63 = vld [vmem:[#allocation3 + $0x110] sm:$0xff]  }
  0xa4   : > { %7073 = vmatmul.mubr.bf16.vlgmr.msra.gmra.mrb[0].mxu0 %v8855_v8 }
  0xa5   : > { %7105 = vmatpush3.bf16.msra.mxu0 %v8433_v47  ;;  %7076 = vmatprep.mubr.bf16.mxu0 %v8857_v10  ;;  %v8441_v47 = vld [vmem:[#allocation3 + $0xc0] sm:$0xff]  }
  0xa6   : > { %7106 = vmatprep.subr.bf16.mxu0 %v8434_v9 }
  0xa9   : > { %7107 = vmatpush3.bf16.msra.mxu0 %v8434_v9  ;;  %v858_v9 = vld [vmem:[%s8770_s13 + $0xa] sm:$0xff] }
  0xaa   : > { %7108 = vmatprep.subr.bf16.mxu0 %v8435_v15  ;;  %v889_v12 = vpack.c.bf16 %v858_v9, %v857_v7  ;;  %v875_v7 = vld [vmem:[%s8770_s13 + $0xda] sm:$0xff]  ;;  %v876_v9 = vld [vmem:[%s8770_s13 + $0xe2] sm:$0xff] }
  0xac   : > { %7077 = vmatmul.mubr.bf16.gmra.mrb[4].mxu0 %v8865_v18 }
  0xad   : > { %7080 = vmatprep.mubr.bf16.mxu0 %v8867_v20  ;;  %7109 = vmatpush3.bf16.msra.mxu0 %v8435_v15  ;;  %v861_v15 = vld [vmem:[%s8770_s13 + $0x32] sm:$0xff] }
  0xae   : > { %7110 = vmatprep.subr.bf16.mxu0 %v8436_v19 }
  0xb1   : > { %7111 = vmatpush3.bf16.msra.mxu0 %v8436_v19  ;;  %v862_v19 = vld [vmem:[%s8770_s13 + $0x3a] sm:$0xff] }
  0xb2   : > { %7112 = vmatprep.subr.bf16.mxu0 %v8437_v27  ;;  %v8934_v22 = vpack.c.bf16 %v862_v19, %v861_v15  ;;  %v8972_v15 = vpack.c.bf16 %v876_v9, %v875_v7  ;;  %v8455_v7 = vld [vmem:[#allocation3 + $0x130] sm:$0xff]   ;;  %v8456_v9 = vld [vmem:[#allocation3 + $0x138] sm:$0xff]  }
  0xb4   : > { %7081 = vmatmul.mubr.bf16.gmra.mrb[8].mxu0 %v8875_v28 }
  0xb5   : > { %7084 = vmatprep.mubr.bf16.mxu0 %v8877_v30  ;;  %7113 = vmatpush3.bf16.msra.mxu0 %v8437_v27  ;;  %v864_v27 = vld [vmem:[%s8770_s13 + $0x52] sm:$0xff] }
  0xb6   : > { %7114 = vmatprep.subr.bf16.mxu0 %v8438_v29  ;;  %v8942_v35 = vpack.c.bf16 %v864_v27, %v863_v26  ;;  %v880_v26 = vld [vmem:[%s8770_s13 + $0x112] sm:$0xff]  ;;  %v881_v27 = vld [vmem:[%s8770_s13 + $0x122] sm:$0xff] }
  0xb9   : > { %7115 = vmatpush3.bf16.msra.mxu0 %v8438_v29  ;;  %v865_v29 = vld [vmem:[%s8770_s13 + $0x62] sm:$0xff] }
  0xba   : > { %7116 = vmatprep.subr.bf16.mxu0 %v8439_v37  ;;  %v8944_v36 = vpack.c.bf16 %v866_v31, %v865_v29  ;;  %v882_v29 = vld [vmem:[%s8770_s13 + $0x12a] sm:$0xff] }
  0xbc   : > { %7085 = vmatmul.mubr.bf16.gmra.mrb[12].mxu0 %v8885_v38 }
  0xbd   : > { %7088 = vmatprep.mubr.bf16.mxu0 %v8887_v41  ;;  %7117 = vmatpush3.bf16.msra.mxu0 %v8439_v37  ;;  %v8444_v37 = vld [vmem:[#allocation3 + $0xd8] sm:$0xff]  }
  0xbe   : > { %7118 = vmatprep.subr.bf16.mxu0 %v8440_v39 }
  0xc1   : > { %7119 = vmatpush3.bf16.msra.mxu0 %v8440_v39  ;;  %v867_v39 = vld [vmem:[%s8770_s13 + $0x7a] sm:$0xff] }
  0xc2   : > { %7152 = vmatprep.subr.bf16.mxu0 %v8441_v47 }
  0xc4   : > { %7089 = vmatmul.mubr.bf16.gmra.mrb[16].mxu0 %v8895_v50 }
  0xc5   : > { %7092 = vmatprep.mubr.bf16.mxu0 %v8897_v51 }
  0xcc   : > { %7093 = vmatmul.mubr.bf16.gmra.mrb[20].mxu0 %v8905_v58 }
  0xcd   : > { %7096 = vmatprep.mubr.bf16.mxu0 %v8907_v59 }
  0xd4   : > { %7097 = vmatmul.mubr.bf16.gmra.mrb[24].mxu0 %v8915_v3 }
  0xd5   : > { %7100 = vmatprep.mubr.bf16.mxu0 %v8917_v4 }
  0xdc   : > { %7101 = vmatmul.mubr.bf16.gmra.mrb[28].mxu0 %v8925_v11 }
  0xdd   : > { %7120 = vmatprep.mubr.bf16.mxu0 %v889_v12  ;;  %v877_v12 = vld [vmem:[%s8770_s13 + $0xf2] sm:$0xff] }
  0xde   : > { %v8974_v19 = vpack.c.bf16 %v878_v13, %v877_v12  ;;  %v8457_v12 = vld [vmem:[#allocation3 + $0x140] sm:$0xff]  }
  0xdf   : > { %v6255_v13 = vld [vmem:[%s8770_s13 + $0x180] sm:$0xff] }
  0xe4   : > { %7121 = vmatmul.mubr.bf16.vlgmr.msra.gmra.mrb[0].mxu0 %v8932_v21 }
  0xe5   : > { %7153 = vmatpush3.bf16.msra.mxu0 %v8441_v47  ;;  %7124 = vmatprep.mubr.bf16.mxu0 %v8934_v22  ;;  %v8952_v47 = vpack.c.bf16 %v868_v43, %v867_v39  ;;  %v884_v39 = vld [vmem:[%s8770_s13 + $0x142] sm:$0xff]  ;;  %v885_v43 = vld [vmem:[%s8770_s13 + $0x152] sm:$0xff] }
  0xe6   : > { %7154 = vmatprep.subr.bf16.mxu0 %v8442_v23 }
  0xe9   : > { %7155 = vmatpush3.bf16.msra.mxu0 %v8442_v23  ;;  %v879_v23 = vld [vmem:[%s8770_s13 + $0x10a] sm:$0xff] }
  0xea   : > { %7156 = vmatprep.subr.bf16.mxu0 %v8443_v34  ;;  %v8982_v31 = vpack.c.bf16 %v880_v26, %v879_v23  ;;  %v8458_v26 = vld [vmem:[#allocation3 + $0x148] sm:$0xff]  }
  0xec   : > { %7125 = vmatmul.mubr.bf16.gmra.mrb[4].mxu0 %v8942_v35 }
  0xed   : > { %7128 = vmatprep.mubr.bf16.mxu0 %v8944_v36  ;;  %7157 = vmatpush3.bf16.msra.mxu0 %v8443_v34  ;;  %v8984_v34 = vpack.c.bf16 %v882_v29, %v881_v27  ;;  %v8459_v27 = vld [vmem:[#allocation3 + $0x150] sm:$0xff]   ;;  %v8460_v29 = vld [vmem:[#allocation3 + $0x158] sm:$0xff]  }
  0xee   : > { %7158 = vmatprep.subr.bf16.mxu0 %v8444_v37 }
  0xf1   : > { %7159 = vmatpush3.bf16.msra.mxu0 %v8444_v37  ;;  %v883_v37 = vld [vmem:[%s8770_s13 + $0x13a] sm:$0xff] }
  0xf2   : > { %7160 = vmatprep.subr.bf16.mxu0 %v8445_v46  ;;  %v8992_v45 = vpack.c.bf16 %v884_v39, %v883_v37  ;;  %v8461_v37 = vld [vmem:[#allocation3 + $0x160] sm:$0xff]   ;;  %v8482_v39 = vld [vmem:[#allocation3 + $0x208] sm:$0xff]  }
  0xf4   : > { %7129 = vmatmul.mubr.bf16.gmra.mrb[8].mxu0 %v8952_v47 }
  0xf5   : > { %7132 = vmatprep.mubr.bf16.mxu0 %v8954_v52  ;;  %7161 = vmatpush3.bf16.msra.mxu0 %v8445_v46  ;;  %v8994_v46 = vpack.c.bf16 %v886_v44, %v885_v43  ;;  %v6391_v43 = vld [vmem:[%s8770_s13 + $0x79] sm:$0xff]  ;;  %v6392_v44 = vld [vmem:[%s8770_s13 + $0x81] sm:$0xff] }
  0xf6   : > { %7162 = vmatprep.subr.bf16.mxu0 %v8446_v53 }
  0xf9   : > { %7163 = vmatpush3.bf16.msra.mxu0 %v8446_v53  ;;  %v887_v53 = vld [vmem:[%s8770_s13 + $0x16a] sm:$0xff] }
  0xfa   : > { %7164 = vmatprep.subr.bf16.mxu0 %v8447_v0  ;;  %v9000_v57 = vpack.c.bf16 %v888_v56, %v887_v53  ;;  %v8483_v53 = vld [vmem:[#allocation3 + $0x210] sm:$0xff]   ;;  %v2424_v56 = vpack.c.bf16 %v6392_v44, %v6391_v43  ;;  %v6439_v43 = vld [vmem:[%s8770_s13 + $0xda] sm:$0xff]  ;;  %v6440_v44 = vld [vmem:[%s8770_s13 + $0xe2] sm:$0xff] }
  0xfc   : > { %7133 = vmatmul.mubr.bf16.gmra.mrb[12].mxu0 %v8962_v1 }
  0xfd   : > { %7136 = vmatprep.mubr.bf16.mxu0 %v8964_v5  ;;  %7165 = vmatpush3.bf16.msra.mxu0 %v8447_v0  ;;  %v8452_v0 = vld [vmem:[#allocation3 + $0x118] sm:$0xff]  }
  0xfe   : > { %7166 = vmatprep.subr.bf16.mxu0 %v8448_v6 }
 0x101   : > { %7167 = vmatpush3.bf16.msra.mxu0 %v8448_v6  ;;  %v8453_v6 = vld [vmem:[#allocation3 + $0x120] sm:$0xff]  }
 0x102   : > { %7200 = vmatprep.subr.bf16.mxu0 %v8449_v14 }
 0x104   : > { %7137 = vmatmul.mubr.bf16.gmra.mrb[16].mxu0 %v8972_v15 }
 0x105   : > { %7140 = vmatprep.mubr.bf16.mxu0 %v8974_v19 }
 0x10c   : > { %7141 = vmatmul.mubr.bf16.gmra.mrb[20].mxu0 %v8982_v31 }
 0x10d   : > { %7144 = vmatprep.mubr.bf16.mxu0 %v8984_v34 }
 0x114   : > { %7145 = vmatmul.mubr.bf16.gmra.mrb[24].mxu0 %v8992_v45 }
 0x115   : > { %7148 = vmatprep.mubr.bf16.mxu0 %v8994_v46 }
 0x11c   : > { %7149 = vmatmul.mubr.bf16.gmra.mrb[28].mxu0 %v9000_v57 }
 0x11d   : > { %7168 = vmatprep.mubr.bf16.mxu0 %v8855_v8  ;;  %v8454_v8 = vld [vmem:[#allocation3 + $0x128] sm:$0xff]  }
 0x124   : > { %7169 = vmatmul.mubr.bf16.vlgmr.msra.gmra.mrb[0].mxu0 %v8857_v10 }
 0x125   : > { %7201 = vmatpush3.bf16.msra.mxu0 %v8449_v14  ;;  %7172 = vmatprep.mubr.bf16.mxu0 %v8865_v18  ;;  %v6256_v14 = vld [vmem:[%s8770_s13 + $0x188] sm:$0xff] }
 0x126   : > { %7202 = vmatprep.subr.bf16.mxu0 %v8450_v62  ;;  %v9020_v23 = vpack.c.bf16 %v6256_v14, %v6255_v13  ;;  %v8486_v13 = vld [vmem:[#allocation3 + $0x228] sm:$0xff]   ;;  %v6399_v14 = vld [vmem:[%s8770_s13 + $0xd9] sm:$0xff] }
 0x129   : > { %7203 = vmatpush3.bf16.msra.mxu0 %v8450_v62  ;;  %v8484_v62 = vld [vmem:[#allocation3 + $0x218] sm:$0xff]  }
 0x12a   : > { %7204 = vmatprep.subr.bf16.mxu0 %v8451_v63 }
 0x12c   : > { %7173 = vmatmul.mubr.bf16.gmra.mrb[4].mxu0 %v8867_v20 }
 0x12d   : > { %7176 = vmatprep.mubr.bf16.mxu0 %v8875_v28  ;;  %7205 = vmatpush3.bf16.msra.mxu0 %v8451_v63  ;;  %v6395_v63 = vld [vmem:[%s8770_s13 + $0xa9] sm:$0xff] }
 0x12e   : > { %7206 = vmatprep.subr.bf16.mxu0 %v8452_v0 }
 0x131   : > { %7207 = vmatpush3.bf16.msra.mxu0 %v8452_v0  ;;  %v6396_v0 = vld [vmem:[%s8770_s13 + $0xb1] sm:$0xff] }
 0x132   : > { %7208 = vmatprep.subr.bf16.mxu0 %v8453_v6 }
 0x134   : > { %7177 = vmatmul.mubr.bf16.gmra.mrb[8].mxu0 %v8877_v30 }
 0x135   : > { %7180 = vmatprep.mubr.bf16.mxu0 %v8885_v38  ;;  %7209 = vmatpush3.bf16.msra.mxu0 %v8453_v6  ;;  %v6397_v6 = vld [vmem:[%s8770_s13 + $0xc1] sm:$0xff] }
 0x136   : > { %7210 = vmatprep.subr.bf16.mxu0 %v8454_v8 }
 0x139   : > { %7211 = vmatpush3.bf16.msra.mxu0 %v8454_v8  ;;  %v6398_v8 = vld [vmem:[%s8770_s13 + $0xc9] sm:$0xff] }
 0x13a   : > { %7212 = vmatprep.subr.bf16.mxu0 %v8455_v7 }
 0x13c   : > { %7181 = vmatmul.mubr.bf16.gmra.mrb[12].mxu0 %v8887_v41 }
 0x13d   : > { %7184 = vmatprep.mubr.bf16.mxu0 %v8895_v50  ;;  %7213 = vmatpush3.bf16.msra.mxu0 %v8455_v7  ;;  %v8485_v7 = vld [vmem:[#allocation3 + $0x220] sm:$0xff]  }
 0x13e   : > { %7214 = vmatprep.subr.bf16.mxu0 %v8456_v9 }
 0x141   : > { %7215 = vmatpush3.bf16.msra.mxu0 %v8456_v9  ;;  %v2426_v9 = vpack.c.bf16 %v6396_v0, %v6395_v63  ;;  %v6445_v63 = vld [vmem:[%s8770_s13 + $0x122] sm:$0xff]  ;;  %v6446_v0 = vld [vmem:[%s8770_s13 + $0x12a] sm:$0xff] }
 0x142   : > { %7248 = vmatprep.subr.bf16.mxu0 %v8457_v12 }
 0x144   : > { %7185 = vmatmul.mubr.bf16.gmra.mrb[16].mxu0 %v8897_v51 }
 0x145   : > { %7188 = vmatprep.mubr.bf16.mxu0 %v8905_v58 }
 0x14c   : > { %7189 = vmatmul.mubr.bf16.gmra.mrb[20].mxu0 %v8907_v59 }
 0x14d   : > { %7192 = vmatprep.mubr.bf16.mxu0 %v8915_v3 }
 0x154   : > { %7193 = vmatmul.mubr.bf16.gmra.mrb[24].mxu0 %v8917_v4 }
 0x155   : > { %7196 = vmatprep.mubr.bf16.mxu0 %v8925_v11 }
 0x15c   : > { %7197 = vmatmul.mubr.bf16.gmra.mrb[28].mxu0 %v9020_v23 }
 0x15d   : > { %7216 = vmatprep.mubr.bf16.mxu0 %v8778_v16  ;;  %v8462_v16 = vld [vmem:[#allocation3 + $0x168] sm:$0xff]  }
 0x164   : > { %7217 = vmatmul.mubr.bf16.vlgmr.msra.gmra.mrb[0].mxu0 %v8780_v17  ;;  %v8463_v17 = vld [vmem:[#allocation3 + $0x170] sm:$0xff]  }
 0x165   : > { %7249 = vmatpush3.bf16.msra.mxu0 %v8457_v12  ;;  %7220 = vmatprep.mubr.bf16.mxu0 %v8788_v24  ;;  %v8464_v24 = vld [vmem:[#allocation3 + $0x178] sm:$0xff]   ;;  %v2427_v12 = vpack.c.bf16 %v6398_v8, %v6397_v6  ;;  %v2737_v8 = vpack.c.bf16 %v6446_v0, %v6445_v63 }
 0x166   : > { %7250 = vmatprep.subr.bf16.mxu0 %v8458_v26 }
 0x169   : > { %7251 = vmatpush3.bf16.msra.mxu0 %v8458_v26  ;;  %v6401_v26 = vld [vmem:[%s8770_s13 + $0xf1] sm:$0xff] }
 0x16a   : > { %7252 = vmatprep.subr.bf16.mxu0 %v8459_v27 }
 0x16c   : > { %7221 = vmatmul.mubr.bf16.gmra.mrb[4].mxu0 %v8790_v25  ;;  %v8465_v25 = vld [vmem:[#allocation3 + $0x180] sm:$0xff]  }
 0x16d   : > { %7224 = vmatprep.mubr.bf16.mxu0 %v8798_v32  ;;  %7253 = vmatpush3.bf16.msra.mxu0 %v8459_v27  ;;  %v6295_v32 = vld [vmem:[%s8770_s13 + $0x181] sm:$0xff]  ;;  %v6402_v27 = vld [vmem:[%s8770_s13 + $0xf9] sm:$0xff] }
 0x16e   : > { %7254 = vmatprep.subr.bf16.mxu0 %v8460_v29 }
 0x171   : > { %7255 = vmatpush3.bf16.msra.mxu0 %v8460_v29  ;;  %v8487_v29 = vld [vmem:[#allocation3 + $0x230] sm:$0xff]  }
 0x172   : > { %7256 = vmatprep.subr.bf16.mxu0 %v8461_v37 }
 0x174   : > { %7225 = vmatmul.mubr.bf16.gmra.mrb[8].mxu0 %v8800_v33  ;;  %v6296_v33 = vld [vmem:[%s8770_s13 + $0x189] sm:$0xff] }
 0x175   : > { %7228 = vmatprep.mubr.bf16.mxu0 %v8808_v40  ;;  %7257 = vmatpush3.bf16.msra.mxu0 %v8461_v37  ;;  %v9040_v40 = vpack.c.bf16 %v6296_v33, %v6295_v32  ;;  %v6405_v32 = vld [vmem:[%s8770_s13 + $0x121] sm:$0xff]  ;;  %v6406_v33 = vld [vmem:[%s8770_s13 + $0x129] sm:$0xff] }
 0x176   : > { %7258 = vmatprep.subr.bf16.mxu0 %v8462_v16 }
 0x179   : > { %7259 = vmatpush3.bf16.msra.mxu0 %v8462_v16  ;;  %v2429_v16 = vpack.c.bf16 %v6402_v27, %v6401_v26  ;;  %v6451_v26 = vld [vmem:[%s8770_s13 + $0x16a] sm:$0xff]  ;;  %v6452_v27 = vld [vmem:[%s8770_s13 + $0x172] sm:$0xff] }
 0x17a   : > { %7260 = vmatprep.subr.bf16.mxu0 %v8463_v17 }
 0x17c   : > { %7229 = vmatmul.mubr.bf16.gmra.mrb[12].mxu0 %v8810_v42  ;;  %v8466_v42 = vld [vmem:[#allocation3 + $0x188] sm:$0xff]  }
 0x17d   : > { %7232 = vmatprep.mubr.bf16.mxu0 %v8818_v48  ;;  %7261 = vmatpush3.bf16.msra.mxu0 %v8463_v17  ;;  %v8467_v48 = vld [vmem:[#allocation3 + $0x190] sm:$0xff]   ;;  %v8488_v17 = vld [vmem:[#allocation3 + $0x238] sm:$0xff]  }
 0x17e   : > { %7262 = vmatprep.subr.bf16.mxu0 %v8464_v24 }
 0x181   : > { %7263 = vmatpush3.bf16.msra.mxu0 %v8464_v24  ;;  %v6403_v24 = vld [vmem:[%s8770_s13 + $0x109] sm:$0xff] }
 0x182   : > { %7296 = vmatprep.subr.bf16.mxu0 %v8465_v25 }
 0x184   : > { %7233 = vmatmul.mubr.bf16.gmra.mrb[16].mxu0 %v8820_v49  ;;  %v8468_v49 = vld [vmem:[#allocation3 + $0x198] sm:$0xff]  }
 0x185   : > { %7236 = vmatprep.mubr.bf16.mxu0 %v8828_v54  ;;  %v8469_v54 = vld [vmem:[#allocation3 + $0x1a0] sm:$0xff]  }
 0x18c   : > { %7237 = vmatmul.mubr.bf16.gmra.mrb[20].mxu0 %v8830_v55  ;;  %v8470_v55 = vld [vmem:[#allocation3 + $0x1a8] sm:$0xff]  }
 0x18d   : > { %7240 = vmatprep.mubr.bf16.mxu0 %v8838_v60  ;;  %v8471_v60 = vld [vmem:[#allocation3 + $0x1b0] sm:$0xff]  }
 0x194   : > { %7241 = vmatmul.mubr.bf16.gmra.mrb[24].mxu0 %v8840_v61  ;;  %v8472_v61 = vld [vmem:[#allocation3 + $0x1b8] sm:$0xff]  }
 0x195   : > { %7244 = vmatprep.mubr.bf16.mxu0 %v8848_v2  ;;  %v8473_v2 = vld [vmem:[#allocation3 + $0x1c0] sm:$0xff]  }
 0x19c   : > { %7245 = vmatmul.mubr.bf16.gmra.mrb[28].mxu0 %v9040_v40 }
 0x19d   : > { %7264 = vmatprep.mubr.bf16.mxu0 %v8932_v21  ;;  %v6335_v21 = vld [vmem:[%s8770_s13 + $0x182] sm:$0xff] }
 0x1a4   : > { %7265 = vmatmul.mubr.bf16.vlgmr.msra.gmra.mrb[0].mxu0 %v8934_v22  ;;  %v6336_v22 = vld [vmem:[%s8770_s13 + $0x18a] sm:$0xff] }
 0x1a5   : > { %7297 = vmatpush3.bf16.msra.mxu0 %v8465_v25  ;;  %7268 = vmatprep.mubr.bf16.mxu0 %v8942_v35  ;;  %v9060_v35 = vpack.c.bf16 %v6336_v22, %v6335_v21  ;;  %v6404_v25 = vld [vmem:[%s8770_s13 + $0x111] sm:$0xff]  ;;  %v6411_v21 = vld [vmem:[%s8770_s13 + $0x169] sm:$0xff] }
 0x1a6   : > { %7298 = vmatprep.subr.bf16.mxu0 %v8466_v42  ;;  %v6412_v22 = vld [vmem:[%s8770_s13 + $0x171] sm:$0xff] }
 0x1a9   : > { %7299 = vmatpush3.bf16.msra.mxu0 %v8466_v42  ;;  %v2430_v42 = vpack.c.bf16 %v6404_v25, %v6403_v24  ;;  %v8492_v24 = vld [vmem:[#allocation5 + $0x58] sm:$0xff]   ;;  %v8493_v25 = vld [vmem:[#allocation5 + $0x60] sm:$0xff]  }
 0x1aa   : > { %7300 = vmatprep.subr.bf16.mxu0 %v8467_v48 }
 0x1ac   : > { %7269 = vmatmul.mubr.bf16.gmra.mrb[4].mxu0 %v8944_v36  ;;  %v8474_v36 = vld [vmem:[#allocation3 + $0x1c8] sm:$0xff]  }
 0x1ad   : > { %7272 = vmatprep.mubr.bf16.mxu0 %v8952_v47  ;;  %7301 = vmatpush3.bf16.msra.mxu0 %v8467_v48  ;;  %v8475_v47 = vld [vmem:[#allocation3 + $0x1d0] sm:$0xff]   ;;  %v2431_v48 = vpack.c.bf16 %v6406_v33, %v6405_v32  ;;  %v8494_v32 = vld [vmem:[#allocation5 + $0x68] sm:$0xff]  }
 0x1ae   : > { %7302 = vmatprep.subr.bf16.mxu0 %v8468_v49  ;;  %v8495_v33 = vld [vmem:[#allocation5 + $0x70] sm:$0xff]  }
 0x1b1   : > { %7303 = vmatpush3.bf16.msra.mxu0 %v8468_v49  ;;  %v6407_v49 = vld [vmem:[%s8770_s13 + $0x139] sm:$0xff] }
 0x1b2   : > { %7304 = vmatprep.subr.bf16.mxu0 %v8469_v54 }
 0x1b4   : > { %7273 = vmatmul.mubr.bf16.gmra.mrb[8].mxu0 %v8954_v52  ;;  %v8476_v52 = vld [vmem:[#allocation3 + $0x1d8] sm:$0xff]  }
 0x1b5   : > { %7276 = vmatprep.mubr.bf16.mxu0 %v8962_v1  ;;  %7305 = vmatpush3.bf16.msra.mxu0 %v8469_v54  ;;  %v8477_v1 = vld [vmem:[#allocation3 + $0x1e0] sm:$0xff]  }
 0x1b6   : > { %7306 = vmatprep.subr.bf16.mxu0 %v8470_v55  ;;  %v6408_v54 = vld [vmem:[%s8770_s13 + $0x141] sm:$0xff] }
 0x1b9   : > { %7307 = vmatpush3.bf16.msra.mxu0 %v8470_v55  ;;  %v6409_v55 = vld [vmem:[%s8770_s13 + $0x151] sm:$0xff] }
 0x1ba   : > { %7308 = vmatprep.subr.bf16.mxu0 %v8471_v60 }
 0x1bc   : > { %7277 = vmatmul.mubr.bf16.gmra.mrb[12].mxu0 %v8964_v5  ;;  %v8489_v5 = vld [vmem:[#allocation5 + $0x40] sm:$0xff]  }
 0x1bd   : > { %7280 = vmatprep.mubr.bf16.mxu0 %v8972_v15  ;;  %7309 = vmatpush3.bf16.msra.mxu0 %v8471_v60  ;;  %v6387_v15 = vld [vmem:[%s8770_s13 + $0x49] sm:$0xff]  ;;  %v6410_v60 = vld [vmem:[%s8770_s13 + $0x159] sm:$0xff] }
 0x1be   : > { %7310 = vmatprep.subr.bf16.mxu0 %v8472_v61  ;;  %7440 = vmatprep.subr.bf16.mxu1 %v8489_v5 }
 0x1bf   : > { %7441 = vmatpush3.bf16.msra.mxu1 %v8489_v5  ;;  %v6433_v5 = vld [vmem:[%s8770_s13 + $0x92] sm:$0xff] }
 0x1c1   : > { %7311 = vmatpush3.bf16.msra.mxu0 %v8472_v61  ;;  %v2432_v61 = vpack.c.bf16 %v6408_v54, %v6407_v49  ;;  %v8497_v49 = vld [vmem:[#allocation5] sm:$0xff]  }
 0x1c2   : > { %7344 = vmatprep.subr.bf16.mxu0 %v8473_v2  ;;  %v9145_v54 = vld [vmem:[%s9575_s2] ss:$0 sm:$0xff] }
 0x1c4   : > { %7281 = vmatmul.mubr.bf16.gmra.mrb[16].mxu0 %v8974_v19  ;;  %v6390_v19 = vld [vmem:[%s8770_s13 + $0x69] sm:$0xff] }
 0x1c5   : > { %7284 = vmatprep.mubr.bf16.mxu0 %v8982_v31  ;;  %v8491_v31 = vld [vmem:[#allocation5 + $0x50] sm:$0xff]  }
 0x1cc   : > { %7285 = vmatmul.mubr.bf16.gmra.mrb[20].mxu0 %v8984_v34 }
 0x1cd   : > { %7288 = vmatprep.mubr.bf16.mxu0 %v8992_v45  ;;  %v6393_v45 = vld [vmem:[%s8770_s13 + $0x91] sm:$0xff] }
 0x1d4   : > { %7289 = vmatmul.mubr.bf16.gmra.mrb[24].mxu0 %v8994_v46  ;;  %v6394_v46 = vld [vmem:[%s8770_s13 + $0x99] sm:$0xff] }
 0x1d5   : > { %7292 = vmatprep.mubr.bf16.mxu0 %v9000_v57  ;;  %v2425_v57 = vpack.c.bf16 %v6394_v46, %v6393_v45  ;;  %v6441_v45 = vld [vmem:[%s8770_s13 + $0xf2] sm:$0xff]  ;;  %v6442_v46 = vld [vmem:[%s8770_s13 + $0xfa] sm:$0xff] }
 0x1dc   : > { %7293 = vmatmul.mubr.bf16.gmra.mrb[28].mxu0 %v9060_v35 }
 0x1dd   : > { %7312 = vmatprep.mubr.bf16.mxu0 %v8857_v10  ;;  %v8478_v10 = vld [vmem:[#allocation3 + $0x1e8] sm:$0xff]  }
 0x1e4   : > { %7313 = vmatmul.mubr.bf16.vlgmr.msra.gmra.mrb[0].mxu0 %v8865_v18  ;;  %v8479_v18 = vld [vmem:[#allocation3 + $0x1f0] sm:$0xff]  }
 0x1e5   : > { %7345 = vmatpush3.bf16.msra.mxu0 %v8473_v2  ;;  %7316 = vmatprep.mubr.bf16.mxu0 %v8867_v20  ;;  %v8480_v20 = vld [vmem:[#allocation3 + $0x1f8] sm:$0xff]   ;;  %v2433_v2 = vpack.c.bf16 %v6410_v60, %v6409_v55  ;;  %v9150_v60 = vld [vmem:[%s9576_s3] ss:$0 sm:$0xff] }
 0x1e6   : > { %7346 = vmatprep.subr.bf16.mxu0 %v8474_v36 }
 0x1e9   : > { %7347 = vmatpush3.bf16.msra.mxu0 %v8474_v36  ;;  %v2434_v36 = vpack.c.bf16 %v6412_v22, %v6411_v21 }
 0x1ea   : > { %7348 = vmatprep.subr.bf16.mxu0 %v8475_v47 }
 0x1ec   : > { %7317 = vmatmul.mubr.bf16.gmra.mrb[4].mxu0 %v8875_v28  ;;  %v8481_v28 = vld [vmem:[#allocation3 + $0x200] sm:$0xff]  }
 0x1ed   : > { %7320 = vmatprep.mubr.bf16.mxu0 %v8877_v30  ;;  %7349 = vmatpush3.bf16.msra.mxu0 %v8475_v47  ;;  %v6375_v30 = vld [vmem:[%s8770_s13 + $0x198] sm:$0xff] }
 0x1ee   : > { %7350 = vmatprep.subr.bf16.mxu0 %v8476_v52  ;;  %v6415_v47 = vld [vmem:[%s8770_s13 + $0x199] sm:$0xff] }
 0x1f1   : > { %7351 = vmatpush3.bf16.msra.mxu0 %v8476_v52  ;;  %v6416_v52 = vld [vmem:[%s8770_s13 + $0x1a1] sm:$0xff] }
 0x1f2   : > { %7352 = vmatprep.subr.bf16.mxu0 %v8477_v1 }
 0x1f4   : > { %7321 = vmatmul.mubr.bf16.gmra.mrb[8].mxu0 %v8885_v38  ;;  %v6376_v38 = vld [vmem:[%s8770_s13 + $0x1a0] sm:$0xff] }
 0x1f5   : > { %7324 = vmatprep.mubr.bf16.mxu0 %v8887_v41  ;;  %7353 = vmatpush3.bf16.msra.mxu0 %v8477_v1  ;;  %v6385_v41 = vld [vmem:[%s8770_s13 + $0x31] sm:$0xff] }
 0x1f6   : > { %7354 = vmatprep.subr.bf16.mxu0 %v8478_v10  ;;  %v6425_v1 = vld [vmem:[%s8770_s13 + $0x32] sm:$0xff] }
 0x1f9   : > { %7355 = vmatpush3.bf16.msra.mxu0 %v8478_v10  ;;  %v6426_v10 = vld [vmem:[%s8770_s13 + $0x3a] sm:$0xff] }
 0x1fa   : > { %7356 = vmatprep.subr.bf16.mxu0 %v8479_v18 }
 0x1fc   : > { %7325 = vmatmul.mubr.bf16.gmra.mrb[12].mxu0 %v8895_v50  ;;  %v6386_v50 = vld [vmem:[%s8770_s13 + $0x39] sm:$0xff] }
 0x1fd   : > { %7328 = vmatprep.mubr.bf16.mxu0 %v8897_v51  ;;  %7357 = vmatpush3.bf16.msra.mxu0 %v8479_v18  ;;  %v2130_v51 = vpack.c.bf16 %v6376_v38, %v6375_v30  ;;  %v2436_v18 = vpack.c.bf16 %v6416_v52, %v6415_v47  ;;  %v6428_v30 = vld [vmem:[%s8770_s13 + $0x52] sm:$0xff]  ;;  %v6429_v38 = vld [vmem:[%s8770_s13 + $0x62] sm:$0xff] }
 0x1fe   : > { %7358 = vmatprep.subr.bf16.mxu0 %v8480_v20 }
 0x201   : > { %7359 = vmatpush3.bf16.msra.mxu0 %v8480_v20  ;;  %v2727_v20 = vpack.c.bf16 %v6426_v10, %v6425_v1 }
 0x202   : > { %7392 = vmatprep.subr.bf16.mxu0 %v8481_v28 }
 0x204   : > { %7329 = vmatmul.mubr.bf16.gmra.mrb[16].mxu0 %v8905_v58  ;;  %v2421_v58 = vpack.c.bf16 %v6386_v50, %v6385_v41  ;;  %v6430_v41 = vld [vmem:[%s8770_s13 + $0x6a] sm:$0xff] }
 0x205   : > { %7332 = vmatprep.mubr.bf16.mxu0 %v8907_v59  ;;  %v8490_v59 = vld [vmem:[#allocation5 + $0x48] sm:$0xff]   ;;  %v2729_v50 = vpack.c.bf16 %v6430_v41, %v6429_v38 }
 0x206   : > { %7442 = vmatprep.subr.bf16.mxu1 %v8490_v59 }
 0x207   : > { %7443 = vmatpush3.bf16.msra.mxu1 %v8490_v59  ;;  %v6434_v59 = vld [vmem:[%s8770_s13 + $0x9a] sm:$0xff] }
 0x208   : > { %7444 = vmatprep.subr.bf16.mxu1 %v8491_v31 }
 0x20b   : > { %7445 = vmatpush3.bf16.msra.mxu1 %v8491_v31  ;;  %v6438_v31 = vld [vmem:[%s8770_s13 + $0xca] sm:$0xff] }
 0x20c   : > { %7333 = vmatmul.mubr.bf16.gmra.mrb[20].mxu0 %v8915_v3  ;;  %v6388_v3 = vld [vmem:[%s8770_s13 + $0x51] sm:$0xff]  ;;  %7446 = vmatprep.subr.bf16.mxu1 %v8492_v24 }
 0x20d   : > { %7336 = vmatprep.mubr.bf16.mxu0 %v8917_v4  ;;  %v6389_v4 = vld [vmem:[%s8770_s13 + $0x61] sm:$0xff] }
 0x20e   : > { %v2423_v34 = vpack.c.bf16 %v6390_v19, %v6389_v4  ;;  %v6435_v4 = vld [vmem:[%s8770_s13 + $0xaa] sm:$0xff]  ;;  %v6436_v19 = vld [vmem:[%s8770_s13 + $0xb2] sm:$0xff] }
 0x20f   : > { %7447 = vmatpush3.bf16.msra.mxu1 %v8492_v24 }
 0x210   : > { %7448 = vmatprep.subr.bf16.mxu1 %v8493_v25 }
 0x213   : > { %7449 = vmatpush3.bf16.msra.mxu1 %v8493_v25 }
 0x214   : > { %7337 = vmatmul.mubr.bf16.gmra.mrb[24].mxu0 %v8925_v11  ;;  %v2422_v11 = vpack.c.bf16 %v6388_v3, %v6387_v15  ;;  %v2731_v3 = vpack.c.bf16 %v6434_v59, %v6433_v5  ;;  %7450 = vmatprep.subr.bf16.mxu1 %v8494_v32 }
 0x215   : > { %7340 = vmatprep.mubr.bf16.mxu0 %v9020_v23  ;;  %v6400_v23 = vld [vmem:[%s8770_s13 + $0xe1] sm:$0xff] }
 0x216   : > { %v2428_v37 = vpack.c.bf16 %v6400_v23, %v6399_v14 }
 0x217   : > { %7451 = vmatpush3.bf16.msra.mxu1 %v8494_v32 }
 0x218   : > { %7452 = vmatprep.subr.bf16.mxu1 %v8495_v33 }
 0x21b   : > { %7453 = vmatpush3.bf16.msra.mxu1 %v8495_v33 }
 0x21c   : > { %7341 = vmatmul.mubr.bf16.gmra.mrb[28].mxu0 %v2130_v51  ;;  %v6431_v51 = vld [vmem:[%s8770_s13 + $0x7a] sm:$0xff] }
 0x21d   : > { %7360 = vmatprep.mubr.bf16.mxu0 %v2421_v58  ;;  %v6432_v58 = vld [vmem:[%s8770_s13 + $0x82] sm:$0xff] }
 0x21e   : > { %v2730_v15 = vpack.c.bf16 %v6432_v58, %v6431_v51 }
 0x224   : > { %7361 = vmatmul.mubr.bf16.vlgmr.msra.gmra.mrb[0].mxu0 %v2422_v11  ;;  %v6437_v11 = vld [vmem:[%s8770_s13 + $0xc2] sm:$0xff] }
 0x225   : > { %7393 = vmatpush3.bf16.msra.mxu0 %v8481_v28  ;;  %7364 = vmatprep.mubr.bf16.mxu0 %v2423_v34  ;;  %v6427_v28 = vld [vmem:[%s8770_s13 + $0x4a] sm:$0xff]  ;;  %v2732_v34 = vpack.c.bf16 %v6436_v19, %v6435_v4 }
 0x226   : > { %7394 = vmatprep.subr.bf16.mxu0 %v8482_v39 }
 0x229   : > { %7395 = vmatpush3.bf16.msra.mxu0 %v8482_v39  ;;  %v2733_v39 = vpack.c.bf16 %v6438_v31, %v6437_v11 }
 0x22a   : > { %7396 = vmatprep.subr.bf16.mxu0 %v8483_v53 }
 0x22c   : > { %7365 = vmatmul.mubr.bf16.gmra.mrb[4].mxu0 %v2424_v56  ;;  %v2735_v56 = vpack.c.bf16 %v6442_v46, %v6441_v45  ;;  %v8499_v46 = vld [vmem:[#allocation5 + $0x10] sm:$0xff]  }
 0x22d   : > { %7368 = vmatprep.mubr.bf16.mxu0 %v2425_v57  ;;  %7397 = vmatpush3.bf16.msra.mxu0 %v8483_v53  ;;  %v2734_v53 = vpack.c.bf16 %v6440_v44, %v6439_v43  ;;  %v6443_v57 = vld [vmem:[%s8770_s13 + $0x10a] sm:$0xff] }
 0x22e   : > { %7398 = vmatprep.subr.bf16.mxu0 %v8484_v62 }
 0x231   : > { %7399 = vmatpush3.bf16.msra.mxu0 %v8484_v62  ;;  %v6444_v62 = vld [vmem:[%s8770_s13 + $0x112] sm:$0xff] }
 0x232   : > { %7400 = vmatprep.subr.bf16.mxu0 %v8485_v7  ;;  %v2736_v6 = vpack.c.bf16 %v6444_v62, %v6443_v57 }
 0x234   : > { %7369 = vmatmul.mubr.bf16.gmra.mrb[8].mxu0 %v2426_v9  ;;  %v6448_v9 = vld [vmem:[%s8770_s13 + $0x142] sm:$0xff] }
 0x235   : > { %7372 = vmatprep.mubr.bf16.mxu0 %v2427_v12  ;;  %7401 = vmatpush3.bf16.msra.mxu0 %v8485_v7  ;;  %v6447_v7 = vld [vmem:[%s8770_s13 + $0x13a] sm:$0xff]  ;;  %v6449_v12 = vld [vmem:[%s8770_s13 + $0x152] sm:$0xff] }
 0x236   : > { %7402 = vmatprep.subr.bf16.mxu0 %v8486_v13  ;;  %v2738_v14 = vpack.c.bf16 %v6448_v9, %v6447_v7  ;;  %v8500_v9 = vld [vmem:[#allocation5 + $0x18] sm:$0xff]  }
 0x239   : > { %7403 = vmatpush3.bf16.msra.mxu0 %v8486_v13  ;;  %v6450_v13 = vld [vmem:[%s8770_s13 + $0x15a] sm:$0xff] }
 0x23a   : > { %7404 = vmatprep.subr.bf16.mxu0 %v8487_v29  ;;  %v2739_v23 = vpack.c.bf16 %v6450_v13, %v6449_v12 }
 0x23c   : > { %7373 = vmatmul.mubr.bf16.gmra.mrb[12].mxu0 %v2428_v37  ;;  %v6455_v37 = vld [vmem:[%s8770_s13 + $0x19a] sm:$0xff] }
 0x23d   : > { %7376 = vmatprep.mubr.bf16.mxu0 %v2429_v16  ;;  %7405 = vmatpush3.bf16.msra.mxu0 %v8487_v29  ;;  %v2740_v29 = vpack.c.bf16 %v6452_v27, %v6451_v26  ;;  %v6456_v16 = vld [vmem:[%s8770_s13 + $0x1a2] sm:$0xff] }
 0x23e   : > { %7406 = vmatprep.subr.bf16.mxu0 %v8488_v17 }
 0x241   : > { %7407 = vmatpush3.bf16.msra.mxu0 %v8488_v17  ;;  %v2742_v17 = vpack.c.bf16 %v6456_v16, %v6455_v37 }
 0x244   : > { %7377 = vmatmul.mubr.bf16.gmra.mrb[16].mxu0 %v2430_v42  ;;  %v8638_v42 = vmov 0.0  }
 0x245   : > { %7380 = vmatprep.mubr.bf16.mxu0 %v2431_v48  ;;  %3111 = vst [vmem:[#allocation2] sm:$0xff] %v8638_v42  ;;  %3112 = vst [vmem:[#allocation2 + $0x8] sm:$0xff] %v8638_v42  ;;  %v8639_v48 = vmov 0.0|0.0  }
 0x246   : > { %3113 = vst [vmem:[#allocation2 + $0x10] sm:$0xff] %v8638_v42  ;;  %3114 = vst [vmem:[#allocation2 + $0x18] sm:$0xff] %v8638_v42  ;;  %7456 = vmatprep.mubr.bf16.mxu1 %v8639_v48 }
 0x247   : > { %3115 = vst [vmem:[#allocation2 + $0x20] sm:$0xff] %v8638_v42  ;;  %3118 = vst [vmem:[#allocation2 + $0x38] sm:$0xff] %v8638_v42 }
 0x248   : > { %3119 = vst [vmem:[#allocation2 + $0x40] sm:$0xff] %v8638_v42  ;;  %3122 = vst [vmem:[#allocation2 + $0x58] sm:$0xff] %v8638_v42 }
 0x249   : > { %3123 = vst [vmem:[#allocation2 + $0x60] sm:$0xff] %v8638_v42  ;;  %3126 = vst [vmem:[#allocation2 + $0x78] sm:$0xff] %v8638_v42 }
 0x24a   : > { %3127 = vst [vmem:[#allocation2 + $0x80] sm:$0xff] %v8638_v42  ;;  %3130 = vst [vmem:[#allocation2 + $0x98] sm:$0xff] %v8638_v42 }
 0x24b   : > { %3131 = vst [vmem:[#allocation2 + $0xa0] sm:$0xff] %v8638_v42  ;;  %3134 = vst [vmem:[#allocation2 + $0xb8] sm:$0xff] %v8638_v42 }
 0x24c   : > { %7381 = vmatmul.mubr.bf16.gmra.mrb[20].mxu0 %v2432_v61  ;;  %3135 = vst [vmem:[#allocation2 + $0xc0] sm:$0xff] %v8638_v42  ;;  %3138 = vst [vmem:[#allocation2 + $0xd8] sm:$0xff] %v8638_v42 }
 0x24d   : > { %7384 = vmatprep.mubr.bf16.mxu0 %v2433_v2  ;;  %3139 = vst [vmem:[#allocation2 + $0xe0] sm:$0xff] %v8638_v42  ;;  %3142 = vst [vmem:[#allocation2 + $0xf8] sm:$0xff] %v8638_v42 }
 0x24e   : > { %3143 = vst [vmem:[#allocation2 + $0x100] sm:$0xff] %v8638_v42  ;;  %3146 = vst [vmem:[#allocation2 + $0x118] sm:$0xff] %v8638_v42 }
 0x24f   : > { %3147 = vst [vmem:[#allocation2 + $0x120] sm:$0xff] %v8638_v42  ;;  %3150 = vst [vmem:[#allocation2 + $0x138] sm:$0xff] %v8638_v42 }
 0x250   : > { %3151 = vst [vmem:[#allocation2 + $0x140] sm:$0xff] %v8638_v42  ;;  %3154 = vst [vmem:[#allocation2 + $0x158] sm:$0xff] %v8638_v42 }
 0x251   : > { %3155 = vst [vmem:[#allocation2 + $0x160] sm:$0xff] %v8638_v42  ;;  %3158 = vst [vmem:[#allocation2 + $0x178] sm:$0xff] %v8638_v42 }
 0x252   : > { %3159 = vst [vmem:[#allocation2 + $0x180] sm:$0xff] %v8638_v42  ;;  %3162 = vst [vmem:[#allocation2 + $0x198] sm:$0xff] %v8638_v42 }
 0x253   : > { %3163 = vst [vmem:[#allocation2 + $0x1a0] sm:$0xff] %v8638_v42  ;;  %3166 = vst [vmem:[#allocation2 + $0x1b8] sm:$0xff] %v8638_v42 }
 0x254   : > { %7385 = vmatmul.mubr.bf16.gmra.mrb[24].mxu0 %v2434_v36  ;;  %3167 = vst [vmem:[#allocation2 + $0x1c0] sm:$0xff] %v8638_v42  ;;  %3170 = vst [vmem:[#allocation2 + $0x1d8] sm:$0xff] %v8638_v42 }
 0x255   : > { %7388 = vmatprep.mubr.bf16.mxu0 %v9040_v40  ;;  %v2728_v40 = vpack.c.bf16 %v6428_v30, %v6427_v28  ;;  %3171 = vst [vmem:[#allocation2 + $0x1e0] sm:$0xff] %v8638_v42  ;;  %3174 = vst [vmem:[#allocation2 + $0x1f8] sm:$0xff] %v8638_v42 }
 0x256   : > { %3175 = vst [vmem:[#allocation2 + $0x200] sm:$0xff] %v8638_v42  ;;  %3178 = vst [vmem:[#allocation2 + $0x218] sm:$0xff] %v8638_v42 }
 0x257   : > { %3179 = vst [vmem:[#allocation2 + $0x220] sm:$0xff] %v8638_v42  ;;  %3180 = vst [vmem:[#allocation2 + $0x228] sm:$0xff] %v8638_v42 }
 0x258   : > { %3181 = vst [vmem:[#allocation2 + $0x230] sm:$0xff] %v8638_v42  ;;  %3182 = vst [vmem:[#allocation2 + $0x238] sm:$0xff] %v8638_v42 }
 0x25c   : > { %7389 = vmatmul.mubr.bf16.gmra.mrb[28].mxu0 %v2436_v18 }
 0x25d   : > { %7408 = vmatprep.mubr.bf16.mxu0 %v2727_v20 }
 0x264   : > { %7409 = vmatmul.mubr.bf16.vlgmr.msra.gmra.mrb[0].mxu0 %v2728_v40 }
 0x265   : > { %7412 = vmatprep.mubr.bf16.mxu0 %v2729_v50 }
 0x26c   : > { %7413 = vmatmul.mubr.bf16.gmra.mrb[4].mxu0 %v2730_v15 }
 0x26d   : > { %7416 = vmatprep.mubr.bf16.mxu0 %v2731_v3  ;;  %v8498_v3 = vld [vmem:[#allocation5 + $0x8] sm:$0xff]  }
 0x274   : > { %7417 = vmatmul.mubr.bf16.gmra.mrb[8].mxu0 %v2732_v34 }
 0x275   : > { %7420 = vmatprep.mubr.bf16.mxu0 %v2733_v39 }
 0x27c   : > { %7421 = vmatmul.mubr.bf16.gmra.mrb[12].mxu0 %v2734_v53 }
 0x27d   : > { %7424 = vmatprep.mubr.bf16.mxu0 %v2735_v56 }
 0x284   : > { %7425 = vmatmul.mubr.bf16.gmra.mrb[16].mxu0 %v2736_v6 }
 0x285   : > { %7428 = vmatprep.mubr.bf16.mxu0 %v2737_v8 }
 0x28c   : > { %7429 = vmatmul.mubr.bf16.gmra.mrb[20].mxu0 %v2738_v14 }
 0x28d   : > { %7432 = vmatprep.mubr.bf16.mxu0 %v2739_v23 }
 0x294   : > { %7433 = vmatmul.mubr.bf16.gmra.mrb[24].mxu0 %v2740_v29 }
 0x295   : > { %7436 = vmatprep.mubr.bf16.mxu0 %v9060_v35  ;;  %v8496_v35 = vld [vmem:[#allocation5 + $0x78] sm:$0xff]  }
 0x296   : > { %7454 = vmatprep.subr.bf16.mxu1 %v8496_v35 }
 0x297   : > { %7455 = vmatpush3.bf16.msra.mxu1 %v8496_v35 }
 0x298   : > { %7488 = vmatprep.subr.bf16.mxu1 %v8497_v49 }
 0x29c   : > { %7437 = vmatmul.mubr.bf16.gmra.mrb[28].mxu0 %v2742_v17  ;;  %v8501_v17 = vld [vmem:[#allocation5 + $0x20] sm:$0xff]  }
 0x337   : > { %v7410_v55 = vpop.f32.mrb[0].mxu0 }
 0x338   : > { %v3010_v61 = vmul.f32 %v7410_v55, %v9145_v54  ;;  %v2842_v2 = vpop.f32.mrb[1].mxu0 }
 0x339   : > { %v3008_v21 = vmul.f32 %v9145_v54, %v2842_v2  ;;  %v7411_v22 = vpop.f32.mrb[2].mxu0 }
 0x33a   : > { %v3049_v36 = vadd.f32 %v9150_v60, %v3010_v61  ;;  %v3011_v47 = vmul.f32 %v7411_v22, %v9145_v54  ;;  %v2845_v52 = vpop.f32.mrb[3].mxu0  ;;  %v8502_v61 = vld [vmem:[#allocation5 + $0x28] sm:$0xff]  }
 0x33b   : > { %v3047_v1 = vadd.f32 %v9150_v60, %v3008_v21  ;;  %v3009_v10 = vmul.f32 %v9145_v54, %v2845_v52 }
 0x33c   : > { %v3081_v18 = vmax.f32 %v3049_v36, 0.0  ;;  %v3050_v20 = vadd.f32 %v9150_v60, %v3011_v47 }
 0x33d   : > { %v3079_v28 = vmax.f32 %v3047_v1, 0.0  ;;  %v3048_v30 = vadd.f32 %v9150_v60, %v3009_v10 }
 0x33e   : > { %3186 = vst [vmem:[#allocation2 + $0x48] sm:$0xff] %v3081_v18  ;;  %v3082_v38 = vmax.f32 %v3050_v20, 0.0  ;;  %v8503_v20 = vld [vmem:[#allocation5 + $0x30] sm:$0xff]  }
 0x33f   : > { %3184 = vst [vmem:[#allocation2 + $0x28] sm:$0xff] %v3079_v28  ;;  %v3080_v41 = vmax.f32 %v3048_v30, 0.0  ;;  %v7414_v40 = vpop.f32.mrb[4].mxu0 }
 0x340   : > { %3187 = vst [vmem:[#allocation2 + $0x50] sm:$0xff] %v3082_v38  ;;  %v3014_v50 = vmul.f32 %v7414_v40, %v9145_v54  ;;  %v2858_v51 = vpop.f32.mrb[5].mxu0  ;;  %v3314_v58 = vpack.c.bf16 %v3082_v38, %v3081_v18 }
 0x341   : > { %3185 = vst [vmem:[#allocation2 + $0x30] sm:$0xff] %v3080_v41  ;;  %v3012_v5 = vmul.f32 %v9145_v54, %v2858_v51  ;;  %v7415_v59 = vpop.f32.mrb[6].mxu0  ;;  %v3313_v15 = vpack.c.bf16 %v3080_v41, %v3079_v28 }
 0x342   : > { %v3053_v4 = vadd.f32 %v9150_v60, %v3014_v50  ;;  %v3015_v19 = vmul.f32 %v7415_v59, %v9145_v54  ;;  %v2861_v11 = vpop.f32.mrb[7].mxu0  ;;  %v8504_v59 = vld [vmem:[#allocation5 + $0x38] sm:$0xff]  }
 0x343   : > { %v3051_v31 = vadd.f32 %v9150_v60, %v3012_v5  ;;  %v3013_v34 = vmul.f32 %v9145_v54, %v2861_v11  ;;  %7457 = vmatmul.mubr.bf16.vlgmr.msra.gmra.mrb[0].mxu1 %v3313_v15 }
 0x344   : > { %v3085_v39 = vmax.f32 %v3053_v4, 0.0  ;;  %v3054_v43 = vadd.f32 %v9150_v60, %v3015_v19  ;;  %7460 = vmatprep.mubr.bf16.mxu1 %v3314_v58  ;;  %7489 = vmatpush3.bf16.msra.mxu1 %v8497_v49 }
 0x345   : > { %v3083_v44 = vmax.f32 %v3051_v31, 0.0  ;;  %v3052_v45 = vadd.f32 %v9150_v60, %v3013_v34  ;;  %7490 = vmatprep.subr.bf16.mxu1 %v8498_v3 }
 0x346   : > { %3190 = vst [vmem:[#allocation2 + $0x88] sm:$0xff] %v3085_v39  ;;  %v3086_v53 = vmax.f32 %v3054_v43, 0.0 }
 0x347   : > { %3188 = vst [vmem:[#allocation2 + $0x68] sm:$0xff] %v3083_v44  ;;  %v3084_v56 = vmax.f32 %v3052_v45, 0.0  ;;  %v7418_v57 = vpop.f32.mrb[8].mxu0 }
 0x348   : > { %3191 = vst [vmem:[#allocation2 + $0x90] sm:$0xff] %v3086_v53  ;;  %v3018_v62 = vmul.f32 %v7418_v57, %v9145_v54  ;;  %v2874_v63 = vpop.f32.mrb[9].mxu0  ;;  %v3316_v0 = vpack.c.bf16 %v3086_v53, %v3085_v39  ;;  %7491 = vmatpush3.bf16.msra.mxu1 %v8498_v3 }
 0x349   : > { %3189 = vst [vmem:[#allocation2 + $0x70] sm:$0xff] %v3084_v56  ;;  %v3016_v6 = vmul.f32 %v9145_v54, %v2874_v63  ;;  %v7419_v8 = vpop.f32.mrb[10].mxu0  ;;  %v3315_v7 = vpack.c.bf16 %v3084_v56, %v3083_v44  ;;  %7492 = vmatprep.subr.bf16.mxu1 %v8499_v46  ;;  %v9192_v44 = vld [vmem:[#allocation5 + $0x80] sm:$0xff]  }
 0x34a   : > { %v3057_v12 = vadd.f32 %v9150_v60, %v3018_v62  ;;  %v3019_v13 = vmul.f32 %v7419_v8, %v9145_v54  ;;  %v2877_v14 = vpop.f32.mrb[11].mxu0 }
 0x34b   : > { %v3055_v23 = vadd.f32 %v9150_v60, %v3016_v6  ;;  %v3017_v26 = vmul.f32 %v9145_v54, %v2877_v14  ;;  %7461 = vmatmul.mubr.bf16.gmra.mrb[4].mxu1 %v3315_v7 }
 0x34c   : > { %v3089_v27 = vmax.f32 %v3057_v12, 0.0  ;;  %v3058_v29 = vadd.f32 %v9150_v60, %v3019_v13  ;;  %7464 = vmatprep.mubr.bf16.mxu1 %v3316_v0  ;;  %7493 = vmatpush3.bf16.msra.mxu1 %v8499_v46 }
 0x34d   : > { %v3087_v37 = vmax.f32 %v3055_v23, 0.0  ;;  %v3056_v16 = vadd.f32 %v9150_v60, %v3017_v26  ;;  %7494 = vmatprep.subr.bf16.mxu1 %v8500_v9 }
 0x34e   : > { %3194 = vst [vmem:[#allocation2 + $0xc8] sm:$0xff] %v3089_v27  ;;  %v3090_v24 = vmax.f32 %v3058_v29, 0.0 }
 0x34f   : > { %3192 = vst [vmem:[#allocation2 + $0xa8] sm:$0xff] %v3087_v37  ;;  %v3088_v25 = vmax.f32 %v3056_v16, 0.0  ;;  %v7422_v32 = vpop.f32.mrb[12].mxu0 }
 0x350   : > { %3195 = vst [vmem:[#allocation2 + $0xd0] sm:$0xff] %v3090_v24  ;;  %v3022_v33 = vmul.f32 %v7422_v32, %v9145_v54  ;;  %v2890_v42 = vpop.f32.mrb[13].mxu0  ;;  %v3318_v35 = vpack.c.bf16 %v3090_v24, %v3089_v27  ;;  %7495 = vmatpush3.bf16.msra.mxu1 %v8500_v9 }
 0x351   : > { %3193 = vst [vmem:[#allocation2 + $0xb0] sm:$0xff] %v3088_v25  ;;  %v3020_v48 = vmul.f32 %v9145_v54, %v2890_v42  ;;  %v7423_v49 = vpop.f32.mrb[14].mxu0  ;;  %v3317_v55 = vpack.c.bf16 %v3088_v25, %v3087_v37  ;;  %7496 = vmatprep.subr.bf16.mxu1 %v8501_v17 }
 0x352   : > { %v3061_v2 = vadd.f32 %v9150_v60, %v3022_v33  ;;  %v3023_v21 = vmul.f32 %v7423_v49, %v9145_v54  ;;  %v2893_v22 = vpop.f32.mrb[15].mxu0 }
 0x353   : > { %v3059_v36 = vadd.f32 %v9150_v60, %v3020_v48  ;;  %v3021_v47 = vmul.f32 %v9145_v54, %v2893_v22  ;;  %7465 = vmatmul.mubr.bf16.gmra.mrb[8].mxu1 %v3317_v55 }
 0x354   : > { %v3093_v52 = vmax.f32 %v3061_v2, 0.0  ;;  %v3062_v1 = vadd.f32 %v9150_v60, %v3023_v21  ;;  %7468 = vmatprep.mubr.bf16.mxu1 %v3318_v35  ;;  %7497 = vmatpush3.bf16.msra.mxu1 %v8501_v17 }
 0x355   : > { %v3091_v10 = vmax.f32 %v3059_v36, 0.0  ;;  %v3060_v18 = vadd.f32 %v9150_v60, %v3021_v47  ;;  %7498 = vmatprep.subr.bf16.mxu1 %v8502_v61 }
 0x356   : > { %3198 = vst [vmem:[#allocation2 + $0x108] sm:$0xff] %v3093_v52  ;;  %v3094_v28 = vmax.f32 %v3062_v1, 0.0 }
 0x357   : > { %3196 = vst [vmem:[#allocation2 + $0xe8] sm:$0xff] %v3091_v10  ;;  %v3092_v30 = vmax.f32 %v3060_v18, 0.0  ;;  %v7426_v38 = vpop.f32.mrb[16].mxu0 }
 0x358   : > { %3199 = vst [vmem:[#allocation2 + $0x110] sm:$0xff] %v3094_v28  ;;  %v3026_v41 = vmul.f32 %v7426_v38, %v9145_v54  ;;  %v2906_v40 = vpop.f32.mrb[17].mxu0  ;;  %v3320_v50 = vpack.c.bf16 %v3094_v28, %v3093_v52  ;;  %7499 = vmatpush3.bf16.msra.mxu1 %v8502_v61 }
 0x359   : > { %3197 = vst [vmem:[#allocation2 + $0xf0] sm:$0xff] %v3092_v30  ;;  %v3024_v51 = vmul.f32 %v9145_v54, %v2906_v40  ;;  %v7427_v58 = vpop.f32.mrb[18].mxu0  ;;  %v3319_v5 = vpack.c.bf16 %v3092_v30, %v3091_v10  ;;  %7500 = vmatprep.subr.bf16.mxu1 %v8503_v20 }
 0x35a   : > { %v3065_v15 = vadd.f32 %v9150_v60, %v3026_v41  ;;  %v3027_v3 = vmul.f32 %v7427_v58, %v9145_v54  ;;  %v2909_v4 = vpop.f32.mrb[19].mxu0 }
 0x35b   : > { %v3063_v19 = vadd.f32 %v9150_v60, %v3024_v51  ;;  %v3025_v11 = vmul.f32 %v9145_v54, %v2909_v4  ;;  %7469 = vmatmul.mubr.bf16.gmra.mrb[12].mxu1 %v3319_v5  ;;  %v3216_v4 = vld [vmem:[#allocation2 + $0x7] sm:$0xff] }
 0x35c   : > { %v3097_v31 = vmax.f32 %v3065_v15, 0.0  ;;  %v3066_v34 = vadd.f32 %v9150_v60, %v3027_v3  ;;  %7472 = vmatprep.mubr.bf16.mxu1 %v3320_v50  ;;  %7501 = vmatpush3.bf16.msra.mxu1 %v8503_v20 }
 0x35d   : > { %v3095_v39 = vmax.f32 %v3063_v19, 0.0  ;;  %v3064_v43 = vadd.f32 %v9150_v60, %v3025_v11  ;;  %7502 = vmatprep.subr.bf16.mxu1 %v8504_v59  ;;  %v3217_v19 = vld [vmem:[#allocation2 + $0xf] sm:$0xff] }
 0x35e   : > { %3202 = vst [vmem:[#allocation2 + $0x148] sm:$0xff] %v3097_v31  ;;  %v9194_v45 = vmax.f32 %v3066_v34, 0.0  ;;  %v3248_v34 = vpack.c.bf16 %v3217_v19, %v3216_v4  ;;  %v3764_v4 = vld [vmem:[#allocation2 + $0x11] sm:$0xff] }
 0x35f   : > { %3200 = vst [vmem:[#allocation2 + $0x128] sm:$0xff] %v3095_v39  ;;  %v3096_v46 = vmax.f32 %v3064_v43, 0.0  ;;  %v7430_v53 = vpop.f32.mrb[20].mxu0  ;;  %v3219_v43 = vld [vmem:[#allocation2 + $0x2f] sm:$0xff] }
 0x360   : > { %3203 = vst [vmem:[#allocation2 + $0x150] sm:$0xff] %v9194_v45  ;;  %v3030_v56 = vmul.f32 %v7430_v53, %v9145_v54  ;;  %v2922_v57 = vpop.f32.mrb[21].mxu0  ;;  %v3322_v62 = vpack.c.bf16 %v9194_v45, %v3097_v31  ;;  %7503 = vmatpush3.bf16.msra.mxu1 %v8504_v59  ;;  %v3218_v53 = vld [vmem:[#allocation2 + $0x27] sm:$0xff] }
 0x361   : > { %3201 = vst [vmem:[#allocation2 + $0x130] sm:$0xff] %v3096_v46  ;;  %v3028_v63 = vmul.f32 %v9145_v54, %v2922_v57  ;;  %v7431_v0 = vpop.f32.mrb[22].mxu0  ;;  %v9200_v6 = vpack.c.bf16 %v3096_v46, %v3095_v39  ;;  %7536 = vmatprep.subr.bf16.mxu1 %v9192_v44  ;;  %v3221_v46 = vld [vmem:[#allocation2 + $0x4f] sm:$0xff] }
 0x362   : > { %v3069_v8 = vadd.f32 %v9150_v60, %v3030_v56  ;;  %v3031_v7 = vmul.f32 %v7431_v0, %v9145_v54  ;;  %v2925_v9 = vpop.f32.mrb[23].mxu0  ;;  %v3220_v56 = vld [vmem:[#allocation2 + $0x47] sm:$0xff]  ;;  %v3223_v0 = vld [vmem:[#allocation2 + $0x6f] sm:$0xff] }
 0x363   : > { %v3067_v12 = vadd.f32 %v9150_v60, %v3028_v63  ;;  %v3029_v13 = vmul.f32 %v9145_v54, %v2925_v9  ;;  %7473 = vmatmul.mubr.bf16.gmra.mrb[16].mxu1 %v9200_v6  ;;  %v8506_v57 = vld [vmem:[#allocation5 + $0x88] sm:$0xff]   ;;  %v8507_v63 = vld [vmem:[#allocation5 + $0x90] sm:$0xff]  }
 0x364   : > { %v3101_v14 = vmax.f32 %v3069_v8, 0.0  ;;  %v3070_v23 = vadd.f32 %v9150_v60, %v3031_v7  ;;  %7476 = vmatprep.mubr.bf16.mxu1 %v3322_v62  ;;  %v9245_v62 = vpack.c.bf16 %v3221_v46, %v3220_v56  ;;  %v3225_v8 = vld [vmem:[#allocation2 + $0x8f] sm:$0xff]  ;;  %v3222_v7 = vld [vmem:[#allocation2 + $0x67] sm:$0xff] }
 0x365   : > { %v3099_v26 = vmax.f32 %v3067_v12, 0.0  ;;  %v3068_v27 = vadd.f32 %v9150_v60, %v3029_v13  ;;  %v9250_v9 = vpack.c.bf16 %v3223_v0, %v3222_v7  ;;  %v3224_v12 = vld [vmem:[#allocation2 + $0x87] sm:$0xff]  ;;  %v8508_v13 = vld [vmem:[#allocation5 + $0x98] sm:$0xff]  }
 0x366   : > { %3206 = vst [vmem:[#allocation2 + $0x188] sm:$0xff] %v3101_v14  ;;  %v3102_v29 = vmax.f32 %v3070_v23, 0.0  ;;  %v3227_v23 = vld [vmem:[#allocation2 + $0xaf] sm:$0xff] }
 0x367   : > { %3204 = vst [vmem:[#allocation2 + $0x168] sm:$0xff] %v3099_v26  ;;  %v3100_v37 = vmax.f32 %v3068_v27, 0.0  ;;  %v7434_v16 = vpop.f32.mrb[24].mxu0  ;;  %v3226_v27 = vld [vmem:[#allocation2 + $0xa7] sm:$0xff]  ;;  %v3766_v46 = vld [vmem:[#allocation2 + $0x31] sm:$0xff] }
 0x368   : > { %3207 = vst [vmem:[#allocation2 + $0x190] sm:$0xff] %v3102_v29  ;;  %v3034_v17 = vmul.f32 %v7434_v16, %v9145_v54  ;;  %v2938_v24 = vpop.f32.mrb[25].mxu0  ;;  %v9211_v25 = vpack.c.bf16 %v3102_v29, %v3101_v14  ;;  %v9252_v14 = vpack.c.bf16 %v3225_v8, %v3224_v12  ;;  %v9256_v29 = vpack.c.bf16 %v3227_v23, %v3226_v27  ;;  %v8510_v16 = vld [vmem:[#allocation5 + $0xa8] sm:$0xff]   ;;  %v3768_v56 = vld [vmem:[#allocation2 + $0x51] sm:$0xff] }
 0x369   : > { %3205 = vst [vmem:[#allocation2 + $0x170] sm:$0xff] %v3100_v37  ;;  %v3032_v32 = vmul.f32 %v9145_v54, %v2938_v24  ;;  %v7435_v33 = vpop.f32.mrb[26].mxu0  ;;  %v9214_v42 = vpack.c.bf16 %v3100_v37, %v3099_v26  ;;  %v3229_v26 = vld [vmem:[#allocation2 + $0xcf] sm:$0xff]  ;;  %v3228_v37 = vld [vmem:[#allocation2 + $0xc7] sm:$0xff] }
 0x36a   : > { %v3073_v35 = vadd.f32 %v9150_v60, %v3034_v17  ;;  %v3035_v48 = vmul.f32 %v7435_v33, %v9145_v54  ;;  %v2941_v49 = vpop.f32.mrb[27].mxu0  ;;  %v9258_v17 = vpack.c.bf16 %v3229_v26, %v3228_v37  ;;  %v8511_v24 = vld [vmem:[#allocation5 + $0xb0] sm:$0xff]   ;;  %v8516_v26 = vld [vmem:[#allocation5 + $0xd8] sm:$0xff]   ;;  %v8517_v37 = vld [vmem:[#allocation5 + $0xe0] sm:$0xff]  }
 0x36b   : > { %v3071_v55 = vadd.f32 %v9150_v60, %v3032_v32  ;;  %v3033_v61 = vmul.f32 %v9145_v54, %v2941_v49  ;;  %7477 = vmatmul.mubr.bf16.gmra.mrb[20].mxu1 %v9214_v42  ;;  %v3231_v32 = vld [vmem:[#allocation2 + $0xef] sm:$0xff]  ;;  %v3232_v49 = vld [vmem:[#allocation2 + $0x107] sm:$0xff] }
 0x36c   : > { %v3105_v2 = vmax.f32 %v3073_v35, 0.0  ;;  %v3074_v21 = vadd.f32 %v9150_v60, %v3035_v48  ;;  %7480 = vmatprep.mubr.bf16.mxu1 %v9211_v25  ;;  %v3233_v33 = vld [vmem:[#allocation2 + $0x10f] sm:$0xff]  ;;  %v3230_v35 = vld [vmem:[#allocation2 + $0xe7] sm:$0xff] }
 0x36d   : > { %v3103_v22 = vmax.f32 %v3071_v55, 0.0  ;;  %v3072_v36 = vadd.f32 %v9150_v60, %v3033_v61  ;;  %v9262_v48 = vpack.c.bf16 %v3231_v32, %v3230_v35  ;;  %v8512_v55 = vld [vmem:[#allocation5 + $0xb8] sm:$0xff]   ;;  %v9264_v61 = vpack.c.bf16 %v3233_v33, %v3232_v49  ;;  %v8515_v8 = vld [vmem:[#allocation5 + $0xd0] sm:$0xff]   ;;  %v8518_v49 = vld [vmem:[#allocation5 + $0xe8] sm:$0xff]  }
 0x36e   : > { %3210 = vst [vmem:[#allocation2 + $0x1c8] sm:$0xff] %v3105_v2  ;;  %v3106_v47 = vmax.f32 %v3074_v21, 0.0  ;;  %v3235_v21 = vld [vmem:[#allocation2 + $0x12f] sm:$0xff] }
 0x36f   : > { %3208 = vst [vmem:[#allocation2 + $0x1a8] sm:$0xff] %v3103_v22  ;;  %v3104_v52 = vmax.f32 %v3072_v36, 0.0  ;;  %v7438_v1 = vpop.f32.mrb[28].mxu0  ;;  %v3234_v36 = vld [vmem:[#allocation2 + $0x127] sm:$0xff]  ;;  %v3770_v12 = vld [vmem:[#allocation2 + $0x71] sm:$0xff] }
 0x370   : > { %3211 = vst [vmem:[#allocation2 + $0x1d0] sm:$0xff] %v3106_v47  ;;  %v3038_v10 = vmul.f32 %v7438_v1, %v9145_v54  ;;  %v2954_v18 = vpop.f32.mrb[29].mxu0  ;;  %v9225_v20 = vpack.c.bf16 %v3106_v47, %v3105_v2  ;;  %v8513_v2 = vld [vmem:[#allocation5 + $0xc0] sm:$0xff]   ;;  %v9268_v47 = vpack.c.bf16 %v3235_v21, %v3234_v36  ;;  %v3769_v7 = vld [vmem:[#allocation2 + $0x69] sm:$0xff]  ;;  %v3776_v33 = vld [vmem:[#allocation2 + $0xd1] sm:$0xff] }
 0x371   : > { %3209 = vst [vmem:[#allocation2 + $0x1b0] sm:$0xff] %v3104_v52  ;;  %v3036_v28 = vmul.f32 %v9145_v54, %v2954_v18  ;;  %v7439_v30 = vpop.f32.mrb[30].mxu0  ;;  %v9228_v38 = vpack.c.bf16 %v3104_v52, %v3103_v22  ;;  %v3237_v22 = vld [vmem:[#allocation2 + $0x14f] sm:$0xff]  ;;  %v3236_v52 = vld [vmem:[#allocation2 + $0x147] sm:$0xff]  ;;  %v9295_v23 = vpack.c.bf16 %v3770_v12, %v3769_v7 }
 0x372   : > { %v3077_v41 = vadd.f32 %v9150_v60, %v3038_v10  ;;  %v3039_v40 = vmul.f32 %v7439_v30, %v9145_v54  ;;  %v2957_v50 = vpop.f32.mrb[31].mxu0  ;;  %v9270_v1 = vpack.c.bf16 %v3237_v22, %v3236_v52  ;;  %v3239_v10 = vld [vmem:[#allocation2 + $0x16f] sm:$0xff] }
 0x373   : > { %v3075_v51 = vadd.f32 %v9150_v60, %v3036_v28  ;;  %v3037_v58 = vmul.f32 %v9145_v54, %v2957_v50  ;;  %7481 = vmatmul.mubr.bf16.gmra.mrb[24].mxu1 %v9228_v38  ;;  %v3241_v18 = vld [vmem:[#allocation2 + $0x18f] sm:$0xff]  ;;  %v3238_v28 = vld [vmem:[#allocation2 + $0x167] sm:$0xff] }
 0x374   : > { %v3109_v5 = vmax.f32 %v3077_v41, 0.0  ;;  %v3078_v59 = vadd.f32 %v9150_v60, %v3039_v40  ;;  %7484 = vmatprep.mubr.bf16.mxu1 %v9225_v20  ;;  %v9274_v30 = vpack.c.bf16 %v3239_v10, %v3238_v28  ;;  %v3240_v41 = vld [vmem:[#allocation2 + $0x187] sm:$0xff]  ;;  %v3778_v22 = vld [vmem:[#allocation2 + $0xf1] sm:$0xff] }
 0x375   : > { %v3107_v15 = vmax.f32 %v3075_v51, 0.0  ;;  %v3076_v3 = vadd.f32 %v9150_v60, %v3037_v58  ;;  %v9243_v60 = vpack.c.bf16 %v3219_v43, %v3218_v53  ;;  %v9276_v40 = vpack.c.bf16 %v3241_v18, %v3240_v41  ;;  %v3765_v43 = vld [vmem:[#allocation2 + $0x29] sm:$0xff]  ;;  %v3780_v52 = vld [vmem:[#allocation2 + $0x111] sm:$0xff]  ;;  %v8521_v41 = vld [vmem:[#allocation5 + $0x100] sm:$0xff]  }
 0x376   : > { %3214 = vst [vmem:[#allocation2 + $0x208] sm:$0xff] %v3109_v5  ;;  %v3110_v11 = vmax.f32 %v3078_v59, 0.0  ;;  %v3242_v58 = vld [vmem:[#allocation2 + $0x1a7] sm:$0xff]  ;;  %v8520_v18 = vld [vmem:[#allocation5 + $0xf8] sm:$0xff]  }
 0x377   : > { %3212 = vst [vmem:[#allocation2 + $0x1e8] sm:$0xff] %v3107_v15  ;;  %v3108_v31 = vmax.f32 %v3076_v3, 0.0  ;;  %v3245_v51 = vld [vmem:[#allocation2 + $0x1cf] sm:$0xff]  ;;  %v3244_v59 = vld [vmem:[#allocation2 + $0x1c7] sm:$0xff] }
 0x378   : > { %3215 = vst [vmem:[#allocation2 + $0x210] sm:$0xff] %v3110_v11  ;;  %v9238_v39 = vpack.c.bf16 %v3110_v11, %v3109_v5  ;;  %v3243_v50 = vld [vmem:[#allocation2 + $0x1af] sm:$0xff] }
 0x379   : > { %3213 = vst [vmem:[#allocation2 + $0x1f0] sm:$0xff] %v3108_v31  ;;  %v9240_v54 = vpack.c.bf16 %v3108_v31, %v3107_v15  ;;  %v9280_v5 = vpack.c.bf16 %v3243_v50, %v3242_v58  ;;  %v9282_v15 = vpack.c.bf16 %v3245_v51, %v3244_v59  ;;  %v3763_v3 = vld [vmem:[#allocation2 + $0x9] sm:$0xff]  ;;  %v3782_v51 = vld [vmem:[#allocation2 + $0x131] sm:$0xff] }
 0x37a   : > { %v3795_v31 = vpack.c.bf16 %v3764_v4, %v3763_v3  ;;  %v3767_v53 = vld [vmem:[#allocation2 + $0x49] sm:$0xff]  ;;  %v3784_v59 = vld [vmem:[#allocation2 + $0x151] sm:$0xff] }
 0x37b   : > { %7485 = vmatmul.mubr.bf16.gmra.mrb[28].mxu1 %v9240_v54  ;;  %v9291_v0 = vpack.c.bf16 %v3768_v56, %v3767_v53  ;;  %v3775_v32 = vld [vmem:[#allocation2 + $0xc9] sm:$0xff]  ;;  %v3792_v7 = vld [vmem:[#allocation2 + $0x1d1] sm:$0xff] }
 0x37c   : > { %7504 = vmatprep.mubr.bf16.mxu1 %v3248_v34  ;;  %v3777_v21 = vld [vmem:[#allocation2 + $0xe9] sm:$0xff] }
 0x37d   : > { %v3779_v36 = vld [vmem:[#allocation2 + $0x109] sm:$0xff]  ;;  %v9307_v10 = vpack.c.bf16 %v3778_v22, %v3777_v21  ;;  %v8529_v21 = vld [vmem:[#allocation5 + $0x140] sm:$0xff]  }
 0x37e   : > { %v3246_v11 = vld [vmem:[#allocation2 + $0x1e7] sm:$0xff]  ;;  %v9309_v28 = vpack.c.bf16 %v3780_v52, %v3779_v36  ;;  %v4376_v36 = vld [vmem:[#allocation2 + $0x30] sm:$0xff] }
 0x37f   : > { %v3781_v50 = vld [vmem:[#allocation2 + $0x129] sm:$0xff] }
 0x380   : > { %v3247_v19 = vld [vmem:[#allocation2 + $0x1ef] sm:$0xff]  ;;  %v9313_v3 = vpack.c.bf16 %v3782_v51, %v3781_v50  ;;  %v4099_v52 = vld [vmem:[#allocation2 + $0x207] sm:$0xff] }
 0x381   : > { %v9286_v34 = vpack.c.bf16 %v3247_v19, %v3246_v11  ;;  %v3783_v58 = vld [vmem:[#allocation2 + $0x149] sm:$0xff]  ;;  %v3786_v11 = vld [vmem:[#allocation2 + $0x171] sm:$0xff] }
 0x382   : > { %v9315_v4 = vpack.c.bf16 %v3784_v59, %v3783_v58  ;;  %v3785_v19 = vld [vmem:[#allocation2 + $0x169] sm:$0xff] }
 0x383   : > { %7505 = vmatmul.mubr.bf16.vlgmr.msra.gmra.mrb[0].mxu1 %v9243_v60  ;;  %v3789_v56 = vld [vmem:[#allocation2 + $0x1a9] sm:$0xff] }
 0x384   : > { %7508 = vmatprep.mubr.bf16.mxu1 %v9245_v62  ;;  %7537 = vmatpush3.bf16.msra.mxu1 %v9192_v44  ;;  %v8509_v44 = vld [vmem:[#allocation5 + $0xa0] sm:$0xff]   ;;  %v4100_v22 = vld [vmem:[#allocation2 + $0x20f] sm:$0xff] }
 0x385   : > { %7538 = vmatprep.subr.bf16.mxu1 %v8506_v57  ;;  %v4378_v51 = vld [vmem:[#allocation2 + $0x50] sm:$0xff]  ;;  %v4377_v59 = vld [vmem:[#allocation2 + $0x48] sm:$0xff] }
 0x386   : > { %v4380_v58 = vld [vmem:[#allocation2 + $0x70] sm:$0xff] }
 0x388   : > { %7539 = vmatpush3.bf16.msra.mxu1 %v8506_v57  ;;  %v9289_v57 = vpack.c.bf16 %v3766_v46, %v3765_v43  ;;  %v3788_v43 = vld [vmem:[#allocation2 + $0x191] sm:$0xff]  ;;  %v9319_v46 = vpack.c.bf16 %v3786_v11, %v3785_v19  ;;  %v9352_v19 = vpack.c.bf16 %v4378_v51, %v4377_v59  ;;  %v4379_v11 = vld [vmem:[#allocation2 + $0x68] sm:$0xff]  ;;  %v8537_v59 = vld [vmem:[#allocation5 + $0x180] sm:$0xff]  }
 0x389   : > { %7540 = vmatprep.subr.bf16.mxu1 %v8507_v63 }
 0x38b   : > { %7509 = vmatmul.mubr.bf16.gmra.mrb[4].mxu1 %v9250_v9 }
 0x38c   : > { %7512 = vmatprep.mubr.bf16.mxu1 %v9252_v14  ;;  %7541 = vmatpush3.bf16.msra.mxu1 %v8507_v63  ;;  %v8514_v63 = vld [vmem:[#allocation5 + $0xc8] sm:$0xff]  }
 0x38d   : > { %7542 = vmatprep.subr.bf16.mxu1 %v8508_v13 }
 0x390   : > { %7543 = vmatpush3.bf16.msra.mxu1 %v8508_v13  ;;  %v3771_v13 = vld [vmem:[#allocation2 + $0x89] sm:$0xff] }
 0x391   : > { %7544 = vmatprep.subr.bf16.mxu1 %v8509_v44 }
 0x393   : > { %7513 = vmatmul.mubr.bf16.gmra.mrb[8].mxu1 %v9256_v29 }
 0x394   : > { %7516 = vmatprep.mubr.bf16.mxu1 %v9258_v17  ;;  %7545 = vmatpush3.bf16.msra.mxu1 %v8509_v44  ;;  %v3772_v44 = vld [vmem:[#allocation2 + $0x91] sm:$0xff] }
 0x395   : > { %7546 = vmatprep.subr.bf16.mxu1 %v8510_v16  ;;  %v9297_v27 = vpack.c.bf16 %v3772_v44, %v3771_v13  ;;  %v3793_v44 = vld [vmem:[#allocation2 + $0x1e9] sm:$0xff] }
 0x398   : > { %7547 = vmatpush3.bf16.msra.mxu1 %v8510_v16  ;;  %v3773_v16 = vld [vmem:[#allocation2 + $0xa9] sm:$0xff] }
 0x399   : > { %7548 = vmatprep.subr.bf16.mxu1 %v8511_v24 }
 0x39b   : > { %7517 = vmatmul.mubr.bf16.gmra.mrb[12].mxu1 %v9262_v48 }
 0x39c   : > { %7520 = vmatprep.mubr.bf16.mxu1 %v9264_v61  ;;  %7549 = vmatpush3.bf16.msra.mxu1 %v8511_v24  ;;  %v3774_v24 = vld [vmem:[#allocation2 + $0xb1] sm:$0xff] }
 0x39d   : > { %7550 = vmatprep.subr.bf16.mxu1 %v8512_v55  ;;  %v9301_v35 = vpack.c.bf16 %v3774_v24, %v3773_v16  ;;  %v8522_v16 = vld [vmem:[#allocation5 + $0x108] sm:$0xff]   ;;  %v8523_v24 = vld [vmem:[#allocation5 + $0x110] sm:$0xff]  }
 0x3a0   : > { %7551 = vmatpush3.bf16.msra.mxu1 %v8512_v55  ;;  %v9303_v55 = vpack.c.bf16 %v3776_v33, %v3775_v32  ;;  %v8524_v32 = vld [vmem:[#allocation5 + $0x118] sm:$0xff]   ;;  %v8525_v33 = vld [vmem:[#allocation5 + $0x120] sm:$0xff]  }
 0x3a1   : > { %7584 = vmatprep.subr.bf16.mxu1 %v8513_v2 }
 0x3a3   : > { %7521 = vmatmul.mubr.bf16.gmra.mrb[16].mxu1 %v9268_v47 }
 0x3a4   : > { %7524 = vmatprep.mubr.bf16.mxu1 %v9270_v1 }
 0x3ab   : > { %7525 = vmatmul.mubr.bf16.gmra.mrb[20].mxu1 %v9274_v30 }
 0x3ac   : > { %7528 = vmatprep.mubr.bf16.mxu1 %v9276_v40 }
 0x3b3   : > { %7529 = vmatmul.mubr.bf16.gmra.mrb[24].mxu1 %v9280_v5 }
 0x3b4   : > { %7532 = vmatprep.mubr.bf16.mxu1 %v9282_v15 }
 0x3bb   : > { %7533 = vmatmul.mubr.bf16.gmra.mrb[28].mxu1 %v9286_v34 }
 0x3bc   : > { %7552 = vmatprep.mubr.bf16.mxu1 %v3795_v31  ;;  %v3787_v31 = vld [vmem:[#allocation2 + $0x189] sm:$0xff] }
 0x3bd   : > { %v9321_v53 = vpack.c.bf16 %v3788_v43, %v3787_v31  ;;  %v8530_v31 = vld [vmem:[#allocation5 + $0x148] sm:$0xff]   ;;  %v9354_v43 = vpack.c.bf16 %v4380_v58, %v4379_v11  ;;  %v8536_v58 = vld [vmem:[#allocation5 + $0x178] sm:$0xff]  }
 0x3be   : > { %v9374_v11 = vld [vmem:[#allocation2 + $0x148] sm:$0xff] }
 0x3c3   : > { %7553 = vmatmul.mubr.bf16.vlgmr.msra.gmra.mrb[0].mxu1 %v9289_v57 }
 0x3c4   : > { %7556 = vmatprep.mubr.bf16.mxu1 %v9291_v0  ;;  %7585 = vmatpush3.bf16.msra.mxu1 %v8513_v2  ;;  %v8519_v2 = vld [vmem:[#allocation5 + $0xf0] sm:$0xff]  }
 0x3c5   : > { %7586 = vmatprep.subr.bf16.mxu1 %v8514_v63 }
 0x3c8   : > { %7587 = vmatpush3.bf16.msra.mxu1 %v8514_v63  ;;  %v3790_v63 = vld [vmem:[#allocation2 + $0x1b1] sm:$0xff] }
 0x3c9   : > { %7588 = vmatprep.subr.bf16.mxu1 %v8515_v8  ;;  %v9325_v12 = vpack.c.bf16 %v3790_v63, %v3789_v56  ;;  %v8531_v56 = vld [vmem:[#allocation5 + $0x150] sm:$0xff]  }
 0x3ca   : > { %v4382_v63 = vld [vmem:[#allocation2 + $0x90] sm:$0xff] }
 0x3cb   : > { %7557 = vmatmul.mubr.bf16.gmra.mrb[4].mxu1 %v9295_v23 }
 0x3cc   : > { %7560 = vmatprep.mubr.bf16.mxu1 %v9297_v27  ;;  %7589 = vmatpush3.bf16.msra.mxu1 %v8515_v8  ;;  %v3791_v8 = vld [vmem:[#allocation2 + $0x1c9] sm:$0xff] }
 0x3cd   : > { %7590 = vmatprep.subr.bf16.mxu1 %v8516_v26  ;;  %v9327_v13 = vpack.c.bf16 %v3792_v7, %v3791_v8  ;;  %v4384_v8 = vld [vmem:[#allocation2 + $0xb0] sm:$0xff]  ;;  %v4381_v7 = vld [vmem:[#allocation2 + $0x88] sm:$0xff] }
 0x3d0   : > { %7591 = vmatpush3.bf16.msra.mxu1 %v8516_v26  ;;  %v3794_v26 = vld [vmem:[#allocation2 + $0x1f1] sm:$0xff] }
 0x3d1   : > { %7592 = vmatprep.subr.bf16.mxu1 %v8517_v37 }
 0x3d3   : > { %7561 = vmatmul.mubr.bf16.gmra.mrb[8].mxu1 %v9301_v35 }
 0x3d4   : > { %7564 = vmatprep.mubr.bf16.mxu1 %v9303_v55  ;;  %7593 = vmatpush3.bf16.msra.mxu1 %v8517_v37  ;;  %v9331_v37 = vpack.c.bf16 %v3794_v26, %v3793_v44  ;;  %v9358_v44 = vpack.c.bf16 %v4382_v63, %v4381_v7  ;;  %v4383_v26 = vld [vmem:[#allocation2 + $0xa8] sm:$0xff]  ;;  %v5319_v63 = vld [vmem:[#allocation2 + $0x1d0] sm:$0xff] }
 0x3d5   : > { %7594 = vmatprep.subr.bf16.mxu1 %v8518_v49 }
 0x3d8   : > { %7595 = vmatpush3.bf16.msra.mxu1 %v8518_v49  ;;  %v8527_v49 = vld [vmem:[#allocation5 + $0x130] sm:$0xff]  }
 0x3d9   : > { %7596 = vmatprep.subr.bf16.mxu1 %v8519_v2 }
 0x3db   : > { %7565 = vmatmul.mubr.bf16.gmra.mrb[12].mxu1 %v9307_v10 }
 0x3dc   : > { %7568 = vmatprep.mubr.bf16.mxu1 %v9309_v28  ;;  %7597 = vmatpush3.bf16.msra.mxu1 %v8519_v2  ;;  %v8528_v2 = vld [vmem:[#allocation5 + $0x138] sm:$0xff]  }
 0x3dd   : > { %7598 = vmatprep.subr.bf16.mxu1 %v8520_v18 }
 0x3e0   : > { %7599 = vmatpush3.bf16.msra.mxu1 %v8520_v18  ;;  %v9349_v18 = vpack.c.bf16 %v4100_v22, %v4099_v52  ;;  %v8534_v22 = vld [vmem:[#allocation5 + $0x168] sm:$0xff]   ;;  %v8535_v52 = vld [vmem:[#allocation5 + $0x170] sm:$0xff]  }
 0x3e1   : > { %7632 = vmatprep.subr.bf16.mxu1 %v8521_v41 }
 0x3e3   : > { %7569 = vmatmul.mubr.bf16.gmra.mrb[16].mxu1 %v9313_v3 }
 0x3e4   : > { %7572 = vmatprep.mubr.bf16.mxu1 %v9315_v4 }
 0x3eb   : > { %7573 = vmatmul.mubr.bf16.gmra.mrb[20].mxu1 %v9319_v46 }
 0x3ec   : > { %7576 = vmatprep.mubr.bf16.mxu1 %v9321_v53 }
 0x3f3   : > { %7577 = vmatmul.mubr.bf16.gmra.mrb[24].mxu1 %v9325_v12 }
 0x3f4   : > { %7580 = vmatprep.mubr.bf16.mxu1 %v9327_v13 }
 0x3fb   : > { %7581 = vmatmul.mubr.bf16.gmra.mrb[28].mxu1 %v9331_v37 }
 0x3fc   : > { %7600 = vmatprep.mubr.bf16.mxu1 %v9243_v60  ;;  %v8526_v60 = vld [vmem:[#allocation5 + $0x128] sm:$0xff]  }
 0x403   : > { %7601 = vmatmul.mubr.bf16.vlgmr.msra.gmra.mrb[0].mxu1 %v9245_v62 }
 0x404   : > { %7604 = vmatprep.mubr.bf16.mxu1 %v9250_v9  ;;  %7633 = vmatpush3.bf16.msra.mxu1 %v8521_v41  ;;  %v4375_v41 = vld [vmem:[#allocation2 + $0x28] sm:$0xff] }
 0x405   : > { %7634 = vmatprep.subr.bf16.mxu1 %v8522_v16  ;;  %v4407_v50 = vpack.c.bf16 %v4376_v36, %v4375_v41  ;;  %v4390_v41 = vld [vmem:[#allocation2 + $0x110] sm:$0xff] }
 0x408   : > { %7635 = vmatpush3.bf16.msra.mxu1 %v8522_v16  ;;  %v8532_v16 = vld [vmem:[#allocation5 + $0x158] sm:$0xff]  }
 0x409   : > { %7636 = vmatprep.subr.bf16.mxu1 %v8523_v24 }
 0x40b   : > { %7605 = vmatmul.mubr.bf16.gmra.mrb[4].mxu1 %v9252_v14 }
 0x40c   : > { %7608 = vmatprep.mubr.bf16.mxu1 %v9256_v29  ;;  %7637 = vmatpush3.bf16.msra.mxu1 %v8523_v24  ;;  %v9360_v24 = vpack.c.bf16 %v4384_v8, %v4383_v26  ;;  %v5316_v8 = vld [vmem:[#allocation2 + $0x1a8] sm:$0xff] }
 0x40d   : > { %7638 = vmatprep.subr.bf16.mxu1 %v8524_v32 }
 0x410   : > { %7639 = vmatpush3.bf16.msra.mxu1 %v8524_v32  ;;  %v8533_v32 = vld [vmem:[#allocation5 + $0x160] sm:$0xff]  }
 0x411   : > { %7640 = vmatprep.subr.bf16.mxu1 %v8525_v33 }
 0x413   : > { %7609 = vmatmul.mubr.bf16.gmra.mrb[8].mxu1 %v9258_v17 }
 0x414   : > { %7612 = vmatprep.mubr.bf16.mxu1 %v9262_v48  ;;  %7641 = vmatpush3.bf16.msra.mxu1 %v8525_v33  ;;  %v4386_v33 = vld [vmem:[#allocation2 + $0xd0] sm:$0xff] }
 0x415   : > { %7642 = vmatprep.subr.bf16.mxu1 %v8526_v60 }
 0x418   : > { %7643 = vmatpush3.bf16.msra.mxu1 %v8526_v60  ;;  %v4388_v60 = vld [vmem:[#allocation2 + $0xf0] sm:$0xff] }
 0x419   : > { %7644 = vmatprep.subr.bf16.mxu1 %v8527_v49 }
 0x41b   : > { %7613 = vmatmul.mubr.bf16.gmra.mrb[12].mxu1 %v9264_v61 }
 0x41c   : > { %7616 = vmatprep.mubr.bf16.mxu1 %v9268_v47  ;;  %7645 = vmatpush3.bf16.msra.mxu1 %v8527_v49  ;;  %v4385_v49 = vld [vmem:[#allocation2 + $0xc8] sm:$0xff] }
 0x41d   : > { %7646 = vmatprep.subr.bf16.mxu1 %v8528_v2 }
 0x420   : > { %7647 = vmatpush3.bf16.msra.mxu1 %v8528_v2  ;;  %v9364_v2 = vpack.c.bf16 %v4386_v33, %v4385_v49 }
 0x421   : > { %7680 = vmatprep.subr.bf16.mxu1 %v8529_v21 }
 0x423   : > { %7617 = vmatmul.mubr.bf16.gmra.mrb[16].mxu1 %v9270_v1 }
 0x424   : > { %7620 = vmatprep.mubr.bf16.mxu1 %v9274_v30 }
 0x42b   : > { %7621 = vmatmul.mubr.bf16.gmra.mrb[20].mxu1 %v9276_v40 }
 0x42c   : > { %7624 = vmatprep.mubr.bf16.mxu1 %v9280_v5 }
 0x433   : > { %7625 = vmatmul.mubr.bf16.gmra.mrb[24].mxu1 %v9282_v15 }
 0x434   : > { %7628 = vmatprep.mubr.bf16.mxu1 %v9286_v34 }
 0x43b   : > { %7629 = vmatmul.mubr.bf16.gmra.mrb[28].mxu1 %v9349_v18 }
 0x43c   : > { %7648 = vmatprep.mubr.bf16.mxu1 %v4407_v50  ;;  %v4389_v50 = vld [vmem:[#allocation2 + $0x108] sm:$0xff] }
 0x43d   : > { %v9370_v51 = vpack.c.bf16 %v4390_v41, %v4389_v50  ;;  %v5602_v41 = vld [vmem:[#allocation2 + $0x69] sm:$0xff]  ;;  %v5603_v50 = vld [vmem:[#allocation2 + $0x71] sm:$0xff] }
 0x443   : > { %7649 = vmatmul.mubr.bf16.vlgmr.msra.gmra.mrb[0].mxu1 %v9352_v19 }
 0x444   : > { %7652 = vmatprep.mubr.bf16.mxu1 %v9354_v43  ;;  %7681 = vmatpush3.bf16.msra.mxu1 %v8529_v21  ;;  %v4387_v21 = vld [vmem:[#allocation2 + $0xe8] sm:$0xff] }
 0x445   : > { %7682 = vmatprep.subr.bf16.mxu1 %v8530_v31  ;;  %v9366_v36 = vpack.c.bf16 %v4388_v60, %v4387_v21  ;;  %v5322_v60 = vld [vmem:[#allocation2 + $0x208] sm:$0xff] }
 0x448   : > { %7683 = vmatpush3.bf16.msra.mxu1 %v8530_v31  ;;  %v4416_v31 = vpack.c.bf16 %v9194_v45, %v9374_v11  ;;  %v8539_v45 = vld [vmem:[#allocation5 + $0x190] sm:$0xff]  }
 0x449   : > { %7684 = vmatprep.subr.bf16.mxu1 %v8531_v56 }
 0x44b   : > { %7653 = vmatmul.mubr.bf16.gmra.mrb[4].mxu1 %v9358_v44 }
 0x44c   : > { %7656 = vmatprep.mubr.bf16.mxu1 %v9360_v24  ;;  %7685 = vmatpush3.bf16.msra.mxu1 %v8531_v56  ;;  %v5317_v56 = vld [vmem:[#allocation2 + $0x1b0] sm:$0xff] }
 0x44d   : > { %7686 = vmatprep.subr.bf16.mxu1 %v8532_v16  ;;  %v5337_v7 = vpack.c.bf16 %v5317_v56, %v5316_v8  ;;  %v6543_v56 = vld [vmem:[%s8770_s13 + $0x31] sm:$0xff] }
 0x450   : > { %7687 = vmatpush3.bf16.msra.mxu1 %v8532_v16  ;;  %v5321_v16 = vld [vmem:[#allocation2 + $0x1f0] sm:$0xff] }
 0x451   : > { %7688 = vmatprep.subr.bf16.mxu1 %v8533_v32 }
 0x453   : > { %7657 = vmatmul.mubr.bf16.gmra.mrb[8].mxu1 %v9364_v2 }
 0x454   : > { %7660 = vmatprep.mubr.bf16.mxu1 %v9366_v36  ;;  %7689 = vmatpush3.bf16.msra.mxu1 %v8533_v32  ;;  %v5320_v32 = vld [vmem:[#allocation2 + $0x1e8] sm:$0xff] }
 0x455   : > { %7690 = vmatprep.subr.bf16.mxu1 %v8534_v22  ;;  %v5339_v33 = vpack.c.bf16 %v5321_v16, %v5320_v32  ;;  %v6544_v32 = vld [vmem:[%s8770_s13 + $0x39] sm:$0xff] }
 0x458   : > { %7691 = vmatpush3.bf16.msra.mxu1 %v8534_v22  ;;  %v5600_v22 = vld [vmem:[#allocation2 + $0x49] sm:$0xff] }
 0x459   : > { %7692 = vmatprep.subr.bf16.mxu1 %v8535_v52 }
 0x45b   : > { %7661 = vmatmul.mubr.bf16.gmra.mrb[12].mxu1 %v9370_v51 }
 0x45c   : > { %7664 = vmatprep.mubr.bf16.mxu1 %v9200_v6  ;;  %7693 = vmatpush3.bf16.msra.mxu1 %v8535_v52  ;;  %v8538_v6 = vld [vmem:[#allocation5 + $0x188] sm:$0xff]  }
 0x45d   : > { %7694 = vmatprep.subr.bf16.mxu1 %v8536_v58 }
 0x460   : > { %7695 = vmatpush3.bf16.msra.mxu1 %v8536_v58  ;;  %v5605_v58 = vld [vmem:[#allocation2 + $0x91] sm:$0xff] }
 0x461   : > { %7728 = vmatprep.subr.bf16.mxu1 %v8537_v59 }
 0x463   : > { %7665 = vmatmul.mubr.bf16.gmra.mrb[16].mxu1 %v4416_v31  ;;  %v5606_v31 = vld [vmem:[#allocation2 + $0xa9] sm:$0xff] }
 0x464   : > { %7668 = vmatprep.mubr.bf16.mxu1 %v9214_v42  ;;  %v8541_v42 = vld [vmem:[#allocation5 + $0x1a0] sm:$0xff]  }
 0x46b   : > { %7669 = vmatmul.mubr.bf16.gmra.mrb[20].mxu1 %v9211_v25  ;;  %v8540_v25 = vld [vmem:[#allocation5 + $0x198] sm:$0xff]  }
 0x46c   : > { %7672 = vmatprep.mubr.bf16.mxu1 %v9228_v38  ;;  %v8543_v38 = vld [vmem:[#allocation5 + $0x1b0] sm:$0xff]  }
 0x473   : > { %7673 = vmatmul.mubr.bf16.gmra.mrb[24].mxu1 %v9225_v20  ;;  %v8542_v20 = vld [vmem:[#allocation5 + $0x1a8] sm:$0xff]  }
 0x474   : > { %7676 = vmatprep.mubr.bf16.mxu1 %v9240_v54  ;;  %v8545_v54 = vld [vmem:[#allocation5 + $0x1c0] sm:$0xff]  }
 0x47b   : > { %7677 = vmatmul.mubr.bf16.gmra.mrb[28].mxu1 %v9238_v39  ;;  %v8544_v39 = vld [vmem:[#allocation5 + $0x1b8] sm:$0xff]  }
 0x47c   : > { %7696 = vmatprep.mubr.bf16.mxu1 %v9289_v57  ;;  %v4711_v57 = vld [vmem:[#allocation2 + $0x209] sm:$0xff] }
 0x483   : > { %7697 = vmatmul.mubr.bf16.vlgmr.msra.gmra.mrb[0].mxu1 %v9291_v0  ;;  %v4712_v0 = vld [vmem:[#allocation2 + $0x211] sm:$0xff] }
 0x484   : > { %7700 = vmatprep.mubr.bf16.mxu1 %v9295_v23  ;;  %7729 = vmatpush3.bf16.msra.mxu1 %v8537_v59  ;;  %v9399_v23 = vpack.c.bf16 %v4712_v0, %v4711_v57  ;;  %v5633_v59 = vpack.c.bf16 %v5603_v50, %v5602_v41  ;;  %v5613_v57 = vld [vmem:[#allocation2 + $0x111] sm:$0xff] }
 0x485   : > { %7730 = vmatprep.subr.bf16.mxu1 %v8538_v6 }
 0x488   : > { %7731 = vmatpush3.bf16.msra.mxu1 %v8538_v6  ;;  %v5607_v6 = vld [vmem:[#allocation2 + $0xb1] sm:$0xff] }
 0x489   : > { %7732 = vmatprep.subr.bf16.mxu1 %v8539_v45 }
 0x48b   : > { %7701 = vmatmul.mubr.bf16.gmra.mrb[4].mxu1 %v9297_v27  ;;  %v8546_v27 = vld [vmem:[#allocation5 + $0x1c8] sm:$0xff]  }
 0x48c   : > { %7704 = vmatprep.mubr.bf16.mxu1 %v9301_v35  ;;  %7733 = vmatpush3.bf16.msra.mxu1 %v8539_v45  ;;  %v8547_v35 = vld [vmem:[#allocation5 + $0x1d0] sm:$0xff]  }
 0x48d   : > { %7734 = vmatprep.subr.bf16.mxu1 %v8540_v25  ;;  %v5608_v45 = vld [vmem:[#allocation2 + $0xc9] sm:$0xff] }
 0x490   : > { %7735 = vmatpush3.bf16.msra.mxu1 %v8540_v25  ;;  %v5609_v25 = vld [vmem:[#allocation2 + $0xd1] sm:$0xff] }
 0x491   : > { %7736 = vmatprep.subr.bf16.mxu1 %v8541_v42 }
 0x493   : > { %7705 = vmatmul.mubr.bf16.gmra.mrb[8].mxu1 %v9303_v55  ;;  %v8548_v55 = vld [vmem:[#allocation5 + $0x1d8] sm:$0xff]  }
 0x494   : > { %7708 = vmatprep.mubr.bf16.mxu1 %v9307_v10  ;;  %7737 = vmatpush3.bf16.msra.mxu1 %v8541_v42  ;;  %v8549_v10 = vld [vmem:[#allocation5 + $0x1e0] sm:$0xff]   ;;  %v5635_v42 = vpack.c.bf16 %v5607_v6, %v5606_v31 }
 0x495   : > { %7738 = vmatprep.subr.bf16.mxu1 %v8542_v20  ;;  %v6547_v6 = vld [vmem:[%s8770_s13 + $0x61] sm:$0xff] }
 0x498   : > { %7739 = vmatpush3.bf16.msra.mxu1 %v8542_v20  ;;  %v5636_v20 = vpack.c.bf16 %v5609_v25, %v5608_v45 }
 0x499   : > { %7740 = vmatprep.subr.bf16.mxu1 %v8543_v38 }
 0x49b   : > { %7709 = vmatmul.mubr.bf16.gmra.mrb[12].mxu1 %v9309_v28  ;;  %v5311_v28 = vld [vmem:[#allocation2 + $0x150] sm:$0xff] }
 0x49c   : > { %7712 = vmatprep.mubr.bf16.mxu1 %v9313_v3  ;;  %7741 = vmatpush3.bf16.msra.mxu1 %v8543_v38  ;;  %v5308_v3 = vld [vmem:[#allocation2 + $0x128] sm:$0xff] }
 0x49d   : > { %7742 = vmatprep.subr.bf16.mxu1 %v8544_v39  ;;  %v5610_v38 = vld [vmem:[#allocation2 + $0xe9] sm:$0xff] }
 0x4a0   : > { %7743 = vmatpush3.bf16.msra.mxu1 %v8544_v39  ;;  %v5611_v39 = vld [vmem:[#allocation2 + $0xf1] sm:$0xff] }
 0x4a1   : > { %7776 = vmatprep.subr.bf16.mxu1 %v8545_v54  ;;  %v5637_v0 = vpack.c.bf16 %v5611_v39, %v5610_v38 }
 0x4a3   : > { %7713 = vmatmul.mubr.bf16.gmra.mrb[16].mxu1 %v9315_v4 }
 0x4a4   : > { %7716 = vmatprep.mubr.bf16.mxu1 %v9319_v46  ;;  %v8560_v46 = vld [vmem:[#allocation5 + $0x238] sm:$0xff]  }
 0x4ab   : > { %7717 = vmatmul.mubr.bf16.gmra.mrb[20].mxu1 %v9321_v53  ;;  %v5334_v53 = vpack.c.bf16 %v5311_v28, %v9374_v11 }
 0x4ac   : > { %7720 = vmatprep.mubr.bf16.mxu1 %v9325_v12  ;;  %v5313_v12 = vld [vmem:[#allocation2 + $0x170] sm:$0xff] }
 0x4b3   : > { %7721 = vmatmul.mubr.bf16.gmra.mrb[24].mxu1 %v9327_v13  ;;  %v5315_v13 = vld [vmem:[#allocation2 + $0x190] sm:$0xff] }
 0x4b4   : > { %7724 = vmatprep.mubr.bf16.mxu1 %v9331_v37  ;;  %v5312_v37 = vld [vmem:[#allocation2 + $0x168] sm:$0xff] }
 0x4bb   : > { %7725 = vmatmul.mubr.bf16.gmra.mrb[28].mxu1 %v9399_v23 }
 0x4bc   : > { %7744 = vmatprep.mubr.bf16.mxu1 %v9245_v62  ;;  %v8550_v62 = vld [vmem:[#allocation5 + $0x1e8] sm:$0xff]  }
 0x4c3   : > { %7745 = vmatmul.mubr.bf16.vlgmr.msra.gmra.mrb[0].mxu1 %v9250_v9  ;;  %v8551_v9 = vld [vmem:[#allocation5 + $0x1f0] sm:$0xff]  }
 0x4c4   : > { %7748 = vmatprep.mubr.bf16.mxu1 %v9252_v14  ;;  %7777 = vmatpush3.bf16.msra.mxu1 %v8545_v54  ;;  %v8552_v14 = vld [vmem:[#allocation5 + $0x1f8] sm:$0xff]   ;;  %v5612_v54 = vld [vmem:[#allocation2 + $0x109] sm:$0xff] }
 0x4c5   : > { %7778 = vmatprep.subr.bf16.mxu1 %v8546_v27 }
 0x4c8   : > { %7779 = vmatpush3.bf16.msra.mxu1 %v8546_v27  ;;  %v5638_v27 = vpack.c.bf16 %v5613_v57, %v5612_v54  ;;  %v6548_v57 = vld [vmem:[%s8770_s13 + $0x69] sm:$0xff] }
 0x4c9   : > { %7780 = vmatprep.subr.bf16.mxu1 %v8547_v35 }
 0x4cb   : > { %7749 = vmatmul.mubr.bf16.gmra.mrb[4].mxu1 %v9256_v29  ;;  %v8553_v29 = vld [vmem:[#allocation5 + $0x200] sm:$0xff]  }
 0x4cc   : > { %7752 = vmatprep.mubr.bf16.mxu1 %v9258_v17  ;;  %7781 = vmatpush3.bf16.msra.mxu1 %v8547_v35  ;;  %v5018_v17 = vld [vmem:[#allocation2 + $0x227] sm:$0xff] }
 0x4cd   : > { %7782 = vmatprep.subr.bf16.mxu1 %v8548_v55  ;;  %v5614_v35 = vld [vmem:[#allocation2 + $0x129] sm:$0xff] }
 0x4d0   : > { %7783 = vmatpush3.bf16.msra.mxu1 %v8548_v55  ;;  %v5615_v55 = vld [vmem:[#allocation2 + $0x131] sm:$0xff] }
 0x4d1   : > { %7784 = vmatprep.subr.bf16.mxu1 %v8549_v10 }
 0x4d3   : > { %7753 = vmatmul.mubr.bf16.gmra.mrb[8].mxu1 %v9262_v48  ;;  %v5019_v48 = vld [vmem:[#allocation2 + $0x22f] sm:$0xff] }
 0x4d4   : > { %7756 = vmatprep.mubr.bf16.mxu1 %v9264_v61  ;;  %7785 = vmatpush3.bf16.msra.mxu1 %v8549_v10  ;;  %v5035_v61 = vpack.c.bf16 %v5019_v48, %v5018_v17  ;;  %v5616_v10 = vld [vmem:[#allocation2 + $0x149] sm:$0xff]  ;;  %v5619_v17 = vld [vmem:[#allocation2 + $0x171] sm:$0xff] }
 0x4d5   : > { %7786 = vmatprep.subr.bf16.mxu1 %v8550_v62  ;;  %v5620_v48 = vld [vmem:[#allocation2 + $0x189] sm:$0xff] }
 0x4d8   : > { %7787 = vmatpush3.bf16.msra.mxu1 %v8550_v62  ;;  %v5617_v62 = vld [vmem:[#allocation2 + $0x151] sm:$0xff] }
 0x4d9   : > { %7788 = vmatprep.subr.bf16.mxu1 %v8551_v9 }
 0x4db   : > { %7757 = vmatmul.mubr.bf16.gmra.mrb[12].mxu1 %v9268_v47  ;;  %v8554_v47 = vld [vmem:[#allocation5 + $0x208] sm:$0xff]  }
 0x4dc   : > { %7760 = vmatprep.mubr.bf16.mxu1 %v9270_v1  ;;  %7789 = vmatpush3.bf16.msra.mxu1 %v8551_v9  ;;  %v8555_v1 = vld [vmem:[#allocation5 + $0x210] sm:$0xff]   ;;  %v5639_v9 = vpack.c.bf16 %v5615_v55, %v5614_v35 }
 0x4dd   : > { %7790 = vmatprep.subr.bf16.mxu1 %v8552_v14  ;;  %v6546_v55 = vld [vmem:[%s8770_s13 + $0x51] sm:$0xff] }
 0x4e0   : > { %7791 = vmatpush3.bf16.msra.mxu1 %v8552_v14  ;;  %v5640_v14 = vpack.c.bf16 %v5617_v62, %v5616_v10 }
 0x4e1   : > { %7824 = vmatprep.subr.bf16.mxu1 %v8553_v29 }
 0x4e3   : > { %7761 = vmatmul.mubr.bf16.gmra.mrb[16].mxu1 %v9274_v30  ;;  %v8556_v30 = vld [vmem:[#allocation5 + $0x218] sm:$0xff]  }
 0x4e4   : > { %7764 = vmatprep.mubr.bf16.mxu1 %v9276_v40  ;;  %v8557_v40 = vld [vmem:[#allocation5 + $0x220] sm:$0xff]  }
 0x4eb   : > { %7765 = vmatmul.mubr.bf16.gmra.mrb[20].mxu1 %v9280_v5  ;;  %v8558_v5 = vld [vmem:[#allocation5 + $0x228] sm:$0xff]  }
 0x4ec   : > { %7768 = vmatprep.mubr.bf16.mxu1 %v9282_v15  ;;  %v8559_v15 = vld [vmem:[#allocation5 + $0x230] sm:$0xff]  }
 0x4f3   : > { %7769 = vmatmul.mubr.bf16.gmra.mrb[24].mxu1 %v9286_v34  ;;  %v5309_v34 = vld [vmem:[#allocation2 + $0x130] sm:$0xff] }
 0x4f4   : > { %7772 = vmatprep.mubr.bf16.mxu1 %v9349_v18  ;;  %v5333_v4 = vpack.c.bf16 %v5309_v34, %v5308_v3  ;;  %v5335_v18 = vpack.c.bf16 %v5313_v12, %v5312_v37  ;;  %v5626_v3 = vld [vmem:[#allocation2 + $0x1e9] sm:$0xff]  ;;  %v5631_v12 = vld [vmem:[#allocation2 + $0x231] sm:$0xff]  ;;  %v9429_v37 = vld [vmem:[%s9578_s5] ss:$0 sm:$0xff] }
 0x4fb   : > { %7773 = vmatmul.mubr.bf16.gmra.mrb[28].mxu1 %v5035_v61  ;;  %v5621_v61 = vld [vmem:[#allocation2 + $0x191] sm:$0xff] }
 0x4fc   : > { %7792 = vmatprep.mubr.bf16.mxu1 %v9352_v19  ;;  %v5314_v19 = vld [vmem:[#allocation2 + $0x188] sm:$0xff] }
 0x503   : > { %7793 = vmatmul.mubr.bf16.vlgmr.msra.gmra.mrb[0].mxu1 %v9354_v43  ;;  %v5336_v43 = vpack.c.bf16 %v5315_v13, %v5314_v19  ;;  %v9434_v19 = vld [vmem:[%s9579_s6] ss:$0 sm:$0xff] }
 0x504   : > { %7796 = vmatprep.mubr.bf16.mxu1 %v9358_v44  ;;  %7825 = vmatpush3.bf16.msra.mxu1 %v8553_v29  ;;  %v5318_v44 = vld [vmem:[#allocation2 + $0x1c8] sm:$0xff] }
 0x505   : > { %7826 = vmatprep.subr.bf16.mxu1 %v8554_v47  ;;  %v5338_v26 = vpack.c.bf16 %v5319_v63, %v5318_v44  ;;  %v5618_v29 = vld [vmem:[#allocation2 + $0x169] sm:$0xff]  ;;  %v6541_v44 = vld [vmem:[%s8770_s13 + $0x19] sm:$0xff] }
 0x508   : > { %7827 = vmatpush3.bf16.msra.mxu1 %v8554_v47  ;;  %v5641_v47 = vpack.c.bf16 %v5619_v17, %v5618_v29 }
 0x509   : > { %7828 = vmatprep.subr.bf16.mxu1 %v8555_v1 }
 0x50b   : > { %7797 = vmatmul.mubr.bf16.gmra.mrb[4].mxu1 %v9360_v24  ;;  %v5323_v24 = vld [vmem:[#allocation2 + $0x210] sm:$0xff] }
 0x50c   : > { %7800 = vmatprep.mubr.bf16.mxu1 %v9364_v2  ;;  %7829 = vmatpush3.bf16.msra.mxu1 %v8555_v1  ;;  %v5340_v49 = vpack.c.bf16 %v5323_v24, %v5322_v60  ;;  %v8561_v2 = vld [vmem:[#allocation2] sm:$0xff]  ;;  %v5642_v1 = vpack.c.bf16 %v5621_v61, %v5620_v48 }
 0x50d   : > { %7830 = vmatprep.subr.bf16.mxu1 %v8556_v30  ;;  %v5341_v21 = vpack.c.bf16 %v8561_v2, %v8561_v2  ;;  %v6542_v2 = vld [vmem:[%s8770_s13 + $0x21] sm:$0xff] }
 0x510   : > { %7831 = vmatpush3.bf16.msra.mxu1 %v8556_v30  ;;  %v5622_v30 = vld [vmem:[#allocation2 + $0x1a9] sm:$0xff] }
 0x511   : > { %7832 = vmatprep.subr.bf16.mxu1 %v8557_v40 }
 0x513   : > { %7801 = vmatmul.mubr.bf16.gmra.mrb[8].mxu1 %v9366_v36  ;;  %v5601_v36 = vld [vmem:[#allocation2 + $0x51] sm:$0xff] }
 0x514   : > { %7804 = vmatprep.mubr.bf16.mxu1 %v9370_v51  ;;  %7833 = vmatpush3.bf16.msra.mxu1 %v8557_v40  ;;  %v5632_v52 = vpack.c.bf16 %v5601_v36, %v5600_v22  ;;  %v5604_v51 = vld [vmem:[#allocation2 + $0x89] sm:$0xff]  ;;  %v5623_v40 = vld [vmem:[#allocation2 + $0x1b1] sm:$0xff] }
 0x515   : > { %7834 = vmatprep.subr.bf16.mxu1 %v8558_v5  ;;  %v5634_v11 = vpack.c.bf16 %v5605_v58, %v5604_v51  ;;  %v5643_v34 = vpack.c.bf16 %v5623_v40, %v5622_v30  ;;  %v6551_v40 = vld [vmem:[%s8770_s13 + $0x91] sm:$0xff] }
 0x518   : > { %7835 = vmatpush3.bf16.msra.mxu1 %v8558_v5  ;;  %v5624_v5 = vld [vmem:[#allocation2 + $0x1c9] sm:$0xff] }
 0x519   : > { %7836 = vmatprep.subr.bf16.mxu1 %v8559_v15 }
 0x51b   : > { %7805 = vmatmul.mubr.bf16.gmra.mrb[12].mxu1 %v5333_v4  ;;  %v5627_v4 = vld [vmem:[#allocation2 + $0x1f1] sm:$0xff] }
 0x51c   : > { %7808 = vmatprep.mubr.bf16.mxu1 %v5334_v53  ;;  %7837 = vmatpush3.bf16.msra.mxu1 %v8559_v15  ;;  %v5625_v15 = vld [vmem:[#allocation2 + $0x1d1] sm:$0xff]  ;;  %v5630_v53 = vld [vmem:[#allocation2 + $0x229] sm:$0xff] }
 0x51d   : > { %7838 = vmatprep.subr.bf16.mxu1 %v8560_v46  ;;  %v5644_v28 = vpack.c.bf16 %v5625_v15, %v5624_v5  ;;  %v5647_v13 = vpack.c.bf16 %v5631_v12, %v5630_v53  ;;  %v6552_v53 = vld [vmem:[%s8770_s13 + $0x99] sm:$0xff] }
 0x520   : > { %7839 = vmatpush3.bf16.msra.mxu1 %v8560_v46  ;;  %v5645_v46 = vpack.c.bf16 %v5627_v4, %v5626_v3 }
 0x523   : > { %7809 = vmatmul.mubr.bf16.gmra.mrb[16].mxu1 %v5335_v18 }
 0x524   : > { %7812 = vmatprep.mubr.bf16.mxu1 %v5336_v43 }
 0x52b   : > { %7813 = vmatmul.mubr.bf16.gmra.mrb[20].mxu1 %v5337_v7 }
 0x52c   : > { %7816 = vmatprep.mubr.bf16.mxu1 %v5338_v26 }
 0x533   : > { %7817 = vmatmul.mubr.bf16.gmra.mrb[24].mxu1 %v5339_v33 }
 0x534   : > { %7820 = vmatprep.mubr.bf16.mxu1 %v5340_v49 }
 0x53b   : > { %7821 = vmatmul.mubr.bf16.gmra.mrb[28].mxu1 %v5341_v21 }
 0x53c   : > { %7840 = vmatprep.mubr.bf16.mxu1 %v5632_v52 }
 0x543   : > { %7841 = vmatmul.mubr.bf16.vlgmr.msra.gmra.mrb[0].mxu1 %v5633_v59 }
 0x544   : > { %7844 = vmatprep.mubr.bf16.mxu1 %v5634_v11 }
 0x54b   : > { %7845 = vmatmul.mubr.bf16.gmra.mrb[4].mxu1 %v5635_v42 }
 0x54c   : > { %7848 = vmatprep.mubr.bf16.mxu1 %v5636_v20  ;;  %v6545_v20 = vld [vmem:[%s8770_s13 + $0x49] sm:$0xff] }
 0x553   : > { %7849 = vmatmul.mubr.bf16.gmra.mrb[8].mxu1 %v5637_v0 }
 0x554   : > { %7852 = vmatprep.mubr.bf16.mxu1 %v5638_v27 }
 0x55b   : > { %7853 = vmatmul.mubr.bf16.gmra.mrb[12].mxu1 %v5639_v9 }
 0x55c   : > { %7856 = vmatprep.mubr.bf16.mxu1 %v5640_v14 }
 0x563   : > { %7857 = vmatmul.mubr.bf16.gmra.mrb[16].mxu1 %v5641_v47 }
 0x564   : > { %7860 = vmatprep.mubr.bf16.mxu1 %v5642_v1 }
 0x56b   : > { %7861 = vmatmul.mubr.bf16.gmra.mrb[20].mxu1 %v5643_v34 }
 0x56c   : > { %7864 = vmatprep.mubr.bf16.mxu1 %v5644_v28  ;;  %v6549_v28 = vld [vmem:[%s8770_s13 + $0x79] sm:$0xff] }
 0x573   : > { %7865 = vmatmul.mubr.bf16.gmra.mrb[24].mxu1 %v5645_v46 }
 0x574   : > { %7868 = vmatprep.mubr.bf16.mxu1 %v9399_v23 }
 0x57b   : > { %7869 = vmatmul.mubr.bf16.gmra.mrb[28].mxu1 %v5647_v13 }
 0x616   : > { %v7842_v18 = vpop.f32.mrb[0].mxu1 }
 0x617   : > { %v5915_v43 = vmul.f32 %v7842_v18, %v9429_v37  ;;  %v5747_v23 = vpop.f32.mrb[1].mxu1 }
 0x618   : > { %v5913_v63 = vmul.f32 %v9429_v37, %v5747_v23  ;;  %v7843_v8 = vpop.f32.mrb[2].mxu1 }
 0x619   : > { %v5954_v7 = vadd.f32 %v9434_v19, %v5915_v43  ;;  %v5916_v26 = vmul.f32 %v7843_v8, %v9429_v37  ;;  %v5750_v16 = vpop.f32.mrb[3].mxu1  ;;  %v6550_v43 = vld [vmem:[%s8770_s13 + $0x81] sm:$0xff] }
 0x61a   : > { %v5952_v24 = vadd.f32 %v9434_v19, %v5913_v63  ;;  %v5914_v33 = vmul.f32 %v9429_v37, %v5750_v16 }
 0x61b   : > { %v6018_v60 = vadd.f32 %v6543_v56, %v5954_v7  ;;  %v5955_v49 = vadd.f32 %v9434_v19, %v5916_v26 }
 0x61c   : > { %v6016_v21 = vadd.f32 %v6541_v44, %v5952_v24  ;;  %v5953_v22 = vadd.f32 %v9434_v19, %v5914_v33 }
 0x61d   : > { %v6050_v36 = vmax.f32 %v6018_v60, 0.0  ;;  %v6019_v52 = vadd.f32 %v6544_v32, %v5955_v49  ;;  %v6555_v60 = vld [vmem:[%s8770_s13 + $0xc1] sm:$0xff] }
 0x61e   : > { %v6048_v41 = vmax.f32 %v6016_v21, 0.0  ;;  %v6017_v50 = vadd.f32 %v6542_v2, %v5953_v22  ;;  %v7846_v51 = vpop.f32.mrb[4].mxu1  ;;  %v6553_v22 = vld [vmem:[%s8770_s13 + $0xa9] sm:$0xff] }
 0x61f   : > { %6082 = vst [vmem:[%s9451_s25 + $0x10] sm:$0xff] %v6050_v36  ;;  %v6051_v58 = vmax.f32 %v6019_v52, 0.0  ;;  %v5919_v59 = vmul.f32 %v7846_v51, %v9429_v37  ;;  %v5763_v11 = vpop.f32.mrb[5].mxu1 }
 0x620   : > { %6080 = vst [vmem:[%s9451_s25] sm:$0xff] %v6048_v41  ;;  %v6049_v31 = vmax.f32 %v6017_v50, 0.0  ;;  %v5917_v45 = vmul.f32 %v9429_v37, %v5763_v11  ;;  %v7847_v25 = vpop.f32.mrb[6].mxu1  ;;  %v6556_v50 = vld [vmem:[%s8770_s13 + $0xc9] sm:$0xff]  ;;  %v6554_v11 = vld [vmem:[%s8770_s13 + $0xb1] sm:$0xff] }
 0x621   : > { %6083 = vst [vmem:[%s9451_s25 + $0x18] sm:$0xff] %v6051_v58  ;;  %v5958_v42 = vadd.f32 %v9434_v19, %v5919_v59  ;;  %v5920_v38 = vmul.f32 %v7847_v25, %v9429_v37  ;;  %v5766_v39 = vpop.f32.mrb[7].mxu1 }
 0x622   : > { %6081 = vst [vmem:[%s9451_s25 + $0x8] sm:$0xff] %v6049_v31  ;;  %v5956_v54 = vadd.f32 %v9434_v19, %v5917_v45  ;;  %v5918_v0 = vmul.f32 %v9429_v37, %v5766_v39 }
 0x623   : > { %v6022_v27 = vadd.f32 %v6547_v6, %v5958_v42  ;;  %v5959_v35 = vadd.f32 %v9434_v19, %v5920_v38 }
 0x624   : > { %v6020_v10 = vadd.f32 %v6545_v20, %v5956_v54  ;;  %v5957_v62 = vadd.f32 %v9434_v19, %v5918_v0 }
 0x625   : > { %v6054_v9 = vmax.f32 %v6022_v27, 0.0  ;;  %v6023_v14 = vadd.f32 %v6548_v57, %v5959_v35  ;;  %v6559_v27 = vld [vmem:[%s8770_s13 + $0xf1] sm:$0xff] }
 0x626   : > { %v6052_v29 = vmax.f32 %v6020_v10, 0.0  ;;  %v6021_v17 = vadd.f32 %v6546_v55, %v5957_v62  ;;  %v7850_v48 = vpop.f32.mrb[8].mxu1  ;;  %v6557_v62 = vld [vmem:[%s8770_s13 + $0xd9] sm:$0xff] }
 0x627   : > { %6086 = vst [vmem:[%s9451_s25 + $0x30] sm:$0xff] %v6054_v9  ;;  %v6055_v61 = vmax.f32 %v6023_v14, 0.0  ;;  %v5923_v47 = vmul.f32 %v7850_v48, %v9429_v37  ;;  %v5779_v1 = vpop.f32.mrb[9].mxu1 }
 0x628   : > { %6084 = vst [vmem:[%s9451_s25 + $0x20] sm:$0xff] %v6052_v29  ;;  %v6053_v30 = vmax.f32 %v6021_v17, 0.0  ;;  %v5921_v5 = vmul.f32 %v9429_v37, %v5779_v1  ;;  %v7851_v15 = vpop.f32.mrb[10].mxu1  ;;  %v6560_v17 = vld [vmem:[%s8770_s13 + $0xf9] sm:$0xff]  ;;  %v6558_v1 = vld [vmem:[%s8770_s13 + $0xe1] sm:$0xff] }
 0x629   : > { %6087 = vst [vmem:[%s9451_s25 + $0x38] sm:$0xff] %v6055_v61  ;;  %v5962_v34 = vadd.f32 %v9434_v19, %v5923_v47  ;;  %v5924_v3 = vmul.f32 %v7851_v15, %v9429_v37  ;;  %v5782_v4 = vpop.f32.mrb[11].mxu1 }
 0x62a   : > { %6085 = vst [vmem:[%s9451_s25 + $0x28] sm:$0xff] %v6053_v30  ;;  %v5960_v46 = vadd.f32 %v9434_v19, %v5921_v5  ;;  %v5922_v12 = vmul.f32 %v9429_v37, %v5782_v4 }
 0x62b   : > { %v6026_v13 = vadd.f32 %v6551_v40, %v5962_v34  ;;  %v5963_v18 = vadd.f32 %v9434_v19, %v5924_v3 }
 0x62c   : > { %v6024_v23 = vadd.f32 %v6549_v28, %v5960_v46  ;;  %v5961_v56 = vadd.f32 %v9434_v19, %v5922_v12 }
 0x62d   : > { %v6058_v63 = vmax.f32 %v6026_v13, 0.0  ;;  %v6027_v8 = vadd.f32 %v6552_v53, %v5963_v18  ;;  %v6563_v13 = vld [vmem:[%s8770_s13 + $0x121] sm:$0xff] }
 0x62e   : > { %v6056_v7 = vmax.f32 %v6024_v23, 0.0  ;;  %v6025_v44 = vadd.f32 %v6550_v43, %v5961_v56  ;;  %v7854_v26 = vpop.f32.mrb[12].mxu1  ;;  %v6561_v56 = vld [vmem:[%s8770_s13 + $0x109] sm:$0xff] }
 0x62f   : > { %6090 = vst [vmem:[%s9451_s25 + $0x50] sm:$0xff] %v6058_v63  ;;  %v6059_v16 = vmax.f32 %v6027_v8, 0.0  ;;  %v5927_v24 = vmul.f32 %v7854_v26, %v9429_v37  ;;  %v5795_v32 = vpop.f32.mrb[13].mxu1 }
 0x630   : > { %6088 = vst [vmem:[%s9451_s25 + $0x40] sm:$0xff] %v6056_v7  ;;  %v6057_v33 = vmax.f32 %v6025_v44, 0.0  ;;  %v5925_v49 = vmul.f32 %v9429_v37, %v5795_v32  ;;  %v7855_v2 = vpop.f32.mrb[14].mxu1  ;;  %v6564_v44 = vld [vmem:[%s8770_s13 + $0x129] sm:$0xff]  ;;  %v6562_v32 = vld [vmem:[%s8770_s13 + $0x111] sm:$0xff] }
 0x631   : > { %6091 = vst [vmem:[%s9451_s25 + $0x58] sm:$0xff] %v6059_v16  ;;  %v5966_v21 = vadd.f32 %v9434_v19, %v5927_v24  ;;  %v5928_v36 = vmul.f32 %v7855_v2, %v9429_v37  ;;  %v5798_v52 = vpop.f32.mrb[15].mxu1 }
 0x632   : > { %6089 = vst [vmem:[%s9451_s25 + $0x48] sm:$0xff] %v6057_v33  ;;  %v5964_v41 = vadd.f32 %v9434_v19, %v5925_v49  ;;  %v5926_v51 = vmul.f32 %v9429_v37, %v5798_v52 }
 0x633   : > { %v6030_v58 = vadd.f32 %v6555_v60, %v5966_v21  ;;  %v5967_v59 = vadd.f32 %v9434_v19, %v5928_v36 }
 0x634   : > { %v6028_v31 = vadd.f32 %v6553_v22, %v5964_v41  ;;  %v5965_v6 = vadd.f32 %v9434_v19, %v5926_v51 }
 0x635   : > { %v6062_v45 = vmax.f32 %v6030_v58, 0.0  ;;  %v6031_v25 = vadd.f32 %v6556_v50, %v5967_v59  ;;  %v6567_v58 = vld [vmem:[%s8770_s13 + $0x151] sm:$0xff] }
 0x636   : > { %v6060_v42 = vmax.f32 %v6028_v31, 0.0  ;;  %v6029_v20 = vadd.f32 %v6554_v11, %v5965_v6  ;;  %v7858_v38 = vpop.f32.mrb[16].mxu1  ;;  %v6565_v6 = vld [vmem:[%s8770_s13 + $0x139] sm:$0xff] }
 0x637   : > { %6094 = vst [vmem:[%s9451_s25 + $0x70] sm:$0xff] %v6062_v45  ;;  %v6063_v39 = vmax.f32 %v6031_v25, 0.0  ;;  %v5931_v54 = vmul.f32 %v7858_v38, %v9429_v37  ;;  %v5811_v57 = vpop.f32.mrb[17].mxu1 }
 0x638   : > { %6092 = vst [vmem:[%s9451_s25 + $0x60] sm:$0xff] %v6060_v42  ;;  %v6061_v0 = vmax.f32 %v6029_v20, 0.0  ;;  %v5929_v35 = vmul.f32 %v9429_v37, %v5811_v57  ;;  %v7859_v55 = vpop.f32.mrb[18].mxu1  ;;  %v6568_v20 = vld [vmem:[%s8770_s13 + $0x159] sm:$0xff]  ;;  %v6566_v57 = vld [vmem:[%s8770_s13 + $0x141] sm:$0xff] }
 0x639   : > { %6095 = vst [vmem:[%s9451_s25 + $0x78] sm:$0xff] %v6063_v39  ;;  %v5970_v10 = vadd.f32 %v9434_v19, %v5931_v54  ;;  %v5932_v9 = vmul.f32 %v7859_v55, %v9429_v37  ;;  %v5814_v14 = vpop.f32.mrb[19].mxu1 }
 0x63a   : > { %6093 = vst [vmem:[%s9451_s25 + $0x68] sm:$0xff] %v6061_v0  ;;  %v5968_v29 = vadd.f32 %v9434_v19, %v5929_v35  ;;  %v5930_v48 = vmul.f32 %v9429_v37, %v5814_v14 }
 0x63b   : > { %v6034_v61 = vadd.f32 %v6559_v27, %v5970_v10  ;;  %v5971_v47 = vadd.f32 %v9434_v19, %v5932_v9 }
 0x63c   : > { %v6032_v30 = vadd.f32 %v6557_v62, %v5968_v29  ;;  %v5969_v40 = vadd.f32 %v9434_v19, %v5930_v48 }
 0x63d   : > { %v6066_v5 = vmax.f32 %v6034_v61, 0.0  ;;  %v6035_v15 = vadd.f32 %v6560_v17, %v5971_v47  ;;  %v6571_v61 = vld [vmem:[%s8770_s13 + $0x181] sm:$0xff] }
 0x63e   : > { %v6064_v34 = vmax.f32 %v6032_v30, 0.0  ;;  %v6033_v28 = vadd.f32 %v6558_v1, %v5969_v40  ;;  %v7862_v3 = vpop.f32.mrb[20].mxu1  ;;  %v6569_v40 = vld [vmem:[%s8770_s13 + $0x169] sm:$0xff] }
 0x63f   : > { %6098 = vst [vmem:[%s9451_s25 + $0x90] sm:$0xff] %v6066_v5  ;;  %v6067_v4 = vmax.f32 %v6035_v15, 0.0  ;;  %v5935_v46 = vmul.f32 %v7862_v3, %v9429_v37  ;;  %v5827_v53 = vpop.f32.mrb[21].mxu1 }
 0x640   : > { %6096 = vst [vmem:[%s9451_s25 + $0x80] sm:$0xff] %v6064_v34  ;;  %v6065_v12 = vmax.f32 %v6033_v28, 0.0  ;;  %v5933_v18 = vmul.f32 %v9429_v37, %v5827_v53  ;;  %v7863_v43 = vpop.f32.mrb[22].mxu1  ;;  %v6572_v28 = vld [vmem:[%s8770_s13 + $0x189] sm:$0xff]  ;;  %v6570_v53 = vld [vmem:[%s8770_s13 + $0x171] sm:$0xff] }
 0x641   : > { %6099 = vst [vmem:[%s9451_s25 + $0x98] sm:$0xff] %v6067_v4  ;;  %v5974_v23 = vadd.f32 %v9434_v19, %v5935_v46  ;;  %v5936_v63 = vmul.f32 %v7863_v43, %v9429_v37  ;;  %v5830_v8 = vpop.f32.mrb[23].mxu1 }
 0x642   : > { %6097 = vst [vmem:[%s9451_s25 + $0x88] sm:$0xff] %v6065_v12  ;;  %v5972_v7 = vadd.f32 %v9434_v19, %v5933_v18  ;;  %v5934_v26 = vmul.f32 %v9429_v37, %v5830_v8 }
 0x643   : > { %v6038_v16 = vadd.f32 %v6563_v13, %v5974_v23  ;;  %v5975_v24 = vadd.f32 %v9434_v19, %v5936_v63 }
 0x644   : > { %v6036_v33 = vadd.f32 %v6561_v56, %v5972_v7  ;;  %v5973_v60 = vadd.f32 %v9434_v19, %v5934_v26 }
 0x645   : > { %v6070_v49 = vmax.f32 %v6038_v16, 0.0  ;;  %v6039_v2 = vadd.f32 %v6564_v44, %v5975_v24 }
 0x646   : > { %v6068_v21 = vmax.f32 %v6036_v33, 0.0  ;;  %v6037_v22 = vadd.f32 %v6562_v32, %v5973_v60  ;;  %v7866_v36 = vpop.f32.mrb[24].mxu1 }
 0x647   : > { %6102 = vst [vmem:[%s9451_s25 + $0xb0] sm:$0xff] %v6070_v49  ;;  %v6071_v52 = vmax.f32 %v6039_v2, 0.0  ;;  %v5939_v41 = vmul.f32 %v7866_v36, %v9429_v37  ;;  %v5843_v50 = vpop.f32.mrb[25].mxu1 }
 0x648   : > { %6100 = vst [vmem:[%s9451_s25 + $0xa0] sm:$0xff] %v6068_v21  ;;  %v6069_v51 = vmax.f32 %v6037_v22, 0.0  ;;  %v5937_v59 = vmul.f32 %v9429_v37, %v5843_v50  ;;  %v7867_v11 = vpop.f32.mrb[26].mxu1 }
 0x649   : > { %6103 = vst [vmem:[%s9451_s25 + $0xb8] sm:$0xff] %v6071_v52  ;;  %v5978_v31 = vadd.f32 %v9434_v19, %v5939_v41  ;;  %v5940_v45 = vmul.f32 %v7867_v11, %v9429_v37  ;;  %v5846_v25 = vpop.f32.mrb[27].mxu1 }
 0x64a   : > { %6101 = vst [vmem:[%s9451_s25 + $0xa8] sm:$0xff] %v6069_v51  ;;  %v5976_v42 = vadd.f32 %v9434_v19, %v5937_v59  ;;  %v5938_v38 = vmul.f32 %v9429_v37, %v5846_v25 }
 0x64b   : > { %v6042_v39 = vadd.f32 %v6567_v58, %v5978_v31  ;;  %v5979_v54 = vadd.f32 %v9434_v19, %v5940_v45 }
 0x64c   : > { %v6040_v0 = vadd.f32 %v6565_v6, %v5976_v42  ;;  %v5977_v27 = vadd.f32 %v9434_v19, %v5938_v38 }
 0x64d   : > { %v6074_v35 = vmax.f32 %v6042_v39, 0.0  ;;  %v6043_v55 = vadd.f32 %v6568_v20, %v5979_v54 }
 0x64e   : > { %v6072_v10 = vmax.f32 %v6040_v0, 0.0  ;;  %v6041_v62 = vadd.f32 %v6566_v57, %v5977_v27  ;;  %v7870_v9 = vpop.f32.mrb[28].mxu1 }
 0x64f   : > { %6106 = vst [vmem:[%s9451_s25 + $0xd0] sm:$0xff] %v6074_v35  ;;  %v6075_v14 = vmax.f32 %v6043_v55, 0.0  ;;  %v5943_v29 = vmul.f32 %v7870_v9, %v9429_v37  ;;  %v5859_v17 = vpop.f32.mrb[29].mxu1 }
 0x650   : > { %6104 = vst [vmem:[%s9451_s25 + $0xc0] sm:$0xff] %v6072_v10  ;;  %v6073_v48 = vmax.f32 %v6041_v62, 0.0  ;;  %v5941_v47 = vmul.f32 %v9429_v37, %v5859_v17  ;;  %v7871_v1 = vpop.f32.mrb[30].mxu1 }
 0x651   : > { %6107 = vst [vmem:[%s9451_s25 + $0xd8] sm:$0xff] %v6075_v14  ;;  %v5982_v30 = vadd.f32 %v9434_v19, %v5943_v29  ;;  %v5944_v5 = vmul.f32 %v7871_v1, %v9429_v37  ;;  %v5862_v15 = vpop.f32.mrb[31].mxu1 }
 0x652   : > { %6105 = vst [vmem:[%s9451_s25 + $0xc8] sm:$0xff] %v6073_v48  ;;  %v5980_v34 = vadd.f32 %v9434_v19, %v5941_v47  ;;  %v5942_v3 = vmul.f32 %v9429_v37, %v5862_v15 }
 0x653   : > { %v6046_v4 = vadd.f32 %v6571_v61, %v5982_v30  ;;  %v5983_v46 = vadd.f32 %v9434_v19, %v5944_v5 }
 0x654   : > { %v6044_v12 = vadd.f32 %v6569_v40, %v5980_v34  ;;  %v5981_v13 = vadd.f32 %v9434_v19, %v5942_v3 }
 0x655   : > { %v6078_v18 = vmax.f32 %v6046_v4, 0.0  ;;  %v6047_v43 = vadd.f32 %v6572_v28, %v5983_v46 }
 0x656   : > { %v6076_v23 = vmax.f32 %v6044_v12, 0.0  ;;  %v6045_v56 = vadd.f32 %v6570_v53, %v5981_v13 }
 0x657   : > { %6110 = vst [vmem:[%s9451_s25 + $0xf0] sm:$0xff] %v6078_v18  ;;  %v6079_v63 = vmax.f32 %v6047_v43, 0.0 }
 0x658   : > { %6108 = vst [vmem:[%s9451_s25 + $0xe0] sm:$0xff] %v6076_v23  ;;  %v6077_v8 = vmax.f32 %v6045_v56, 0.0 }
 0x659   : > { %6111 = vst [vmem:[%s9451_s25 + $0xf8] sm:$0xff] %v6079_v63 }
 0x65a   : > { %6109 = vst [vmem:[%s9451_s25 + $0xe8] sm:$0xff] %v6077_v8 }
 0x65b PF: > { %s19_s24 = sadd.s32 1, %s8632_s24  }
 0x65c   : > { %p16_p5 = scmp.ge.s32.totalorder %s19_s24, 4  }
 0x65e   :  { %18 = sbr.rel (!%p16_p5) target bundleno = 2 (0x2), region = 107 }
 0x665   :  { %6133 = vsyncpa [#allocation4], 1 }
 0x666   :  { %6135 = vsyncpa [#allocation4 + $0x1], 1 }
 0x667   :  { %6136 = vsyncpa [#allocation6], 1 }

// kernel: fwd.3
= control target key start
LH: loop header
LB: loop body
LE: loop exit
PB: predicated region body
PF: predicated region fallthrough
CT: control target
= control target key end

     0   :  { %15 = vsyncpa [#allocation4], 0  ;;  %s10177_s0 = inlined_call_operand.vmem [shape: f32[8,9,9,128], index: 0, kind: input, shape index: {}]   ;;  %s10178_s1 = inlined_call_operand.vmem [shape: bf16[9,128,256], index: 1, kind: input, shape index: {}]   ;;  %s10179_s2 = inlined_call_operand.vmem [shape: f32[1,256], index: 2, kind: input, shape index: {}, may-alias: {2,5,8}]   ;;  %s10180_s3 = inlined_call_operand.vmem [shape: f32[1,256], index: 3, kind: input, shape index: {}, may-alias: {3,6,9}]   ;;  %s10181_s4 = inlined_call_operand.vmem [shape: bf16[9,256,256], index: 4, kind: input, shape index: {}]   ;;  %s10182_s5 = inlined_call_operand.vmem [shape: f32[1,256], index: 5, kind: input, shape index: {}, may-alias: {2,5,8}]   ;;  %s10183_s6 = inlined_call_operand.vmem [shape: f32[1,256], index: 6, kind: input, shape index: {}, may-alias: {3,6,9}]   ;;  %s10184_s7 = inlined_call_operand.vmem [shape: bf16[128,256], index: 7, kind: input, shape index: {}]   ;;  %s10185_s8 = inlined_call_operand.vmem [shape: f32[1,256], index: 8, kind: input, shape index: {}, may-alias: {2,5,8}]   ;;  %s10186_s9 = inlined_call_operand.vmem [shape: f32[1,256], index: 9, kind: input, shape index: {}, may-alias: {3,6,9}]   ;;  %s10187_s10 = inlined_call_operand.hbm [shape: f32[2,8,8,256], index: 10, kind: output, shape index: {}]  }
   0x1   :  { %17 = vsyncpa [#allocation4 + $0x1], 0  ;;  %s8107_s13 = smov 0   ;;  %s8109_s14 = smov 0  }
   0x2   :  { %s8111_s15 = smov 0   ;;  %s8113_s16 = smov 0  }
   0x3 LB: > { %s8128_s17 = sadd.s32 4294967295, %s8045_s16   ;;  %s6080_s18 = sadd.s32 4294967294, %s8045_s16   ;;  %s8045_s16 = sphi %s8113_s16, %s10195_s16   ;;  %s8041_s15 = sphi %s8111_s15, %s10194_s15   ;;  %s8037_s14 = sphi %s8109_s14, %s10193_s14   ;;  %s8033_s13 = sphi %s8107_s13, %s10192_s13  }
   0x4   : > { %s8132_s19 = sadd.s32 1, %s8045_s16   ;;  %s245_s20 = sadd.s32 1, %s8041_s15 }
   0x5   : > { %s242_s21 = ssub.s32 %s8045_s16, %s8132_s19  ;;  %p255_p0 = scmp.ne.s32.totalorder %s8041_s15, %s8037_s14 }
   0x6   : > { %p243_p1 = scmp.eq.s32.totalorder %s242_s21, 0  ;;  %p256_p2 = scmp.eq.s32.totalorder %s8128_s17, 1 }
   0x7   : > { %p261_p3 = scmp.ne.s32.totalorder %s8037_s14, %s8033_s13  ;;  %p262_p4 = scmp.eq.s32.totalorder %s6080_s18, 1 }
   0x8   : > { %s8143_s22 = scalar_select %p243_p1, %s8041_s15, %s245_s20  }
   0x9   : > { %p8145_p5 = por %p256_p2, %p255_p0  ;;  %p8149_p6 = por %p262_p4, %p261_p3 }
   0xa   : > { %10188 = sst [smem:[#allocation6_spill]] %s8143_s22  ;;  %p6083_p7 = scmp.ge.s32.totalorder %s8045_s16, 1 }
   0xb   : > { %p317_p8 = scmp.lt.s32.totalorder %s8045_s16, 3 }
   0xd   : > { %p318_p9 = pnand %p6083_p7, %p317_p8 }
   0xe   : > { %v7289_v0 = vld [vmem:[%s10178_s1 + $0x84] ss:$8 sps:$4 sm:$0xff] (!%p318_p9)   ;;  %v7291_v1 = vld [vmem:[%s10178_s1 + $0x80] ss:$8 sps:$4 sm:$0xff] (!%p318_p9)   ;;  %v8047_v2 = vmov (!%p318_p9), 0   ;;  %s6085_s28 = sshll.u32 (!%p318_p9), %s8128_s17, 2 }
   0xf   : > { %321 = sbr.rel (%p318_p9) target bundleno = 1184 (0x4a0), region = 60  ;;  %534 = vmatprep.mubr.bf16.mxu0 (!%p318_p9), %v8047_v2  ;;  %502 = vmatprep.subr.bf16.mxu0 (!%p318_p9), %v7289_v0  ;;  %v7292_v3 = vld [vmem:[%s10178_s1 + $0x94] ss:$8 sps:$4 sm:$0xff] (!%p318_p9)   ;;  %v7294_v4 = vld [vmem:[%s10178_s1 + $0x90] ss:$8 sps:$4 sm:$0xff] (!%p318_p9)   ;;  %p357_p10 = scmp.lt.s32.totalorder (!%p318_p9), %s6085_s28, 7 }
  0x10   : > { %503 = vmatpush1.bf16.msra.mxu0 (!%p318_p9), %v7291_v1  ;;  %v7295_v5 = vld [vmem:[%s10178_s1 + $0xa4] ss:$8 sps:$4 sm:$0xff] (!%p318_p9)   ;;  %v7297_v6 = vld [vmem:[%s10178_s1 + $0xa0] ss:$8 sps:$4 sm:$0xff] (!%p318_p9)   ;;  %v7298_v7 = vld [vmem:[%s10178_s1 + $0xb4] ss:$8 sps:$4 sm:$0xff] (!%p318_p9)  }
  0x11   : > { %504 = vmatprep.subr.bf16.mxu0 (!%p318_p9), %v7292_v3  ;;  %v7300_v8 = vld [vmem:[%s10178_s1 + $0xb0] ss:$8 sps:$4 sm:$0xff] (!%p318_p9)   ;;  %v7301_v9 = vld [vmem:[%s10178_s1 + $0xc4] ss:$8 sps:$4 sm:$0xff] (!%p318_p9)   ;;  %v7303_v10 = vld [vmem:[%s10178_s1 + $0xc0] ss:$8 sps:$4 sm:$0xff] (!%p318_p9)  }
  0x12   : > { %v7304_v11 = vld [vmem:[%s10178_s1 + $0xd4] ss:$8 sps:$4 sm:$0xff] (!%p318_p9)   ;;  %v7306_v12 = vld [vmem:[%s10178_s1 + $0xd0] ss:$8 sps:$4 sm:$0xff] (!%p318_p9)   ;;  %v7307_v13 = vld [vmem:[%s10178_s1 + $0xe4] ss:$8 sps:$4 sm:$0xff] (!%p318_p9)  }
  0x13   : > { %v7309_v14 = vld [vmem:[%s10178_s1 + $0xe0] ss:$8 sps:$4 sm:$0xff] (!%p318_p9)   ;;  %v7310_v15 = vld [vmem:[%s10178_s1 + $0xf4] ss:$8 sps:$4 sm:$0xff] (!%p318_p9)   ;;  %v7312_v16 = vld [vmem:[%s10178_s1 + $0xf0] ss:$8 sps:$4 sm:$0xff] (!%p318_p9)  }
  0x14   : > { %505 = vmatpush1.bf16.msra.mxu0 (!%p318_p9), %v7294_v4  ;;  %v7315_v19 = vld [vmem:[%s10178_s1 + $0x4] ss:$8 sps:$4 sm:$0xff] (!%p318_p9)   ;;  %v7313_v21 = vld [vmem:[%s10178_s1] ss:$8 sps:$4 sm:$0xff] (!%p318_p9)   ;;  %v7318_v22 = vld [vmem:[%s10178_s1 + $0x14] ss:$8 sps:$4 sm:$0xff] (!%p318_p9)  }
  0x15   : > { %506 = vmatprep.subr.bf16.mxu0 (!%p318_p9), %v7295_v5  ;;  %v7316_v23 = vld [vmem:[%s10178_s1 + $0x10] ss:$8 sps:$4 sm:$0xff] (!%p318_p9)   ;;  %v7321_v26 = vld [vmem:[%s10178_s1 + $0x24] ss:$8 sps:$4 sm:$0xff] (!%p318_p9)   ;;  %v7319_v28 = vld [vmem:[%s10178_s1 + $0x20] ss:$8 sps:$4 sm:$0xff] (!%p318_p9)  }
  0x16   : > { %s10197_s28 = smov (!%p357_p10, %s6085_s28), 7  ;;  %v7324_v29 = vld [vmem:[%s10178_s1 + $0x34] ss:$8 sps:$4 sm:$0xff]   ;;  %v7322_v30 = vld [vmem:[%s10178_s1 + $0x30] ss:$8 sps:$4 sm:$0xff]   ;;  %vm3023_vm0 = vcmask 1046528  }
  0x17   : > { %s7245_s11 = smul.u32 144, %s10197_s28  ;;  %v7327_v33 = vld [vmem:[%s10178_s1 + $0x44] ss:$8 sps:$4 sm:$0xff]   ;;  %v7325_v35 = vld [vmem:[%s10178_s1 + $0x40] ss:$8 sps:$4 sm:$0xff]   ;;  %vm2331_vm1 = vcmask 1040384  }
  0x18   : > { %507 = vmatpush1.bf16.msra.mxu0 %v7297_v6  ;;  %v7330_v36 = vld [vmem:[%s10178_s1 + $0x54] ss:$8 sps:$4 sm:$0xff]   ;;  %v7328_v37 = vld [vmem:[%s10178_s1 + $0x50] ss:$8 sps:$4 sm:$0xff]   ;;  %v7333_v40 = vld [vmem:[%s10178_s1 + $0x64] ss:$8 sps:$4 sm:$0xff]  }
  0x19   : > { %508 = vmatprep.subr.bf16.mxu0 %v7298_v7  ;;  %s8205_s26 = scalar_lea.vmem %s10177_s0, %s7245_s11  ;;  %v7331_v42 = vld [vmem:[%s10178_s1 + $0x60] ss:$8 sps:$4 sm:$0xff]   ;;  %v7336_v43 = vld [vmem:[%s10178_s1 + $0x74] ss:$8 sps:$4 sm:$0xff]   ;;  %v7334_v44 = vld [vmem:[%s10178_s1 + $0x70] ss:$8 sps:$4 sm:$0xff]  }
  0x1a   : > { %v6087_v17 = vld [vmem:[%s8205_s26 + $0x90] sm:$0xff]  ;;  %v6088_v18 = vld [vmem:[%s8205_s26 + $0xa0] sm:$0xff]  ;;  %s353_s28 = sand.u32 1, %s8037_s14   ;;  %s6988_s30 = sshll.u32 %s8128_s17, 11 }
  0x1b   : > { %v401_v20 = vpack.c.bf16 %v6088_v18, %v6087_v17  ;;  %v6089_v24 = vld [vmem:[%s8205_s26 + $0xb0] sm:$0xff]  ;;  %v6090_v25 = vld [vmem:[%s8205_s26 + $0xc0] sm:$0xff]  ;;  %s6084_s27 = sshll.u32 %s353_s28, 7  ;;  %s10127_s12 = scalar_lea.hbm %s10187_s10, %s6988_s30 }
  0x1c   : > { %509 = vmatpush1.bf16.msra.mxu0 %v7300_v8  ;;  %v402_v27 = vpack.c.bf16 %v6090_v25, %v6089_v24  ;;  %v6091_v31 = vld [vmem:[%s8205_s26 + $0xd0] sm:$0xff]  ;;  %v6092_v32 = vld [vmem:[%s8205_s26 + $0xe0] sm:$0xff]  ;;  %s10044_s29 = scalar_lea.vmem [#allocation3], %s6084_s27  ;;  %s10136_s17 = scalar_lea.sflag [#allocation4], %s353_s28 }
  0x1d   : > { %510 = vmatprep.subr.bf16.mxu0 %v7301_v9  ;;  %v403_v34 = vpack.c.bf16 %v6092_v32, %v6091_v31  ;;  %v6093_v38 = vld [vmem:[%s8205_s26 + $0xf0] sm:$0xff]  ;;  %v6094_v39 = vld [vmem:[%s8205_s26 + $0x100] sm:$0xff]  ;;  %s6018_s22 = sshll.u32 %s10044_s29, 4  ;;  %s8049_s20 = smov [#allocation3]   ;;  %s10129_s22 = int_to_ptr.vmem [resolvable:$true] %s6018_s22 }
  0x1e   : > { %v404_v41 = vpack.c.bf16 %v6094_v39, %v6093_v38  ;;  %v364_v45 = vld [vmem:[%s8205_s26] sm:$0xff]  ;;  %v365_v46 = vld [vmem:[%s8205_s26 + $0x10] sm:$0xff]  ;;  %s7983_s18 = scalar_lea.vmem %s10129_s22, 2048  ;;  %s7987_s21 = sshll.u32 %s8049_s20, 4  ;;  %s7988_s21 = int_to_ptr.vmem [resolvable:$false] %s7987_s21 }
  0x1f   : > { %v7339_v47 = vld [vmem:[%s10178_s1 + $0x104] ss:$8 sps:$4 sm:$0xff]   ;;  %v372_v48 = vpack.c.bf16 %v365_v46, %v364_v45  ;;  %v7337_v49 = vld [vmem:[%s10178_s1 + $0x100] ss:$8 sps:$4 sm:$0xff]   ;;  %v7342_v50 = vld [vmem:[%s10178_s1 + $0x114] ss:$8 sps:$4 sm:$0xff]   ;;  %p7984_p11 = scmp.ne.s32.totalorder %s10129_s22, %s7983_s18  ;;  %p7990_p0 = scmp.lt.s32.totalorder %s10129_s22, %s7988_s21 }
  0x20   : > { %511 = vmatpush1.bf16.msra.mxu0 %v7303_v10  ;;  %v7340_v51 = vld [vmem:[%s10178_s1 + $0x110] ss:$8 sps:$4 sm:$0xff]   ;;  %v366_v52 = vld [vmem:[%s8205_s26 + $0x20] sm:$0xff]  ;;  %v7348_v57 = vld [vmem:[%s10178_s1 + $0x134] ss:$8 sps:$4 sm:$0xff]   ;;  %s7989_s25 = scalar_lea.vmem %s7988_s21, 4096 }
  0x21   : > { %512 = vmatprep.subr.bf16.mxu0 %v7304_v11  ;;  %v367_v53 = vld [vmem:[%s8205_s26 + $0x30] sm:$0xff]  ;;  %v7345_v54 = vld [vmem:[%s10178_s1 + $0x124] ss:$8 sps:$4 sm:$0xff]   ;;  %v7343_v56 = vld [vmem:[%s10178_s1 + $0x120] ss:$8 sps:$4 sm:$0xff]   ;;  %p7985_p12 = pnand %p7984_p11, %p8145_p5  ;;  %p7991_p1 = scmp.lt.s32.totalorder %s7989_s25, %s7983_s18 }
  0x22   : > { %v373_v55 = vpack.c.bf16 %v367_v53, %v366_v52  ;;  %v7346_v58 = vld [vmem:[%s10178_s1 + $0x130] ss:$8 sps:$4 sm:$0xff]   ;;  %v368_v59 = vld [vmem:[%s8205_s26 + $0x40] sm:$0xff]  ;;  %v7354_v0 = vld [vmem:[%s10178_s1 + $0x154] ss:$8 sps:$4 sm:$0xff]  }
  0x23   : > { %v369_v60 = vld [vmem:[%s8205_s26 + $0x50] sm:$0xff]  ;;  %v7351_v61 = vld [vmem:[%s10178_s1 + $0x144] ss:$8 sps:$4 sm:$0xff]   ;;  %v7349_v63 = vld [vmem:[%s10178_s1 + $0x140] ss:$8 sps:$4 sm:$0xff]   ;;  %p7986_p13 = pneg %p7985_p12  ;;  %p7992_p2 = por %p7991_p1, %p7990_p0 }
  0x24   : > { %513 = vmatpush1.bf16.msra.mxu0 %v7306_v12  ;;  %v374_v62 = vpack.c.bf16 %v369_v60, %v368_v59  ;;  %v7352_v1 = vld [vmem:[%s10178_s1 + $0x150] ss:$8 sps:$4 sm:$0xff]   ;;  %v370_v3 = vld [vmem:[%s8205_s26 + $0x60] sm:$0xff]  ;;  %v7360_v8 = vld [vmem:[%s10178_s1 + $0x174] ss:$8 sps:$4 sm:$0xff]  }
  0x25   : > { %514 = vmatprep.subr.bf16.mxu0 %v7307_v13  ;;  %v371_v4 = vld [vmem:[%s8205_s26 + $0x70] sm:$0xff]  ;;  %v7357_v5 = vld [vmem:[%s10178_s1 + $0x164] ss:$8 sps:$4 sm:$0xff]   ;;  %v7355_v7 = vld [vmem:[%s10178_s1 + $0x160] ss:$8 sps:$4 sm:$0xff]   ;;  %p7993_p3 = pnand %p7992_p2, %p7986_p13 }
  0x26   : > { %v375_v6 = vpack.c.bf16 %v371_v4, %v370_v3  ;;  %v7358_v9 = vld [vmem:[%s10178_s1 + $0x170] ss:$8 sps:$4 sm:$0xff]   ;;  %v728_v10 = vld [vmem:[%s8205_s26 + $0x1] sm:$0xff] }
  0x27   : > { %v729_v11 = vld [vmem:[%s8205_s26 + $0x11] sm:$0xff]  ;;  %v7363_v12 = vld [vmem:[%s10178_s1 + $0x184] ss:$8 sps:$4 sm:$0xff]   ;;  %v7361_v13 = vld [vmem:[%s10178_s1 + $0x180] ss:$8 sps:$4 sm:$0xff]  }
  0x28   : > { %515 = vmatpush1.bf16.msra.mxu0 %v7309_v14  ;;  %v736_v14 = vpack.c.bf16 %v729_v11, %v728_v10  ;;  %v730_v17 = vld [vmem:[%s8205_s26 + $0x21] sm:$0xff]  ;;  %v731_v18 = vld [vmem:[%s8205_s26 + $0x31] sm:$0xff] }
  0x29   : > { %516 = vmatprep.subr.bf16.mxu0 %v7310_v15  ;;  %v7366_v15 = vld [vmem:[%s10178_s1 + $0x194] ss:$8 sps:$4 sm:$0xff]   ;;  %v732_v24 = vld [vmem:[%s8205_s26 + $0x41] sm:$0xff] }
  0x2a   : > { %v733_v25 = vld [vmem:[%s8205_s26 + $0x51] sm:$0xff]  ;;  %v734_v31 = vld [vmem:[%s8205_s26 + $0x61] sm:$0xff] }
  0x2b   : > { %v735_v32 = vld [vmem:[%s8205_s26 + $0x71] sm:$0xff]  ;;  %v6175_v38 = vld [vmem:[%s8205_s26 + $0x120] sm:$0xff] }
  0x2c   : > { %517 = vmatpush1.bf16.msra.mxu0 %v7312_v16  ;;  %v7364_v16 = vld [vmem:[%s10178_s1 + $0x190] ss:$8 sps:$4 sm:$0xff]   ;;  %v6177_v45 = vld [vmem:[%s8205_s26 + $0x140] sm:$0xff] }
  0x2d   : > { %655 = vmatprep.subr.bf16.mxu0 %v7315_v19  ;;  %v7369_v19 = vld [vmem:[%s10178_s1 + $0x1a4] ss:$8 sps:$4 sm:$0xff]   ;;  %v6176_v39 = vld [vmem:[%s8205_s26 + $0x130] sm:$0xff] }
  0x2e   : > { %v6178_v46 = vld [vmem:[%s8205_s26 + $0x150] sm:$0xff]  ;;  %v6179_v52 = vld [vmem:[%s8205_s26 + $0x160] sm:$0xff] }
  0x2f   : > { %535 = vmatmul.mubr.bf16.vlgmr.msra.gmra.mrb[0].mxu0 %v401_v20  ;;  %v7367_v20 = vld [vmem:[%s10178_s1 + $0x1a0] ss:$8 sps:$4 sm:$0xff]   ;;  %v6180_v53 = vld [vmem:[%s8205_s26 + $0x170] sm:$0xff] }
  0x30   : > { %656 = vmatpush1.bf16.msra.mxu0 %v7313_v21  ;;  %544 = vmatprep.mubr.bf16.mxu0 %v8047_v2  ;;  %v737_v21 = vpack.c.bf16 %v731_v18, %v730_v17  ;;  %v6181_v59 = vld [vmem:[%s8205_s26 + $0x180] sm:$0xff]  ;;  %v6182_v60 = vld [vmem:[%s8205_s26 + $0x190] sm:$0xff] }
  0x31   : > { %657 = vmatprep.subr.bf16.mxu0 %v7318_v22  ;;  %v7372_v22 = vld [vmem:[%s10178_s1 + $0x1b4] ss:$8 sps:$4 sm:$0xff]   ;;  %v6216_v4 = vld [vmem:[%s8205_s26 + $0x1c0] sm:$0xff] }
  0x32   : > { %v6215_v3 = vld [vmem:[%s8205_s26 + $0x1b0] sm:$0xff]  ;;  %v6218_v11 = vld [vmem:[%s8205_s26 + $0x1e0] sm:$0xff] }
  0x33   : > { %v6217_v10 = vld [vmem:[%s8205_s26 + $0x1d0] sm:$0xff]  ;;  %v6220_v18 = vld [vmem:[%s8205_s26 + $0x200] sm:$0xff] }
  0x34   : > { %658 = vmatpush1.bf16.msra.mxu0 %v7316_v23  ;;  %v7370_v23 = vld [vmem:[%s10178_s1 + $0x1b0] ss:$8 sps:$4 sm:$0xff]  }
  0x35   : > { %659 = vmatprep.subr.bf16.mxu0 %v7321_v26  ;;  %v7375_v26 = vld [vmem:[%s10178_s1 + $0x1c4] ss:$8 sps:$4 sm:$0xff]   ;;  %v6219_v17 = vld [vmem:[%s8205_s26 + $0x1f0] sm:$0xff] }
  0x37   : > { %545 = vmatmul.mubr.bf16.gmra.mrb[4].mxu0 %v402_v27  ;;  %v7373_v27 = vld [vmem:[%s10178_s1 + $0x1c0] ss:$8 sps:$4 sm:$0xff]  }
  0x38   : > { %660 = vmatpush1.bf16.msra.mxu0 %v7319_v28  ;;  %554 = vmatprep.mubr.bf16.mxu0 %v8047_v2  ;;  %v738_v28 = vpack.c.bf16 %v733_v25, %v732_v24  ;;  %v6221_v24 = vld [vmem:[%s8205_s26 + $0x210] sm:$0xff]  ;;  %v6222_v25 = vld [vmem:[%s8205_s26 + $0x220] sm:$0xff] }
  0x39   : > { %661 = vmatprep.subr.bf16.mxu0 %v7324_v29  ;;  %v7378_v29 = vld [vmem:[%s10178_s1 + $0x1d4] ss:$8 sps:$4 sm:$0xff]  }
  0x3c   : > { %662 = vmatpush1.bf16.msra.mxu0 %v7322_v30  ;;  %v7376_v30 = vld [vmem:[%s10178_s1 + $0x1d0] ss:$8 sps:$4 sm:$0xff]  }
  0x3d   : > { %663 = vmatprep.subr.bf16.mxu0 %v7327_v33  ;;  %v7381_v33 = vld [vmem:[%s10178_s1 + $0x1e4] ss:$8 sps:$4 sm:$0xff]  }
  0x3f   : > { %555 = vmatmul.mubr.bf16.gmra.mrb[8].mxu0 %v403_v34  ;;  %v739_v34 = vpack.c.bf16 %v735_v32, %v734_v31  ;;  %v7508_v31 = vld [vmem:[%s10181_s4 + $0x204] ss:$8 sps:$4 sm:$0xff]  }
  0x40   : > { %664 = vmatpush1.bf16.msra.mxu0 %v7325_v35  ;;  %564 = vmatprep.mubr.bf16.mxu0 %v8047_v2  ;;  %v7379_v35 = vld [vmem:[%s10178_s1 + $0x1e0] ss:$8 sps:$4 sm:$0xff]  }
  0x41   : > { %665 = vmatprep.subr.bf16.mxu0 %v7330_v36  ;;  %v7384_v36 = vld [vmem:[%s10178_s1 + $0x1f4] ss:$8 sps:$4 sm:$0xff]   ;;  %v6255_v32 = vld [vmem:[%s8205_s26 + $0x121] sm:$0xff]  ;;  %3289 = vmatprep.subr.bf16.mxu1 %v7508_v31  ;;  %v7466_v31 = vld [vmem:[%s10178_s1 + $0x3b0] ss:$8 sps:$4 sm:$0xff]  }
  0x44   : > { %666 = vmatpush1.bf16.msra.mxu0 %v7328_v37  ;;  %v7382_v37 = vld [vmem:[%s10178_s1 + $0x1f0] ss:$8 sps:$4 sm:$0xff]  }
  0x45   : > { %667 = vmatprep.subr.bf16.mxu0 %v7333_v40  ;;  %v7387_v40 = vld [vmem:[%s10178_s1 + $0x204] ss:$8 sps:$4 sm:$0xff]  }
  0x47   : > { %565 = vmatmul.mubr.bf16.gmra.mrb[12].mxu0 %v404_v41  ;;  %v7385_v41 = vld [vmem:[%s10178_s1 + $0x200] ss:$8 sps:$4 sm:$0xff]  }
  0x48   : > { %668 = vmatpush1.bf16.msra.mxu0 %v7331_v42  ;;  %687 = vmatprep.mubr.bf16.mxu0 %v8047_v2  ;;  %v935_v42 = vpack.c.bf16 %v6176_v39, %v6175_v38  ;;  %v7520_v39 = vld [vmem:[%s10181_s4 + $0x224] ss:$8 sps:$4 sm:$0xff]  }
  0x49   : > { %669 = vmatprep.subr.bf16.mxu0 %v7336_v43  ;;  %v7390_v43 = vld [vmem:[%s10178_s1 + $0x214] ss:$8 sps:$4 sm:$0xff]  }
  0x4c   : > { %670 = vmatpush1.bf16.msra.mxu0 %v7334_v44  ;;  %v7388_v44 = vld [vmem:[%s10178_s1 + $0x210] ss:$8 sps:$4 sm:$0xff]  }
  0x4d   : > { %837 = vmatprep.subr.bf16.mxu0 %v7339_v47  ;;  %v7393_v47 = vld [vmem:[%s10178_s1 + $0x224] ss:$8 sps:$4 sm:$0xff]  }
  0x4f   : > { %688 = vmatmul.mubr.bf16.vlgmr.msra.gmra.mrb[0].mxu0 %v372_v48  ;;  %v7391_v48 = vld [vmem:[%s10178_s1 + $0x220] ss:$8 sps:$4 sm:$0xff]  }
  0x50   : > { %838 = vmatpush1.bf16.msra.mxu0 %v7337_v49  ;;  %697 = vmatprep.mubr.bf16.mxu0 %v8047_v2  ;;  %v936_v49 = vpack.c.bf16 %v6178_v46, %v6177_v45  ;;  %v6257_v45 = vld [vmem:[%s8205_s26 + $0x141] sm:$0xff]  ;;  %v6258_v46 = vld [vmem:[%s8205_s26 + $0x151] sm:$0xff] }
  0x51   : > { %839 = vmatprep.subr.bf16.mxu0 %v7342_v50  ;;  %v7396_v50 = vld [vmem:[%s10178_s1 + $0x234] ss:$8 sps:$4 sm:$0xff]  }
  0x54   : > { %840 = vmatpush1.bf16.msra.mxu0 %v7340_v51  ;;  %v7394_v51 = vld [vmem:[%s10178_s1 + $0x230] ss:$8 sps:$4 sm:$0xff]  }
  0x55   : > { %841 = vmatprep.subr.bf16.mxu0 %v7345_v54  ;;  %v7399_v54 = vld [vmem:[%s10178_s1 + $0x244] ss:$8 sps:$4 sm:$0xff]  }
  0x57   : > { %698 = vmatmul.mubr.bf16.gmra.mrb[4].mxu0 %v373_v55  ;;  %v7397_v55 = vld [vmem:[%s10178_s1 + $0x240] ss:$8 sps:$4 sm:$0xff]  }
  0x58   : > { %842 = vmatpush1.bf16.msra.mxu0 %v7343_v56  ;;  %707 = vmatprep.mubr.bf16.mxu0 %v8047_v2  ;;  %v937_v56 = vpack.c.bf16 %v6180_v53, %v6179_v52  ;;  %v7444_v52 = vld [vmem:[%s10178_s1 + $0x334] ss:$8 sps:$4 sm:$0xff]   ;;  %v7537_v53 = vld [vmem:[%s10181_s4 + $0x240] ss:$8 sps:$4 sm:$0xff]  }
  0x59   : > { %843 = vmatprep.subr.bf16.mxu0 %v7348_v57  ;;  %v7402_v57 = vld [vmem:[%s10178_s1 + $0x254] ss:$8 sps:$4 sm:$0xff]  }
  0x5c   : > { %844 = vmatpush1.bf16.msra.mxu0 %v7346_v58  ;;  %v7400_v58 = vld [vmem:[%s10178_s1 + $0x250] ss:$8 sps:$4 sm:$0xff]  }
  0x5d   : > { %845 = vmatprep.subr.bf16.mxu0 %v7351_v61  ;;  %v7405_v61 = vld [vmem:[%s10178_s1 + $0x264] ss:$8 sps:$4 sm:$0xff]  }
  0x5f   : > { %708 = vmatmul.mubr.bf16.gmra.mrb[8].mxu0 %v374_v62  ;;  %v938_v62 = vpack.c.bf16 %v6182_v60, %v6181_v59  ;;  %v7543_v59 = vld [vmem:[%s10181_s4 + $0x250] ss:$8 sps:$4 sm:$0xff]   ;;  %v7544_v60 = vld [vmem:[%s10181_s4 + $0x264] ss:$8 sps:$4 sm:$0xff]  }
  0x60   : > { %846 = vmatpush1.bf16.msra.mxu0 %v7349_v63  ;;  %717 = vmatprep.mubr.bf16.mxu0 %v8047_v2  ;;  %v7403_v63 = vld [vmem:[%s10178_s1 + $0x260] ss:$8 sps:$4 sm:$0xff]  }
  0x61   : > { %847 = vmatprep.subr.bf16.mxu0 %v7354_v0  ;;  %v7408_v0 = vld [vmem:[%s10178_s1 + $0x274] ss:$8 sps:$4 sm:$0xff]  }
  0x64   : > { %848 = vmatpush1.bf16.msra.mxu0 %v7352_v1  ;;  %v7406_v1 = vld [vmem:[%s10178_s1 + $0x270] ss:$8 sps:$4 sm:$0xff]  }
  0x65   : > { %849 = vmatprep.subr.bf16.mxu0 %v7357_v5  ;;  %v7411_v5 = vld [vmem:[%s10178_s1 + $0x284] ss:$8 sps:$4 sm:$0xff]  }
  0x67   : > { %718 = vmatmul.mubr.bf16.gmra.mrb[12].mxu0 %v375_v6  ;;  %v7409_v6 = vld [vmem:[%s10178_s1 + $0x280] ss:$8 sps:$4 sm:$0xff]  }
  0x68   : > { %850 = vmatpush1.bf16.msra.mxu0 %v7355_v7  ;;  %869 = vmatprep.mubr.bf16.mxu0 %v8047_v2  ;;  %v1134_v7 = vpack.c.bf16 %v6216_v4, %v6215_v3  ;;  %v7448_v3 = vld [vmem:[%s10178_s1 + $0x350] ss:$8 sps:$4 sm:$0xff]   ;;  %v6261_v4 = vld [vmem:[%s8205_s26 + $0x181] sm:$0xff] }
  0x69   : > { %851 = vmatprep.subr.bf16.mxu0 %v7360_v8  ;;  %v7414_v8 = vld [vmem:[%s10178_s1 + $0x294] ss:$8 sps:$4 sm:$0xff]  }
  0x6c   : > { %852 = vmatpush1.bf16.msra.mxu0 %v7358_v9  ;;  %v7412_v9 = vld [vmem:[%s10178_s1 + $0x290] ss:$8 sps:$4 sm:$0xff]  }
  0x6d   : > { %1036 = vmatprep.subr.bf16.mxu0 %v7363_v12  ;;  %v7417_v12 = vld [vmem:[%s10178_s1 + $0x2a4] ss:$8 sps:$4 sm:$0xff]  }
  0x6f   : > { %870 = vmatmul.mubr.bf16.vlgmr.msra.gmra.mrb[0].mxu0 %v736_v14  ;;  %v1135_v14 = vpack.c.bf16 %v6218_v11, %v6217_v10  ;;  %v7456_v11 = vld [vmem:[%s10178_s1 + $0x374] ss:$8 sps:$4 sm:$0xff]  }
  0x70   : > { %1037 = vmatpush1.bf16.msra.mxu0 %v7361_v13  ;;  %879 = vmatprep.mubr.bf16.mxu0 %v8047_v2  ;;  %v7415_v13 = vld [vmem:[%s10178_s1 + $0x2a0] ss:$8 sps:$4 sm:$0xff]  }
  0x71   : > { %1038 = vmatprep.subr.bf16.mxu0 %v7366_v15  ;;  %v7420_v15 = vld [vmem:[%s10178_s1 + $0x2b4] ss:$8 sps:$4 sm:$0xff]  }
  0x74   : > { %1039 = vmatpush1.bf16.msra.mxu0 %v7364_v16  ;;  %v7418_v16 = vld [vmem:[%s10178_s1 + $0x2b0] ss:$8 sps:$4 sm:$0xff]  }
  0x75   : > { %1040 = vmatprep.subr.bf16.mxu0 %v7369_v19  ;;  %v7423_v19 = vld [vmem:[%s10178_s1 + $0x2c4] ss:$8 sps:$4 sm:$0xff]  }
  0x77   : > { %880 = vmatmul.mubr.bf16.gmra.mrb[4].mxu0 %v737_v21  ;;  %v1136_v21 = vpack.c.bf16 %v6220_v18, %v6219_v17  ;;  %v7568_v17 = vld [vmem:[%s10181_s4 + $0x2a4] ss:$8 sps:$4 sm:$0xff]   ;;  %v7457_v18 = vld [vmem:[%s10178_s1 + $0x380] ss:$8 sps:$4 sm:$0xff]  }
  0x78   : > { %1041 = vmatpush1.bf16.msra.mxu0 %v7367_v20  ;;  %889 = vmatprep.mubr.bf16.mxu0 %v8047_v2  ;;  %v7421_v20 = vld [vmem:[%s10178_s1 + $0x2c0] ss:$8 sps:$4 sm:$0xff]  }
  0x79   : > { %1042 = vmatprep.subr.bf16.mxu0 %v7372_v22  ;;  %v7426_v22 = vld [vmem:[%s10178_s1 + $0x2d4] ss:$8 sps:$4 sm:$0xff]  }
  0x7c   : > { %1043 = vmatpush1.bf16.msra.mxu0 %v7370_v23  ;;  %v7424_v23 = vld [vmem:[%s10178_s1 + $0x2d0] ss:$8 sps:$4 sm:$0xff]  }
  0x7d   : > { %1044 = vmatprep.subr.bf16.mxu0 %v7375_v26  ;;  %v7429_v26 = vld [vmem:[%s10178_s1 + $0x2e4] ss:$8 sps:$4 sm:$0xff]  }
  0x7f   : > { %890 = vmatmul.mubr.bf16.gmra.mrb[8].mxu0 %v738_v28  ;;  %v1137_v28 = vpack.c.bf16 %v6222_v25, %v6221_v24  ;;  %v7460_v24 = vld [vmem:[%s10178_s1 + $0x390] ss:$8 sps:$4 sm:$0xff]   ;;  %v7465_v25 = vld [vmem:[%s10178_s1 + $0x3a4] ss:$8 sps:$4 sm:$0xff]  }
  0x80   : > { %1045 = vmatpush1.bf16.msra.mxu0 %v7373_v27  ;;  %899 = vmatprep.mubr.bf16.mxu0 %v8047_v2  ;;  %v7427_v27 = vld [vmem:[%s10178_s1 + $0x2e0] ss:$8 sps:$4 sm:$0xff]  }
  0x81   : > { %1046 = vmatprep.subr.bf16.mxu0 %v7378_v29  ;;  %v7432_v29 = vld [vmem:[%s10178_s1 + $0x2f4] ss:$8 sps:$4 sm:$0xff]  }
  0x84   : > { %1047 = vmatpush1.bf16.msra.mxu0 %v7376_v30  ;;  %v7430_v30 = vld [vmem:[%s10178_s1 + $0x2f0] ss:$8 sps:$4 sm:$0xff]  }
  0x85   : > { %1048 = vmatprep.subr.bf16.mxu0 %v7381_v33  ;;  %v6256_v33 = vld [vmem:[%s8205_s26 + $0x131] sm:$0xff] }
  0x86   : > { %v1332_v38 = vpack.c.bf16 %v6256_v33, %v6255_v32  ;;  %v7471_v32 = vld [vmem:[%s10178_s1 + $0x3c4] ss:$8 sps:$4 sm:$0xff]   ;;  %v7965_v33 = vld [vmem:[%s8205_s26 + $0x50] sm:$0xff] }
  0x87   : > { %900 = vmatmul.mubr.bf16.gmra.mrb[12].mxu0 %v739_v34  ;;  %v7513_v34 = vld [vmem:[%s10181_s4 + $0x200] ss:$8 sps:$4 sm:$0xff]  }
  0x88   : > { %1049 = vmatpush1.bf16.msra.mxu0 %v7379_v35  ;;  %1068 = vmatprep.mubr.bf16.mxu0 %v8047_v2  ;;  %v7435_v35 = vld [vmem:[%s10178_s1 + $0x304] ss:$8 sps:$4 sm:$0xff]  }
  0x89   : > { %1050 = vmatprep.subr.bf16.mxu0 %v7384_v36  ;;  %v7514_v36 = vld [vmem:[%s10181_s4 + $0x214] ss:$8 sps:$4 sm:$0xff]   ;;  %3290 = vmatpush1.bf16.msra.mxu1 %v7513_v34  ;;  %v7966_v34 = vld [vmem:[%s8205_s26 + $0x60] sm:$0xff] }
  0x8a   : > { %3291 = vmatprep.subr.bf16.mxu1 %v7514_v36  ;;  %v7469_v36 = vld [vmem:[%s10178_s1 + $0x3c0] ss:$8 sps:$4 sm:$0xff]  }
  0x8c   : > { %1051 = vmatpush1.bf16.msra.mxu0 %v7382_v37  ;;  %v7519_v37 = vld [vmem:[%s10181_s4 + $0x210] ss:$8 sps:$4 sm:$0xff]  }
  0x8d   : > { %1235 = vmatprep.subr.bf16.mxu0 %v7387_v40  ;;  %v7433_v40 = vld [vmem:[%s10178_s1 + $0x300] ss:$8 sps:$4 sm:$0xff]   ;;  %3292 = vmatpush1.bf16.msra.mxu1 %v7519_v37  ;;  %v7474_v37 = vld [vmem:[%s10178_s1 + $0x3d4] ss:$8 sps:$4 sm:$0xff]  }
  0x8e   : > { %3293 = vmatprep.subr.bf16.mxu1 %v7520_v39  ;;  %v6302_v39 = vld [vmem:[%s8205_s26 + $0x80] sm:$0xff] }
  0x8f   : > { %1069 = vmatmul.mubr.bf16.vlgmr.msra.gmra.mrb[0].mxu0 %v935_v42  ;;  %v7525_v42 = vld [vmem:[%s10181_s4 + $0x220] ss:$8 sps:$4 sm:$0xff]  }
  0x90   : > { %1236 = vmatpush1.bf16.msra.mxu0 %v7385_v41  ;;  %1078 = vmatprep.mubr.bf16.mxu0 %v8047_v2  ;;  %v7438_v41 = vld [vmem:[%s10178_s1 + $0x314] ss:$8 sps:$4 sm:$0xff]  }
  0x91   : > { %1237 = vmatprep.subr.bf16.mxu0 %v7390_v43  ;;  %v7526_v43 = vld [vmem:[%s10181_s4 + $0x234] ss:$8 sps:$4 sm:$0xff]   ;;  %3294 = vmatpush1.bf16.msra.mxu1 %v7525_v42 }
  0x92   : > { %3295 = vmatprep.subr.bf16.mxu1 %v7526_v43  ;;  %v7475_v43 = vld [vmem:[%s10178_s1 + $0x3e0] ss:$8 sps:$4 sm:$0xff]  }
  0x94   : > { %1238 = vmatpush1.bf16.msra.mxu0 %v7388_v44  ;;  %v7436_v44 = vld [vmem:[%s10178_s1 + $0x310] ss:$8 sps:$4 sm:$0xff]  }
  0x95   : > { %1239 = vmatprep.subr.bf16.mxu0 %v7393_v47  ;;  %v7441_v47 = vld [vmem:[%s10178_s1 + $0x324] ss:$8 sps:$4 sm:$0xff]  }
  0x97   : > { %1079 = vmatmul.mubr.bf16.gmra.mrb[4].mxu0 %v936_v49  ;;  %v1333_v49 = vpack.c.bf16 %v6258_v46, %v6257_v45  ;;  %v7478_v45 = vld [vmem:[%s10178_s1 + $0x3f0] ss:$8 sps:$4 sm:$0xff]   ;;  %v7483_v46 = vld [vmem:[%s10178_s1 + $0x404] ss:$8 sps:$4 sm:$0xff]  }
  0x98   : > { %1240 = vmatpush1.bf16.msra.mxu0 %v7391_v48  ;;  %1088 = vmatprep.mubr.bf16.mxu0 %v8047_v2  ;;  %v7531_v48 = vld [vmem:[%s10181_s4 + $0x230] ss:$8 sps:$4 sm:$0xff]  }
  0x99   : > { %1241 = vmatprep.subr.bf16.mxu0 %v7396_v50  ;;  %v7532_v50 = vld [vmem:[%s10181_s4 + $0x244] ss:$8 sps:$4 sm:$0xff]   ;;  %3296 = vmatpush1.bf16.msra.mxu1 %v7531_v48  ;;  %v7969_v48 = vld [vmem:[%s8205_s26 + $0xb0] sm:$0xff] }
  0x9a   : > { %3297 = vmatprep.subr.bf16.mxu1 %v7532_v50  ;;  %v7481_v50 = vld [vmem:[%s10178_s1 + $0x400] ss:$8 sps:$4 sm:$0xff]  }
  0x9c   : > { %1242 = vmatpush1.bf16.msra.mxu0 %v7394_v51  ;;  %v7439_v51 = vld [vmem:[%s10178_s1 + $0x320] ss:$8 sps:$4 sm:$0xff]  }
  0x9d   : > { %1243 = vmatprep.subr.bf16.mxu0 %v7399_v54  ;;  %v7538_v54 = vld [vmem:[%s10181_s4 + $0x254] ss:$8 sps:$4 sm:$0xff]   ;;  %3298 = vmatpush1.bf16.msra.mxu1 %v7537_v53  ;;  %v7489_v53 = vld [vmem:[%s10178_s1 + $0x424] ss:$8 sps:$4 sm:$0xff]  }
  0x9e   : > { %3299 = vmatprep.subr.bf16.mxu1 %v7538_v54  ;;  %v7970_v54 = vld [vmem:[%s8205_s26 + $0xc0] sm:$0xff] }
  0x9f   : > { %1089 = vmatmul.mubr.bf16.gmra.mrb[8].mxu0 %v937_v56  ;;  %v6259_v56 = vld [vmem:[%s8205_s26 + $0x161] sm:$0xff] }
  0xa0   : > { %1244 = vmatpush1.bf16.msra.mxu0 %v7397_v55  ;;  %1098 = vmatprep.mubr.bf16.mxu0 %v8047_v2  ;;  %v7442_v55 = vld [vmem:[%s10178_s1 + $0x330] ss:$8 sps:$4 sm:$0xff]  }
  0xa1   : > { %1245 = vmatprep.subr.bf16.mxu0 %v7402_v57  ;;  %v6260_v57 = vld [vmem:[%s8205_s26 + $0x171] sm:$0xff]  ;;  %3300 = vmatpush1.bf16.msra.mxu1 %v7543_v59 }
  0xa2   : > { %3301 = vmatprep.subr.bf16.mxu1 %v7544_v60  ;;  %v7490_v59 = vld [vmem:[%s10178_s1 + $0x430] ss:$8 sps:$4 sm:$0xff]   ;;  %v7495_v60 = vld [vmem:[%s10178_s1 + $0x444] ss:$8 sps:$4 sm:$0xff]  }
  0xa4   : > { %1246 = vmatpush1.bf16.msra.mxu0 %v7400_v58  ;;  %v7447_v58 = vld [vmem:[%s10178_s1 + $0x344] ss:$8 sps:$4 sm:$0xff]  }
  0xa5   : > { %1247 = vmatprep.subr.bf16.mxu0 %v7405_v61  ;;  %v7445_v61 = vld [vmem:[%s10178_s1 + $0x340] ss:$8 sps:$4 sm:$0xff]  }
  0xa7   : > { %1099 = vmatmul.mubr.bf16.gmra.mrb[12].mxu0 %v938_v62  ;;  %v1334_v62 = vpack.c.bf16 %v6260_v57, %v6259_v56  ;;  %v7487_v57 = vld [vmem:[%s10178_s1 + $0x420] ss:$8 sps:$4 sm:$0xff]  }
  0xa8   : > { %1248 = vmatpush1.bf16.msra.mxu0 %v7403_v63  ;;  %1267 = vmatprep.mubr.bf16.mxu0 %v8047_v2  ;;  %v7450_v63 = vld [vmem:[%s10178_s1 + $0x354] ss:$8 sps:$4 sm:$0xff]  }
  0xa9   : > { %1249 = vmatprep.subr.bf16.mxu0 %v7408_v0  ;;  %v7549_v0 = vld [vmem:[%s10181_s4 + $0x260] ss:$8 sps:$4 sm:$0xff]  }
  0xaa   : > { %3302 = vmatpush1.bf16.msra.mxu1 %v7549_v0  ;;  %v7493_v0 = vld [vmem:[%s10178_s1 + $0x440] ss:$8 sps:$4 sm:$0xff]  }
  0xac   : > { %1250 = vmatpush1.bf16.msra.mxu0 %v7406_v1  ;;  %v7550_v1 = vld [vmem:[%s10181_s4 + $0x274] ss:$8 sps:$4 sm:$0xff]  }
  0xad   : > { %1433 = vmatprep.subr.bf16.mxu0 %v7411_v5  ;;  %v6262_v5 = vld [vmem:[%s8205_s26 + $0x191] sm:$0xff]  ;;  %3303 = vmatprep.subr.bf16.mxu1 %v7550_v1 }
  0xae   : > { %v1335_v10 = vpack.c.bf16 %v6262_v5, %v6261_v4  ;;  %v7498_v1 = vld [vmem:[%s10178_s1 + $0x454] ss:$8 sps:$4 sm:$0xff]   ;;  %v7501_v5 = vld [vmem:[%s10178_s1 + $0x464] ss:$8 sps:$4 sm:$0xff]  }
  0xaf   : > { %1268 = vmatmul.mubr.bf16.vlgmr.msra.gmra.mrb[0].mxu0 %v1134_v7  ;;  %v7555_v7 = vld [vmem:[%s10181_s4 + $0x270] ss:$8 sps:$4 sm:$0xff]  }
  0xb0   : > { %1434 = vmatpush1.bf16.msra.mxu0 %v7409_v6  ;;  %1277 = vmatprep.mubr.bf16.mxu0 %v8047_v2  ;;  %v7453_v6 = vld [vmem:[%s10178_s1 + $0x364] ss:$8 sps:$4 sm:$0xff]   ;;  %v6342_v4 = vld [vmem:[%s8205_s26 + $0x110] sm:$0xff] }
  0xb1   : > { %1435 = vmatprep.subr.bf16.mxu0 %v7414_v8  ;;  %v7556_v8 = vld [vmem:[%s10181_s4 + $0x284] ss:$8 sps:$4 sm:$0xff]   ;;  %3304 = vmatpush1.bf16.msra.mxu1 %v7555_v7 }
  0xb2   : > { %3305 = vmatprep.subr.bf16.mxu1 %v7556_v8  ;;  %v7499_v8 = vld [vmem:[%s10178_s1 + $0x460] ss:$8 sps:$4 sm:$0xff]  }
  0xb4   : > { %1436 = vmatpush1.bf16.msra.mxu0 %v7412_v9  ;;  %v7451_v9 = vld [vmem:[%s10178_s1 + $0x360] ss:$8 sps:$4 sm:$0xff]  }
  0xb5   : > { %1437 = vmatprep.subr.bf16.mxu0 %v7417_v12  ;;  %v7561_v12 = vld [vmem:[%s10181_s4 + $0x280] ss:$8 sps:$4 sm:$0xff]  }
  0xb6   : > { %3306 = vmatpush1.bf16.msra.mxu1 %v7561_v12  ;;  %v7975_v12 = vld [vmem:[%s8205_s26 + $0x11] sm:$0xff] }
  0xb7   : > { %1278 = vmatmul.mubr.bf16.gmra.mrb[4].mxu0 %v1135_v14  ;;  %v7454_v14 = vld [vmem:[%s10178_s1 + $0x370] ss:$8 sps:$4 sm:$0xff]  }
  0xb8   : > { %1438 = vmatpush1.bf16.msra.mxu0 %v7415_v13  ;;  %1287 = vmatprep.mubr.bf16.mxu0 %v8047_v2  ;;  %v7562_v13 = vld [vmem:[%s10181_s4 + $0x294] ss:$8 sps:$4 sm:$0xff]  }
  0xb9   : > { %1439 = vmatprep.subr.bf16.mxu0 %v7420_v15  ;;  %v7459_v15 = vld [vmem:[%s10178_s1 + $0x384] ss:$8 sps:$4 sm:$0xff]   ;;  %3307 = vmatprep.subr.bf16.mxu1 %v7562_v13 }
  0xba   : > { %v7976_v13 = vld [vmem:[%s8205_s26 + $0x21] sm:$0xff] }
  0xbc   : > { %1440 = vmatpush1.bf16.msra.mxu0 %v7418_v16  ;;  %v7567_v16 = vld [vmem:[%s10181_s4 + $0x290] ss:$8 sps:$4 sm:$0xff]  }
  0xbd   : > { %1441 = vmatprep.subr.bf16.mxu0 %v7423_v19  ;;  %v7961_v19 = vld [vmem:[%s8205_s26 + $0x10] sm:$0xff]  ;;  %3308 = vmatpush1.bf16.msra.mxu1 %v7567_v16 }
  0xbe   : > { %3309 = vmatprep.subr.bf16.mxu1 %v7568_v17  ;;  %v7512_v16 = vld [vmem:[%s10181_s4 + $0x114] ss:$8 sps:$4 sm:$0xff]   ;;  %v7510_v17 = vld [vmem:[%s10181_s4 + $0x110] ss:$8 sps:$4 sm:$0xff]  }
  0xbf   : > { %1288 = vmatmul.mubr.bf16.gmra.mrb[8].mxu0 %v1136_v21 }
  0xc0   : > { %1442 = vmatpush1.bf16.msra.mxu0 %v7421_v20  ;;  %1297 = vmatprep.mubr.bf16.mxu0 %v8047_v2  ;;  %v7962_v20 = vld [vmem:[%s8205_s26 + $0x20] sm:$0xff] }
  0xc1   : > { %1443 = vmatprep.subr.bf16.mxu0 %v7426_v22  ;;  %v1531_v21 = vpack.c.bf16 %v7962_v20, %v7961_v19  ;;  %v7462_v22 = vld [vmem:[%s10178_s1 + $0x394] ss:$8 sps:$4 sm:$0xff]   ;;  %v7978_v20 = vld [vmem:[%s8205_s26 + $0x41] sm:$0xff] }
  0xc2   : > { %v7977_v19 = vld [vmem:[%s8205_s26 + $0x31] sm:$0xff] }
  0xc4   : > { %1444 = vmatpush1.bf16.msra.mxu0 %v7424_v23  ;;  %v7573_v23 = vld [vmem:[%s10181_s4 + $0x2a0] ss:$8 sps:$4 sm:$0xff]  }
  0xc5   : > { %1445 = vmatprep.subr.bf16.mxu0 %v7429_v26  ;;  %3310 = vmatpush1.bf16.msra.mxu1 %v7573_v23  ;;  %v7963_v26 = vld [vmem:[%s8205_s26 + $0x30] sm:$0xff] }
  0xc6   : > { %v7524_v23 = vld [vmem:[%s10181_s4 + $0x134] ss:$8 sps:$4 sm:$0xff]  }
  0xc7   : > { %1298 = vmatmul.mubr.bf16.gmra.mrb[12].mxu0 %v1137_v28 }
  0xc8   : > { %1446 = vmatpush1.bf16.msra.mxu0 %v7427_v27  ;;  %1465 = vmatprep.mubr.bf16.mxu0 %v8047_v2  ;;  %v7964_v27 = vld [vmem:[%s8205_s26 + $0x40] sm:$0xff] }
  0xc9   : > { %1447 = vmatprep.subr.bf16.mxu0 %v7432_v29  ;;  %v1532_v28 = vpack.c.bf16 %v7964_v27, %v7963_v26  ;;  %v7463_v29 = vld [vmem:[%s10178_s1 + $0x3a0] ss:$8 sps:$4 sm:$0xff]   ;;  %v7979_v26 = vld [vmem:[%s8205_s26 + $0x51] sm:$0xff] }
  0xca   : > { %v7980_v27 = vld [vmem:[%s8205_s26 + $0x61] sm:$0xff] }
  0xcc   : > { %1448 = vmatpush1.bf16.msra.mxu0 %v7430_v30  ;;  %v7468_v30 = vld [vmem:[%s10178_s1 + $0x3b4] ss:$8 sps:$4 sm:$0xff]  }
  0xcd   : > { %1632 = vmatprep.subr.bf16.mxu0 %v7435_v35  ;;  %v1533_v35 = vpack.c.bf16 %v7966_v34, %v7965_v33  ;;  %v7542_v33 = vld [vmem:[%s10181_s4 + $0x164] ss:$8 sps:$4 sm:$0xff]   ;;  %v7981_v34 = vld [vmem:[%s8205_s26 + $0x71] sm:$0xff] }
  0xcf   : > { %1466 = vmatmul.mubr.bf16.vlgmr.msra.gmra.mrb[0].mxu0 %v1332_v38  ;;  %v7472_v38 = vld [vmem:[%s10178_s1 + $0x3d0] ss:$8 sps:$4 sm:$0xff]  }
  0xd0   : > { %1633 = vmatpush1.bf16.msra.mxu0 %v7433_v40  ;;  %1475 = vmatprep.mubr.bf16.mxu0 %v8047_v2  ;;  %v7477_v40 = vld [vmem:[%s10178_s1 + $0x3e4] ss:$8 sps:$4 sm:$0xff]  }
  0xd1   : > { %1634 = vmatprep.subr.bf16.mxu0 %v7438_v41  ;;  %v7967_v41 = vld [vmem:[%s8205_s26 + $0x70] sm:$0xff] }
  0xd2   : > { %v1534_v42 = vpack.c.bf16 %v6302_v39, %v7967_v41  ;;  %v7554_v39 = vld [vmem:[%s10181_s4 + $0x184] ss:$8 sps:$4 sm:$0xff]   ;;  %v7560_v41 = vld [vmem:[%s10181_s4 + $0x194] ss:$8 sps:$4 sm:$0xff]  }
  0xd4   : > { %1635 = vmatpush1.bf16.msra.mxu0 %v7436_v44  ;;  %v7480_v44 = vld [vmem:[%s10178_s1 + $0x3f4] ss:$8 sps:$4 sm:$0xff]  }
  0xd5   : > { %1636 = vmatprep.subr.bf16.mxu0 %v7441_v47  ;;  %v7968_v47 = vld [vmem:[%s8205_s26 + $0xa0] sm:$0xff] }
  0xd7   : > { %1476 = vmatmul.mubr.bf16.gmra.mrb[4].mxu0 %v1333_v49  ;;  %v1730_v49 = vpack.c.bf16 %v7969_v48, %v7968_v47  ;;  %v7578_v47 = vld [vmem:[%s10181_s4 + $0x1c4] ss:$8 sps:$4 sm:$0xff]   ;;  %v7576_v48 = vld [vmem:[%s10181_s4 + $0x1c0] ss:$8 sps:$4 sm:$0xff]  }
  0xd8   : > { %1637 = vmatpush1.bf16.msra.mxu0 %v7439_v51  ;;  %1485 = vmatprep.mubr.bf16.mxu0 %v8047_v2  ;;  %v7486_v51 = vld [vmem:[%s10178_s1 + $0x414] ss:$8 sps:$4 sm:$0xff]  }
  0xd9   : > { %1638 = vmatprep.subr.bf16.mxu0 %v7444_v52  ;;  %v7484_v52 = vld [vmem:[%s10178_s1 + $0x410] ss:$8 sps:$4 sm:$0xff]  }
  0xdc   : > { %1639 = vmatpush1.bf16.msra.mxu0 %v7442_v55  ;;  %v7971_v55 = vld [vmem:[%s8205_s26 + $0xd0] sm:$0xff] }
  0xdd   : > { %1640 = vmatprep.subr.bf16.mxu0 %v7447_v58  ;;  %v1731_v56 = vpack.c.bf16 %v7971_v55, %v7970_v54  ;;  %v7492_v58 = vld [vmem:[%s10178_s1 + $0x434] ss:$8 sps:$4 sm:$0xff]   ;;  %v7588_v54 = vld [vmem:[%s10181_s4 + $0x1e0] ss:$8 sps:$4 sm:$0xff]   ;;  %v7580_v55 = vld [vmem:[%s10181_s4 + $0x2c4] ss:$8 sps:$4 sm:$0xff]  }
  0xdf   : > { %1486 = vmatmul.mubr.bf16.gmra.mrb[8].mxu0 %v1334_v62  ;;  %v7973_v62 = vld [vmem:[%s8205_s26 + $0xf0] sm:$0xff] }
  0xe0   : > { %1641 = vmatpush1.bf16.msra.mxu0 %v7445_v61  ;;  %1495 = vmatprep.mubr.bf16.mxu0 %v8047_v2  ;;  %v7972_v61 = vld [vmem:[%s8205_s26 + $0xe0] sm:$0xff] }
  0xe1   : > { %1642 = vmatprep.subr.bf16.mxu0 %v7450_v63  ;;  %v1732_v63 = vpack.c.bf16 %v7973_v62, %v7972_v61  ;;  %v7591_v61 = vld [vmem:[%s10181_s4 + $0x2d0] ss:$8 sps:$4 sm:$0xff]   ;;  %v7602_v62 = vld [vmem:[%s10181_s4 + $0x4] ss:$8 sps:$4 sm:$0xff]  }
  0xe4   : > { %1643 = vmatpush1.bf16.msra.mxu0 %v7448_v3  ;;  %v7496_v3 = vld [vmem:[%s10178_s1 + $0x450] ss:$8 sps:$4 sm:$0xff]  }
  0xe5   : > { %1644 = vmatprep.subr.bf16.mxu0 %v7453_v6  ;;  %v7974_v6 = vld [vmem:[%s8205_s26 + $0x100] sm:$0xff] }
  0xe6   : > { %v1733_v7 = vpack.c.bf16 %v6342_v4, %v7974_v6  ;;  %v7606_v4 = vld [vmem:[%s10181_s4 + $0x304] ss:$8 sps:$4 sm:$0xff]  }
  0xe7   : > { %1496 = vmatmul.mubr.bf16.gmra.mrb[12].mxu0 %v1335_v10  ;;  %v7502_v10 = vld [vmem:[%s10178_s1 + $0x470] ss:$8 sps:$4 sm:$0xff]  }
  0xe8   : > { %1645 = vmatpush1.bf16.msra.mxu0 %v7451_v9  ;;  %1664 = vmatprep.mubr.bf16.mxu0 %v8047_v2  ;;  %v7504_v9 = vld [vmem:[%s10178_s1 + $0x474] ss:$8 sps:$4 sm:$0xff]  }
  0xe9   : > { %1646 = vmatprep.subr.bf16.mxu0 %v7456_v11  ;;  %v7507_v11 = vld [vmem:[%s10181_s4 + $0x104] ss:$8 sps:$4 sm:$0xff]  }
  0xec   : > { %1647 = vmatpush1.bf16.msra.mxu0 %v7454_v14  ;;  %v1928_v14 = vpack.c.bf16 %v7976_v13, %v7975_v12 }
  0xed   : > { %1831 = vmatprep.subr.bf16.mxu0 %v7459_v15  ;;  %v7505_v15 = vld [vmem:[%s10181_s4 + $0x100] ss:$8 sps:$4 sm:$0xff]  }
  0xef   : > { %1665 = vmatmul.mubr.bf16.vlgmr.msra.gmra.mrb[0].mxu0 %v1531_v21  ;;  %v1929_v21 = vpack.c.bf16 %v7978_v20, %v7977_v19 }
  0xf0   : > { %1832 = vmatpush1.bf16.msra.mxu0 %v7457_v18  ;;  %1674 = vmatprep.mubr.bf16.mxu0 %v8047_v2  ;;  %v7518_v18 = vld [vmem:[%s10181_s4 + $0x124] ss:$8 sps:$4 sm:$0xff]  }
  0xf1   : > { %1833 = vmatprep.subr.bf16.mxu0 %v7462_v22  ;;  %v7516_v22 = vld [vmem:[%s10181_s4 + $0x120] ss:$8 sps:$4 sm:$0xff]  }
  0xf4   : > { %1834 = vmatpush1.bf16.msra.mxu0 %v7460_v24  ;;  %v7522_v24 = vld [vmem:[%s10181_s4 + $0x130] ss:$8 sps:$4 sm:$0xff]  }
  0xf5   : > { %1835 = vmatprep.subr.bf16.mxu0 %v7465_v25  ;;  %v7530_v25 = vld [vmem:[%s10181_s4 + $0x144] ss:$8 sps:$4 sm:$0xff]  }
  0xf7   : > { %1675 = vmatmul.mubr.bf16.gmra.mrb[4].mxu0 %v1532_v28  ;;  %v1930_v28 = vpack.c.bf16 %v7980_v27, %v7979_v26 }
  0xf8   : > { %1836 = vmatpush1.bf16.msra.mxu0 %v7463_v29  ;;  %1684 = vmatprep.mubr.bf16.mxu0 %v8047_v2  ;;  %v7528_v29 = vld [vmem:[%s10181_s4 + $0x140] ss:$8 sps:$4 sm:$0xff]  }
  0xf9   : > { %1837 = vmatprep.subr.bf16.mxu0 %v7468_v30  ;;  %v7536_v30 = vld [vmem:[%s10181_s4 + $0x154] ss:$8 sps:$4 sm:$0xff]  }
  0xfc   : > { %1838 = vmatpush1.bf16.msra.mxu0 %v7466_v31  ;;  %v6382_v31 = vld [vmem:[%s8205_s26 + $0x81] sm:$0xff] }
  0xfd   : > { %1839 = vmatprep.subr.bf16.mxu0 %v7471_v32  ;;  %v7534_v32 = vld [vmem:[%s10181_s4 + $0x150] ss:$8 sps:$4 sm:$0xff]  }
  0xff   : > { %1685 = vmatmul.mubr.bf16.gmra.mrb[8].mxu0 %v1533_v35  ;;  %v1931_v35 = vpack.c.bf16 %v6382_v31, %v7981_v34  ;;  %v7609_v31 = vld [vmem:[%s10181_s4 + $0x14] ss:$8 sps:$4 sm:$0xff]  }
 0x100   : > { %1840 = vmatpush1.bf16.msra.mxu0 %v7469_v36  ;;  %1694 = vmatprep.mubr.bf16.mxu0 %v8047_v2  ;;  %v7540_v36 = vld [vmem:[%s10181_s4 + $0x160] ss:$8 sps:$4 sm:$0xff]  }
 0x101   : > { %1841 = vmatprep.subr.bf16.mxu0 %v7474_v37  ;;  %v7548_v37 = vld [vmem:[%s10181_s4 + $0x174] ss:$8 sps:$4 sm:$0xff]  }
 0x104   : > { %1842 = vmatpush1.bf16.msra.mxu0 %v7472_v38  ;;  %v7546_v38 = vld [vmem:[%s10181_s4 + $0x170] ss:$8 sps:$4 sm:$0xff]  }
 0x105   : > { %1843 = vmatprep.subr.bf16.mxu0 %v7477_v40  ;;  %v7552_v40 = vld [vmem:[%s10181_s4 + $0x180] ss:$8 sps:$4 sm:$0xff]  }
 0x107   : > { %1695 = vmatmul.mubr.bf16.gmra.mrb[12].mxu0 %v1534_v42  ;;  %v7558_v42 = vld [vmem:[%s10181_s4 + $0x190] ss:$8 sps:$4 sm:$0xff]  }
 0x108   : > { %1844 = vmatpush1.bf16.msra.mxu0 %v7475_v43  ;;  %1863 = vmatprep.mubr.bf16.mxu0 %v8047_v2  ;;  %v7566_v43 = vld [vmem:[%s10181_s4 + $0x1a4] ss:$8 sps:$4 sm:$0xff]  }
 0x109   : > { %1845 = vmatprep.subr.bf16.mxu0 %v7480_v44  ;;  %v7564_v44 = vld [vmem:[%s10181_s4 + $0x1a0] ss:$8 sps:$4 sm:$0xff]  }
 0x10c   : > { %1846 = vmatpush1.bf16.msra.mxu0 %v7478_v45  ;;  %v7572_v45 = vld [vmem:[%s10181_s4 + $0x1b4] ss:$8 sps:$4 sm:$0xff]  }
 0x10d   : > { %2029 = vmatprep.subr.bf16.mxu0 %v7483_v46  ;;  %v7570_v46 = vld [vmem:[%s10181_s4 + $0x1b0] ss:$8 sps:$4 sm:$0xff]  }
 0x10f   : > { %1864 = vmatmul.mubr.bf16.vlgmr.msra.gmra.mrb[0].mxu0 %v1730_v49  ;;  %v7584_v49 = vld [vmem:[%s10181_s4 + $0x1d4] ss:$8 sps:$4 sm:$0xff]  }
 0x110   : > { %2030 = vmatpush1.bf16.msra.mxu0 %v7481_v50  ;;  %1873 = vmatprep.mubr.bf16.mxu0 %v8047_v2  ;;  %v7582_v50 = vld [vmem:[%s10181_s4 + $0x1d0] ss:$8 sps:$4 sm:$0xff]  }
 0x111   : > { %2031 = vmatprep.subr.bf16.mxu0 %v7486_v51  ;;  %v7574_v51 = vld [vmem:[%s10181_s4 + $0x2b4] ss:$8 sps:$4 sm:$0xff]  }
 0x112   : > { %3311 = vmatprep.subr.bf16.mxu1 %v7574_v51 }
 0x114   : > { %2032 = vmatpush1.bf16.msra.mxu0 %v7484_v52  ;;  %v7579_v52 = vld [vmem:[%s10181_s4 + $0x2b0] ss:$8 sps:$4 sm:$0xff]  }
 0x115   : > { %2033 = vmatprep.subr.bf16.mxu0 %v7489_v53  ;;  %v7590_v53 = vld [vmem:[%s10181_s4 + $0x1e4] ss:$8 sps:$4 sm:$0xff]   ;;  %3312 = vmatpush1.bf16.msra.mxu1 %v7579_v52 }
 0x116   : > { %3313 = vmatprep.subr.bf16.mxu1 %v7580_v55 }
 0x117   : > { %1874 = vmatmul.mubr.bf16.gmra.mrb[4].mxu0 %v1731_v56  ;;  %v7585_v56 = vld [vmem:[%s10181_s4 + $0x2c0] ss:$8 sps:$4 sm:$0xff]  }
 0x118   : > { %2034 = vmatpush1.bf16.msra.mxu0 %v7487_v57  ;;  %1883 = vmatprep.mubr.bf16.mxu0 %v8047_v2  ;;  %v7596_v57 = vld [vmem:[%s10181_s4 + $0x1f4] ss:$8 sps:$4 sm:$0xff]  }
 0x119   : > { %2035 = vmatprep.subr.bf16.mxu0 %v7492_v58  ;;  %v7594_v58 = vld [vmem:[%s10181_s4 + $0x1f0] ss:$8 sps:$4 sm:$0xff]   ;;  %3314 = vmatpush1.bf16.msra.mxu1 %v7585_v56 }
 0x11c   : > { %2036 = vmatpush1.bf16.msra.mxu0 %v7490_v59  ;;  %v8048_v59 = vmov 0.0  }
 0x11d   : > { %2037 = vmatprep.subr.bf16.mxu0 %v7495_v60  ;;  %2190 = vst [vmem:[#allocation2] sm:$0xff] %v8048_v59  ;;  %2191 = vst [vmem:[#allocation2 + $0x8] sm:$0xff] %v8048_v59  ;;  %v7586_v60 = vld [vmem:[%s10181_s4 + $0x2d4] ss:$8 sps:$4 sm:$0xff]  }
 0x11e   : > { %2192 = vst [vmem:[#allocation2 + $0x10] sm:$0xff] %v8048_v59  ;;  %2193 = vst [vmem:[#allocation2 + $0x18] sm:$0xff] %v8048_v59  ;;  %3315 = vmatprep.subr.bf16.mxu1 %v7586_v60 }
 0x11f   : > { %1884 = vmatmul.mubr.bf16.gmra.mrb[8].mxu0 %v1732_v63  ;;  %2194 = vst [vmem:[#allocation2 + $0x20] sm:$0xff] %v8048_v59  ;;  %2195 = vst [vmem:[#allocation2 + $0x28] sm:$0xff] %v8048_v59  ;;  %3316 = vmatpush1.bf16.msra.mxu1 %v7591_v61  ;;  %v7592_v63 = vld [vmem:[%s10181_s4 + $0x2e4] ss:$8 sps:$4 sm:$0xff]  }
 0x120   : > { %2038 = vmatpush1.bf16.msra.mxu0 %v7493_v0  ;;  %1893 = vmatprep.mubr.bf16.mxu0 %v8047_v2  ;;  %2196 = vst [vmem:[#allocation2 + $0x30] sm:$0xff] %v8048_v59  ;;  %2197 = vst [vmem:[#allocation2 + $0x38] sm:$0xff] %v8048_v59  ;;  %v7597_v0 = vld [vmem:[%s10181_s4 + $0x2e0] ss:$8 sps:$4 sm:$0xff]  }
 0x121   : > { %2039 = vmatprep.subr.bf16.mxu0 %v7498_v1  ;;  %2200 = vst [vmem:[#allocation2 + $0x50] sm:$0xff] %v8048_v59  ;;  %2201 = vst [vmem:[#allocation2 + $0x58] sm:$0xff] %v8048_v59  ;;  %3317 = vmatprep.subr.bf16.mxu1 %v7592_v63  ;;  %v7598_v1 = vld [vmem:[%s10181_s4 + $0x2f4] ss:$8 sps:$4 sm:$0xff]  }
 0x122   : > { %2202 = vst [vmem:[#allocation2 + $0x60] sm:$0xff] %v8048_v59  ;;  %2203 = vst [vmem:[#allocation2 + $0x68] sm:$0xff] %v8048_v59 }
 0x123   : > { %2206 = vst [vmem:[#allocation2 + $0x80] sm:$0xff] %v8048_v59  ;;  %2207 = vst [vmem:[#allocation2 + $0x88] sm:$0xff] %v8048_v59  ;;  %3318 = vmatpush1.bf16.msra.mxu1 %v7597_v0 }
 0x124   : > { %2040 = vmatpush1.bf16.msra.mxu0 %v7496_v3  ;;  %2208 = vst [vmem:[#allocation2 + $0x90] sm:$0xff] %v8048_v59  ;;  %2209 = vst [vmem:[#allocation2 + $0x98] sm:$0xff] %v8048_v59  ;;  %v7603_v3 = vld [vmem:[%s10181_s4 + $0x2f0] ss:$8 sps:$4 sm:$0xff]   ;;  %3319 = vmatprep.subr.bf16.mxu1 %v7598_v1  ;;  %v7613_v1 = vld [vmem:[%s10181_s4 + $0x20] ss:$8 sps:$4 sm:$0xff]  }
 0x125   : > { %2041 = vmatprep.subr.bf16.mxu0 %v7501_v5  ;;  %2212 = vst [vmem:[#allocation2 + $0xb0] sm:$0xff] %v8048_v59  ;;  %2213 = vst [vmem:[#allocation2 + $0xb8] sm:$0xff] %v8048_v59  ;;  %v2120_v5 = vlaneseq }
 0x126   : > { %2214 = vst [vmem:[#allocation2 + $0xc0] sm:$0xff] %v8048_v59  ;;  %2215 = vst [vmem:[#allocation2 + $0xc8] sm:$0xff] %v8048_v59 }
 0x127   : > { %1894 = vmatmul.mubr.bf16.gmra.mrb[12].mxu0 %v1733_v7  ;;  %2218 = vst [vmem:[#allocation2 + $0xe0] sm:$0xff] %v8048_v59  ;;  %2219 = vst [vmem:[#allocation2 + $0xe8] sm:$0xff] %v8048_v59  ;;  %3320 = vmatpush1.bf16.msra.mxu1 %v7603_v3  ;;  %v2121_v6 = vshrl.u32 %v2120_v5, 7 }
 0x128   : > { %2042 = vmatpush1.bf16.msra.mxu0 %v7499_v8  ;;  %2061 = vmatprep.mubr.bf16.mxu0 %v8047_v2  ;;  %2220 = vst [vmem:[#allocation2 + $0xf0] sm:$0xff] %v8048_v59  ;;  %2221 = vst [vmem:[#allocation2 + $0xf8] sm:$0xff] %v8048_v59  ;;  %v2118_v8 = vld [vmem:[%s10179_s2] sm:$0x3] }
 0x129   : > { %2043 = vmatprep.subr.bf16.mxu0 %v7504_v9  ;;  %2224 = vst [vmem:[#allocation2 + $0x110] sm:$0xff] %v8048_v59  ;;  %2225 = vst [vmem:[#allocation2 + $0x118] sm:$0xff] %v8048_v59  ;;  %3707 = vmatprep.subr.bf16.mxu1 %v7606_v4  ;;  %v8943_v7 = vsub.s32 0, %v2121_v6  ;;  %v8948_v9 = vsub.s32 1, %v2121_v6 }
 0x12a   : > { %2226 = vst [vmem:[#allocation2 + $0x120] sm:$0xff] %v8048_v59  ;;  %2227 = vst [vmem:[#allocation2 + $0x128] sm:$0xff] %v8048_v59  ;;  %v8996_v60 = vld [vmem:[#allocation2 + $0x88] sm:$0x1]  ;;  %v9004_v3 = vld [vmem:[#allocation2 + $0x80] sm:$0x1] }
 0x12b   : > { %2230 = vst [vmem:[#allocation2 + $0x140] sm:$0xff] %v8048_v59  ;;  %2231 = vst [vmem:[#allocation2 + $0x148] sm:$0xff] %v8048_v59  ;;  %v8957_v12 = vrot.slane %v2118_v8, %v8948_v9 }
 0x12c   : > { %2044 = vmatpush1.bf16.msra.mxu0 %v7502_v10  ;;  %2232 = vst [vmem:[#allocation2 + $0x150] sm:$0xff] %v8048_v59  ;;  %2233 = vst [vmem:[#allocation2 + $0x158] sm:$0xff] %v8048_v59  ;;  %v2146_v10 = vld [vmem:[%s10180_s3] sm:$0x3] }
 0x12d   : > { %2653 = vmatprep.subr.bf16.mxu0 %v7507_v11  ;;  %2236 = vst [vmem:[#allocation2 + $0x170] sm:$0xff] %v8048_v59  ;;  %2237 = vst [vmem:[#allocation2 + $0x178] sm:$0xff] %v8048_v59  ;;  %v8954_v11 = vrot.slane %v2118_v8, %v8943_v7  ;;  %v8960_v13 = vrot.slane %v2146_v10, %v8943_v7 }
 0x12e   : > { %2238 = vst [vmem:[#allocation2 + $0x180] sm:$0xff] %v8048_v59  ;;  %2239 = vst [vmem:[#allocation2 + $0x188] sm:$0xff] %v8048_v59 }
 0x12f   : > { %2062 = vmatmul.mubr.bf16.vlgmr.msra.gmra.mrb[0].mxu0 %v1928_v14  ;;  %2242 = vst [vmem:[#allocation2 + $0x1a0] sm:$0xff] %v8048_v59  ;;  %2243 = vst [vmem:[#allocation2 + $0x1a8] sm:$0xff] %v8048_v59 }
 0x130   : > { %2071 = vmatprep.mubr.bf16.mxu0 %v8047_v2  ;;  %2654 = vmatpush1.bf16.msra.mxu0 %v7505_v15  ;;  %2244 = vst [vmem:[#allocation2 + $0x1b0] sm:$0xff] %v8048_v59  ;;  %2245 = vst [vmem:[#allocation2 + $0x1b8] sm:$0xff] %v8048_v59  ;;  %v8963_v15 = vrot.slane %v2146_v10, %v8948_v9 }
 0x131   : > { %2655 = vmatprep.subr.bf16.mxu0 %v7512_v16  ;;  %2246 = vst [vmem:[#allocation2 + $0x1c0] sm:$0xff] %v8048_v59  ;;  %2247 = vst [vmem:[#allocation2 + $0x1c8] sm:$0xff] %v8048_v59 }
 0x132   : > { %2248 = vst [vmem:[#allocation2 + $0x1d0] sm:$0xff] %v8048_v59  ;;  %2249 = vst [vmem:[#allocation2 + $0x1d8] sm:$0xff] %v8048_v59 }
 0x134   : > { %2656 = vmatpush1.bf16.msra.mxu0 %v7510_v17 }
 0x135   : > { %2657 = vmatprep.subr.bf16.mxu0 %v7518_v18 }
 0x137   : > { %2072 = vmatmul.mubr.bf16.gmra.mrb[4].mxu0 %v1929_v21 }
 0x138   : > { %2081 = vmatprep.mubr.bf16.mxu0 %v8047_v2  ;;  %2658 = vmatpush1.bf16.msra.mxu0 %v7516_v22 }
 0x139   : > { %2659 = vmatprep.subr.bf16.mxu0 %v7524_v23 }
 0x13c   : > { %2660 = vmatpush1.bf16.msra.mxu0 %v7522_v24 }
 0x13d   : > { %2661 = vmatprep.subr.bf16.mxu0 %v7530_v25 }
 0x13f   : > { %2082 = vmatmul.mubr.bf16.gmra.mrb[8].mxu0 %v1930_v28 }
 0x140   : > { %2091 = vmatprep.mubr.bf16.mxu0 %v8047_v2  ;;  %2662 = vmatpush1.bf16.msra.mxu0 %v7528_v29 }
 0x141   : > { %2663 = vmatprep.subr.bf16.mxu0 %v7536_v30  ;;  %v7600_v30 = vld [vmem:[%s10181_s4] ss:$8 sps:$4 sm:$0xff]  }
 0x144   : > { %2664 = vmatpush1.bf16.msra.mxu0 %v7534_v32 }
 0x145   : > { %2665 = vmatprep.subr.bf16.mxu0 %v7542_v33 }
 0x147   : > { %2092 = vmatmul.mubr.bf16.gmra.mrb[12].mxu0 %v1931_v35  ;;  %v2960_v35 = vld [vmem:[#allocation2 + $0x18] sm:$0xfe] }
 0x148   : > { %2666 = vmatpush1.bf16.msra.mxu0 %v7540_v36  ;;  %v2962_v36 = vld [vmem:[#allocation2 + $0x28] sm:$0x1] }
 0x149   : > { %2667 = vmatprep.subr.bf16.mxu0 %v7548_v37 }
 0x14c   : > { %2668 = vmatpush1.bf16.msra.mxu0 %v7546_v38 }
 0x14d   : > { %2669 = vmatprep.subr.bf16.mxu0 %v7554_v39 }
 0x150   : > { %2670 = vmatpush1.bf16.msra.mxu0 %v7552_v40  ;;  %v2959_v40 = vld [vmem:[#allocation2 + $0x10] sm:$0xfe] }
 0x151   : > { %2671 = vmatprep.subr.bf16.mxu0 %v7560_v41  ;;  %v2961_v41 = vld [vmem:[#allocation2 + $0x20] sm:$0x1] }
 0x152   : > { %v3025_v55 = vrot.slane %v2961_v41, 1 }
 0x154   : > { %2672 = vmatpush1.bf16.msra.mxu0 %v7558_v42 }
 0x155   : > { %2673 = vmatprep.subr.bf16.mxu0 %v7566_v43 }
 0x158   : > { %2674 = vmatpush1.bf16.msra.mxu0 %v7564_v44  ;;  %v2965_v44 = vld [vmem:[#allocation2 + $0x50] sm:$0x1] }
 0x159   : > { %2675 = vmatprep.subr.bf16.mxu0 %v7572_v45 }
 0x15c   : > { %2676 = vmatpush1.bf16.msra.mxu0 %v7570_v46 }
 0x15d   : > { %2677 = vmatprep.subr.bf16.mxu0 %v7578_v47 }
 0x160   : > { %2678 = vmatpush1.bf16.msra.mxu0 %v7576_v48  ;;  %v2966_v48 = vld [vmem:[#allocation2 + $0x58] sm:$0x1] }
 0x161   : > { %2679 = vmatprep.subr.bf16.mxu0 %v7584_v49  ;;  %v3027_v49 = vrot.slane %v2960_v35, 1  ;;  %v3034_v63 = vrot.slane %v2966_v48, 1  ;;  %v9047_v48 = vld [vmem:[#allocation2 + $0x38] sm:$0x80] }
 0x164   : > { %2680 = vmatpush1.bf16.msra.mxu0 %v7582_v50  ;;  %v3028_v50 = vrot.slane %v2962_v36, 1 }
 0x165   : > { %2681 = vmatprep.subr.bf16.mxu0 %v7590_v53  ;;  %v7607_v53 = vld [vmem:[%s10181_s4 + $0x10] ss:$8 sps:$4 sm:$0xff]  }
 0x166   : > { %v3029_v6 = vsel %vm3023_vm0, %v3027_v49, %v3028_v50 }
 0x168   : > { %2682 = vmatpush1.bf16.msra.mxu0 %v7588_v54  ;;  %v3024_v54 = vrot.slane %v2959_v40, 1 }
 0x169   : > { %2683 = vmatprep.subr.bf16.mxu0 %v7596_v57 }
 0x16c   : > { %2684 = vmatpush1.bf16.msra.mxu0 %v7594_v58  ;;  %v3031_v58 = vrot.slane %v2965_v44, 1 }
 0x16d   : > { %2886 = vmatprep.subr.bf16.mxu0 %v7602_v62 }
 0x202   : > { %v2063_v14 = vpop.f32.mrb[0].mxu0 }
 0x203   : > { %v2130_v16 = vmul.f32 %v8954_v11, %v2063_v14  ;;  %v2065_v17 = vpop.f32.mrb[1].mxu0  ;;  %v9008_v14 = vld [vmem:[#allocation2 + $0x8] sm:$0x80] }
 0x204   : > { %v2131_v18 = vmul.f32 %v8957_v12, %v2065_v17  ;;  %v2067_v19 = vpop.f32.mrb[2].mxu0  ;;  %v2335_v35 = vrot.slane %v9008_v14, 7 }
 0x205   : > { %v2158_v20 = vadd.f32 %v8960_v13, %v2130_v16  ;;  %v2132_v21 = vmul.f32 %v8954_v11, %v2067_v19  ;;  %v2069_v22 = vpop.f32.mrb[3].mxu0 }
 0x206   : > { %v2159_v23 = vadd.f32 %v8963_v15, %v2131_v18  ;;  %v2133_v24 = vmul.f32 %v8957_v12, %v2069_v22 }
 0x207   : > { %v2174_v25 = vmax.f32 %v2158_v20, 0.0  ;;  %v2160_v26 = vadd.f32 %v8960_v13, %v2132_v21  ;;  %v3040_v20 = vrot.slane %v8996_v60, 1  ;;  %v9012_v21 = vld [vmem:[#allocation2 + $0x18] sm:$0x7f] }
 0x208   : > { %v2175_v27 = vmax.f32 %v2159_v23, 0.0  ;;  %v2161_v28 = vadd.f32 %v8963_v15, %v2133_v24  ;;  %v7604_v24 = vld [vmem:[%s10181_s4 + $0x300] ss:$8 sps:$4 sm:$0xff]  }
 0x209   : > { %2251 = vst [vmem:[#allocation2 + $0x40] sm:$0xff] %v2174_v25  ;;  %v2176_v29 = vmax.f32 %v2160_v26, 0.0  ;;  %v2452_v39 = vpack.c.bf16 %v2174_v25, %v8048_v59  ;;  %v3026_v25 = vsel %vm3023_vm0, %v3024_v54, %v3025_v55  ;;  %v9059_v54 = vld [vmem:[#allocation2 + $0xe8] sm:$0x1] }
 0x20a   : > { %2252 = vst [vmem:[#allocation2 + $0x48] sm:$0xff] %v2175_v27  ;;  %v2177_v32 = vmax.f32 %v2161_v28, 0.0  ;;  %v2073_v33 = vpop.f32.mrb[4].mxu0  ;;  %v2453_v34 = vpack.c.bf16 %v2175_v27, %v8048_v59  ;;  %v7615_v59 = vld [vmem:[%s10181_s4 + $0x24] ss:$8 sps:$4 sm:$0xff]  }
 0x20b   : > { %2253 = vst [vmem:[#allocation2 + $0x70] sm:$0xff] %v2176_v29  ;;  %v2134_v37 = vmul.f32 %v8954_v11, %v2073_v33  ;;  %v2075_v38 = vpop.f32.mrb[5].mxu0  ;;  %v7621_v27 = vld [vmem:[%s10181_s4 + $0x34] ss:$8 sps:$4 sm:$0xff]   ;;  %v9025_v28 = vld [vmem:[#allocation2 + $0xb0] sm:$0x1] }
 0x20c   : > { %2254 = vst [vmem:[#allocation2 + $0x78] sm:$0xff] %v2177_v32  ;;  %v2135_v42 = vmul.f32 %v8957_v12, %v2075_v38  ;;  %v2077_v43 = vpop.f32.mrb[6].mxu0  ;;  %2685 = vmatprep.mubr.bf16.mxu0 %v2453_v34  ;;  %v9032_v33 = vld [vmem:[#allocation2 + $0xb8] sm:$0x1] }
 0x20d   : > { %v2162_v45 = vadd.f32 %v8960_v13, %v2134_v37  ;;  %v2136_v46 = vmul.f32 %v8954_v11, %v2077_v43  ;;  %v2079_v47 = vpop.f32.mrb[7].mxu0  ;;  %2686 = vmatmul.mubr.bf16.vlgmr.msra.gmra.mrb[16].mxu0 %v2452_v39  ;;  %v7619_v34 = vld [vmem:[%s10181_s4 + $0x30] ss:$8 sps:$4 sm:$0xff]  }
 0x20e   : > { %v2163_v51 = vadd.f32 %v8963_v15, %v2135_v42  ;;  %v2137_v52 = vmul.f32 %v8957_v12, %v2079_v47  ;;  %2887 = vmatpush1.bf16.msra.mxu0 %v7600_v30  ;;  %v2336_v42 = vrot.slane %v9012_v21, 7  ;;  %v3043_v47 = vrot.slane %v9025_v28, 1 }
 0x20f   : > { %v2178_v56 = vmax.f32 %v2162_v45, 0.0  ;;  %v8991_v57 = vadd.f32 %v8960_v13, %v2136_v46  ;;  %2888 = vmatprep.subr.bf16.mxu0 %v7609_v31  ;;  %v7612_v46 = vld [vmem:[%s10181_s4 + $0x314] ss:$8 sps:$4 sm:$0xff]  }
 0x210   : > { %v2179_v61 = vmax.f32 %v2163_v51, 0.0  ;;  %v8999_v62 = vadd.f32 %v8963_v15, %v2137_v52  ;;  %v2963_v0 = vld [vmem:[#allocation2 + $0x40] sm:$0xfe]  ;;  %v7610_v51 = vld [vmem:[%s10181_s4 + $0x310] ss:$8 sps:$4 sm:$0xff]   ;;  %v3046_v52 = vrot.slane %v9032_v33, 1 }
 0x211   : > { %2255 = vst [vmem:[#allocation2 + $0xa0] sm:$0xff] %v2178_v56  ;;  %v2180_v4 = vmax.f32 %v8991_v57, 0.0  ;;  %v2964_v5 = vld [vmem:[#allocation2 + $0x48] sm:$0xfe]  ;;  %v3030_v8 = vrot.slane %v2963_v0, 1  ;;  %v2454_v10 = vpack.c.bf16 %v2178_v56, %v2176_v29  ;;  %v3037_v29 = vrot.slane %v9004_v3, 1 }
 0x212   : > { %2256 = vst [vmem:[#allocation2 + $0xa8] sm:$0xff] %v2179_v61  ;;  %v2181_v16 = vmax.f32 %v8999_v62, 0.0  ;;  %v2083_v17 = vpop.f32.mrb[8].mxu0  ;;  %v3033_v18 = vrot.slane %v2964_v5, 1  ;;  %2889 = vmatpush1.bf16.msra.mxu0 %v7607_v53  ;;  %v2455_v19 = vpack.c.bf16 %v2179_v61, %v2177_v32  ;;  %v2967_v41 = vld [vmem:[#allocation2 + $0x70] sm:$0xfe] }
 0x213   : > { %2257 = vst [vmem:[#allocation2 + $0xd0] sm:$0xff] %v2180_v4  ;;  %v2138_v22 = vmul.f32 %v8954_v11, %v2083_v17  ;;  %v2085_v23 = vpop.f32.mrb[9].mxu0  ;;  %v3032_v26 = vsel %vm3023_vm0, %v3030_v8, %v3031_v58  ;;  %2890 = vmatprep.subr.bf16.mxu0 %v7615_v59  ;;  %v2968_v40 = vld [vmem:[#allocation2 + $0x78] sm:$0xfe]  ;;  %v7627_v53 = vld [vmem:[%s10181_s4 + $0x44] ss:$8 sps:$4 sm:$0xff]  }
 0x214   : > { %2258 = vst [vmem:[#allocation2 + $0xd8] sm:$0xff] %v2181_v16  ;;  %v2139_v30 = vmul.f32 %v8957_v12, %v2085_v23  ;;  %v2087_v31 = vpop.f32.mrb[10].mxu0  ;;  %v3035_v32 = vsel %vm3023_vm0, %v3033_v18, %v3034_v63  ;;  %2695 = vmatprep.mubr.bf16.mxu0 %v2455_v19  ;;  %v3088_v45 = vpack.c.bf16 %v3032_v26, %v3026_v25  ;;  %v3039_v58 = vrot.slane %v2968_v40, 1  ;;  %v7625_v63 = vld [vmem:[%s10181_s4 + $0x40] ss:$8 sps:$4 sm:$0xff]  }
 0x215   : > { %v2166_v36 = vadd.f32 %v8960_v13, %v2138_v22  ;;  %v2140_v37 = vmul.f32 %v8954_v11, %v2087_v31  ;;  %v2089_v38 = vpop.f32.mrb[11].mxu0  ;;  %v3089_v39 = vpack.c.bf16 %v3035_v32, %v3029_v6  ;;  %2696 = vmatmul.mubr.bf16.gmra.mrb[20].mxu0 %v2454_v10  ;;  %v3036_v61 = vrot.slane %v2967_v41, 1  ;;  %v9070_v8 = vld [vmem:[#allocation2 + $0xe0] sm:$0x1]  ;;  %v7618_v19 = vld [vmem:[%s10181_s4 + $0x324] ss:$8 sps:$4 sm:$0xff]  }
 0x216   : > { %v2167_v43 = vadd.f32 %v8963_v15, %v2139_v30  ;;  %v2141_v44 = vmul.f32 %v8957_v12, %v2089_v38  ;;  %2891 = vmatpush1.bf16.msra.mxu0 %v7613_v1  ;;  %v2341_v23 = vrot.slane %v9047_v48, 7  ;;  %v3052_v26 = vrot.slane %v9059_v54, 1  ;;  %v7633_v62 = vld [vmem:[%s10181_s4 + $0x54] ss:$8 sps:$4 sm:$0xff]   ;;  %v7631_v33 = vld [vmem:[%s10181_s4 + $0x50] ss:$8 sps:$4 sm:$0xff]  }
 0x217   : > { %v2182_v49 = vmax.f32 %v2166_v36, 0.0  ;;  %v9050_v50 = vadd.f32 %v8960_v13, %v2140_v37  ;;  %3321 = vmatprep.mubr.bf16.mxu1 %v3089_v39  ;;  %2892 = vmatprep.subr.bf16.mxu0 %v7621_v27  ;;  %v3041_v30 = vsel %vm3023_vm0, %v3039_v58, %v3040_v20  ;;  %v3038_v32 = vsel %vm3023_vm0, %v3036_v61, %v3037_v29  ;;  %v2982_v39 = vld [vmem:[#allocation2 + $0x118] sm:$0x1]  ;;  %v7628_v48 = vld [vmem:[%s10181_s4 + $0x340] ss:$8 sps:$4 sm:$0xff]  }
 0x218   : > { %v2183_v55 = vmax.f32 %v2167_v43, 0.0  ;;  %v9062_v56 = vadd.f32 %v8963_v15, %v2141_v44  ;;  %3322 = vmatmul.mubr.bf16.vlgmr.msra.gmra.mrb[0].mxu1 %v3088_v45  ;;  %v2971_v59 = vld [vmem:[#allocation2 + $0xa0] sm:$0xfe]  ;;  %v3049_v3 = vrot.slane %v9070_v8, 1  ;;  %v7624_v43 = vld [vmem:[%s10181_s4 + $0x334] ss:$8 sps:$4 sm:$0xff]  }
 0x219   : > { %2259 = vst [vmem:[#allocation2 + $0x100] sm:$0xff] %v2182_v49  ;;  %v2184_v0 = vmax.f32 %v9050_v50, 0.0  ;;  %3708 = vmatpush1.bf16.msra.mxu1 %v7604_v24  ;;  %v2972_v1 = vld [vmem:[#allocation2 + $0xa8] sm:$0xfe]  ;;  %v3042_v5 = vrot.slane %v2971_v59, 1  ;;  %v2456_v6 = vpack.c.bf16 %v2182_v49, %v2180_v4  ;;  %v3058_v59 = vrot.slane %v2982_v39, 1 }
 0x21a   : > { %2260 = vst [vmem:[#allocation2 + $0x108] sm:$0xff] %v2183_v55  ;;  %v2185_v10 = vmax.f32 %v9062_v56, 0.0  ;;  %v2093_v17 = vpop.f32.mrb[12].mxu0  ;;  %3709 = vmatprep.subr.bf16.mxu1 %v7612_v46  ;;  %v3045_v18 = vrot.slane %v2972_v1, 1  ;;  %2893 = vmatpush1.bf16.msra.mxu0 %v7619_v34  ;;  %v2457_v22 = vpack.c.bf16 %v2183_v55, %v2181_v16  ;;  %v7616_v24 = vld [vmem:[%s10181_s4 + $0x320] ss:$8 sps:$4 sm:$0xff]  }
 0x21b   : > { %2261 = vst [vmem:[#allocation2 + $0x130] sm:$0xff] %v2184_v0  ;;  %v2142_v57 = vmul.f32 %v8954_v11, %v2093_v17  ;;  %v2095_v4 = vpop.f32.mrb[13].mxu0  ;;  %v3044_v25 = vsel %vm3023_vm0, %v3042_v5, %v3043_v47  ;;  %2894 = vmatprep.subr.bf16.mxu0 %v7627_v53  ;;  %v2274_v16 = vld [vmem:[#allocation2 + $0x48] sm:$0x7f]  ;;  %v2981_v34 = vld [vmem:[#allocation2 + $0x110] sm:$0x1]  ;;  %v2337_v53 = vsel %vm2331_vm1, %v2335_v35, %v2336_v42 }
 0x21c   : > { %2262 = vst [vmem:[#allocation2 + $0x138] sm:$0xff] %v2185_v10  ;;  %v2143_v27 = vmul.f32 %v8957_v12, %v2095_v4  ;;  %v2097_v28 = vpop.f32.mrb[14].mxu0  ;;  %v3047_v31 = vsel %vm3023_vm0, %v3045_v18, %v3046_v52  ;;  %2705 = vmatprep.mubr.bf16.mxu0 %v2457_v22  ;;  %v2976_v20 = vld [vmem:[#allocation2 + $0xd8] sm:$0xfe]  ;;  %v3090_v41 = vpack.c.bf16 %v3044_v25, %v3038_v32  ;;  %v2342_v44 = vrot.slane %v2274_v16, 7 }
 0x21d   : > { %v2170_v36 = vadd.f32 %v8960_v13, %v2142_v57  ;;  %v2144_v37 = vmul.f32 %v8954_v11, %v2097_v28  ;;  %3710 = vmatpush1.bf16.msra.mxu1 %v7610_v51  ;;  %v2099_v60 = vpop.f32.mrb[15].mxu0  ;;  %v3091_v38 = vpack.c.bf16 %v3047_v31, %v3041_v30  ;;  %2706 = vmatmul.mubr.bf16.gmra.mrb[24].mxu0 %v2456_v6  ;;  %v2975_v11 = vld [vmem:[#allocation2 + $0xd0] sm:$0xfe]  ;;  %v9111_v45 = vld [vmem:[#allocation2 + $0x38] sm:$0x80]  ;;  %v3055_v51 = vrot.slane %v2981_v34, 1 }
 0x21e   : > { %v2171_v29 = vadd.f32 %v8963_v15, %v2143_v27  ;;  %v2145_v40 = vmul.f32 %v8957_v12, %v2099_v60  ;;  %3711 = vmatprep.subr.bf16.mxu1 %v7618_v19  ;;  %2895 = vmatpush1.bf16.msra.mxu0 %v7625_v63  ;;  %v9113_v46 = vld [vmem:[#allocation2 + $0x68] sm:$0x80]  ;;  %v7622_v12 = vld [vmem:[%s10181_s4 + $0x330] ss:$8 sps:$4 sm:$0xff]   ;;  %v3051_v58 = vrot.slane %v2976_v20, 1  ;;  %v3048_v5 = vrot.slane %v2975_v11, 1 }
 0x21f   : > { %v2186_v47 = vmax.f32 %v2170_v36, 0.0  ;;  %v2172_v49 = vadd.f32 %v8960_v13, %v2144_v37  ;;  %3331 = vmatprep.mubr.bf16.mxu1 %v3091_v38  ;;  %2896 = vmatprep.subr.bf16.mxu0 %v7633_v62  ;;  %v7639_v52 = vld [vmem:[%s10181_s4 + $0x64] ss:$8 sps:$4 sm:$0xff]   ;;  %v7637_v8 = vld [vmem:[%s10181_s4 + $0x60] ss:$8 sps:$4 sm:$0xff]   ;;  %v2343_v50 = vsel %vm2331_vm1, %v2341_v23, %v2342_v44  ;;  %v3445_v19 = vrot.slane %v9111_v45, 7 }
 0x220   : > { %v2187_v55 = vmax.f32 %v2171_v29, 0.0  ;;  %v2173_v13 = vadd.f32 %v8963_v15, %v2145_v40  ;;  %3332 = vmatmul.mubr.bf16.gmra.mrb[4].mxu1 %v3090_v41  ;;  %v2979_v61 = vld [vmem:[#allocation2 + $0x100] sm:$0xfe]  ;;  %v2986_v17 = vld [vmem:[#allocation2 + $0x148] sm:$0x1]  ;;  %v3451_v22 = vrot.slane %v9113_v46, 7  ;;  %v3053_v56 = vsel %vm3023_vm0, %v3051_v58, %v3052_v26 }
 0x221   : > { %2263 = vst [vmem:[#allocation2 + $0x160] sm:$0xff] %v2186_v47  ;;  %v2188_v63 = vmax.f32 %v2172_v49, 0.0  ;;  %3712 = vmatpush1.bf16.msra.mxu1 %v7616_v24  ;;  %v2980_v1 = vld [vmem:[#allocation2 + $0x108] sm:$0xfe]  ;;  %v3054_v6 = vrot.slane %v2979_v61, 1  ;;  %v2458_v21 = vpack.c.bf16 %v2186_v47, %v2184_v0  ;;  %v3050_v24 = vsel %vm3023_vm0, %v3048_v5, %v3049_v3 }
 0x222   : > { %2264 = vst [vmem:[#allocation2 + $0x168] sm:$0xff] %v2187_v55  ;;  %v2189_v14 = vmax.f32 %v2173_v13, 0.0  ;;  %3713 = vmatprep.subr.bf16.mxu1 %v7624_v43  ;;  %v3057_v35 = vrot.slane %v2980_v1, 1  ;;  %v7630_v15 = vld [vmem:[%s10181_s4 + $0x344] ss:$8 sps:$4 sm:$0xff]   ;;  %2897 = vmatpush1.bf16.msra.mxu0 %v7631_v33  ;;  %v2459_v42 = vpack.c.bf16 %v2187_v55, %v2185_v10  ;;  %v2397_v54 = vpack.c.bf16 %v2343_v50, %v2337_v53 }
 0x223   : > { %2265 = vst [vmem:[#allocation2 + $0x190] sm:$0xff] %v2188_v63  ;;  %v3056_v0 = vsel %vm3023_vm0, %v3054_v6, %v3055_v51  ;;  %2898 = vmatprep.subr.bf16.mxu0 %v7639_v52  ;;  %v2985_v18 = vld [vmem:[#allocation2 + $0x140] sm:$0x1]  ;;  %v7645_v23 = vld [vmem:[%s10181_s4 + $0x74] ss:$8 sps:$4 sm:$0xff]   ;;  %v3064_v37 = vrot.slane %v2986_v17, 1 }
 0x224   : > { %2266 = vst [vmem:[#allocation2 + $0x198] sm:$0xff] %v2189_v14  ;;  %v3059_v10 = vsel %vm3023_vm0, %v3057_v35, %v3058_v59  ;;  %2715 = vmatprep.mubr.bf16.mxu0 %v2459_v42  ;;  %v2989_v57 = vld [vmem:[#allocation2 + $0x170] sm:$0x1]  ;;  %v2984_v25 = vld [vmem:[#allocation2 + $0x138] sm:$0xfe]  ;;  %v3092_v16 = vpack.c.bf16 %v3056_v0, %v3050_v24  ;;  %v3061_v31 = vrot.slane %v2985_v18, 1 }
 0x225   : > { %3714 = vmatpush1.bf16.msra.mxu1 %v7622_v12  ;;  %v3093_v4 = vpack.c.bf16 %v3059_v10, %v3053_v56  ;;  %2716 = vmatmul.mubr.bf16.gmra.mrb[28].mxu0 %v2458_v21  ;;  %v2990_v26 = vld [vmem:[#allocation2 + $0x178] sm:$0x1]  ;;  %v7636_v27 = vld [vmem:[%s10181_s4 + $0x354] ss:$8 sps:$4 sm:$0xff]   ;;  %v3067_v32 = vrot.slane %v2989_v57, 1  ;;  %v3063_v36 = vrot.slane %v2984_v25, 1 }
 0x226   : > { %v3385_v62 = vld [vmem:[#allocation2 + $0x78] sm:$0x7f]  ;;  %3715 = vmatprep.subr.bf16.mxu1 %v7630_v15  ;;  %2899 = vmatpush1.bf16.msra.mxu0 %v7637_v8  ;;  %v2983_v30 = vld [vmem:[#allocation2 + $0x130] sm:$0xfe]  ;;  %v3381_v33 = vld [vmem:[#allocation2 + $0x48] sm:$0x7f] }
 0x227   : > { %v7643_v28 = vld [vmem:[%s10181_s4 + $0x70] ss:$8 sps:$4 sm:$0xff]   ;;  %3341 = vmatprep.mubr.bf16.mxu1 %v3093_v4  ;;  %2918 = vmatprep.mubr.bf16.mxu0 %v2397_v54  ;;  %v7651_v34 = vld [vmem:[%s10181_s4 + $0x84] ss:$8 sps:$4 sm:$0xff]   ;;  %v3070_v60 = vrot.slane %v2990_v26, 1  ;;  %v3452_v20 = vrot.slane %v3385_v62, 7  ;;  %v3065_v47 = vsel %vm3023_vm0, %v3063_v36, %v3064_v37 }
 0x228   : > { %3342 = vmatmul.mubr.bf16.gmra.mrb[8].mxu1 %v3092_v16  ;;  %2900 = vmatprep.subr.bf16.mxu0 %v7645_v23  ;;  %v2987_v38 = vld [vmem:[#allocation2 + $0x160] sm:$0xfe]  ;;  %v7634_v39 = vld [vmem:[%s10181_s4 + $0x350] ss:$8 sps:$4 sm:$0xff]   ;;  %v3060_v29 = vrot.slane %v2983_v30, 1  ;;  %v3446_v11 = vrot.slane %v3381_v33, 7 }
 0x229   : > { %3716 = vmatpush1.bf16.msra.mxu1 %v7628_v48  ;;  %v2988_v3 = vld [vmem:[#allocation2 + $0x168] sm:$0xfe]  ;;  %v3066_v40 = vrot.slane %v2987_v38, 1  ;;  %v7657_v46 = vld [vmem:[%s10181_s4 + $0x94] ss:$8 sps:$4 sm:$0xff]   ;;  %v3453_v12 = vsel %vm2331_vm1, %v3451_v22, %v3452_v20 }
 0x22a   : > { %3717 = vmatprep.subr.bf16.mxu1 %v7636_v27  ;;  %v3069_v41 = vrot.slane %v2988_v3, 1  ;;  %v7642_v43 = vld [vmem:[%s10181_s4 + $0x364] ss:$8 sps:$4 sm:$0xff]   ;;  %2901 = vmatpush1.bf16.msra.mxu0 %v7643_v28  ;;  %v7649_v44 = vld [vmem:[%s10181_s4 + $0x80] ss:$8 sps:$4 sm:$0xff]   ;;  %v3062_v53 = vsel %vm3023_vm0, %v3060_v29, %v3061_v31  ;;  %v3447_v13 = vsel %vm2331_vm1, %v3445_v19, %v3446_v11 }
 0x22b   : > { %v3068_v45 = vsel %vm3023_vm0, %v3066_v40, %v3067_v32  ;;  %2902 = vmatprep.subr.bf16.mxu0 %v7651_v34  ;;  %v7640_v52 = vld [vmem:[%s10181_s4 + $0x360] ss:$8 sps:$4 sm:$0xff]   ;;  %v7648_v58 = vld [vmem:[%s10181_s4 + $0x374] ss:$8 sps:$4 sm:$0xff]   ;;  %v7655_v59 = vld [vmem:[%s10181_s4 + $0x90] ss:$8 sps:$4 sm:$0xff]   ;;  %v3507_v61 = vpack.c.bf16 %v3453_v12, %v3447_v13 }
 0x22c   : > { %v3071_v49 = vsel %vm3023_vm0, %v3069_v41, %v3070_v60  ;;  %v3094_v55 = vpack.c.bf16 %v3068_v45, %v3062_v53  ;;  %v7663_v63 = vld [vmem:[%s10181_s4 + $0xa4] ss:$8 sps:$4 sm:$0xff]   ;;  %v7646_v1 = vld [vmem:[%s10181_s4 + $0x370] ss:$8 sps:$4 sm:$0xff]   ;;  %v7661_v6 = vld [vmem:[%s10181_s4 + $0xa0] ss:$8 sps:$4 sm:$0xff]  }
 0x22d   : > { %3718 = vmatpush1.bf16.msra.mxu1 %v7634_v39  ;;  %v3095_v51 = vpack.c.bf16 %v3071_v49, %v3065_v47  ;;  %v7654_v5 = vld [vmem:[%s10181_s4 + $0x384] ss:$8 sps:$4 sm:$0xff]   ;;  %v7669_v21 = vld [vmem:[%s10181_s4 + $0xb4] ss:$8 sps:$4 sm:$0xff]   ;;  %v7652_v14 = vld [vmem:[%s10181_s4 + $0x380] ss:$8 sps:$4 sm:$0xff]  }
 0x22e   : > { %3719 = vmatprep.subr.bf16.mxu1 %v7642_v43  ;;  %2903 = vmatpush1.bf16.msra.mxu0 %v7649_v44  ;;  %v7660_v35 = vld [vmem:[%s10181_s4 + $0x394] ss:$8 sps:$4 sm:$0xff]   ;;  %v7667_v15 = vld [vmem:[%s10181_s4 + $0xb0] ss:$8 sps:$4 sm:$0xff]   ;;  %v7675_v42 = vld [vmem:[%s10181_s4 + $0xc4] ss:$8 sps:$4 sm:$0xff]  }
 0x22f   : > { %3351 = vmatprep.mubr.bf16.mxu1 %v3095_v51  ;;  %2904 = vmatprep.subr.bf16.mxu0 %v7657_v46  ;;  %v7658_v8 = vld [vmem:[%s10181_s4 + $0x390] ss:$8 sps:$4 sm:$0xff]   ;;  %v7666_v50 = vld [vmem:[%s10181_s4 + $0x3a4] ss:$8 sps:$4 sm:$0xff]   ;;  %v7673_v0 = vld [vmem:[%s10181_s4 + $0xc0] ss:$8 sps:$4 sm:$0xff]  }
 0x230   : > { %3352 = vmatmul.mubr.bf16.gmra.mrb[12].mxu1 %v3094_v55  ;;  %v7681_v17 = vld [vmem:[%s10181_s4 + $0xd4] ss:$8 sps:$4 sm:$0xff]   ;;  %v7664_v18 = vld [vmem:[%s10181_s4 + $0x3a0] ss:$8 sps:$4 sm:$0xff]   ;;  %v7679_v22 = vld [vmem:[%s10181_s4 + $0xd0] ss:$8 sps:$4 sm:$0xff]  }
 0x231   : > { %3720 = vmatpush1.bf16.msra.mxu1 %v7640_v52  ;;  %3739 = vmatprep.mubr.bf16.mxu1 %v3507_v61  ;;  %v7672_v19 = vld [vmem:[%s10181_s4 + $0x3b4] ss:$8 sps:$4 sm:$0xff]   ;;  %v7687_v56 = vld [vmem:[%s10181_s4 + $0xe4] ss:$8 sps:$4 sm:$0xff]   ;;  %v7670_v57 = vld [vmem:[%s10181_s4 + $0x3b0] ss:$8 sps:$4 sm:$0xff]  }
 0x232   : > { %3721 = vmatprep.subr.bf16.mxu1 %v7648_v58  ;;  %2905 = vmatpush1.bf16.msra.mxu0 %v7655_v59  ;;  %v2267_v10 = vld [vmem:[#allocation2] sm:$0x80]  ;;  %v2269_v48 = vld [vmem:[#allocation2 + $0x10] sm:$0x7f]  ;;  %v2271_v23 = vld [vmem:[#allocation2 + $0x30] sm:$0x80] }
 0x233   : > { %2906 = vmatprep.subr.bf16.mxu0 %v7663_v63  ;;  %v2273_v4 = vld [vmem:[#allocation2 + $0x40] sm:$0x7f]  ;;  %v2280_v24 = vld [vmem:[#allocation2 + $0x98] sm:$0x80]  ;;  %v2282_v26 = vld [vmem:[#allocation2 + $0xa8] sm:$0x7f] }
 0x234   : > { %v7678_v54 = vld [vmem:[%s10181_s4 + $0x3c4] ss:$8 sps:$4 sm:$0xff]   ;;  %v7685_v25 = vld [vmem:[%s10181_s4 + $0xe0] ss:$8 sps:$4 sm:$0xff]   ;;  %v7693_v62 = vld [vmem:[%s10181_s4 + $0xf4] ss:$8 sps:$4 sm:$0xff]  }
 0x235   : > { %3722 = vmatpush1.bf16.msra.mxu1 %v7646_v1  ;;  %v2332_v16 = vrot.slane %v2267_v10, 7  ;;  %v2333_v27 = vrot.slane %v2269_v48, 7  ;;  %v2338_v28 = vrot.slane %v2271_v23, 7  ;;  %v2339_v30 = vrot.slane %v2273_v4, 7  ;;  %v2276_v31 = vld [vmem:[#allocation2 + $0x68] sm:$0x80] }
 0x236   : > { %3723 = vmatprep.subr.bf16.mxu1 %v7654_v5  ;;  %2907 = vmatpush1.bf16.msra.mxu0 %v7661_v6  ;;  %v2278_v32 = vld [vmem:[#allocation2 + $0x78] sm:$0x7f]  ;;  %v7676_v33 = vld [vmem:[%s10181_s4 + $0x3c0] ss:$8 sps:$4 sm:$0xff]   ;;  %v2353_v34 = vrot.slane %v2280_v24, 7  ;;  %v2354_v36 = vrot.slane %v2282_v26, 7 }
 0x237   : > { %2908 = vmatprep.subr.bf16.mxu0 %v7669_v21  ;;  %v9257_v37 = vld [vmem:[#allocation2 + $0x30] sm:$0x80]  ;;  %v7691_v38 = vld [vmem:[%s10181_s4 + $0xf0] ss:$8 sps:$4 sm:$0xff]   ;;  %v2347_v20 = vrot.slane %v2276_v31, 7  ;;  %v2348_v39 = vrot.slane %v2278_v32, 7  ;;  %v2334_v3 = vsel %vm2331_vm1, %v2332_v16, %v2333_v27  ;;  %v2340_v29 = vsel %vm2331_vm1, %v2338_v28, %v2339_v30 }
 0x238   : > { %v7684_v60 = vld [vmem:[%s10181_s4 + $0x3d4] ss:$8 sps:$4 sm:$0xff]   ;;  %v3442_v40 = vrot.slane %v9257_v37, 7  ;;  %v7682_v41 = vld [vmem:[%s10181_s4 + $0x3d0] ss:$8 sps:$4 sm:$0xff]   ;;  %v2355_v43 = vsel %vm2331_vm1, %v2353_v34, %v2354_v36  ;;  %v2396_v51 = vpack.c.bf16 %v2340_v29, %v2334_v3 }
 0x239   : > { %3724 = vmatpush1.bf16.msra.mxu1 %v7652_v14  ;;  %v2275_v11 = vld [vmem:[#allocation2 + $0x60] sm:$0x80]  ;;  %v2279_v44 = vld [vmem:[#allocation2 + $0x90] sm:$0x80]  ;;  %v2281_v45 = vld [vmem:[#allocation2 + $0xa0] sm:$0x7f]  ;;  %v2349_v52 = vsel %vm2331_vm1, %v2347_v20, %v2348_v39 }
 0x23a   : > { %3725 = vmatprep.subr.bf16.mxu1 %v7660_v35  ;;  %2909 = vmatpush1.bf16.msra.mxu0 %v7667_v15  ;;  %v7690_v46 = vld [vmem:[%s10181_s4 + $0x3e4] ss:$8 sps:$4 sm:$0xff]   ;;  %v2288_v49 = vld [vmem:[#allocation2 + $0xf8] sm:$0x80]  ;;  %v2277_v55 = vld [vmem:[#allocation2 + $0x70] sm:$0x7f]  ;;  %v2399_v58 = vpack.c.bf16 %v2355_v43, %v2349_v52 }
 0x23b   : > { %2910 = vmatprep.subr.bf16.mxu0 %v7675_v42  ;;  %v3382_v47 = vld [vmem:[#allocation2 + $0x60] sm:$0x80]  ;;  %v2290_v12 = vld [vmem:[#allocation2 + $0x108] sm:$0x7f]  ;;  %v3391_v53 = vld [vmem:[#allocation2 + $0xc8] sm:$0x80] }
 0x23c   : > { %v2284_v13 = vld [vmem:[#allocation2 + $0xc8] sm:$0x80]  ;;  %v3384_v59 = vld [vmem:[#allocation2 + $0x70] sm:$0x7f]  ;;  %v9276_v61 = vld [vmem:[#allocation2 + $0x98] sm:$0x80] }
 0x23d   : > { %3726 = vmatpush1.bf16.msra.mxu1 %v7658_v8  ;;  %v2350_v63 = vrot.slane %v2279_v44, 7  ;;  %v2351_v1 = vrot.slane %v2281_v45, 7  ;;  %v2286_v5 = vld [vmem:[#allocation2 + $0xd8] sm:$0x7f]  ;;  %v7688_v6 = vld [vmem:[%s10181_s4 + $0x3e0] ss:$8 sps:$4 sm:$0xff]  }
 0x23e   : > { %3727 = vmatprep.subr.bf16.mxu1 %v7666_v50  ;;  %2911 = vmatpush1.bf16.msra.mxu0 %v7673_v0  ;;  %v3393_v21 = vld [vmem:[#allocation2 + $0xd8] sm:$0x7f]  ;;  %v2365_v14 = vrot.slane %v2288_v49, 7  ;;  %v2366_v35 = vrot.slane %v2290_v12, 7  ;;  %v9281_v15 = vld [vmem:[#allocation2 + $0xc0] sm:$0x80] }
 0x23f   : > { %2912 = vmatprep.subr.bf16.mxu0 %v7681_v17  ;;  %v7696_v42 = vld [vmem:[%s10181_s4 + $0x3f4] ss:$8 sps:$4 sm:$0xff]   ;;  %v3380_v8 = vld [vmem:[#allocation2 + $0x40] sm:$0x7f]  ;;  %v2344_v50 = vrot.slane %v2275_v11, 7  ;;  %v2345_v0 = vrot.slane %v2277_v55, 7  ;;  %v2352_v23 = vsel %vm2331_vm1, %v2350_v63, %v2351_v1 }
 0x240   : > { %v3448_v17 = vrot.slane %v3382_v47, 7  ;;  %v3463_v10 = vrot.slane %v3391_v53, 7  ;;  %v3464_v48 = vrot.slane %v3393_v21, 7  ;;  %v2296_v4 = vld [vmem:[#allocation2 + $0x158] sm:$0x80]  ;;  %v2367_v26 = vsel %vm2331_vm1, %v2365_v14, %v2366_v35 }
 0x241   : > { %3728 = vmatpush1.bf16.msra.mxu1 %v7664_v18  ;;  %v3449_v18 = vrot.slane %v3384_v59, 7  ;;  %v7694_v24 = vld [vmem:[%s10181_s4 + $0x3f0] ss:$8 sps:$4 sm:$0xff]   ;;  %v2289_v16 = vld [vmem:[#allocation2 + $0x100] sm:$0x7f]  ;;  %v2346_v30 = vsel %vm2331_vm1, %v2344_v50, %v2345_v0  ;;  %v3460_v31 = vrot.slane %v9281_v15, 7 }
 0x242   : > { %3729 = vmatprep.subr.bf16.mxu1 %v7672_v19  ;;  %2913 = vmatpush1.bf16.msra.mxu0 %v7679_v22  ;;  %v3389_v19 = vld [vmem:[#allocation2 + $0xa8] sm:$0x7f]  ;;  %v2359_v22 = vrot.slane %v2284_v13, 7  ;;  %v2398_v34 = vpack.c.bf16 %v2352_v23, %v2346_v30  ;;  %v2292_v20 = vld [vmem:[#allocation2 + $0x128] sm:$0x80]  ;;  %v3465_v39 = vsel %vm2331_vm1, %v3463_v10, %v3464_v48  ;;  %v2363_v11 = vrot.slane %v2289_v16, 7 }
 0x243   : > { %2914 = vmatprep.subr.bf16.mxu0 %v7687_v56  ;;  %v2360_v56 = vrot.slane %v2286_v5, 7  ;;  %v7699_v27 = vld [vmem:[%s10181_s4 + $0x404] ss:$8 sps:$4 sm:$0xff]   ;;  %v3458_v28 = vrot.slane %v3389_v19, 7  ;;  %v3386_v29 = vld [vmem:[#allocation2 + $0x90] sm:$0x80] }
 0x244   : > { %v2298_v32 = vld [vmem:[#allocation2 + $0x168] sm:$0x7f]  ;;  %v2294_v44 = vld [vmem:[#allocation2 + $0x138] sm:$0x7f]  ;;  %v3395_v47 = vld [vmem:[#allocation2 + $0xf8] sm:$0x80] }
 0x245   : > { %3730 = vmatpush1.bf16.msra.mxu1 %v7670_v57  ;;  %v2287_v57 = vld [vmem:[#allocation2 + $0xf0] sm:$0x80]  ;;  %v2361_v36 = vsel %vm2331_vm1, %v2359_v22, %v2360_v56  ;;  %v3401_v49 = vld [vmem:[#allocation2 + $0x138] sm:$0x7f]  ;;  %v2377_v12 = vrot.slane %v2296_v4, 7  ;;  %v2371_v63 = vrot.slane %v2292_v20, 7 }
 0x246   : > { %3731 = vmatprep.subr.bf16.mxu1 %v7678_v54  ;;  %2915 = vmatpush1.bf16.msra.mxu0 %v7685_v25  ;;  %v3443_v54 = vrot.slane %v3380_v8, 7  ;;  %v3457_v25 = vrot.slane %v9276_v61, 7  ;;  %v2401_v3 = vpack.c.bf16 %v2367_v26, %v2361_v36  ;;  %v2362_v43 = vrot.slane %v2287_v57, 7  ;;  %v7702_v55 = vld [vmem:[%s10181_s4 + $0x414] ss:$8 sps:$4 sm:$0xff]  }
 0x247   : > { %2916 = vmatprep.subr.bf16.mxu0 %v7693_v62  ;;  %v2283_v62 = vld [vmem:[#allocation2 + $0xc0] sm:$0x80]  ;;  %v3388_v37 = vld [vmem:[#allocation2 + $0xa0] sm:$0x7f]  ;;  %v3397_v61 = vld [vmem:[#allocation2 + $0x108] sm:$0x7f] }
 0x248   : > { %v3444_v45 = vsel %vm2331_vm1, %v3442_v40, %v3443_v54  ;;  %v3459_v53 = vsel %vm2331_vm1, %v3457_v25, %v3458_v28  ;;  %v2356_v40 = vrot.slane %v2283_v62, 7  ;;  %v2372_v1 = vrot.slane %v2294_v44, 7  ;;  %v2295_v14 = vld [vmem:[#allocation2 + $0x150] sm:$0x80]  ;;  %v7700_v35 = vld [vmem:[%s10181_s4 + $0x410] ss:$8 sps:$4 sm:$0xff]  }
 0x249   : > { %3732 = vmatpush1.bf16.msra.mxu1 %v7676_v33  ;;  %v3450_v33 = vsel %vm2331_vm1, %v3448_v17, %v3449_v18  ;;  %v2364_v21 = vsel %vm2331_vm1, %v2362_v43, %v2363_v11  ;;  %v3454_v15 = vrot.slane %v3386_v29, 7  ;;  %v2297_v50 = vld [vmem:[#allocation2 + $0x160] sm:$0x7f]  ;;  %v3469_v17 = vrot.slane %v3395_v47, 7  ;;  %v2291_v48 = vld [vmem:[#allocation2 + $0x120] sm:$0x80] }
 0x24a   : > { %3733 = vmatprep.subr.bf16.mxu1 %v7684_v60  ;;  %2917 = vmatpush1.bf16.msra.mxu0 %v7691_v38  ;;  %v3399_v60 = vld [vmem:[#allocation2 + $0x128] sm:$0x80]  ;;  %v2285_v38 = vld [vmem:[#allocation2 + $0xd0] sm:$0x7f]  ;;  %v3506_v52 = vpack.c.bf16 %v3450_v33, %v3444_v45  ;;  %v3470_v18 = vrot.slane %v3397_v61, 7  ;;  %v2373_v10 = vsel %vm2331_vm1, %v2371_v63, %v2372_v1  ;;  %v2374_v26 = vrot.slane %v2295_v14, 7 }
 0x24b   : > { %v2357_v13 = vrot.slane %v2285_v38, 7  ;;  %v3475_v5 = vrot.slane %v3399_v60, 7  ;;  %v7705_v0 = vld [vmem:[%s10181_s4 + $0x424] ss:$8 sps:$4 sm:$0xff]   ;;  %v2293_v23 = vld [vmem:[#allocation2 + $0x130] sm:$0x7f] }
 0x24c   : > { %v3398_v54 = vld [vmem:[#allocation2 + $0x120] sm:$0x80]  ;;  %v3400_v25 = vld [vmem:[#allocation2 + $0x130] sm:$0x7f]  ;;  %v2375_v62 = vrot.slane %v2297_v50, 7  ;;  %v2368_v36 = vrot.slane %v2291_v48, 7 }
 0x24d   : > { %3734 = vmatpush1.bf16.msra.mxu1 %v7682_v41  ;;  %2919 = vmatmul.mubr.bf16.vlgmr.msra.gmra.mrb[16].mxu0 %v2396_v51  ;;  %v3392_v41 = vld [vmem:[#allocation2 + $0xd0] sm:$0x7f]  ;;  %v2378_v51 = vrot.slane %v2298_v32, 7  ;;  %v2358_v19 = vsel %vm2331_vm1, %v2356_v40, %v2357_v13  ;;  %v3407_v28 = vld [vmem:[#allocation2 + $0x188] sm:$0x80]  ;;  %v3471_v32 = vsel %vm2331_vm1, %v3469_v17, %v3470_v18  ;;  %v2369_v60 = vrot.slane %v2293_v23, 7 }
 0x24e   : > { %3735 = vmatprep.subr.bf16.mxu1 %v7690_v46  ;;  %2928 = vmatprep.mubr.bf16.mxu0 %v2399_v58  ;;  %v7697_v46 = vld [vmem:[%s10181_s4 + $0x400] ss:$8 sps:$4 sm:$0xff]   ;;  %v3509_v58 = vpack.c.bf16 %v3465_v39, %v3459_v53  ;;  %v3461_v59 = vrot.slane %v3392_v41, 7  ;;  %v2400_v56 = vpack.c.bf16 %v2364_v21, %v2358_v19  ;;  %v3409_v30 = vld [vmem:[#allocation2 + $0x198] sm:$0x7f]  ;;  %v3472_v20 = vrot.slane %v3398_v54, 7 }
 0x24f   : > { %v2379_v8 = vsel %vm2331_vm1, %v2377_v12, %v2378_v51  ;;  %v7708_v33 = vld [vmem:[%s10181_s4 + $0x434] ss:$8 sps:$4 sm:$0xff]   ;;  %v3473_v39 = vrot.slane %v3400_v25, 7  ;;  %v3405_v29 = vld [vmem:[#allocation2 + $0x168] sm:$0x7f]  ;;  %v3487_v41 = vrot.slane %v3407_v28, 7  ;;  %v2376_v11 = vsel %vm2331_vm1, %v2374_v26, %v2375_v62 }
 0x250   : > { %v3462_v22 = vsel %vm2331_vm1, %v3460_v31, %v3461_v59  ;;  %v2403_v4 = vpack.c.bf16 %v2379_v8, %v2373_v10  ;;  %v3488_v43 = vrot.slane %v3409_v30, 7  ;;  %v7706_v44 = vld [vmem:[%s10181_s4 + $0x430] ss:$8 sps:$4 sm:$0xff]   ;;  %v7711_v47 = vld [vmem:[%s10181_s4 + $0x444] ss:$8 sps:$4 sm:$0xff]   ;;  %v3482_v12 = vrot.slane %v3405_v29, 7 }
 0x251   : > { %3736 = vmatpush1.bf16.msra.mxu1 %v7688_v6  ;;  %v3476_v6 = vrot.slane %v3401_v49, 7  ;;  %v2370_v51 = vsel %vm2331_vm1, %v2368_v36, %v2369_v60  ;;  %v3408_v40 = vld [vmem:[#allocation2 + $0x190] sm:$0x7f]  ;;  %v3402_v1 = vld [vmem:[#allocation2 + $0x150] sm:$0x80]  ;;  %v9420_v29 = vld [vmem:[#allocation2 + $0xa8] sm:$0xff] }
 0x252   : > { %3737 = vmatprep.subr.bf16.mxu1 %v7696_v42  ;;  %v3455_v42 = vrot.slane %v3388_v37, 7  ;;  %v2402_v53 = vpack.c.bf16 %v2376_v11, %v2370_v51  ;;  %v3406_v37 = vld [vmem:[#allocation2 + $0x180] sm:$0x80]  ;;  %v7714_v63 = vld [vmem:[%s10181_s4 + $0x454] ss:$8 sps:$4 sm:$0xff]   ;;  %v3485_v14 = vrot.slane %v3408_v40, 7 }
 0x253   : > { %v3477_v57 = vsel %vm2331_vm1, %v3475_v5, %v3476_v6  ;;  %v3404_v5 = vld [vmem:[#allocation2 + $0x160] sm:$0x7f]  ;;  %v3484_v21 = vrot.slane %v3406_v37, 7  ;;  %v7718_v48 = vld [vmem:[%s10181_s4 + $0x470] ss:$8 sps:$4 sm:$0xff]   ;;  %v9438_v51 = vld [vmem:[#allocation2 + $0x108] sm:$0xff] }
 0x254   : > { %v3456_v16 = vsel %vm2331_vm1, %v3454_v15, %v3455_v42  ;;  %v3511_v38 = vpack.c.bf16 %v3477_v57, %v3471_v32  ;;  %v3478_v15 = vrot.slane %v3402_v1, 7  ;;  %v3479_v42 = vrot.slane %v3404_v5, 7  ;;  %v7717_v8 = vld [vmem:[%s10181_s4 + $0x464] ss:$8 sps:$4 sm:$0xff]   ;;  %v7715_v18 = vld [vmem:[%s10181_s4 + $0x460] ss:$8 sps:$4 sm:$0xff]  }
 0x255   : > { %3738 = vmatpush1.bf16.msra.mxu1 %v7694_v24  ;;  %2929 = vmatmul.mubr.bf16.gmra.mrb[20].mxu0 %v2398_v34  ;;  %v3394_v24 = vld [vmem:[#allocation2 + $0xf0] sm:$0x80]  ;;  %v3508_v31 = vpack.c.bf16 %v3462_v22, %v3456_v16  ;;  %v3396_v34 = vld [vmem:[#allocation2 + $0x100] sm:$0x7f]  ;;  %v3486_v50 = vsel %vm2331_vm1, %v3484_v21, %v3485_v14  ;;  %v3797_v22 = vld [vmem:[#allocation2 + $0x48] sm:$0xff] }
 0x256   : > { %4013 = vmatprep.subr.bf16.mxu1 %v7699_v27  ;;  %2938 = vmatprep.mubr.bf16.mxu0 %v2401_v3  ;;  %v7703_v27 = vld [vmem:[%s10181_s4 + $0x420] ss:$8 sps:$4 sm:$0xff]   ;;  %v3403_v3 = vld [vmem:[#allocation2 + $0x158] sm:$0x80]  ;;  %v3466_v45 = vrot.slane %v3394_v24, 7  ;;  %v3480_v17 = vsel %vm2331_vm1, %v3478_v15, %v3479_v42  ;;  %v3798_v60 = vld [vmem:[#allocation2 + $0x70] sm:$0xff] }
 0x257   : > { %v3481_v49 = vrot.slane %v3403_v3, 7  ;;  %v3512_v19 = vpack.c.bf16 %v3486_v50, %v3480_v17  ;;  %v7723_v23 = vld [vmem:[%s10181_s4 + $0x484] ss:$8 sps:$4 sm:$0xff]   ;;  %v7721_v57 = vld [vmem:[%s10181_s4 + $0x480] ss:$8 sps:$4 sm:$0xff]   ;;  %v3806_v40 = vld [vmem:[#allocation2 + $0x130] sm:$0xff] }
 0x258   : > { %3740 = vmatmul.mubr.bf16.vlgmr.msra.gmra.mrb[0].mxu1 %v3506_v52  ;;  %v3474_v52 = vsel %vm2331_vm1, %v3472_v20, %v3473_v39  ;;  %v7724_v24 = vld [vmem:[%s10181_s4 + $0x490] ss:$8 sps:$4 sm:$0xff]   ;;  %v7729_v54 = vld [vmem:[%s10181_s4 + $0x4a4] ss:$8 sps:$4 sm:$0xff]   ;;  %v7727_v25 = vld [vmem:[%s10181_s4 + $0x4a0] ss:$8 sps:$4 sm:$0xff]  }
 0x259   : > { %3749 = vmatprep.mubr.bf16.mxu1 %v3509_v58  ;;  %4014 = vmatpush1.bf16.msra.mxu1 %v7697_v46  ;;  %v3467_v46 = vrot.slane %v3396_v34, 7  ;;  %v7709_v58 = vld [vmem:[%s10181_s4 + $0x440] ss:$8 sps:$4 sm:$0xff]   ;;  %v3483_v61 = vsel %vm2331_vm1, %v3481_v49, %v3482_v12  ;;  %v7732_v26 = vld [vmem:[%s10181_s4 + $0x4b4] ss:$8 sps:$4 sm:$0xff]  }
 0x25a   : > { %4015 = vmatprep.subr.bf16.mxu1 %v7702_v55  ;;  %v3489_v55 = vsel %vm2331_vm1, %v3487_v41, %v3488_v43  ;;  %v7730_v62 = vld [vmem:[%s10181_s4 + $0x4b0] ss:$8 sps:$4 sm:$0xff]   ;;  %v7735_v16 = vld [vmem:[%s10181_s4 + $0x4c4] ss:$8 sps:$4 sm:$0xff]   ;;  %v7738_v28 = vld [vmem:[%s10181_s4 + $0x4d4] ss:$8 sps:$4 sm:$0xff]  }
 0x25b   : > { %v3468_v13 = vsel %vm2331_vm1, %v3466_v45, %v3467_v46  ;;  %v3513_v6 = vpack.c.bf16 %v3489_v55, %v3483_v61  ;;  %v7736_v30 = vld [vmem:[%s10181_s4 + $0x4d0] ss:$8 sps:$4 sm:$0xff]   ;;  %v7739_v32 = vld [vmem:[%s10181_s4 + $0x4e0] ss:$8 sps:$4 sm:$0xff]   ;;  %v7747_v36 = vld [vmem:[%s10181_s4 + $0x504] ss:$8 sps:$4 sm:$0xff]  }
 0x25c   : > { %v3510_v59 = vpack.c.bf16 %v3474_v52, %v3468_v13  ;;  %v7742_v34 = vld [vmem:[%s10181_s4 + $0x4f0] ss:$8 sps:$4 sm:$0xff]   ;;  %v3796_v20 = vld [vmem:[#allocation2 + $0x40] sm:$0xff]  ;;  %v7750_v41 = vld [vmem:[%s10181_s4 + $0x514] ss:$8 sps:$4 sm:$0xff]  }
 0x25d   : > { %4016 = vmatpush1.bf16.msra.mxu1 %v7700_v35  ;;  %2939 = vmatmul.mubr.bf16.gmra.mrb[24].mxu0 %v2400_v56  ;;  %v7712_v35 = vld [vmem:[%s10181_s4 + $0x450] ss:$8 sps:$4 sm:$0xff]   ;;  %v7720_v56 = vld [vmem:[%s10181_s4 + $0x474] ss:$8 sps:$4 sm:$0xff]   ;;  %v7745_v39 = vld [vmem:[%s10181_s4 + $0x500] ss:$8 sps:$4 sm:$0xff]   ;;  %v3812_v3 = vpack.c.bf16 %v3798_v60, %v3796_v20 }
 0x25e   : > { %4017 = vmatprep.subr.bf16.mxu1 %v7705_v0  ;;  %2948 = vmatprep.mubr.bf16.mxu0 %v2403_v4  ;;  %v3799_v0 = vld [vmem:[#allocation2 + $0x78] sm:$0xff]  ;;  %v3802_v45 = vld [vmem:[#allocation2 + $0xd0] sm:$0xff]  ;;  %v7751_v49 = vld [vmem:[%s10181_s4 + $0x520] ss:$8 sps:$4 sm:$0xff]  }
 0x25f   : > { %v3813_v10 = vpack.c.bf16 %v3799_v0, %v3797_v22  ;;  %v7726_v4 = vld [vmem:[%s10181_s4 + $0x494] ss:$8 sps:$4 sm:$0xff]   ;;  %v7748_v11 = vld [vmem:[%s10181_s4 + $0x510] ss:$8 sps:$4 sm:$0xff]   ;;  %v7759_v37 = vld [vmem:[%s10181_s4 + $0x544] ss:$8 sps:$4 sm:$0xff]  }
 0x260   : > { %3750 = vmatmul.mubr.bf16.gmra.mrb[4].mxu1 %v3508_v31  ;;  %v7741_v31 = vld [vmem:[%s10181_s4 + $0x4e4] ss:$8 sps:$4 sm:$0xff]   ;;  %v3807_v46 = vld [vmem:[#allocation2 + $0x138] sm:$0xff]  ;;  %v7757_v61 = vld [vmem:[%s10181_s4 + $0x540] ss:$8 sps:$4 sm:$0xff]  }
 0x261   : > { %3759 = vmatprep.mubr.bf16.mxu1 %v3511_v38  ;;  %4018 = vmatpush1.bf16.msra.mxu1 %v7703_v27  ;;  %v7733_v27 = vld [vmem:[%s10181_s4 + $0x4c0] ss:$8 sps:$4 sm:$0xff]   ;;  %v3803_v38 = vld [vmem:[#allocation2 + $0xd8] sm:$0xff]  ;;  %v7765_v50 = vld [vmem:[%s10181_s4 + $0x564] ss:$8 sps:$4 sm:$0xff]  }
 0x262   : > { %4019 = vmatprep.subr.bf16.mxu1 %v7708_v33  ;;  %v7744_v33 = vld [vmem:[%s10181_s4 + $0x4f4] ss:$8 sps:$4 sm:$0xff]   ;;  %v3815_v43 = vpack.c.bf16 %v3803_v38, %v9420_v29  ;;  %v7754_v55 = vld [vmem:[%s10181_s4 + $0x530] ss:$8 sps:$4 sm:$0xff]   ;;  %v9456_v5 = vld [vmem:[#allocation2 + $0x168] sm:$0xff] }
 0x263   : > { %v7756_v52 = vld [vmem:[%s10181_s4 + $0x534] ss:$8 sps:$4 sm:$0xff]   ;;  %v4103_v14 = vld [vmem:[#allocation2 + $0x48] sm:$0xfe]  ;;  %v9469_v22 = vld [vmem:[#allocation2 + $0x160] sm:$0xff] }
 0x264   : > { %v3811_v13 = vld [vmem:[#allocation2 + $0x198] sm:$0xff]  ;;  %v4169_v0 = vrot.slane %v4103_v14, 1  ;;  %v4108_v60 = vld [vmem:[#allocation2 + $0x80] sm:$0x1] }
 0x265   : > { %4020 = vmatpush1.bf16.msra.mxu1 %v7706_v44  ;;  %2949 = vmatmul.mubr.bf16.gmra.mrb[28].mxu0 %v2402_v53  ;;  %v7753_v44 = vld [vmem:[%s10181_s4 + $0x524] ss:$8 sps:$4 sm:$0xff]   ;;  %v3817_v53 = vpack.c.bf16 %v3807_v46, %v9438_v51  ;;  %v3819_v21 = vpack.c.bf16 %v3811_v13, %v9456_v5  ;;  %v7787_v38 = vld [vmem:[%s10181_s4 + $0x5e0] ss:$8 sps:$4 sm:$0xff]   ;;  %v4115_v20 = vld [vmem:[#allocation2 + $0xd8] sm:$0xfe] }
 0x266   : > { %4021 = vmatprep.subr.bf16.mxu1 %v7711_v47  ;;  %5859 = vmatprep.mubr.bf16.mxu0 %v8047_v2  ;;  %v9432_v47 = vld [vmem:[#allocation2 + $0xa0] sm:$0xff]  ;;  %v4113_v46 = vld [vmem:[#allocation2 + $0xb8] sm:$0x1]  ;;  %v4123_v14 = vld [vmem:[#allocation2 + $0x138] sm:$0xfe] }
 0x267   : > { %v3814_v12 = vpack.c.bf16 %v3802_v45, %v9432_v47  ;;  %v4111_v45 = vld [vmem:[#allocation2 + $0xa8] sm:$0xfe]  ;;  %v4182_v13 = vrot.slane %v4113_v46, 1  ;;  %v7802_v46 = vld [vmem:[%s10181_s4 + $0x630] ss:$8 sps:$4 sm:$0xff]  }
 0x268   : > { %3760 = vmatmul.mubr.bf16.gmra.mrb[8].mxu1 %v3510_v59  ;;  %v9450_v59 = vld [vmem:[#allocation2 + $0x100] sm:$0xff] }
 0x269   : > { %3769 = vmatprep.mubr.bf16.mxu1 %v3513_v6  ;;  %4022 = vmatpush1.bf16.msra.mxu1 %v7709_v58  ;;  %v4109_v58 = vld [vmem:[#allocation2 + $0x88] sm:$0x1]  ;;  %v3816_v1 = vpack.c.bf16 %v3806_v40, %v9450_v59  ;;  %v7762_v6 = vld [vmem:[%s10181_s4 + $0x554] ss:$8 sps:$4 sm:$0xff]   ;;  %v4181_v40 = vrot.slane %v4111_v45, 1 }
 0x26a   : > { %4023 = vmatprep.subr.bf16.mxu1 %v7714_v63  ;;  %v4107_v63 = vld [vmem:[#allocation2 + $0x78] sm:$0xfe]  ;;  %v4176_v42 = vrot.slane %v4109_v58, 1 }
 0x26b   : > { %v4175_v15 = vrot.slane %v4107_v63, 1  ;;  %v4114_v63 = vld [vmem:[#allocation2 + $0xd0] sm:$0xfe] }
 0x26d   : > { %4024 = vmatpush1.bf16.msra.mxu1 %v7712_v35  ;;  %v4105_v35 = vld [vmem:[#allocation2 + $0x58] sm:$0x1] }
 0x26e   : > { %4025 = vmatprep.subr.bf16.mxu1 %v7717_v8  ;;  %v7760_v8 = vld [vmem:[%s10181_s4 + $0x550] ss:$8 sps:$4 sm:$0xff]   ;;  %v4170_v17 = vrot.slane %v4105_v35, 1  ;;  %v4125_v35 = vld [vmem:[#allocation2 + $0x148] sm:$0x1] }
 0x270   : > { %3770 = vmatmul.mubr.bf16.gmra.mrb[12].mxu1 %v3512_v19  ;;  %v4177_v19 = vsel %vm3023_vm0, %v4175_v15, %v4176_v42  ;;  %v4183_v42 = vsel %vm3023_vm0, %v4181_v40, %v4182_v13  ;;  %v4130_v13 = vld [vmem:[#allocation2 + $0x190] sm:$0xfe] }
 0x271   : > { %4026 = vmatpush1.bf16.msra.mxu1 %v7715_v18  ;;  %4045 = vmatprep.mubr.bf16.mxu1 %v3813_v10  ;;  %v3810_v18 = vld [vmem:[#allocation2 + $0x190] sm:$0xff] }
 0x272   : > { %4027 = vmatprep.subr.bf16.mxu1 %v7720_v56  ;;  %v7763_v56 = vld [vmem:[%s10181_s4 + $0x560] ss:$8 sps:$4 sm:$0xff]   ;;  %v3818_v10 = vpack.c.bf16 %v3810_v18, %v9469_v22  ;;  %v4184_v18 = vrot.slane %v4114_v63, 1 }
 0x273   : > { %v7805_v63 = vld [vmem:[%s10181_s4 + $0x640] ss:$8 sps:$4 sm:$0xff]  }
 0x275   : > { %4028 = vmatpush1.bf16.msra.mxu1 %v7718_v48  ;;  %v4171_v48 = vsel %vm3023_vm0, %v4169_v0, %v4170_v17  ;;  %v4112_v0 = vld [vmem:[#allocation2 + $0xb0] sm:$0x1] }
 0x276   : > { %4029 = vmatprep.subr.bf16.mxu1 %v7723_v23  ;;  %v7768_v23 = vld [vmem:[%s10181_s4 + $0x574] ss:$8 sps:$4 sm:$0xff]  }
 0x279   : > { %4030 = vmatpush1.bf16.msra.mxu1 %v7721_v57  ;;  %v4231_v57 = vpack.c.bf16 %v4177_v19, %v4171_v48  ;;  %v4199_v48 = vrot.slane %v4123_v14, 1 }
 0x27a   : > { %4031 = vmatprep.subr.bf16.mxu1 %v7726_v4  ;;  %v7766_v4 = vld [vmem:[%s10181_s4 + $0x570] ss:$8 sps:$4 sm:$0xff]  }
 0x27d   : > { %4032 = vmatpush1.bf16.msra.mxu1 %v7724_v24  ;;  %v7771_v24 = vld [vmem:[%s10181_s4 + $0x584] ss:$8 sps:$4 sm:$0xff]  }
 0x27e   : > { %4033 = vmatprep.subr.bf16.mxu1 %v7729_v54  ;;  %v7769_v54 = vld [vmem:[%s10181_s4 + $0x580] ss:$8 sps:$4 sm:$0xff]  }
 0x281   : > { %4034 = vmatpush1.bf16.msra.mxu1 %v7727_v25  ;;  %v7774_v25 = vld [vmem:[%s10181_s4 + $0x594] ss:$8 sps:$4 sm:$0xff]  }
 0x282   : > { %4035 = vmatprep.subr.bf16.mxu1 %v7732_v26  ;;  %v7772_v26 = vld [vmem:[%s10181_s4 + $0x590] ss:$8 sps:$4 sm:$0xff]  }
 0x285   : > { %4036 = vmatpush1.bf16.msra.mxu1 %v7730_v62  ;;  %v7777_v62 = vld [vmem:[%s10181_s4 + $0x5a4] ss:$8 sps:$4 sm:$0xff]  }
 0x286   : > { %4037 = vmatprep.subr.bf16.mxu1 %v7735_v16  ;;  %v7775_v16 = vld [vmem:[%s10181_s4 + $0x5a0] ss:$8 sps:$4 sm:$0xff]  }
 0x289   : > { %4038 = vmatpush1.bf16.msra.mxu1 %v7733_v27  ;;  %v7780_v27 = vld [vmem:[%s10181_s4 + $0x5b4] ss:$8 sps:$4 sm:$0xff]  }
 0x28a   : > { %4039 = vmatprep.subr.bf16.mxu1 %v7738_v28  ;;  %v7778_v28 = vld [vmem:[%s10181_s4 + $0x5b0] ss:$8 sps:$4 sm:$0xff]  }
 0x28d   : > { %4040 = vmatpush1.bf16.msra.mxu1 %v7736_v30  ;;  %v7783_v30 = vld [vmem:[%s10181_s4 + $0x5c4] ss:$8 sps:$4 sm:$0xff]  }
 0x28e   : > { %4041 = vmatprep.subr.bf16.mxu1 %v7741_v31  ;;  %v7781_v31 = vld [vmem:[%s10181_s4 + $0x5c0] ss:$8 sps:$4 sm:$0xff]  }
 0x291   : > { %4042 = vmatpush1.bf16.msra.mxu1 %v7739_v32  ;;  %v7786_v32 = vld [vmem:[%s10181_s4 + $0x5d4] ss:$8 sps:$4 sm:$0xff]  }
 0x292   : > { %4043 = vmatprep.subr.bf16.mxu1 %v7744_v33  ;;  %v7784_v33 = vld [vmem:[%s10181_s4 + $0x5d0] ss:$8 sps:$4 sm:$0xff]  }
 0x295   : > { %4044 = vmatpush1.bf16.msra.mxu1 %v7742_v34  ;;  %v7789_v34 = vld [vmem:[%s10181_s4 + $0x5e4] ss:$8 sps:$4 sm:$0xff]  }
 0x296   : > { %4431 = vmatprep.subr.bf16.mxu1 %v7747_v36  ;;  %v4106_v36 = vld [vmem:[#allocation2 + $0x70] sm:$0xfe] }
 0x298   : > { %4046 = vmatmul.mubr.bf16.vlgmr.msra.gmra.mrb[0].mxu1 %v3812_v3  ;;  %v7792_v3 = vld [vmem:[%s10181_s4 + $0x5f4] ss:$8 sps:$4 sm:$0xff]  }
 0x299   : > { %4055 = vmatprep.mubr.bf16.mxu1 %v3815_v43  ;;  %4432 = vmatpush1.bf16.msra.mxu1 %v7745_v39  ;;  %v4117_v39 = vld [vmem:[#allocation2 + $0xe8] sm:$0x1]  ;;  %v4104_v43 = vld [vmem:[#allocation2 + $0x50] sm:$0x1] }
 0x29a   : > { %4433 = vmatprep.subr.bf16.mxu1 %v7750_v41  ;;  %v4102_v41 = vld [vmem:[#allocation2 + $0x40] sm:$0xfe] }
 0x29d   : > { %4434 = vmatpush1.bf16.msra.mxu1 %v7748_v11  ;;  %v4172_v11 = vrot.slane %v4106_v36, 1 }
 0x29e   : > { %4435 = vmatprep.subr.bf16.mxu1 %v7753_v44  ;;  %v4173_v44 = vrot.slane %v4108_v60, 1  ;;  %v7804_v60 = vld [vmem:[%s10181_s4 + $0x634] ss:$8 sps:$4 sm:$0xff]  }
 0x2a0   : > { %4056 = vmatmul.mubr.bf16.gmra.mrb[4].mxu1 %v3814_v12  ;;  %v4188_v12 = vrot.slane %v4117_v39, 1  ;;  %v4174_v58 = vsel %vm3023_vm0, %v4172_v11, %v4173_v44  ;;  %v4129_v11 = vld [vmem:[#allocation2 + $0x178] sm:$0x1] }
 0x2a1   : > { %4065 = vmatprep.mubr.bf16.mxu1 %v3817_v53  ;;  %4436 = vmatpush1.bf16.msra.mxu1 %v7751_v49  ;;  %v4187_v49 = vrot.slane %v4115_v20, 1  ;;  %v4166_v53 = vrot.slane %v4102_v41, 1  ;;  %v4120_v20 = vld [vmem:[#allocation2 + $0x110] sm:$0x1] }
 0x2a2   : > { %4437 = vmatprep.subr.bf16.mxu1 %v7756_v52  ;;  %v7790_v52 = vld [vmem:[%s10181_s4 + $0x5f0] ss:$8 sps:$4 sm:$0xff]  }
 0x2a5   : > { %4438 = vmatpush1.bf16.msra.mxu1 %v7754_v55  ;;  %v4167_v55 = vrot.slane %v4104_v43, 1  ;;  %v4127_v43 = vld [vmem:[#allocation2 + $0x168] sm:$0xfe] }
 0x2a6   : > { %4439 = vmatprep.subr.bf16.mxu1 %v7759_v37  ;;  %v7795_v37 = vld [vmem:[%s10181_s4 + $0x604] ss:$8 sps:$4 sm:$0xff]  }
 0x2a8   : > { %4066 = vmatmul.mubr.bf16.gmra.mrb[8].mxu1 %v3816_v1  ;;  %v4116_v1 = vld [vmem:[#allocation2 + $0xe0] sm:$0x1] }
 0x2a9   : > { %4075 = vmatprep.mubr.bf16.mxu1 %v3819_v21  ;;  %4440 = vmatpush1.bf16.msra.mxu1 %v7757_v61  ;;  %v4189_v61 = vsel %vm3023_vm0, %v4187_v49, %v4188_v12  ;;  %v7793_v21 = vld [vmem:[%s10181_s4 + $0x600] ss:$8 sps:$4 sm:$0xff]   ;;  %v4185_v19 = vrot.slane %v4116_v1, 1  ;;  %v4191_v12 = vrot.slane %v4120_v20, 1  ;;  %v4526_v1 = vld [vmem:[#allocation2 + $0x98] sm:$0x80] }
 0x2aa   : > { %4441 = vmatprep.subr.bf16.mxu1 %v7762_v6  ;;  %v4168_v6 = vsel %vm3023_vm0, %v4166_v53, %v4167_v55  ;;  %v4233_v17 = vpack.c.bf16 %v4189_v61, %v4183_v42  ;;  %v4205_v53 = vrot.slane %v4127_v43, 1  ;;  %v4206_v55 = vrot.slane %v4129_v11, 1  ;;  %v4128_v42 = vld [vmem:[#allocation2 + $0x170] sm:$0x1]  ;;  %v7825_v20 = vld [vmem:[%s10181_s4 + $0x6a4] ss:$8 sps:$4 sm:$0xff]  }
 0x2ab   : > { %v4230_v15 = vpack.c.bf16 %v4174_v58, %v4168_v6  ;;  %v4132_v58 = vld [vmem:[#allocation2 + $0x1a0] sm:$0x1]  ;;  %v4528_v6 = vld [vmem:[#allocation2 + $0xa8] sm:$0x7f]  ;;  %v7828_v43 = vld [vmem:[%s10181_s4 + $0x6b4] ss:$8 sps:$4 sm:$0xff]  }
 0x2ac   : > { %v4207_v14 = vsel %vm3023_vm0, %v4205_v53, %v4206_v55  ;;  %v7928_v11 = vld [vmem:[%s10184_s7 + $0x20] ss:$8 sps:$4 sm:$0xff]   ;;  %v7834_v53 = vld [vmem:[%s10181_s4 + $0x6d4] ss:$8 sps:$4 sm:$0xff]  }
 0x2ad   : > { %4442 = vmatpush1.bf16.msra.mxu1 %v7760_v8  ;;  %v7798_v8 = vld [vmem:[%s10181_s4 + $0x614] ss:$8 sps:$4 sm:$0xff]   ;;  %v7940_v55 = vld [vmem:[%s10184_s7 + $0x40] ss:$8 sps:$4 sm:$0xff]  }
 0x2ae   : > { %4443 = vmatprep.subr.bf16.mxu1 %v7765_v50  ;;  %v4110_v50 = vld [vmem:[#allocation2 + $0xa0] sm:$0xfe] }
 0x2b0   : > { %4076 = vmatmul.mubr.bf16.gmra.mrb[12].mxu1 %v3818_v10  ;;  %v4121_v10 = vld [vmem:[#allocation2 + $0x118] sm:$0x1] }
 0x2b1   : > { %4444 = vmatpush1.bf16.msra.mxu1 %v7763_v56  ;;  %4463 = vmatprep.mubr.bf16.mxu1 %v4231_v57  ;;  %v4119_v56 = vld [vmem:[#allocation2 + $0x108] sm:$0xfe]  ;;  %v7796_v57 = vld [vmem:[%s10181_s4 + $0x610] ss:$8 sps:$4 sm:$0xff]  }
 0x2b2   : > { %4445 = vmatprep.subr.bf16.mxu1 %v7768_v23  ;;  %v4200_v23 = vrot.slane %v4125_v35, 1  ;;  %v7810_v35 = vld [vmem:[%s10181_s4 + $0x654] ss:$8 sps:$4 sm:$0xff]  }
 0x2b5   : > { %4446 = vmatpush1.bf16.msra.mxu1 %v7766_v4  ;;  %v4178_v4 = vrot.slane %v4110_v50, 1  ;;  %v4208_v50 = vrot.slane %v4130_v13, 1  ;;  %v7837_v13 = vld [vmem:[%s10181_s4 + $0x6e4] ss:$8 sps:$4 sm:$0xff]  }
 0x2b6   : > { %4447 = vmatprep.subr.bf16.mxu1 %v7771_v24  ;;  %v4179_v24 = vrot.slane %v4112_v0, 1  ;;  %v4209_v0 = vrot.slane %v4132_v58, 1  ;;  %v7946_v58 = vld [vmem:[%s10184_s7 + $0x50] ss:$8 sps:$4 sm:$0xff]  }
 0x2b9   : > { %4448 = vmatpush1.bf16.msra.mxu1 %v7769_v54  ;;  %v7801_v54 = vld [vmem:[%s10181_s4 + $0x624] ss:$8 sps:$4 sm:$0xff]  }
 0x2ba   : > { %4449 = vmatprep.subr.bf16.mxu1 %v7774_v25  ;;  %v4193_v25 = vrot.slane %v4119_v56, 1  ;;  %v4595_v56 = vrot.slane %v4528_v6, 7  ;;  %v4523_v6 = vld [vmem:[#allocation2 + $0x70] sm:$0x7f] }
 0x2bd   : > { %4450 = vmatpush1.bf16.msra.mxu1 %v7772_v26  ;;  %v4194_v26 = vrot.slane %v4121_v10, 1  ;;  %v7808_v10 = vld [vmem:[%s10181_s4 + $0x650] ss:$8 sps:$4 sm:$0xff]  }
 0x2be   : > { %4451 = vmatprep.subr.bf16.mxu1 %v7777_v62  ;;  %v4186_v62 = vsel %vm3023_vm0, %v4184_v18, %v4185_v19  ;;  %v4524_v18 = vld [vmem:[#allocation2 + $0x78] sm:$0x7f]  ;;  %v4594_v19 = vrot.slane %v4526_v1, 7  ;;  %v4521_v1 = vld [vmem:[#allocation2 + $0x60] sm:$0x80] }
 0x2bf   : > { %v4195_v36 = vsel %vm3023_vm0, %v4193_v25, %v4194_v26 }
 0x2c0   : > { %v4596_v25 = vsel %vm2331_vm1, %v4594_v19, %v4595_v56 }
 0x2c1   : > { %4452 = vmatpush1.bf16.msra.mxu1 %v7775_v16  ;;  %v4201_v16 = vsel %vm3023_vm0, %v4199_v48, %v4200_v23  ;;  %v4203_v23 = vrot.slane %v4128_v42, 1  ;;  %v4532_v42 = vld [vmem:[#allocation2 + $0xd8] sm:$0x7f] }
 0x2c2   : > { %4453 = vmatprep.subr.bf16.mxu1 %v7780_v27  ;;  %v4122_v27 = vld [vmem:[#allocation2 + $0x130] sm:$0xfe]  ;;  %v4235_v39 = vpack.c.bf16 %v4201_v16, %v4195_v36  ;;  %v7916_v36 = vld [vmem:[%s10184_s7] ss:$8 sps:$4 sm:$0xff]  }
 0x2c5   : > { %4454 = vmatpush1.bf16.msra.mxu1 %v7778_v28  ;;  %v4124_v28 = vld [vmem:[#allocation2 + $0x140] sm:$0x1] }
 0x2c6   : > { %4455 = vmatprep.subr.bf16.mxu1 %v7783_v30  ;;  %v4180_v30 = vsel %vm3023_vm0, %v4178_v4, %v4179_v24  ;;  %v4197_v41 = vrot.slane %v4124_v28, 1  ;;  %v4589_v24 = vrot.slane %v4524_v18, 7  ;;  %v7816_v28 = vld [vmem:[%s10181_s4 + $0x674] ss:$8 sps:$4 sm:$0xff]  }
 0x2c9   : > { %4456 = vmatpush1.bf16.msra.mxu1 %v7781_v31  ;;  %v7799_v31 = vld [vmem:[%s10181_s4 + $0x620] ss:$8 sps:$4 sm:$0xff]  }
 0x2ca   : > { %4457 = vmatprep.subr.bf16.mxu1 %v7786_v32  ;;  %v4131_v32 = vld [vmem:[#allocation2 + $0x198] sm:$0xfe] }
 0x2cb   : > { %v4211_v44 = vrot.slane %v4131_v32, 1  ;;  %v7819_v32 = vld [vmem:[%s10181_s4 + $0x684] ss:$8 sps:$4 sm:$0xff]  }
 0x2cd   : > { %4458 = vmatpush1.bf16.msra.mxu1 %v7784_v33  ;;  %v4133_v33 = vld [vmem:[#allocation2 + $0x1a8] sm:$0x1] }
 0x2ce   : > { %4459 = vmatprep.subr.bf16.mxu1 %v7789_v34  ;;  %v4232_v34 = vpack.c.bf16 %v4186_v62, %v4180_v30  ;;  %v4212_v45 = vrot.slane %v4133_v33, 1  ;;  %v7811_v62 = vld [vmem:[%s10181_s4 + $0x660] ss:$8 sps:$4 sm:$0xff]  }
 0x2cf   : > { %v7817_v33 = vld [vmem:[%s10181_s4 + $0x680] ss:$8 sps:$4 sm:$0xff]  }
 0x2d0   : > { %v4213_v40 = vsel %vm3023_vm0, %v4211_v44, %v4212_v45  ;;  %v7930_v44 = vld [vmem:[%s10184_s7 + $0x24] ss:$8 sps:$4 sm:$0xff]   ;;  %v7826_v45 = vld [vmem:[%s10181_s4 + $0x6b0] ss:$8 sps:$4 sm:$0xff]  }
 0x2d1   : > { %4460 = vmatpush1.bf16.msra.mxu1 %v7787_v38  ;;  %v4118_v38 = vld [vmem:[#allocation2 + $0x100] sm:$0xfe] }
 0x2d2   : > { %4461 = vmatprep.subr.bf16.mxu1 %v7792_v3  ;;  %v4196_v3 = vrot.slane %v4122_v27, 1  ;;  %v4190_v49 = vrot.slane %v4118_v38, 1  ;;  %v7820_v38 = vld [vmem:[%s10181_s4 + $0x690] ss:$8 sps:$4 sm:$0xff]  }
 0x2d4   : > { %v4192_v61 = vsel %vm3023_vm0, %v4190_v49, %v4191_v12  ;;  %v7934_v49 = vld [vmem:[%s10184_s7 + $0x30] ss:$8 sps:$4 sm:$0xff]   ;;  %v7936_v12 = vld [vmem:[%s10184_s7 + $0x34] ss:$8 sps:$4 sm:$0xff]  }
 0x2d5   : > { %4462 = vmatpush1.bf16.msra.mxu1 %v7790_v52  ;;  %v7807_v52 = vld [vmem:[%s10181_s4 + $0x644] ss:$8 sps:$4 sm:$0xff]  }
 0x2d6   : > { %4850 = vmatprep.subr.bf16.mxu1 %v7795_v37  ;;  %v4198_v37 = vsel %vm3023_vm0, %v4196_v3, %v4197_v41  ;;  %v7924_v3 = vld [vmem:[%s10184_s7 + $0x14] ss:$8 sps:$4 sm:$0xff]   ;;  %v7823_v41 = vld [vmem:[%s10181_s4 + $0x6a0] ss:$8 sps:$4 sm:$0xff]  }
 0x2d8   : > { %4464 = vmatmul.mubr.bf16.vlgmr.msra.gmra.mrb[0].mxu1 %v4230_v15  ;;  %v4126_v15 = vld [vmem:[#allocation2 + $0x160] sm:$0xfe] }
 0x2d9   : > { %4473 = vmatprep.mubr.bf16.mxu1 %v4233_v17  ;;  %4851 = vmatpush1.bf16.msra.mxu1 %v7793_v21  ;;  %v4234_v21 = vpack.c.bf16 %v4198_v37, %v4192_v61  ;;  %v4522_v17 = vld [vmem:[#allocation2 + $0x68] sm:$0x80]  ;;  %v4202_v48 = vrot.slane %v4126_v15, 1  ;;  %v7948_v61 = vld [vmem:[%s10184_s7 + $0x54] ss:$8 sps:$4 sm:$0xff]  }
 0x2da   : > { %4852 = vmatprep.subr.bf16.mxu1 %v7798_v8  ;;  %v4237_v8 = vpack.c.bf16 %v4213_v40, %v4207_v14  ;;  %v4588_v4 = vrot.slane %v4522_v17, 7  ;;  %v7942_v37 = vld [vmem:[%s10184_s7 + $0x44] ss:$8 sps:$4 sm:$0xff]   ;;  %v7832_v40 = vld [vmem:[%s10181_s4 + $0x6d0] ss:$8 sps:$4 sm:$0xff]  }
 0x2db   : > { %v4204_v26 = vsel %vm3023_vm0, %v4202_v48, %v4203_v23  ;;  %v4530_v14 = vld [vmem:[#allocation2 + $0xc8] sm:$0x80]  ;;  %v7835_v15 = vld [vmem:[%s10181_s4 + $0x6e0] ss:$8 sps:$4 sm:$0xff]   ;;  %v7838_v48 = vld [vmem:[%s10181_s4 + $0x6f0] ss:$8 sps:$4 sm:$0xff]  }
 0x2dc   : > { %v4590_v27 = vsel %vm2331_vm1, %v4588_v4, %v4589_v24  ;;  %v7954_v17 = vld [vmem:[%s10184_s7 + $0x64] ss:$8 sps:$4 sm:$0xff]   ;;  %v4585_v23 = vrot.slane %v4521_v1, 7  ;;  %v4600_v4 = vrot.slane %v4530_v14, 7  ;;  %v4601_v24 = vrot.slane %v4532_v42, 7 }
 0x2dd   : > { %4853 = vmatpush1.bf16.msra.mxu1 %v7796_v57  ;;  %v7813_v57 = vld [vmem:[%s10181_s4 + $0x664] ss:$8 sps:$4 sm:$0xff]   ;;  %v4650_v30 = vpack.c.bf16 %v4596_v25, %v4590_v27  ;;  %v7958_v25 = vld [vmem:[%s10184_s7 + $0x70] ss:$8 sps:$4 sm:$0xff]   ;;  %v4533_v27 = vld [vmem:[#allocation2 + $0xf0] sm:$0x80] }
 0x2de   : > { %4854 = vmatprep.subr.bf16.mxu1 %v7801_v54  ;;  %v4210_v54 = vsel %vm3023_vm0, %v4208_v50, %v4209_v0  ;;  %v7840_v50 = vld [vmem:[%s10181_s4 + $0x6f4] ss:$8 sps:$4 sm:$0xff]   ;;  %v7952_v0 = vld [vmem:[%s10184_s7 + $0x60] ss:$8 sps:$4 sm:$0xff]  }
 0x2df   : > { %v4236_v16 = vpack.c.bf16 %v4210_v54, %v4204_v26  ;;  %v7843_v54 = vld [vmem:[%s10181_s4 + $0x704] ss:$8 sps:$4 sm:$0xff]   ;;  %v7960_v26 = vld [vmem:[%s10184_s7 + $0x74] ss:$8 sps:$4 sm:$0xff]  }
 0x2e0   : > { %4474 = vmatmul.mubr.bf16.gmra.mrb[4].mxu1 %v4232_v34  ;;  %v7822_v34 = vld [vmem:[%s10181_s4 + $0x694] ss:$8 sps:$4 sm:$0xff]   ;;  %v4543_v1 = vld [vmem:[#allocation2 + $0x160] sm:$0x7f]  ;;  %v4552_v42 = vld [vmem:[#allocation2 + $0x1c8] sm:$0x7f] }
 0x2e1   : > { %4483 = vmatprep.mubr.bf16.mxu1 %v4235_v39  ;;  %4855 = vmatpush1.bf16.msra.mxu1 %v7799_v31  ;;  %v7814_v31 = vld [vmem:[%s10181_s4 + $0x670] ss:$8 sps:$4 sm:$0xff]  }
 0x2e2   : > { %4856 = vmatprep.subr.bf16.mxu1 %v7804_v60  ;;  %v7918_v60 = vld [vmem:[%s10184_s7 + $0x4] ss:$8 sps:$4 sm:$0xff]   ;;  %v7922_v39 = vld [vmem:[%s10184_s7 + $0x10] ss:$8 sps:$4 sm:$0xff]  }
 0x2e3   : > { %5827 = vmatprep.subr.bf16.mxu0 %v7918_v60  ;;  %v7846_v60 = vld [vmem:[%s10181_s4 + $0x714] ss:$8 sps:$4 sm:$0xff]  }
 0x2e4   : > { %5828 = vmatpush1.bf16.msra.mxu0 %v7916_v36  ;;  %v4602_v36 = vsel %vm2331_vm1, %v4600_v4, %v4601_v24  ;;  %v4631_v24 = vrot.slane %v4552_v42, 7 }
 0x2e5   : > { %4857 = vmatpush1.bf16.msra.mxu1 %v7802_v46  ;;  %5829 = vmatprep.subr.bf16.mxu0 %v7924_v3  ;;  %v7831_v46 = vld [vmem:[%s10181_s4 + $0x6c4] ss:$8 sps:$4 sm:$0xff]   ;;  %v4603_v3 = vrot.slane %v4533_v27, 7 }
 0x2e6   : > { %4858 = vmatprep.subr.bf16.mxu1 %v7807_v52  ;;  %v7829_v52 = vld [vmem:[%s10181_s4 + $0x6c0] ss:$8 sps:$4 sm:$0xff]  }
 0x2e8   : > { %4484 = vmatmul.mubr.bf16.gmra.mrb[8].mxu1 %v4234_v21  ;;  %5830 = vmatpush1.bf16.msra.mxu0 %v7922_v39  ;;  %v4527_v21 = vld [vmem:[#allocation2 + $0xa0] sm:$0x7f] }
 0x2e9   : > { %4493 = vmatprep.mubr.bf16.mxu1 %v4237_v8  ;;  %4859 = vmatpush1.bf16.msra.mxu1 %v7805_v63  ;;  %v4525_v63 = vld [vmem:[#allocation2 + $0x90] sm:$0x80]  ;;  %v4536_v8 = vld [vmem:[#allocation2 + $0x108] sm:$0x7f]  ;;  %v4592_v19 = vrot.slane %v4527_v21, 7 }
 0x2ea   : > { %4860 = vmatprep.subr.bf16.mxu1 %v7810_v35  ;;  %5831 = vmatprep.subr.bf16.mxu0 %v7930_v44  ;;  %v4534_v35 = vld [vmem:[#allocation2 + $0xf8] sm:$0x80]  ;;  %v4591_v18 = vrot.slane %v4525_v63, 7 }
 0x2eb   : > { %v4606_v56 = vrot.slane %v4534_v35, 7  ;;  %v4550_v21 = vld [vmem:[#allocation2 + $0x1b8] sm:$0x80]  ;;  %v7847_v35 = vld [vmem:[%s10181_s4 + $0x720] ss:$8 sps:$4 sm:$0xff]  }
 0x2ec   : > { %5832 = vmatpush1.bf16.msra.mxu0 %v7928_v11  ;;  %v4540_v11 = vld [vmem:[#allocation2 + $0x138] sm:$0x7f]  ;;  %v4630_v4 = vrot.slane %v4550_v21, 7  ;;  %v7859_v21 = vld [vmem:[%s10181_s4 + $0x760] ss:$8 sps:$4 sm:$0xff]  }
 0x2ed   : > { %4861 = vmatpush1.bf16.msra.mxu1 %v7808_v10  ;;  %5833 = vmatprep.subr.bf16.mxu0 %v7936_v12  ;;  %v4607_v10 = vrot.slane %v4536_v8, 7  ;;  %v7844_v12 = vld [vmem:[%s10181_s4 + $0x710] ss:$8 sps:$4 sm:$0xff]  }
 0x2ee   : > { %4862 = vmatprep.subr.bf16.mxu1 %v7813_v57  ;;  %v4586_v57 = vrot.slane %v4523_v6, 7  ;;  %v4546_v6 = vld [vmem:[#allocation2 + $0x188] sm:$0x80] }
 0x2f0   : > { %4494 = vmatmul.mubr.bf16.gmra.mrb[12].mxu1 %v4236_v16  ;;  %5834 = vmatpush1.bf16.msra.mxu0 %v7934_v49  ;;  %v4608_v16 = vsel %vm2331_vm1, %v4606_v56, %v4607_v10  ;;  %v6960_v49 = vld [vmem:[%s8205_s26 + $0x1c0] sm:$0xff]  ;;  %v4616_v10 = vrot.slane %v4543_v1, 7 }
 0x2f1   : > { %4863 = vmatpush1.bf16.msra.mxu1 %v7811_v62  ;;  %4882 = vmatprep.mubr.bf16.mxu1 %v4650_v30  ;;  %v4593_v62 = vsel %vm2331_vm1, %v4591_v18, %v4592_v19  ;;  %v4587_v30 = vsel %vm2331_vm1, %v4585_v23, %v4586_v57  ;;  %v4652_v39 = vpack.c.bf16 %v4608_v16, %v4602_v36  ;;  %v4539_v18 = vld [vmem:[#allocation2 + $0x130] sm:$0x7f] }
 0x2f2   : > { %4864 = vmatprep.subr.bf16.mxu1 %v7816_v28  ;;  %5835 = vmatprep.subr.bf16.mxu0 %v7942_v37  ;;  %v4535_v28 = vld [vmem:[#allocation2 + $0x100] sm:$0x7f]  ;;  %v4610_v16 = vrot.slane %v4539_v18, 7 }
 0x2f3   : > { %v7849_v37 = vld [vmem:[%s10181_s4 + $0x724] ss:$8 sps:$4 sm:$0xff]  }
 0x2f4   : > { %5836 = vmatpush1.bf16.msra.mxu0 %v7940_v55 }
 0x2f5   : > { %4865 = vmatpush1.bf16.msra.mxu1 %v7814_v31  ;;  %5837 = vmatprep.subr.bf16.mxu0 %v7948_v61  ;;  %v7841_v31 = vld [vmem:[%s10181_s4 + $0x700] ss:$8 sps:$4 sm:$0xff]   ;;  %v4541_v61 = vld [vmem:[#allocation2 + $0x150] sm:$0x80] }
 0x2f6   : > { %4866 = vmatprep.subr.bf16.mxu1 %v7819_v32  ;;  %v4542_v32 = vld [vmem:[#allocation2 + $0x158] sm:$0x80]  ;;  %v4615_v56 = vrot.slane %v4541_v61, 7 }
 0x2f7   : > { %v4618_v44 = vrot.slane %v4542_v32, 7 }
 0x2f8   : > { %5838 = vmatpush1.bf16.msra.mxu0 %v7946_v58  ;;  %v4617_v32 = vsel %vm2331_vm1, %v4615_v56, %v4616_v10  ;;  %v7865_v10 = vld [vmem:[%s10181_s4 + $0x780] ss:$8 sps:$4 sm:$0xff]  }
 0x2f9   : > { %4867 = vmatpush1.bf16.msra.mxu1 %v7817_v33  ;;  %5839 = vmatprep.subr.bf16.mxu0 %v7954_v17  ;;  %v4544_v33 = vld [vmem:[#allocation2 + $0x168] sm:$0x7f]  ;;  %v4537_v17 = vld [vmem:[#allocation2 + $0x120] sm:$0x80] }
 0x2fa   : > { %4868 = vmatprep.subr.bf16.mxu1 %v7822_v34  ;;  %v4649_v34 = vpack.c.bf16 %v4593_v62, %v4587_v30  ;;  %v4609_v62 = vrot.slane %v4537_v17, 7  ;;  %v7855_v30 = vld [vmem:[%s10181_s4 + $0x744] ss:$8 sps:$4 sm:$0xff]  }
 0x2fc   : > { %5840 = vmatpush1.bf16.msra.mxu0 %v7952_v0  ;;  %v7852_v0 = vld [vmem:[%s10181_s4 + $0x734] ss:$8 sps:$4 sm:$0xff]  }
 0x2fd   : > { %4869 = vmatpush1.bf16.msra.mxu1 %v7820_v38  ;;  %5841 = vmatprep.subr.bf16.mxu0 %v7960_v26  ;;  %v4529_v38 = vld [vmem:[#allocation2 + $0xc0] sm:$0x80]  ;;  %v7850_v26 = vld [vmem:[%s10181_s4 + $0x730] ss:$8 sps:$4 sm:$0xff]  }
 0x2fe   : > { %4870 = vmatprep.subr.bf16.mxu1 %v7825_v20  ;;  %v4531_v20 = vld [vmem:[#allocation2 + $0xd0] sm:$0x7f] }
 0x300   : > { %5842 = vmatpush1.bf16.msra.mxu0 %v7958_v25  ;;  %v6962_v25 = vld [vmem:[%s8205_s26 + $0x1e0] sm:$0xff] }
 0x301   : > { %4871 = vmatpush1.bf16.msra.mxu1 %v7823_v41  ;;  %v4604_v41 = vrot.slane %v4535_v28, 7 }
 0x302   : > { %4872 = vmatprep.subr.bf16.mxu1 %v7828_v43  ;;  %v4538_v43 = vld [vmem:[#allocation2 + $0x128] sm:$0x80] }
 0x303   : > { %v4605_v58 = vsel %vm2331_vm1, %v4603_v3, %v4604_v41  ;;  %v4611_v3 = vsel %vm2331_vm1, %v4609_v62, %v4610_v16  ;;  %v7853_v41 = vld [vmem:[%s10181_s4 + $0x740] ss:$8 sps:$4 sm:$0xff]   ;;  %v7876_v16 = vld [vmem:[%s10181_s4 + $0x7b4] ss:$8 sps:$4 sm:$0xff]  }
 0x304   : > { %v7871_v62 = vld [vmem:[%s10181_s4 + $0x7a0] ss:$8 sps:$4 sm:$0xff]  }
 0x305   : > { %4873 = vmatpush1.bf16.msra.mxu1 %v7826_v45  ;;  %v4619_v45 = vrot.slane %v4544_v33, 7 }
 0x306   : > { %4874 = vmatprep.subr.bf16.mxu1 %v7831_v46  ;;  %v6959_v46 = vld [vmem:[%s8205_s26 + $0x1b0] sm:$0xff] }
 0x307   : > { %v5727_v55 = vpack.c.bf16 %v6960_v49, %v6959_v46  ;;  %v4620_v63 = vsel %vm2331_vm1, %v4618_v44, %v4619_v45 }
 0x309   : > { %4875 = vmatpush1.bf16.msra.mxu1 %v7829_v52  ;;  %v4597_v52 = vrot.slane %v4529_v38, 7  ;;  %5860 = vmatmul.mubr.bf16.vlgmr.msra.gmra.mrb[32].mxu0 %v5727_v55  ;;  %v4547_v38 = vld [vmem:[#allocation2 + $0x190] sm:$0x7f]  ;;  %v6964_v55 = vld [vmem:[%s8205_s26 + $0x200] sm:$0xff] }
 0x30a   : > { %4876 = vmatprep.subr.bf16.mxu1 %v7834_v53  ;;  %v4598_v53 = vrot.slane %v4531_v20, 7  ;;  %5869 = vmatprep.mubr.bf16.mxu0 %v8047_v2  ;;  %v4549_v20 = vld [vmem:[#allocation2 + $0x1b0] sm:$0x80]  ;;  %v4622_v46 = vrot.slane %v4547_v38, 7  ;;  %v7883_v38 = vld [vmem:[%s10181_s4 + $0x7e0] ss:$8 sps:$4 sm:$0xff]  }
 0x30b   : > { %v4627_v49 = vrot.slane %v4549_v20, 7  ;;  %v7888_v20 = vld [vmem:[%s10181_s4 + $0x7f4] ss:$8 sps:$4 sm:$0xff]  }
 0x30c   : > { %v4599_v14 = vsel %vm2331_vm1, %v4597_v52, %v4598_v53  ;;  %v6963_v53 = vld [vmem:[%s8205_s26 + $0x1f0] sm:$0xff] }
 0x30d   : > { %4877 = vmatpush1.bf16.msra.mxu1 %v7832_v40  ;;  %v4612_v40 = vrot.slane %v4538_v43, 7  ;;  %v4651_v8 = vpack.c.bf16 %v4605_v58, %v4599_v14  ;;  %v4653_v43 = vpack.c.bf16 %v4617_v32, %v4611_v3  ;;  %v7861_v58 = vld [vmem:[%s10181_s4 + $0x764] ss:$8 sps:$4 sm:$0xff]   ;;  %v7877_v32 = vld [vmem:[%s10181_s4 + $0x7c0] ss:$8 sps:$4 sm:$0xff]  }
 0x30e   : > { %4878 = vmatprep.subr.bf16.mxu1 %v7837_v13  ;;  %v4613_v13 = vrot.slane %v4540_v11, 7  ;;  %v7858_v11 = vld [vmem:[%s10181_s4 + $0x754] ss:$8 sps:$4 sm:$0xff]   ;;  %v7891_v3 = vld [vmem:[%s10181_s4 + $0x804] ss:$8 sps:$4 sm:$0xff]  }
 0x311   : > { %4879 = vmatpush1.bf16.msra.mxu1 %v7835_v15  ;;  %v4548_v15 = vld [vmem:[#allocation2 + $0x198] sm:$0x7f] }
 0x312   : > { %4880 = vmatprep.subr.bf16.mxu1 %v7840_v50  ;;  %v4614_v50 = vsel %vm2331_vm1, %v4612_v40, %v4613_v13  ;;  %v4625_v57 = vrot.slane %v4548_v15, 7  ;;  %v5729_v13 = vpack.c.bf16 %v6964_v55, %v6963_v53  ;;  %v7864_v15 = vld [vmem:[%s10181_s4 + $0x774] ss:$8 sps:$4 sm:$0xff]   ;;  %v7895_v53 = vld [vmem:[%s10181_s4 + $0x820] ss:$8 sps:$4 sm:$0xff]  }
 0x313   : > { %v4654_v19 = vpack.c.bf16 %v4620_v63, %v4614_v50  ;;  %v6965_v50 = vld [vmem:[%s8205_s26 + $0x210] sm:$0xff]  ;;  %v4948_v55 = vld [vmem:[#allocation2 + $0x138] sm:$0xff] }
 0x315   : > { %4881 = vmatpush1.bf16.msra.mxu1 %v7838_v48  ;;  %v4624_v48 = vrot.slane %v4546_v6, 7 }
 0x316   : > { %5156 = vmatprep.subr.bf16.mxu1 %v7843_v54  ;;  %v6961_v54 = vld [vmem:[%s8205_s26 + $0x1d0] sm:$0xff] }
 0x317   : > { %v5728_v28 = vpack.c.bf16 %v6962_v25, %v6961_v54  ;;  %v4626_v36 = vsel %vm2331_vm1, %v4624_v48, %v4625_v57  ;;  %v7870_v48 = vld [vmem:[%s10181_s4 + $0x794] ss:$8 sps:$4 sm:$0xff]   ;;  %v7873_v54 = vld [vmem:[%s10181_s4 + $0x7a4] ss:$8 sps:$4 sm:$0xff]  }
 0x318   : > { %4883 = vmatmul.mubr.bf16.vlgmr.msra.gmra.mrb[0].mxu1 %v4649_v34  ;;  %v4545_v34 = vld [vmem:[#allocation2 + $0x180] sm:$0x80] }
 0x319   : > { %4892 = vmatprep.mubr.bf16.mxu1 %v4652_v39  ;;  %5157 = vmatpush1.bf16.msra.mxu1 %v7841_v31  ;;  %v4551_v39 = vld [vmem:[#allocation2 + $0x1c0] sm:$0x7f]  ;;  %v4621_v44 = vrot.slane %v4545_v34, 7  ;;  %v7882_v34 = vld [vmem:[%s10181_s4 + $0x7d4] ss:$8 sps:$4 sm:$0xff]  }
 0x31a   : > { %5158 = vmatprep.subr.bf16.mxu1 %v7846_v60  ;;  %5870 = vmatmul.mubr.bf16.gmra.mrb[36].mxu0 %v5728_v28  ;;  %v4632_v60 = vsel %vm2331_vm1, %v4630_v4, %v4631_v24  ;;  %v7868_v4 = vld [vmem:[%s10181_s4 + $0x790] ss:$8 sps:$4 sm:$0xff]  }
 0x31b   : > { %5879 = vmatprep.mubr.bf16.mxu0 %v8047_v2  ;;  %v4656_v45 = vpack.c.bf16 %v4632_v60, %v4626_v36  ;;  %v4623_v63 = vsel %vm2331_vm1, %v4621_v44, %v4622_v46  ;;  %v7874_v28 = vld [vmem:[%s10181_s4 + $0x7b0] ss:$8 sps:$4 sm:$0xff]   ;;  %v7885_v60 = vld [vmem:[%s10181_s4 + $0x7e4] ss:$8 sps:$4 sm:$0xff]  }
 0x31c   : > { %v7880_v36 = vld [vmem:[%s10181_s4 + $0x7d0] ss:$8 sps:$4 sm:$0xff]  }
 0x31d   : > { %5159 = vmatpush1.bf16.msra.mxu1 %v7844_v12  ;;  %v4628_v12 = vrot.slane %v4551_v39, 7  ;;  %v7886_v39 = vld [vmem:[%s10181_s4 + $0x7f0] ss:$8 sps:$4 sm:$0xff]  }
 0x31e   : > { %5160 = vmatprep.subr.bf16.mxu1 %v7849_v37  ;;  %v7856_v37 = vld [vmem:[%s10181_s4 + $0x750] ss:$8 sps:$4 sm:$0xff]  }
 0x31f   : > { %v4629_v1 = vsel %vm2331_vm1, %v4627_v49, %v4628_v12  ;;  %v4944_v44 = vld [vmem:[#allocation2 + $0xd8] sm:$0xff]  ;;  %v4943_v12 = vld [vmem:[#allocation2 + $0xd0] sm:$0xff] }
 0x320   : > { %4893 = vmatmul.mubr.bf16.gmra.mrb[4].mxu1 %v4651_v8  ;;  %v9722_v23 = vpop.f32.mrb[16].mxu0  ;;  %v4655_v14 = vpack.c.bf16 %v4629_v1, %v4623_v63  ;;  %v4958_v46 = vpack.c.bf16 %v9438_v51, %v4944_v44  ;;  %v7892_v49 = vld [vmem:[%s10181_s4 + $0x810] ss:$8 sps:$4 sm:$0xff]   ;;  %v4957_v51 = vpack.c.bf16 %v9450_v59, %v4943_v12  ;;  %v7903_v59 = vld [vmem:[%s10181_s4 + $0x844] ss:$8 sps:$4 sm:$0xff]  }
 0x321   : > { %4902 = vmatprep.mubr.bf16.mxu1 %v4654_v19  ;;  %5161 = vmatpush1.bf16.msra.mxu1 %v7847_v35  ;;  %v9729_v27 = vpop.f32.mrb[17].mxu0  ;;  %v4940_v35 = vld [vmem:[#allocation2 + $0x78] sm:$0xff]  ;;  %v7867_v19 = vld [vmem:[%s10181_s4 + $0x784] ss:$8 sps:$4 sm:$0xff]  }
 0x322   : > { %5162 = vmatprep.subr.bf16.mxu1 %v7852_v0  ;;  %v9734_v31 = vpop.f32.mrb[18].mxu0  ;;  %5880 = vmatmul.mubr.bf16.gmra.mrb[40].mxu0 %v5729_v13  ;;  %v4956_v42 = vpack.c.bf16 %v9420_v29, %v4940_v35  ;;  %v6966_v0 = vld [vmem:[%s8205_s26 + $0x220] sm:$0xff]  ;;  %v4960_v13 = vpack.c.bf16 %v9456_v5, %v4948_v55  ;;  %v4952_v63 = vld [vmem:[#allocation2 + $0x198] sm:$0xff]  ;;  %v5258_v55 = vld [vmem:[#allocation2 + $0x108] sm:$0xfe] }
 0x323   : > { %v9737_v33 = vpop.f32.mrb[19].mxu0  ;;  %5889 = vmatprep.mubr.bf16.mxu0 %v8047_v2  ;;  %v7862_v2 = vld [vmem:[%s10181_s4 + $0x770] ss:$8 sps:$4 sm:$0xff]   ;;  %v5730_v18 = vpack.c.bf16 %v6966_v0, %v6965_v50  ;;  %v7901_v5 = vld [vmem:[%s10181_s4 + $0x840] ss:$8 sps:$4 sm:$0xff]  }
 0x324   : > { %v5252_v1 = vld [vmem:[#allocation2 + $0xb8] sm:$0x1]  ;;  %v5246_v0 = vld [vmem:[#allocation2 + $0x78] sm:$0xfe]  ;;  %v7939_v44 = vld [vmem:[%s10181_s4 + $0x8c4] ss:$8 sps:$4 sm:$0xff]  }
 0x325   : > { %5163 = vmatpush1.bf16.msra.mxu1 %v7850_v26  ;;  %v5249_v12 = vld [vmem:[#allocation2 + $0xa0] sm:$0xfe] }
 0x326   : > { %5164 = vmatprep.subr.bf16.mxu1 %v7855_v30  ;;  %v7879_v30 = vld [vmem:[%s10181_s4 + $0x7c4] ss:$8 sps:$4 sm:$0xff]  }
 0x328   : > { %4903 = vmatmul.mubr.bf16.gmra.mrb[8].mxu1 %v4653_v43  ;;  %v9749_v52 = vpop.f32.mrb[20].mxu0  ;;  %v7889_v43 = vld [vmem:[%s10181_s4 + $0x800] ss:$8 sps:$4 sm:$0xff]  }
 0x329   : > { %4912 = vmatprep.mubr.bf16.mxu1 %v4656_v45  ;;  %5165 = vmatpush1.bf16.msra.mxu1 %v7853_v41  ;;  %v9756_v40 = vpop.f32.mrb[21].mxu0  ;;  %v4939_v41 = vld [vmem:[#allocation2 + $0x70] sm:$0xff] }
 0x32a   : > { %5166 = vmatprep.subr.bf16.mxu1 %v7858_v11  ;;  %v9761_v61 = vpop.f32.mrb[22].mxu0  ;;  %5890 = vmatmul.mubr.bf16.gmra.mrb[44].mxu0 %v5730_v18  ;;  %v4955_v11 = vpack.c.bf16 %v9432_v47, %v4939_v41  ;;  %v7894_v45 = vld [vmem:[%s10181_s4 + $0x814] ss:$8 sps:$4 sm:$0xff]   ;;  %v7897_v47 = vld [vmem:[%s10181_s4 + $0x824] ss:$8 sps:$4 sm:$0xff]  }
 0x32b   : > { %v9765_v6 = vpop.f32.mrb[23].mxu0  ;;  %v7925_v41 = vld [vmem:[%s10181_s4 + $0x8a0] ss:$8 sps:$4 sm:$0xff]  }
 0x32d   : > { %5167 = vmatpush1.bf16.msra.mxu1 %v7856_v37  ;;  %v7900_v37 = vld [vmem:[%s10181_s4 + $0x834] ss:$8 sps:$4 sm:$0xff]  }
 0x32e   : > { %5168 = vmatprep.subr.bf16.mxu1 %v7861_v58  ;;  %v7898_v58 = vld [vmem:[%s10181_s4 + $0x830] ss:$8 sps:$4 sm:$0xff]  }
 0x330   : > { %4913 = vmatmul.mubr.bf16.gmra.mrb[12].mxu1 %v4655_v14  ;;  %v9775_v8 = vpop.f32.mrb[24].mxu0  ;;  %v5250_v14 = vld [vmem:[#allocation2 + $0xa8] sm:$0xfe] }
 0x331   : > { %5169 = vmatpush1.bf16.msra.mxu1 %v7859_v21  ;;  %5188 = vmatprep.mubr.bf16.mxu1 %v4956_v42  ;;  %v9782_v17 = vpop.f32.mrb[25].mxu0  ;;  %v4947_v21 = vld [vmem:[#allocation2 + $0x130] sm:$0xff]  ;;  %v7982_v42 = vld [vmem:[#allocation2] sm:$0xff]  ;;  %v5318_v18 = vrot.slane %v5250_v14, 1  ;;  %v5330_v14 = vrot.slane %v5258_v55, 1 }
 0x332   : > { %5170 = vmatprep.subr.bf16.mxu1 %v7864_v15  ;;  %v9787_v29 = vpop.f32.mrb[26].mxu0  ;;  %v4959_v35 = vpack.c.bf16 %v9469_v22, %v4947_v21  ;;  %v7906_v15 = vld [vmem:[%s10181_s4 + $0x854] ss:$8 sps:$4 sm:$0xff]   ;;  %v4962_v50 = vpack.c.bf16 %v7982_v42, %v4952_v63  ;;  %v7909_v22 = vld [vmem:[%s10181_s4 + $0x864] ss:$8 sps:$4 sm:$0xff]   ;;  %v5315_v63 = vrot.slane %v5249_v12, 1 }
 0x333   : > { %v9789_v56 = vpop.f32.mrb[27].mxu0  ;;  %v5254_v21 = vld [vmem:[#allocation2 + $0xd8] sm:$0xfe]  ;;  %v5276_v55 = vld [vmem:[#allocation2 + $0x1d8] sm:$0x1] }
 0x335   : > { %5171 = vmatpush1.bf16.msra.mxu1 %v7862_v2  ;;  %v5248_v2 = vld [vmem:[#allocation2 + $0x88] sm:$0x1] }
 0x336   : > { %5172 = vmatprep.subr.bf16.mxu1 %v7867_v19  ;;  %v5319_v19 = vrot.slane %v5252_v1, 1 }
 0x338   : > { %v9797_v57 = vpop.f32.mrb[28].mxu0 }
 0x339   : > { %5173 = vmatpush1.bf16.msra.mxu1 %v7865_v10  ;;  %v9802_v24 = vpop.f32.mrb[29].mxu0  ;;  %v7904_v10 = vld [vmem:[%s10181_s4 + $0x850] ss:$8 sps:$4 sm:$0xff]  }
 0x33a   : > { %5174 = vmatprep.subr.bf16.mxu1 %v7870_v48  ;;  %v9807_v25 = vpop.f32.mrb[30].mxu0  ;;  %v5312_v48 = vrot.slane %v5246_v0, 1  ;;  %v5324_v0 = vrot.slane %v5254_v21, 1 }
 0x33b   : > { %v9809_v26 = vpop.f32.mrb[31].mxu0 }
 0x33d   : > { %5175 = vmatpush1.bf16.msra.mxu1 %v7868_v4  ;;  %v5313_v4 = vrot.slane %v5248_v2, 1 }
 0x33e   : > { %5176 = vmatprep.subr.bf16.mxu1 %v7873_v54  ;;  %v4951_v54 = vld [vmem:[#allocation2 + $0x190] sm:$0xff] }
 0x341   : > { %5177 = vmatpush1.bf16.msra.mxu1 %v7871_v62  ;;  %v5320_v62 = vsel %vm3023_vm0, %v5318_v18, %v5319_v19 }
 0x342   : > { %5178 = vmatprep.subr.bf16.mxu1 %v7876_v16  ;;  %v7907_v16 = vld [vmem:[%s10181_s4 + $0x860] ss:$8 sps:$4 sm:$0xff]  }
 0x345   : > { %5179 = vmatpush1.bf16.msra.mxu1 %v7874_v28  ;;  %v4961_v28 = vpack.c.bf16 %v7982_v42, %v4951_v54  ;;  %v5268_v54 = vld [vmem:[#allocation2 + $0x178] sm:$0x1] }
 0x346   : > { %5180 = vmatprep.subr.bf16.mxu1 %v7879_v30  ;;  %v5314_v30 = vsel %vm3023_vm0, %v5312_v48, %v5313_v4  ;;  %v5266_v4 = vld [vmem:[#allocation2 + $0x168] sm:$0xfe] }
 0x349   : > { %5181 = vmatpush1.bf16.msra.mxu1 %v7877_v32  ;;  %v7912_v32 = vld [vmem:[%s10181_s4 + $0x874] ss:$8 sps:$4 sm:$0xff]  }
 0x34a   : > { %5182 = vmatprep.subr.bf16.mxu1 %v7882_v34  ;;  %v5374_v34 = vpack.c.bf16 %v5320_v62, %v5314_v30  ;;  %v5255_v30 = vld [vmem:[#allocation2 + $0xe0] sm:$0x1] }
 0x34d   : > { %5183 = vmatpush1.bf16.msra.mxu1 %v7880_v36  ;;  %v7910_v36 = vld [vmem:[%s10181_s4 + $0x870] ss:$8 sps:$4 sm:$0xff]  }
 0x34e   : > { %5184 = vmatprep.subr.bf16.mxu1 %v7885_v60  ;;  %v7915_v60 = vld [vmem:[%s10181_s4 + $0x884] ss:$8 sps:$4 sm:$0xff]  }
 0x351   : > { %5185 = vmatpush1.bf16.msra.mxu1 %v7883_v38  ;;  %v7913_v38 = vld [vmem:[%s10181_s4 + $0x880] ss:$8 sps:$4 sm:$0xff]  }
 0x352   : > { %5186 = vmatprep.subr.bf16.mxu1 %v7888_v20  ;;  %v7921_v20 = vld [vmem:[%s10181_s4 + $0x894] ss:$8 sps:$4 sm:$0xff]  }
 0x355   : > { %5187 = vmatpush1.bf16.msra.mxu1 %v7886_v39  ;;  %v7919_v39 = vld [vmem:[%s10181_s4 + $0x890] ss:$8 sps:$4 sm:$0xff]  }
 0x356   : > { %5574 = vmatprep.subr.bf16.mxu1 %v7891_v3  ;;  %v7927_v3 = vld [vmem:[%s10181_s4 + $0x8a4] ss:$8 sps:$4 sm:$0xff]  }
 0x358   : > { %5189 = vmatmul.mubr.bf16.vlgmr.msra.gmra.mrb[0].mxu1 %v4955_v11  ;;  %v7931_v11 = vld [vmem:[%s10181_s4 + $0x8b0] ss:$8 sps:$4 sm:$0xff]  }
 0x359   : > { %5198 = vmatprep.mubr.bf16.mxu1 %v4958_v46  ;;  %5575 = vmatpush1.bf16.msra.mxu1 %v7889_v43  ;;  %v7933_v43 = vld [vmem:[%s10181_s4 + $0x8b4] ss:$8 sps:$4 sm:$0xff]  }
 0x35a   : > { %5576 = vmatprep.subr.bf16.mxu1 %v7894_v45  ;;  %v7937_v45 = vld [vmem:[%s10181_s4 + $0x8c0] ss:$8 sps:$4 sm:$0xff]   ;;  %v7945_v46 = vld [vmem:[%s10181_s4 + $0x8d4] ss:$8 sps:$4 sm:$0xff]  }
 0x35d   : > { %5577 = vmatpush1.bf16.msra.mxu1 %v7892_v49  ;;  %v7943_v49 = vld [vmem:[%s10181_s4 + $0x8d0] ss:$8 sps:$4 sm:$0xff]  }
 0x35e   : > { %5578 = vmatprep.subr.bf16.mxu1 %v7897_v47  ;;  %v7951_v47 = vld [vmem:[%s10181_s4 + $0x8e4] ss:$8 sps:$4 sm:$0xff]  }
 0x360   : > { %5199 = vmatmul.mubr.bf16.gmra.mrb[4].mxu1 %v4957_v51  ;;  %v7949_v51 = vld [vmem:[%s10181_s4 + $0x8e0] ss:$8 sps:$4 sm:$0xff]  }
 0x361   : > { %5208 = vmatprep.mubr.bf16.mxu1 %v4960_v13  ;;  %5579 = vmatpush1.bf16.msra.mxu1 %v7895_v53  ;;  %v5251_v53 = vld [vmem:[#allocation2 + $0xb0] sm:$0x1]  ;;  %v7957_v13 = vld [vmem:[%s10181_s4 + $0x8f4] ss:$8 sps:$4 sm:$0xff]  }
 0x362   : > { %5580 = vmatprep.subr.bf16.mxu1 %v7900_v37  ;;  %v5260_v37 = vld [vmem:[#allocation2 + $0x118] sm:$0x1]  ;;  %v5316_v1 = vrot.slane %v5251_v53, 1  ;;  %v5270_v53 = vld [vmem:[#allocation2 + $0x198] sm:$0xfe] }
 0x364   : > { %v5317_v18 = vsel %vm3023_vm0, %v5315_v63, %v5316_v1 }
 0x365   : > { %5581 = vmatpush1.bf16.msra.mxu1 %v7898_v58  ;;  %v5245_v58 = vld [vmem:[#allocation2 + $0x70] sm:$0xfe] }
 0x366   : > { %5582 = vmatprep.subr.bf16.mxu1 %v7903_v59  ;;  %v5247_v59 = vld [vmem:[#allocation2 + $0x80] sm:$0x1]  ;;  %v5309_v42 = vrot.slane %v5245_v58, 1  ;;  %v5261_v58 = vld [vmem:[#allocation2 + $0x130] sm:$0xfe] }
 0x368   : > { %5209 = vmatmul.mubr.bf16.gmra.mrb[8].mxu1 %v4959_v35  ;;  %v5331_v35 = vrot.slane %v5260_v37, 1 }
 0x369   : > { %5218 = vmatprep.mubr.bf16.mxu1 %v4962_v50  ;;  %5583 = vmatpush1.bf16.msra.mxu1 %v7901_v5  ;;  %v5256_v5 = vld [vmem:[#allocation2 + $0xe8] sm:$0x1]  ;;  %v5310_v50 = vrot.slane %v5247_v59, 1  ;;  %v5263_v59 = vld [vmem:[#allocation2 + $0x140] sm:$0x1] }
 0x36a   : > { %5584 = vmatprep.subr.bf16.mxu1 %v7906_v15  ;;  %v7955_v15 = vld [vmem:[%s10181_s4 + $0x8f0] ss:$8 sps:$4 sm:$0xff]   ;;  %v5325_v2 = vrot.slane %v5256_v5, 1  ;;  %v5332_v19 = vsel %vm3023_vm0, %v5330_v14, %v5331_v35  ;;  %v5348_v5 = vrot.slane %v5270_v53, 1 }
 0x36b   : > { %v5311_v48 = vsel %vm3023_vm0, %v5309_v42, %v5310_v50  ;;  %v5333_v42 = vrot.slane %v5261_v58, 1  ;;  %v5334_v50 = vrot.slane %v5263_v59, 1  ;;  %v5663_v58 = vld [vmem:[%s10182_s5] sm:$0x3] }
 0x36c   : > { %v5373_v62 = vpack.c.bf16 %v5317_v18, %v5311_v48  ;;  %v5275_v48 = vld [vmem:[#allocation2 + $0x1d0] sm:$0x1]  ;;  %v5928_v59 = vld [vmem:[%s10186_s9] sm:$0x3] }
 0x36d   : > { %5585 = vmatpush1.bf16.msra.mxu1 %v7904_v10  ;;  %v5257_v10 = vld [vmem:[#allocation2 + $0x100] sm:$0xfe] }
 0x36e   : > { %5586 = vmatprep.subr.bf16.mxu1 %v7909_v22  ;;  %v5259_v22 = vld [vmem:[#allocation2 + $0x110] sm:$0x1] }
 0x370   : > { %5219 = vmatmul.mubr.bf16.gmra.mrb[12].mxu1 %v4961_v28  ;;  %v5253_v28 = vld [vmem:[#allocation2 + $0xd0] sm:$0xfe] }
 0x371   : > { %5587 = vmatpush1.bf16.msra.mxu1 %v7907_v16  ;;  %5606 = vmatprep.mubr.bf16.mxu1 %v5374_v34  ;;  %v5326_v16 = vsel %vm3023_vm0, %v5324_v0, %v5325_v2  ;;  %v5327_v34 = vrot.slane %v5257_v10, 1  ;;  %v5271_v2 = vld [vmem:[#allocation2 + $0x1a0] sm:$0x1]  ;;  %v5269_v10 = vld [vmem:[#allocation2 + $0x190] sm:$0xfe] }
 0x372   : > { %5588 = vmatprep.subr.bf16.mxu1 %v7912_v32  ;;  %v5376_v32 = vpack.c.bf16 %v5332_v19, %v5326_v16 }
 0x375   : > { %5589 = vmatpush1.bf16.msra.mxu1 %v7910_v36  ;;  %v5328_v36 = vrot.slane %v5259_v22, 1  ;;  %v5273_v22 = vld [vmem:[#allocation2 + $0x1c0] sm:$0xfe] }
 0x376   : > { %5590 = vmatprep.subr.bf16.mxu1 %v7915_v60  ;;  %v5262_v60 = vld [vmem:[#allocation2 + $0x138] sm:$0xfe] }
 0x379   : > { %5591 = vmatpush1.bf16.msra.mxu1 %v7913_v38  ;;  %v5264_v38 = vld [vmem:[#allocation2 + $0x148] sm:$0x1] }
 0x37a   : > { %5592 = vmatprep.subr.bf16.mxu1 %v7921_v20  ;;  %v5342_v20 = vrot.slane %v5266_v4, 1  ;;  %v5335_v4 = vsel %vm3023_vm0, %v5333_v42, %v5334_v50  ;;  %v10009_v50 = vrot.slane %v5928_v59, %v8948_v9 }
 0x37d   : > { %5593 = vmatpush1.bf16.msra.mxu1 %v7919_v39  ;;  %v5343_v39 = vrot.slane %v5268_v54, 1 }
 0x37e   : > { %5594 = vmatprep.subr.bf16.mxu1 %v7927_v3  ;;  %v5321_v3 = vrot.slane %v5253_v28, 1  ;;  %v5345_v28 = vrot.slane %v5269_v10, 1 }
 0x381   : > { %5595 = vmatpush1.bf16.msra.mxu1 %v7925_v41  ;;  %v5322_v41 = vrot.slane %v5255_v30, 1  ;;  %v5351_v30 = vrot.slane %v5273_v22, 1 }
 0x382   : > { %5596 = vmatprep.subr.bf16.mxu1 %v7933_v43  ;;  %v5336_v43 = vrot.slane %v5262_v60, 1 }
 0x383   : > { %v5323_v12 = vsel %vm3023_vm0, %v5321_v3, %v5322_v41 }
 0x385   : > { %5597 = vmatpush1.bf16.msra.mxu1 %v7931_v11  ;;  %v5337_v11 = vrot.slane %v5264_v38, 1 }
 0x386   : > { %5598 = vmatprep.subr.bf16.mxu1 %v7939_v44  ;;  %v5329_v44 = vsel %vm3023_vm0, %v5327_v34, %v5328_v36 }
 0x387   : > { %v5375_v37 = vpack.c.bf16 %v5329_v44, %v5323_v12 }
 0x389   : > { %5599 = vmatpush1.bf16.msra.mxu1 %v7937_v45  ;;  %v5344_v45 = vsel %vm3023_vm0, %v5342_v20, %v5343_v39 }
 0x38a   : > { %5600 = vmatprep.subr.bf16.mxu1 %v7945_v46  ;;  %v5265_v46 = vld [vmem:[#allocation2 + $0x160] sm:$0xfe] }
 0x38b   : > { %v5339_v1 = vrot.slane %v5265_v46, 1 }
 0x38d   : > { %5601 = vmatpush1.bf16.msra.mxu1 %v7943_v49  ;;  %v5267_v49 = vld [vmem:[#allocation2 + $0x170] sm:$0x1] }
 0x38e   : > { %5602 = vmatprep.subr.bf16.mxu1 %v7951_v47  ;;  %v5272_v47 = vld [vmem:[#allocation2 + $0x1a8] sm:$0x1]  ;;  %v5340_v21 = vrot.slane %v5267_v49, 1 }
 0x38f   : > { %v5349_v14 = vrot.slane %v5272_v47, 1 }
 0x390   : > { %v5341_v0 = vsel %vm3023_vm0, %v5339_v1, %v5340_v21  ;;  %v5691_v1 = vld [vmem:[%s10183_s6] sm:$0x3]  ;;  %v9998_v21 = vrot.slane %v5663_v58, %v8943_v7 }
 0x391   : > { %5603 = vmatpush1.bf16.msra.mxu1 %v7949_v51  ;;  %v5274_v51 = vld [vmem:[#allocation2 + $0x1c8] sm:$0xfe]  ;;  %v5350_v18 = vsel %vm3023_vm0, %v5348_v5, %v5349_v14  ;;  %v5377_v54 = vpack.c.bf16 %v5341_v0, %v5335_v4  ;;  %v10002_v14 = vrot.slane %v5928_v59, %v8943_v7  ;;  %v10018_v10 = vrot.slane %v5691_v1, %v8948_v9 }
 0x392   : > { %5604 = vmatprep.subr.bf16.mxu1 %v7957_v13  ;;  %v5338_v13 = vsel %vm3023_vm0, %v5336_v43, %v5337_v11  ;;  %v5354_v35 = vrot.slane %v5274_v51, 1 }
 0x393   : > { %v5378_v63 = vpack.c.bf16 %v5344_v45, %v5338_v13 }
 0x395   : > { %5605 = vmatpush1.bf16.msra.mxu1 %v7955_v15  ;;  %v5355_v15 = vrot.slane %v5276_v55, 1 }
 0x397   : > { %v5356_v19 = vsel %vm3023_vm0, %v5354_v35, %v5355_v15  ;;  %v10005_v15 = vrot.slane %v5663_v58, %v8948_v9 }
 0x398   : > { %5607 = vmatmul.mubr.bf16.vlgmr.msra.gmra.mrb[0].mxu1 %v5373_v62  ;;  %v5346_v62 = vrot.slane %v5271_v2, 1  ;;  %v5380_v16 = vpack.c.bf16 %v5356_v19, %v5350_v18  ;;  %v10013_v2 = vrot.slane %v5691_v1, %v8943_v7 }
 0x399   : > { %5616 = vmatprep.mubr.bf16.mxu1 %v5376_v32  ;;  %v5352_v32 = vrot.slane %v5275_v48, 1 }
 0x39a   : > { %v5347_v34 = vsel %vm3023_vm0, %v5345_v28, %v5346_v62 }
 0x39b   : > { %v5353_v36 = vsel %vm3023_vm0, %v5351_v30, %v5352_v32 }
 0x39c   : > { %v5379_v60 = vpack.c.bf16 %v5353_v36, %v5347_v34 }
 0x3a0   : > { %5617 = vmatmul.mubr.bf16.gmra.mrb[4].mxu1 %v5375_v37  ;;  %v5900_v37 = vld [vmem:[%s10185_s8] sm:$0x3] }
 0x3a1   : > { %5626 = vmatprep.mubr.bf16.mxu1 %v5378_v63  ;;  %v9983_v13 = vrot.slane %v5900_v37, %v8943_v7  ;;  %v9992_v63 = vrot.slane %v5900_v37, %v8948_v9 }
 0x3a8   : > { %5627 = vmatmul.mubr.bf16.gmra.mrb[8].mxu1 %v5377_v54 }
 0x3a9   : > { %5636 = vmatprep.mubr.bf16.mxu1 %v5380_v16 }
 0x3b0   : > { %5637 = vmatmul.mubr.bf16.gmra.mrb[12].mxu1 %v5379_v60 }
 0x3dc   : > { %v5861_v38 = vpop.f32.mrb[32].mxu0 }
 0x3dd   : > { %v5863_v20 = vpop.f32.mrb[33].mxu0  ;;  %v5912_v5 = vmul.f32 %v9983_v13, %v5861_v38 }
 0x3de   : > { %v5865_v39 = vpop.f32.mrb[34].mxu0  ;;  %v5913_v42 = vmul.f32 %v9992_v63, %v5863_v20 }
 0x3df   : > { %v5867_v3 = vpop.f32.mrb[35].mxu0  ;;  %v5940_v4 = vadd.f32 %v10002_v14, %v5912_v5 }
 0x3e0   : > { %v5941_v16 = vadd.f32 %v10009_v50, %v5913_v42 }
 0x3ed   : > { %v5871_v41 = vpop.f32.mrb[36].mxu0 }
 0x3ee   : > { %v5873_v43 = vpop.f32.mrb[37].mxu0  ;;  %v5916_v32 = vmul.f32 %v9983_v13, %v5871_v41 }
 0x3ef   : > { %v5875_v11 = vpop.f32.mrb[38].mxu0 }
 0x3f0   : > { %v9961_v44 = vpop.f32.mrb[39].mxu0  ;;  %v5944_v1 = vadd.f32 %v10002_v14, %v5916_v32 }
 0x3f5   : > { %v9963_v45 = vpop.f32.mrb[40].mxu0 }
 0x3f6   : > { %v9965_v46 = vpop.f32.mrb[41].mxu0 }
 0x3f7   : > { %v9967_v49 = vpop.f32.mrb[42].mxu0 }
 0x3f8   : > { %v9969_v47 = vpop.f32.mrb[43].mxu0 }
 0x3fd   : > { %v9971_v12 = vpop.f32.mrb[44].mxu0 }
 0x3fe   : > { %v9973_v53 = vpop.f32.mrb[45].mxu0 }
 0x3ff   : > { %v9975_v51 = vpop.f32.mrb[46].mxu0 }
 0x400   : > { %v9977_v55 = vpop.f32.mrb[47].mxu0 }
 0x46b   : > { %v5608_v35 = vpop.f32.mrb[0].mxu1 }
 0x46c   : > { %v6989_v0 = vadd.f32 %v5608_v35, %v9722_v23  ;;  %v5610_v18 = vpop.f32.mrb[1].mxu1  ;;  %v5914_v23 = vmul.f32 %v9983_v13, %v5865_v39 }
 0x46d   : > { %v6990_v19 = vadd.f32 %v5610_v18, %v9729_v27  ;;  %v5612_v22 = vpop.f32.mrb[2].mxu1  ;;  %v5915_v27 = vmul.f32 %v9992_v63, %v5867_v3 }
 0x46e   : > { %v5675_v48 = vmul.f32 %v6989_v0, %v9998_v21  ;;  %v6991_v54 = vadd.f32 %v5612_v22, %v9734_v31  ;;  %v5614_v62 = vpop.f32.mrb[3].mxu1  ;;  %v5942_v38 = vadd.f32 %v10002_v14, %v5914_v23  ;;  %v5919_v23 = vmul.f32 %v9992_v63, %v9961_v44 }
 0x46f   : > { %v5676_v7 = vmul.f32 %v6990_v19, %v10005_v15  ;;  %v6992_v28 = vadd.f32 %v5614_v62, %v9737_v33  ;;  %v5917_v33 = vmul.f32 %v9992_v63, %v5873_v43  ;;  %v5943_v3 = vadd.f32 %v10009_v50, %v5915_v27 }
 0x470   : > { %v5703_v9 = vadd.f32 %v10013_v2, %v5675_v48  ;;  %v5677_v30 = vmul.f32 %v6991_v54, %v9998_v21  ;;  %v5918_v43 = vmul.f32 %v9983_v13, %v5875_v11  ;;  %v5921_v44 = vmul.f32 %v9992_v63, %v9965_v46 }
 0x471   : > { %v5704_v31 = vadd.f32 %v10018_v10, %v5676_v7  ;;  %v5678_v34 = vmul.f32 %v6992_v28, %v10005_v15  ;;  %v5945_v22 = vadd.f32 %v10009_v50, %v5917_v33 }
 0x472   : > { %v5956_v36 = vadd.f32 %v5940_v4, %v5703_v9  ;;  %v5705_v60 = vadd.f32 %v10013_v2, %v5677_v30 }
 0x473   : > { %v5957_v20 = vadd.f32 %v5941_v16, %v5704_v31  ;;  %v5706_v39 = vadd.f32 %v10018_v10, %v5678_v34  ;;  %v5618_v37 = vpop.f32.mrb[4].mxu1  ;;  %v5920_v16 = vmul.f32 %v9983_v13, %v9963_v45  ;;  %v5947_v31 = vadd.f32 %v10009_v50, %v5919_v23 }
 0x474   : > { %v5972_v58 = vmax.f32 %v5956_v36, 0.0  ;;  %v5958_v59 = vadd.f32 %v5942_v38, %v5705_v60  ;;  %v6993_v41 = vadd.f32 %v5618_v37, %v9749_v52  ;;  %v5620_v5 = vpop.f32.mrb[5].mxu1  ;;  %v5922_v37 = vmul.f32 %v9983_v13, %v9967_v49 }
 0x475   : > { %v5973_v35 = vmax.f32 %v5957_v20, 0.0  ;;  %v5959_v42 = vadd.f32 %v5943_v3, %v5706_v39  ;;  %v6994_v0 = vadd.f32 %v5620_v5, %v9756_v40  ;;  %v5622_v18 = vpop.f32.mrb[6].mxu1  ;;  %v5948_v38 = vadd.f32 %v10002_v14, %v5920_v16 }
 0x476   : > { %5988 = vst [vmem:[%s10044_s29] sm:$0xff] %v5972_v58  ;;  %v5974_v19 = vmax.f32 %v5958_v59, 0.0  ;;  %v5679_v52 = vmul.f32 %v6993_v41, %v9998_v21  ;;  %v6995_v48 = vadd.f32 %v5622_v18, %v9761_v61  ;;  %v5624_v4 = vpop.f32.mrb[7].mxu1  ;;  %v5949_v41 = vadd.f32 %v10009_v50, %v5921_v44 }
 0x477   : > { %5989 = vst [vmem:[%s10044_s29 + $0x8] sm:$0xff] %v5973_v35  ;;  %v5975_v40 = vmax.f32 %v5959_v42, 0.0  ;;  %v5680_v54 = vmul.f32 %v6994_v0, %v10005_v15  ;;  %v6996_v11 = vadd.f32 %v5624_v4, %v9765_v6  ;;  %v5946_v6 = vadd.f32 %v10002_v14, %v5918_v43 }
 0x478   : > { %5990 = vst [vmem:[%s10044_s29 + $0x10] sm:$0xff] %v5974_v19  ;;  %v5707_v62 = vadd.f32 %v10013_v2, %v5679_v52  ;;  %v5681_v7 = vmul.f32 %v6995_v48, %v9998_v21  ;;  %v5923_v42 = vmul.f32 %v9992_v63, %v9969_v47  ;;  %v5924_v18 = vmul.f32 %v9983_v13, %v9971_v12 }
 0x479   : > { %5991 = vst [vmem:[%s10044_s29 + $0x18] sm:$0xff] %v5975_v40  ;;  %v5708_v61 = vadd.f32 %v10018_v10, %v5680_v54  ;;  %v5682_v28 = vmul.f32 %v6996_v11, %v10005_v15  ;;  %v5925_v47 = vmul.f32 %v9992_v63, %v9973_v53 }
 0x47a   : > { %v5960_v27 = vadd.f32 %v5944_v1, %v5707_v62  ;;  %v5709_v9 = vadd.f32 %v10013_v2, %v5681_v7  ;;  %v5951_v4 = vadd.f32 %v10009_v50, %v5923_v42  ;;  %v5952_v23 = vadd.f32 %v10002_v14, %v5924_v18 }
 0x47b   : > { %v5961_v30 = vadd.f32 %v5945_v22, %v5708_v61  ;;  %v5710_v32 = vadd.f32 %v10018_v10, %v5682_v28  ;;  %v5628_v45 = vpop.f32.mrb[8].mxu1  ;;  %v5926_v28 = vmul.f32 %v9983_v13, %v9975_v51  ;;  %v5927_v51 = vmul.f32 %v9992_v63, %v9977_v55 }
 0x47c   : > { %v5976_v34 = vmax.f32 %v5960_v27, 0.0  ;;  %v5962_v36 = vadd.f32 %v5946_v6, %v5709_v9  ;;  %v6997_v60 = vadd.f32 %v5628_v45, %v9775_v8  ;;  %v5630_v33 = vpop.f32.mrb[9].mxu1  ;;  %v5953_v6 = vadd.f32 %v10009_v50, %v5925_v47 }
 0x47d   : > { %v5977_v20 = vmax.f32 %v5961_v30, 0.0  ;;  %v5963_v39 = vadd.f32 %v5947_v31, %v5710_v32  ;;  %v6998_v3 = vadd.f32 %v5630_v33, %v9782_v17  ;;  %v5632_v46 = vpop.f32.mrb[10].mxu1  ;;  %v5955_v63 = vadd.f32 %v10009_v50, %v5927_v51 }
 0x47e   : > { %5992 = vst [vmem:[%s10044_s29 + $0x20] sm:$0xff] %v5976_v34  ;;  %v5978_v58 = vmax.f32 %v5962_v36, 0.0  ;;  %v5683_v59 = vmul.f32 %v6997_v60, %v9998_v21  ;;  %v6999_v8 = vadd.f32 %v5632_v46, %v9787_v29  ;;  %v5634_v1 = vpop.f32.mrb[11].mxu1 }
 0x47f   : > { %5993 = vst [vmem:[%s10044_s29 + $0x28] sm:$0xff] %v5977_v20  ;;  %v5979_v5 = vmax.f32 %v5963_v39, 0.0  ;;  %v5684_v35 = vmul.f32 %v6998_v3, %v10005_v15  ;;  %v7000_v17 = vadd.f32 %v5634_v1, %v9789_v56  ;;  %v5950_v56 = vadd.f32 %v10002_v14, %v5922_v37 }
 0x480   : > { %5994 = vst [vmem:[%s10044_s29 + $0x30] sm:$0xff] %v5978_v58  ;;  %v5711_v49 = vadd.f32 %v10013_v2, %v5683_v59  ;;  %v5685_v0 = vmul.f32 %v6999_v8, %v9998_v21 }
 0x481   : > { %5995 = vst [vmem:[%s10044_s29 + $0x38] sm:$0xff] %v5979_v5  ;;  %v5712_v29 = vadd.f32 %v10018_v10, %v5684_v35  ;;  %v5686_v43 = vmul.f32 %v7000_v17, %v10005_v15 }
 0x482   : > { %v5964_v19 = vadd.f32 %v5948_v38, %v5711_v49  ;;  %v5713_v52 = vadd.f32 %v10013_v2, %v5685_v0 }
 0x483   : > { %v5965_v22 = vadd.f32 %v5949_v41, %v5712_v29  ;;  %v5714_v48 = vadd.f32 %v10018_v10, %v5686_v43  ;;  %v5638_v12 = vpop.f32.mrb[12].mxu1 }
 0x484   : > { %v5980_v40 = vmax.f32 %v5964_v19, 0.0  ;;  %v5966_v54 = vadd.f32 %v5950_v56, %v5713_v52  ;;  %v7001_v11 = vadd.f32 %v5638_v12, %v9797_v57  ;;  %v5640_v62 = vpop.f32.mrb[13].mxu1 }
 0x485   : > { %v5981_v7 = vmax.f32 %v5965_v22, 0.0  ;;  %v5967_v16 = vadd.f32 %v5951_v4, %v5714_v48  ;;  %v7002_v61 = vadd.f32 %v5640_v62, %v9802_v24  ;;  %v5642_v53 = vpop.f32.mrb[14].mxu1 }
 0x486   : > { %5996 = vst [vmem:[%s10044_s29 + $0x40] sm:$0xff] %v5980_v40  ;;  %v5982_v27 = vmax.f32 %v5966_v54, 0.0  ;;  %v5687_v9 = vmul.f32 %v7001_v11, %v9998_v21  ;;  %v7003_v57 = vadd.f32 %v5642_v53, %v9807_v25  ;;  %v5644_v44 = vpop.f32.mrb[15].mxu1 }
 0x487   : > { %5997 = vst [vmem:[%s10044_s29 + $0x48] sm:$0xff] %v5981_v7  ;;  %v5983_v30 = vmax.f32 %v5967_v16, 0.0  ;;  %v5688_v32 = vmul.f32 %v7002_v61, %v10005_v15  ;;  %v7004_v24 = vadd.f32 %v5644_v44, %v9809_v26  ;;  %v5954_v26 = vadd.f32 %v10002_v14, %v5926_v28 }
 0x488   : > { %5998 = vst [vmem:[%s10044_s29 + $0x50] sm:$0xff] %v5982_v27  ;;  %v5715_v13 = vadd.f32 %v10013_v2, %v5687_v9  ;;  %v5689_v31 = vmul.f32 %v7003_v57, %v9998_v21 }
 0x489   : > { %5999 = vst [vmem:[%s10044_s29 + $0x58] sm:$0xff] %v5983_v30  ;;  %v5716_v25 = vadd.f32 %v10018_v10, %v5688_v32  ;;  %v5690_v45 = vmul.f32 %v7004_v24, %v10005_v15 }
 0x48a   : > { %v5968_v34 = vadd.f32 %v5952_v23, %v5715_v13  ;;  %v5717_v36 = vadd.f32 %v10013_v2, %v5689_v31 }
 0x48b   : > { %v5969_v60 = vadd.f32 %v5953_v6, %v5716_v25  ;;  %v5718_v55 = vadd.f32 %v10018_v10, %v5690_v45 }
 0x48c   : > { %v5984_v21 = vmax.f32 %v5968_v34, 0.0  ;;  %v5970_v38 = vadd.f32 %v5954_v26, %v5717_v36 }
 0x48d   : > { %v5985_v15 = vmax.f32 %v5969_v60, 0.0  ;;  %v5971_v33 = vadd.f32 %v5955_v63, %v5718_v55 }
 0x48e   : > { %6000 = vst [vmem:[%s10044_s29 + $0x60] sm:$0xff] %v5984_v21  ;;  %v5986_v20 = vmax.f32 %v5970_v38, 0.0 }
 0x48f   : > { %6001 = vst [vmem:[%s10044_s29 + $0x68] sm:$0xff] %v5985_v15  ;;  %v5987_v14 = vmax.f32 %v5971_v33, 0.0 }
 0x490   : > { %6002 = vst [vmem:[%s10044_s29 + $0x70] sm:$0xff] %v5986_v20 }
 0x491   : > { %6003 = vst [vmem:[%s10044_s29 + $0x78] sm:$0xff] %v5987_v14 }
 0x492   : > { %7996 = shalt.err (!%p7993_p3)
}
 0x493   : > { %s7997_s28 = scalar_lea.hbm %s10127_s12, 2048  ;;  %s8001_s30 = scalar_lea.hbm %s10187_s10, 4096 }
 0x494   : > { %p7998_p4 = scmp.ne.s32.totalorder %s10127_s12, %s7997_s28  ;;  %p8002_p9 = scmp.lt.u32.totalorder %s10127_s12, %s10187_s10 }
 0x495   : > { %p8003_p10 = scmp.lt.u32.totalorder %s8001_s30, %s7997_s28  ;;  %p8005_p12 = scmp.lt.u32.totalorder %s7997_s28, %s10127_s12 }
 0x496   : > { %p7999_p7 = pnand %p7998_p4, %p8145_p5 }
 0x497   : > { %p8004_p11 = por %p8003_p10, %p8002_p9 }
 0x498   : > { %p8000_p8 = pneg %p7999_p7 }
 0x499   : > { %p8006_p13 = por %p8005_p12, %p8004_p11 }
 0x49b   : > { %p8007_p0 = pnand %p8006_p13, %p8000_p8 }
 0x49d   : > { %8010 = shalt.err (!%p8007_p0)
}
 0x49e   : > { %s8050_s18 = smov 256   ;;  %s8051_s20 = smov 16  }
 0x49f   : > { %7246 = dma.vmem_to_hbm [thread:$0]  (%p8145_p5), %s10129_s22, 2048, %s10127_s12, %s10136_s17, %s8050_s18, %s8050_s18, %s8051_s20  }
 0x4a0 PF: > { %p7252_p1 = scmp.ge.s32.totalorder %s8045_s16, 2  ;;  %s6033_s21 = sand.u32 1, %s8033_s13  }
 0x4a1   : > { %s6034_s25 = scalar_lea.sflag [#allocation4], %s6033_s21 }
 0x4a2   : > { %p7249_p2 = pnand %p7252_p1, %p8149_p6 }
 0x4a4   : > { %8028 = dma.done.wait (!%p7249_p2), %s6034_s25, 2048  }
 0x4a5   : > { %8030 = vsyncadd (!%p7249_p2), %s6034_s25, 4294965248  ;;  %s10191_s28 = sld [smem:[#allocation6_spill]]  ;;  %p20_p3 = scmp.ge.s32.totalorder %s8132_s19, 4  }
 0x4a6   : > { %s10192_s13 = smov %s8037_s14  ;;  %s10193_s14 = smov %s8041_s15 }
 0x4a7   : > { %s10195_s16 = smov %s8132_s19  ;;  %22 = sbr.rel (!%p20_p3) target bundleno = 3 (0x3), region = 118 }
 0x4ab   : > { %s10194_s15 = smov %s10191_s28 }
 0x4ae   :  { %6039 = vsyncpa [#allocation4], 1 }
 0x4af   :  { %6041 = vsyncpa [#allocation4 + $0x1], 1 }

</bundles_post_ra>
